<compile_context>
chip_gen: v7x
topology: tpu7x:2x2x1
jax: 0.10.0
libtpu: 0.0.40
codegen_flags: <defaults>
</compile_context>

<pallas_src>
import jax
import jax.numpy as jnp
from jax.experimental import pallas as pl
from jax.experimental.pallas import tpu as pltpu

H, W = 45, 6                 # conv3 kernel == full spatial extent -> 1x1 output map
P = H * W                    # 270 spatial positions
P_PAD = 384                  # ceil(270/128)*128 : lane-aligned per-channel width
C1, C2, C3 = 4, 16, 256
K_PAD = C2 * P_PAD           # 6144 : conv3 contraction length (lane-aligned slab)
NUM_CLASSES = 19
OUT_PAD = 128                # lane-dense fc3 output width (sliced to 19 outside)
BN_EPS = 1e-5


def _relu6(v):
    return jnp.clip(v, 0.0, 6.0)


def _round_up(n, m):
    return ((n + m - 1) // m) * m


# ----------------------------------------------------------------------------
# Kernel
# ----------------------------------------------------------------------------
def convnet_kernel(a1_ref, d1_ref, w2_ref, b2_ref,           # scalar-prefetch (SMEM, 1-D)
                   x_ref, w3_ref, b3_ref,                    # VMEM: x streamed, rest resident
                   wf1_ref, bf1_ref, wf2_ref, bf2_ref, wf3_ref, bf3_ref,
                   out_ref,                                  # (TILE_B, OUT_PAD) f32
                   slab_ref):                                # VMEM scratch (TILE_B, K_PAD)
    x = x_ref[...]                                           # (TILE_B, P_PAD) f32

    # conv1 (1x1, 1->4) + bn1 + relu6 : channel-unrolled VPU elementwise.
    h1 = [_relu6(x * a1_ref[c] + d1_ref[c]) for c in range(C1)]

    # conv2 (1x1, 4->16) + bn2 + relu6 ; each output channel is written straight
    # into its lane-aligned 384-wide column block of the conv3 slab so that conv3
    # is a single K=6144 MXU matmul instead of 16 small K=270 ones.
    for co in range(C2):
        acc = h1[0] * w2_ref[co * C1] + b2_ref[co]           # bias fused into 1st term
        for ci in range(1, C1):
            acc = acc + h1[ci] * w2_ref[co * C1 + ci]
        slab_ref[:, co * P_PAD:(co + 1) * P_PAD] = _relu6(acc).astype(slab_ref.dtype)

    # conv3 ([45,6] kernel, 16->256) + bn3 + relu6 : ONE MXU matmul, f32 accumulate.
    z = _relu6(jnp.dot(slab_ref[...], w3_ref[...],
                       preferred_element_type=jnp.float32) + b3_ref[...])

    # fc1 + bn1_fc + relu6
    z = _relu6(jnp.dot(z.astype(wf1_ref.dtype), wf1_ref[...],
                       preferred_element_type=jnp.float32) + bf1_ref[...])
    # fc2 + bn2_fc + relu6
    z = _relu6(jnp.dot(z.astype(wf2_ref.dtype), wf2_ref[...],
                       preferred_element_type=jnp.float32) + bf2_ref[...])
    # fc3 (bn_fc3 exists in __init__ but is never applied in forward); output is
    # zero-padded to 128 lanes for unmasked, lane-dense stores.
    out_ref[...] = jnp.dot(z.astype(wf3_ref.dtype), wf3_ref[...],
                           preferred_element_type=jnp.float32) + bf3_ref[...]


# ----------------------------------------------------------------------------
# Parameter setup (deterministic, synthetic) and one-time BN folding / layout
# ----------------------------------------------------------------------------
def init_params(key):
    ks = jax.random.split(key, 17)

    def nrm(k, shape, scale):
        return scale * jax.random.normal(k, shape, dtype=jnp.float32)

    def bn(k, c):
        k1, k2, k3, k4 = jax.random.split(k, 4)
        gamma = 1.0 + 0.1 * jax.random.normal(k1, (c,), jnp.float32)
        beta = 0.1 * jax.random.normal(k2, (c,), jnp.float32)
        mean = 0.1 * jax.random.normal(k3, (c,), jnp.float32)
        var = jax.random.uniform(k4, (c,), jnp.float32, minval=0.5, maxval=1.5)
        return gamma, beta, mean, var

    return {
        "conv1_w": nrm(ks[0], (C1, 1, 1, 1), 0.5),
        "conv1_b": nrm(ks[1], (C1,), 0.1),
        "bn1": bn(ks[2], C1),
        "conv2_w": nrm(ks[3], (C2, C1, 1, 1), 0.3),
        "conv2_b": nrm(ks[4], (C2,), 0.1),
        "bn2": bn(ks[5], C2),
        "conv3_w": nrm(ks[6], (C3, C2, H, W), 0.05),
        "conv3_b": nrm(ks[7], (C3,), 0.1),
        "bn3": bn(ks[8], C3),
        "fc1_w": nrm(ks[9], (C3, C3), 0.05),
        "fc1_b": nrm(ks[10], (C3,), 0.1),
        "bn1_fc": bn(ks[11], C3),
        "fc2_w": nrm(ks[12], (C3, C3), 0.05),
        "fc2_b": nrm(ks[13], (C3,), 0.1),
        "bn2_fc": bn(ks[14], C3),
        "fc3_w": nrm(ks[15], (NUM_CLASSES, C3), 0.05),
        "fc3_b": nrm(ks[16], (NUM_CLASSES,), 0.1),
        # bn_fc3 of the PyTorch module is unused in forward -> omitted
    }


def prepare_operands(p, mxu_dtype=jnp.bfloat16):
    """Fold eval-mode BatchNorm, transpose/pad weights to kernel layout. Call ONCE."""
    def bn_scale_shift(bn):
        g, b, m, v = bn
        s = g / jnp.sqrt(v + BN_EPS)
        return s, b - m * s

    # conv1 + bn1 folded to per-channel scale a1 / shift d1 (SMEM scalars)
    s1, t1 = bn_scale_shift(p["bn1"])
    a1 = p["conv1_w"].reshape(C1) * s1
    d1 = p["conv1_b"] * s1 + t1

    # conv2 + bn2 folded; flattened 1-D (64,) to avoid 2-D SMEM padding
    s2, t2 = bn_scale_shift(p["bn2"])
    w2f = (p["conv2_w"].reshape(C2, C1) * s2[:, None]).reshape(C2 * C1)
    b2f = p["conv2_b"] * s2 + t2

    # conv3 + bn3 folded; (256,16,45,6) -> (16, 384, 256) -> (6144, 256) slab weight
    # with zero rows at each channel's spatial padding (270..383).
    s3, t3 = bn_scale_shift(p["bn3"])
    w3 = p["conv3_w"].reshape(C3, C2, P) * s3[:, None, None]
    w3 = jnp.transpose(w3, (1, 2, 0))                         # (16, 270, 256)
    w3 = jnp.pad(w3, ((0, 0), (0, P_PAD - P), (0, 0)))        # (16, 384, 256)
    w3flat = w3.reshape(K_PAD, C3).astype(mxu_dtype)          # (6144, 256)
    b3f = (p["conv3_b"] * s3 + t3).reshape(1, C3)

    # fc1 + bn1_fc folded (Linear: y = x @ W.T + b)
    s4, t4 = bn_scale_shift(p["bn1_fc"])
    wf1 = (p["fc1_w"].T * s4[None, :]).astype(mxu_dtype)
    bf1 = (p["fc1_b"] * s4 + t4).reshape(1, C3)

    # fc2 + bn2_fc folded
    s5, t5 = bn_scale_shift(p["bn2_fc"])
    wf2 = (p["fc2_w"].T * s5[None, :]).astype(mxu_dtype)
    bf2 = (p["fc2_b"] * s5 + t5).reshape(1, C3)

    # fc3 (no BN in forward); pad 19 -> 128 outputs for lane-dense stores
    wf3 = jnp.pad(p["fc3_w"].T, ((0, 0), (0, OUT_PAD - NUM_CLASSES))).astype(mxu_dtype)
    bf3 = jnp.pad(p["fc3_b"], (0, OUT_PAD - NUM_CLASSES)).reshape(1, OUT_PAD)

    return (a1, d1, w2f, b2f, w3flat, b3f, wf1, bf1, wf2, bf2, wf3, bf3)


# ----------------------------------------------------------------------------
# Wrapper
# ----------------------------------------------------------------------------
def convnet_forward(x, operands, *, tile_b=256):
    a1, d1, w2f, b2f, w3flat, b3f, wf1, bf1, wf2, bf2, wf3, bf3 = operands

    # mirrors: x = x.float(); x = x.view(-1, 1, H, W); flatten spatial to 270 cols
    xf = x.astype(jnp.float32).reshape(-1, 1, H, W)
    B = xf.shape[0]
    x2d = xf.reshape(B, P)

    # batch tiling (grid) + lane padding of the spatial axis
    tile_b = min(tile_b, _round_up(B, 16))
    b_pad = _round_up(B, tile_b)
    x2d = jnp.pad(x2d, ((0, b_pad - B), (0, P_PAD - P)))
    num_tiles = b_pad // tile_b

    const = lambda i, *_: (0, 0)          # weights: fetched once, VMEM-resident
    batch = lambda i, *_: (i, 0)          # x / out: streamed per batch tile

    grid_spec = pltpu.PrefetchScalarGridSpec(
        num_scalar_prefetch=4,            # a1, d1, w2f, b2f -> SMEM scalars
        grid=(num_tiles,),
        in_specs=[
            pl.BlockSpec((tile_b, P_PAD), batch),      # x
            pl.BlockSpec((K_PAD, C3), const),          # conv3 weight slab
            pl.BlockSpec((1, C3), const),              # conv3 bias
            pl.BlockSpec((C3, C3), const),             # fc1 w
            pl.BlockSpec((1, C3), const),              # fc1 b
            pl.BlockSpec((C3, C3), const),             # fc2 w
            pl.BlockSpec((1, C3), const),              # fc2 b
            pl.BlockSpec((C3, OUT_PAD), const),        # fc3 w (padded)
            pl.BlockSpec((1, OUT_PAD), const),         # fc3 b (padded)
        ],
        out_specs=pl.BlockSpec((tile_b, OUT_PAD), batch),
        scratch_shapes=[pltpu.VMEM((tile_b, K_PAD), w3flat.dtype)],
    )

    # Advisory cost estimate so XLA schedules the surrounding cast/pad/slice well.
    mxu_flops = 2 * b_pad * (K_PAD * C3 + 2 * C3 * C3 + C3 * OUT_PAD)
    vpu_flops = b_pad * P_PAD * (2 * C1 + C2 * (2 * C1 + 1))
    weight_bytes = sum(int(a.size) * a.dtype.itemsize
                       for a in (w3flat, wf1, wf2, wf3, b3f, bf1, bf2, bf3))
    bytes_accessed = int(x2d.size) * 4 + b_pad * OUT_PAD * 4 + weight_bytes

    out = pl.pallas_call(
        convnet_kernel,
        out_shape=jax.ShapeDtypeStruct((b_pad, OUT_PAD), jnp.float32),
        grid_spec=grid_spec,
        compiler_params=pltpu.CompilerParams(
            # independent batch tiles -> megacore / v7x 2-TC sharding
            dimension_semantics=("parallel",),
            # below v7x's 64 MiB physical per-TC VMEM; leaves pipeline headroom
            vmem_limit_bytes=48 << 20),
        cost_estimate=pl.CostEstimate(flops=mxu_flops + vpu_flops,
                                      transcendentals=0,
                                      bytes_accessed=bytes_accessed),
    )(a1, d1, w2f, b2f, x2d, w3flat, b3f, wf1, bf1, wf2, bf2, wf3, bf3)

    return out[:B, :NUM_CLASSES]


# ----------------------------------------------------------------------------
# Pure-JAX reference (same folded operands and the same bf16-operand / f32-accum
# matmul precision policy as the kernel, so the check isolates structural errors)
# ----------------------------------------------------------------------------
def reference_forward(x, operands):
    a1, d1, w2f, b2f, w3flat, b3f, wf1, bf1, wf2, bf2, wf3, bf3 = operands
    hi = jax.lax.Precision.HIGHEST
    xf = x.astype(jnp.float32).reshape(-1, 1, H, W)
    B = xf.shape[0]
    x2d = jnp.pad(xf.reshape(B, P), ((0, 0), (0, P_PAD - P)))
    w2m = w2f.reshape(C2, C1)
    h1 = _relu6(x2d[:, None, :] * a1[None, :, None] + d1[None, :, None])   # (B,4,384)
    h2 = _relu6(jnp.einsum("oc,bcp->bop", w2m, h1, precision=hi)
                + b2f[None, :, None])                                       # (B,16,384)
    slab = h2.reshape(B, K_PAD).astype(w3flat.dtype)
    z = _relu6(jnp.dot(slab, w3flat, preferred_element_type=jnp.float32) + b3f)
    z = _relu6(jnp.dot(z.astype(wf1.dtype), wf1,
                       preferred_element_type=jnp.float32) + bf1)
    z = _relu6(jnp.dot(z.astype(wf2.dtype), wf2,
                       preferred_element_type=jnp.float32) + bf2)
    out = jnp.dot(z.astype(wf3.dtype), wf3,
                  preferred_element_type=jnp.float32) + bf3
    return out[:, :NUM_CLASSES]


if __name__ == "__main__":
    key = jax.random.PRNGKey(0)
    kx, kp = jax.random.split(key)

    # input consistent with the module: (B, 1, 45, 6); conv3's [45,6] kernel forces
    # the spatial size so that the flatten feeds fc1 with 256 features.
    x = jax.random.normal(kx, (2, 1, H, W), dtype=jnp.float32)
    params = init_params(kp)

    # BN folding / weight layout is hoisted out of the per-call path (done once).
    operands = prepare_operands(params)

    fwd = jax.jit(convnet_forward)
    out = jax.block_until_ready(fwd(x, operands))

    ref = reference_forward(x, operands)
    assert out.shape == (2, NUM_CLASSES), out.shape
    assert bool(jnp.all(jnp.isfinite(out)))
    assert bool(jnp.allclose(out, ref, rtol=1e-2, atol=1e-2)), \
        float(jnp.max(jnp.abs(out - ref)))

    print("KERNEL_OK")
</pallas_src>

<mosaic_0001>
module attributes {stable_mosaic.version = 11 : i64} {
  func.func @convnet_kernel(%arg0: i32, %arg1: memref<4xf32, #tpu.memory_space<smem>>, %arg2: memref<4xf32, #tpu.memory_space<smem>>, %arg3: memref<64xf32, #tpu.memory_space<smem>>, %arg4: memref<16xf32, #tpu.memory_space<smem>>, %arg5: memref<16x384xf32, #tpu.memory_space<vmem>>, %arg6: memref<6144x256xbf16, #tpu.memory_space<vmem>>, %arg7: memref<1x256xf32, #tpu.memory_space<vmem>>, %arg8: memref<256x256xbf16, #tpu.memory_space<vmem>>, %arg9: memref<1x256xf32, #tpu.memory_space<vmem>>, %arg10: memref<256x256xbf16, #tpu.memory_space<vmem>>, %arg11: memref<1x256xf32, #tpu.memory_space<vmem>>, %arg12: memref<256x128xbf16, #tpu.memory_space<vmem>>, %arg13: memref<1x128xf32, #tpu.memory_space<vmem>>, %arg14: memref<16x128xf32, #tpu.memory_space<vmem>>, %arg15: memref<16x6144xbf16, #tpu.memory_space<vmem>>) attributes {dimension_semantics = [#tpu.dimension_semantics<parallel>], iteration_bounds = array<i64: 1>, scalar_prefetch = 4 : i64, scratch_operands = 1 : i64, tpu.core_type = #tpu.core_type<tc>, window_params = [{transform_indices = @transform_0, window_bounds = array<i64: 16, 384>}, {pipeline_mode = #tpu.pipeline_mode<synchronous>, transform_indices = @transform_1, window_bounds = array<i64: 6144, 256>}, {pipeline_mode = #tpu.pipeline_mode<synchronous>, transform_indices = @transform_2, window_bounds = array<i64: 1, 256>}, {pipeline_mode = #tpu.pipeline_mode<synchronous>, transform_indices = @transform_3, window_bounds = array<i64: 256, 256>}, {pipeline_mode = #tpu.pipeline_mode<synchronous>, transform_indices = @transform_4, window_bounds = array<i64: 1, 256>}, {pipeline_mode = #tpu.pipeline_mode<synchronous>, transform_indices = @transform_5, window_bounds = array<i64: 256, 256>}, {pipeline_mode = #tpu.pipeline_mode<synchronous>, transform_indices = @transform_6, window_bounds = array<i64: 1, 256>}, {pipeline_mode = #tpu.pipeline_mode<synchronous>, transform_indices = @transform_7, window_bounds = array<i64: 256, 128>}, {pipeline_mode = #tpu.pipeline_mode<synchronous>, transform_indices = @transform_8, window_bounds = array<i64: 1, 128>}, {transform_indices = @transform_9, window_bounds = array<i64: 16, 128>}]} {
    %c0 = arith.constant 0 : index
    %c0_0 = arith.constant 0 : index
    %0 = vector.load %arg5[%c0, %c0_0] : memref<16x384xf32, #tpu.memory_space<vmem>>, vector<16x384xf32>
    %c0_1 = arith.constant 0 : index
    %1 = memref.load %arg1[%c0_1] : memref<4xf32, #tpu.memory_space<smem>>
    %2 = vector.broadcast %1 : f32 to vector<16x384xf32>
    %3 = arith.mulf %0, %2 : vector<16x384xf32>
    %c0_2 = arith.constant 0 : index
    %4 = memref.load %arg2[%c0_2] : memref<4xf32, #tpu.memory_space<smem>>
    %5 = vector.broadcast %4 : f32 to vector<16x384xf32>
    %6 = arith.addf %3, %5 : vector<16x384xf32>
    %cst = arith.constant 0.000000e+00 : f32
    %cst_3 = arith.constant 6.000000e+00 : f32
    %7 = vector.broadcast %cst : f32 to vector<16x384xf32>
    %8 = arith.maximumf %7, %6 : vector<16x384xf32>
    %9 = vector.broadcast %cst_3 : f32 to vector<16x384xf32>
    %10 = arith.minimumf %9, %8 : vector<16x384xf32>
    %c1 = arith.constant 1 : index
    %11 = memref.load %arg1[%c1] : memref<4xf32, #tpu.memory_space<smem>>
    %12 = vector.broadcast %11 : f32 to vector<16x384xf32>
    %13 = arith.mulf %0, %12 : vector<16x384xf32>
    %c1_4 = arith.constant 1 : index
    %14 = memref.load %arg2[%c1_4] : memref<4xf32, #tpu.memory_space<smem>>
    %15 = vector.broadcast %14 : f32 to vector<16x384xf32>
    %16 = arith.addf %13, %15 : vector<16x384xf32>
    %cst_5 = arith.constant 0.000000e+00 : f32
    %cst_6 = arith.constant 6.000000e+00 : f32
    %17 = vector.broadcast %cst_5 : f32 to vector<16x384xf32>
    %18 = arith.maximumf %17, %16 : vector<16x384xf32>
    %19 = vector.broadcast %cst_6 : f32 to vector<16x384xf32>
    %20 = arith.minimumf %19, %18 : vector<16x384xf32>
    %c2 = arith.constant 2 : index
    %21 = memref.load %arg1[%c2] : memref<4xf32, #tpu.memory_space<smem>>
    %22 = vector.broadcast %21 : f32 to vector<16x384xf32>
    %23 = arith.mulf %0, %22 : vector<16x384xf32>
    %c2_7 = arith.constant 2 : index
    %24 = memref.load %arg2[%c2_7] : memref<4xf32, #tpu.memory_space<smem>>
    %25 = vector.broadcast %24 : f32 to vector<16x384xf32>
    %26 = arith.addf %23, %25 : vector<16x384xf32>
    %cst_8 = arith.constant 0.000000e+00 : f32
    %cst_9 = arith.constant 6.000000e+00 : f32
    %27 = vector.broadcast %cst_8 : f32 to vector<16x384xf32>
    %28 = arith.maximumf %27, %26 : vector<16x384xf32>
    %29 = vector.broadcast %cst_9 : f32 to vector<16x384xf32>
    %30 = arith.minimumf %29, %28 : vector<16x384xf32>
    %c3 = arith.constant 3 : index
    %31 = memref.load %arg1[%c3] : memref<4xf32, #tpu.memory_space<smem>>
    %32 = vector.broadcast %31 : f32 to vector<16x384xf32>
    %33 = arith.mulf %0, %32 : vector<16x384xf32>
    %c3_10 = arith.constant 3 : index
    %34 = memref.load %arg2[%c3_10] : memref<4xf32, #tpu.memory_space<smem>>
    %35 = vector.broadcast %34 : f32 to vector<16x384xf32>
    %36 = arith.addf %33, %35 : vector<16x384xf32>
    %cst_11 = arith.constant 0.000000e+00 : f32
    %cst_12 = arith.constant 6.000000e+00 : f32
    %37 = vector.broadcast %cst_11 : f32 to vector<16x384xf32>
    %38 = arith.maximumf %37, %36 : vector<16x384xf32>
    %39 = vector.broadcast %cst_12 : f32 to vector<16x384xf32>
    %40 = arith.minimumf %39, %38 : vector<16x384xf32>
    %c0_13 = arith.constant 0 : index
    %41 = memref.load %arg3[%c0_13] : memref<64xf32, #tpu.memory_space<smem>>
    %42 = vector.broadcast %41 : f32 to vector<16x384xf32>
    %43 = arith.mulf %10, %42 : vector<16x384xf32>
    %c0_14 = arith.constant 0 : index
    %44 = memref.load %arg4[%c0_14] : memref<16xf32, #tpu.memory_space<smem>>
    %45 = vector.broadcast %44 : f32 to vector<16x384xf32>
    %46 = arith.addf %43, %45 : vector<16x384xf32>
    %c1_15 = arith.constant 1 : index
    %47 = memref.load %arg3[%c1_15] : memref<64xf32, #tpu.memory_space<smem>>
    %48 = vector.broadcast %47 : f32 to vector<16x384xf32>
    %49 = arith.mulf %20, %48 : vector<16x384xf32>
    %50 = arith.addf %46, %49 : vector<16x384xf32>
    %c2_16 = arith.constant 2 : index
    %51 = memref.load %arg3[%c2_16] : memref<64xf32, #tpu.memory_space<smem>>
    %52 = vector.broadcast %51 : f32 to vector<16x384xf32>
    %53 = arith.mulf %30, %52 : vector<16x384xf32>
    %54 = arith.addf %50, %53 : vector<16x384xf32>
    %c3_17 = arith.constant 3 : index
    %55 = memref.load %arg3[%c3_17] : memref<64xf32, #tpu.memory_space<smem>>
    %56 = vector.broadcast %55 : f32 to vector<16x384xf32>
    %57 = arith.mulf %40, %56 : vector<16x384xf32>
    %58 = arith.addf %54, %57 : vector<16x384xf32>
    %cst_18 = arith.constant 0.000000e+00 : f32
    %cst_19 = arith.constant 6.000000e+00 : f32
    %59 = vector.broadcast %cst_18 : f32 to vector<16x384xf32>
    %60 = arith.maximumf %59, %58 : vector<16x384xf32>
    %61 = vector.broadcast %cst_19 : f32 to vector<16x384xf32>
    %62 = arith.minimumf %61, %60 : vector<16x384xf32>
    %63 = arith.truncf %62 : vector<16x384xf32> to vector<16x384xbf16>
    %c0_20 = arith.constant 0 : index
    %c0_21 = arith.constant 0 : index
    %64 = vector.load %arg15[%c0_20, %c0_21] : memref<16x6144xbf16, #tpu.memory_space<vmem>>, vector<16x384xbf16>
    tpu.vector_store %arg15[%c0_20, %c0_21], %63 {strides = array<i32>} : memref<16x6144xbf16, #tpu.memory_space<vmem>>, vector<16x384xbf16>,
    %c4 = arith.constant 4 : index
    %65 = memref.load %arg3[%c4] : memref<64xf32, #tpu.memory_space<smem>>
    %66 = vector.broadcast %65 : f32 to vector<16x384xf32>
    %67 = arith.mulf %10, %66 : vector<16x384xf32>
    %c1_22 = arith.constant 1 : index
    %68 = memref.load %arg4[%c1_22] : memref<16xf32, #tpu.memory_space<smem>>
    %69 = vector.broadcast %68 : f32 to vector<16x384xf32>
    %70 = arith.addf %67, %69 : vector<16x384xf32>
    %c5 = arith.constant 5 : index
    %71 = memref.load %arg3[%c5] : memref<64xf32, #tpu.memory_space<smem>>
    %72 = vector.broadcast %71 : f32 to vector<16x384xf32>
    %73 = arith.mulf %20, %72 : vector<16x384xf32>
    %74 = arith.addf %70, %73 : vector<16x384xf32>
    %c6 = arith.constant 6 : index
    %75 = memref.load %arg3[%c6] : memref<64xf32, #tpu.memory_space<smem>>
    %76 = vector.broadcast %75 : f32 to vector<16x384xf32>
    %77 = arith.mulf %30, %76 : vector<16x384xf32>
    %78 = arith.addf %74, %77 : vector<16x384xf32>
    %c7 = arith.constant 7 : index
    %79 = memref.load %arg3[%c7] : memref<64xf32, #tpu.memory_space<smem>>
    %80 = vector.broadcast %79 : f32 to vector<16x384xf32>
    %81 = arith.mulf %40, %80 : vector<16x384xf32>
    %82 = arith.addf %78, %81 : vector<16x384xf32>
    %cst_23 = arith.constant 0.000000e+00 : f32
    %cst_24 = arith.constant 6.000000e+00 : f32
    %83 = vector.broadcast %cst_23 : f32 to vector<16x384xf32>
    %84 = arith.maximumf %83, %82 : vector<16x384xf32>
    %85 = vector.broadcast %cst_24 : f32 to vector<16x384xf32>
    %86 = arith.minimumf %85, %84 : vector<16x384xf32>
    %87 = arith.truncf %86 : vector<16x384xf32> to vector<16x384xbf16>
    %c0_25 = arith.constant 0 : index
    %c384 = arith.constant 384 : index
    %88 = vector.load %arg15[%c0_25, %c384] : memref<16x6144xbf16, #tpu.memory_space<vmem>>, vector<16x384xbf16>
    tpu.vector_store %arg15[%c0_25, %c384], %87 {strides = array<i32>} : memref<16x6144xbf16, #tpu.memory_space<vmem>>, vector<16x384xbf16>,
    %c8 = arith.constant 8 : index
    %89 = memref.load %arg3[%c8] : memref<64xf32, #tpu.memory_space<smem>>
    %90 = vector.broadcast %89 : f32 to vector<16x384xf32>
    %91 = arith.mulf %10, %90 : vector<16x384xf32>
    %c2_26 = arith.constant 2 : index
    %92 = memref.load %arg4[%c2_26] : memref<16xf32, #tpu.memory_space<smem>>
    %93 = vector.broadcast %92 : f32 to vector<16x384xf32>
    %94 = arith.addf %91, %93 : vector<16x384xf32>
    %c9 = arith.constant 9 : index
    %95 = memref.load %arg3[%c9] : memref<64xf32, #tpu.memory_space<smem>>
    %96 = vector.broadcast %95 : f32 to vector<16x384xf32>
    %97 = arith.mulf %20, %96 : vector<16x384xf32>
    %98 = arith.addf %94, %97 : vector<16x384xf32>
    %c10 = arith.constant 10 : index
    %99 = memref.load %arg3[%c10] : memref<64xf32, #tpu.memory_space<smem>>
    %100 = vector.broadcast %99 : f32 to vector<16x384xf32>
    %101 = arith.mulf %30, %100 : vector<16x384xf32>
    %102 = arith.addf %98, %101 : vector<16x384xf32>
    %c11 = arith.constant 11 : index
    %103 = memref.load %arg3[%c11] : memref<64xf32, #tpu.memory_space<smem>>
    %104 = vector.broadcast %103 : f32 to vector<16x384xf32>
    %105 = arith.mulf %40, %104 : vector<16x384xf32>
    %106 = arith.addf %102, %105 : vector<16x384xf32>
    %cst_27 = arith.constant 0.000000e+00 : f32
    %cst_28 = arith.constant 6.000000e+00 : f32
    %107 = vector.broadcast %cst_27 : f32 to vector<16x384xf32>
    %108 = arith.maximumf %107, %106 : vector<16x384xf32>
    %109 = vector.broadcast %cst_28 : f32 to vector<16x384xf32>
    %110 = arith.minimumf %109, %108 : vector<16x384xf32>
    %111 = arith.truncf %110 : vector<16x384xf32> to vector<16x384xbf16>
    %c0_29 = arith.constant 0 : index
    %c768 = arith.constant 768 : index
    %112 = vector.load %arg15[%c0_29, %c768] : memref<16x6144xbf16, #tpu.memory_space<vmem>>, vector<16x384xbf16>
    tpu.vector_store %arg15[%c0_29, %c768], %111 {strides = array<i32>} : memref<16x6144xbf16, #tpu.memory_space<vmem>>, vector<16x384xbf16>,
    %c12 = arith.constant 12 : index
    %113 = memref.load %arg3[%c12] : memref<64xf32, #tpu.memory_space<smem>>
    %114 = vector.broadcast %113 : f32 to vector<16x384xf32>
    %115 = arith.mulf %10, %114 : vector<16x384xf32>
    %c3_30 = arith.constant 3 : index
    %116 = memref.load %arg4[%c3_30] : memref<16xf32, #tpu.memory_space<smem>>
    %117 = vector.broadcast %116 : f32 to vector<16x384xf32>
    %118 = arith.addf %115, %117 : vector<16x384xf32>
    %c13 = arith.constant 13 : index
    %119 = memref.load %arg3[%c13] : memref<64xf32, #tpu.memory_space<smem>>
    %120 = vector.broadcast %119 : f32 to vector<16x384xf32>
    %121 = arith.mulf %20, %120 : vector<16x384xf32>
    %122 = arith.addf %118, %121 : vector<16x384xf32>
    %c14 = arith.constant 14 : index
    %123 = memref.load %arg3[%c14] : memref<64xf32, #tpu.memory_space<smem>>
    %124 = vector.broadcast %123 : f32 to vector<16x384xf32>
    %125 = arith.mulf %30, %124 : vector<16x384xf32>
    %126 = arith.addf %122, %125 : vector<16x384xf32>
    %c15 = arith.constant 15 : index
    %127 = memref.load %arg3[%c15] : memref<64xf32, #tpu.memory_space<smem>>
    %128 = vector.broadcast %127 : f32 to vector<16x384xf32>
    %129 = arith.mulf %40, %128 : vector<16x384xf32>
    %130 = arith.addf %126, %129 : vector<16x384xf32>
    %cst_31 = arith.constant 0.000000e+00 : f32
    %cst_32 = arith.constant 6.000000e+00 : f32
    %131 = vector.broadcast %cst_31 : f32 to vector<16x384xf32>
    %132 = arith.maximumf %131, %130 : vector<16x384xf32>
    %133 = vector.broadcast %cst_32 : f32 to vector<16x384xf32>
    %134 = arith.minimumf %133, %132 : vector<16x384xf32>
    %135 = arith.truncf %134 : vector<16x384xf32> to vector<16x384xbf16>
    %c0_33 = arith.constant 0 : index
    %c1152 = arith.constant 1152 : index
    %136 = vector.load %arg15[%c0_33, %c1152] : memref<16x6144xbf16, #tpu.memory_space<vmem>>, vector<16x384xbf16>
    tpu.vector_store %arg15[%c0_33, %c1152], %135 {strides = array<i32>} : memref<16x6144xbf16, #tpu.memory_space<vmem>>, vector<16x384xbf16>,
    %c16 = arith.constant 16 : index
    %137 = memref.load %arg3[%c16] : memref<64xf32, #tpu.memory_space<smem>>
    %138 = vector.broadcast %137 : f32 to vector<16x384xf32>
    %139 = arith.mulf %10, %138 : vector<16x384xf32>
    %c4_34 = arith.constant 4 : index
    %140 = memref.load %arg4[%c4_34] : memref<16xf32, #tpu.memory_space<smem>>
    %141 = vector.broadcast %140 : f32 to vector<16x384xf32>
    %142 = arith.addf %139, %141 : vector<16x384xf32>
    %c17 = arith.constant 17 : index
    %143 = memref.load %arg3[%c17] : memref<64xf32, #tpu.memory_space<smem>>
    %144 = vector.broadcast %143 : f32 to vector<16x384xf32>
    %145 = arith.mulf %20, %144 : vector<16x384xf32>
    %146 = arith.addf %142, %145 : vector<16x384xf32>
    %c18 = arith.constant 18 : index
    %147 = memref.load %arg3[%c18] : memref<64xf32, #tpu.memory_space<smem>>
    %148 = vector.broadcast %147 : f32 to vector<16x384xf32>
    %149 = arith.mulf %30, %148 : vector<16x384xf32>
    %150 = arith.addf %146, %149 : vector<16x384xf32>
    %c19 = arith.constant 19 : index
    %151 = memref.load %arg3[%c19] : memref<64xf32, #tpu.memory_space<smem>>
    %152 = vector.broadcast %151 : f32 to vector<16x384xf32>
    %153 = arith.mulf %40, %152 : vector<16x384xf32>
    %154 = arith.addf %150, %153 : vector<16x384xf32>
    %cst_35 = arith.constant 0.000000e+00 : f32
    %cst_36 = arith.constant 6.000000e+00 : f32
    %155 = vector.broadcast %cst_35 : f32 to vector<16x384xf32>
    %156 = arith.maximumf %155, %154 : vector<16x384xf32>
    %157 = vector.broadcast %cst_36 : f32 to vector<16x384xf32>
    %158 = arith.minimumf %157, %156 : vector<16x384xf32>
    %159 = arith.truncf %158 : vector<16x384xf32> to vector<16x384xbf16>
    %c0_37 = arith.constant 0 : index
    %c1536 = arith.constant 1536 : index
    %160 = vector.load %arg15[%c0_37, %c1536] : memref<16x6144xbf16, #tpu.memory_space<vmem>>, vector<16x384xbf16>
    tpu.vector_store %arg15[%c0_37, %c1536], %159 {strides = array<i32>} : memref<16x6144xbf16, #tpu.memory_space<vmem>>, vector<16x384xbf16>,
    %c20 = arith.constant 20 : index
    %161 = memref.load %arg3[%c20] : memref<64xf32, #tpu.memory_space<smem>>
    %162 = vector.broadcast %161 : f32 to vector<16x384xf32>
    %163 = arith.mulf %10, %162 : vector<16x384xf32>
    %c5_38 = arith.constant 5 : index
    %164 = memref.load %arg4[%c5_38] : memref<16xf32, #tpu.memory_space<smem>>
    %165 = vector.broadcast %164 : f32 to vector<16x384xf32>
    %166 = arith.addf %163, %165 : vector<16x384xf32>
    %c21 = arith.constant 21 : index
    %167 = memref.load %arg3[%c21] : memref<64xf32, #tpu.memory_space<smem>>
    %168 = vector.broadcast %167 : f32 to vector<16x384xf32>
    %169 = arith.mulf %20, %168 : vector<16x384xf32>
    %170 = arith.addf %166, %169 : vector<16x384xf32>
    %c22 = arith.constant 22 : index
    %171 = memref.load %arg3[%c22] : memref<64xf32, #tpu.memory_space<smem>>
    %172 = vector.broadcast %171 : f32 to vector<16x384xf32>
    %173 = arith.mulf %30, %172 : vector<16x384xf32>
    %174 = arith.addf %170, %173 : vector<16x384xf32>
    %c23 = arith.constant 23 : index
    %175 = memref.load %arg3[%c23] : memref<64xf32, #tpu.memory_space<smem>>
    %176 = vector.broadcast %175 : f32 to vector<16x384xf32>
    %177 = arith.mulf %40, %176 : vector<16x384xf32>
    %178 = arith.addf %174, %177 : vector<16x384xf32>
    %cst_39 = arith.constant 0.000000e+00 : f32
    %cst_40 = arith.constant 6.000000e+00 : f32
    %179 = vector.broadcast %cst_39 : f32 to vector<16x384xf32>
    %180 = arith.maximumf %179, %178 : vector<16x384xf32>
    %181 = vector.broadcast %cst_40 : f32 to vector<16x384xf32>
    %182 = arith.minimumf %181, %180 : vector<16x384xf32>
    %183 = arith.truncf %182 : vector<16x384xf32> to vector<16x384xbf16>
    %c0_41 = arith.constant 0 : index
    %c1920 = arith.constant 1920 : index
    %184 = vector.load %arg15[%c0_41, %c1920] : memref<16x6144xbf16, #tpu.memory_space<vmem>>, vector<16x384xbf16>
    tpu.vector_store %arg15[%c0_41, %c1920], %183 {strides = array<i32>} : memref<16x6144xbf16, #tpu.memory_space<vmem>>, vector<16x384xbf16>,
    %c24 = arith.constant 24 : index
    %185 = memref.load %arg3[%c24] : memref<64xf32, #tpu.memory_space<smem>>
    %186 = vector.broadcast %185 : f32 to vector<16x384xf32>
    %187 = arith.mulf %10, %186 : vector<16x384xf32>
    %c6_42 = arith.constant 6 : index
    %188 = memref.load %arg4[%c6_42] : memref<16xf32, #tpu.memory_space<smem>>
    %189 = vector.broadcast %188 : f32 to vector<16x384xf32>
    %190 = arith.addf %187, %189 : vector<16x384xf32>
    %c25 = arith.constant 25 : index
    %191 = memref.load %arg3[%c25] : memref<64xf32, #tpu.memory_space<smem>>
    %192 = vector.broadcast %191 : f32 to vector<16x384xf32>
    %193 = arith.mulf %20, %192 : vector<16x384xf32>
    %194 = arith.addf %190, %193 : vector<16x384xf32>
    %c26 = arith.constant 26 : index
    %195 = memref.load %arg3[%c26] : memref<64xf32, #tpu.memory_space<smem>>
    %196 = vector.broadcast %195 : f32 to vector<16x384xf32>
    %197 = arith.mulf %30, %196 : vector<16x384xf32>
    %198 = arith.addf %194, %197 : vector<16x384xf32>
    %c27 = arith.constant 27 : index
    %199 = memref.load %arg3[%c27] : memref<64xf32, #tpu.memory_space<smem>>
    %200 = vector.broadcast %199 : f32 to vector<16x384xf32>
    %201 = arith.mulf %40, %200 : vector<16x384xf32>
    %202 = arith.addf %198, %201 : vector<16x384xf32>
    %cst_43 = arith.constant 0.000000e+00 : f32
    %cst_44 = arith.constant 6.000000e+00 : f32
    %203 = vector.broadcast %cst_43 : f32 to vector<16x384xf32>
    %204 = arith.maximumf %203, %202 : vector<16x384xf32>
    %205 = vector.broadcast %cst_44 : f32 to vector<16x384xf32>
    %206 = arith.minimumf %205, %204 : vector<16x384xf32>
    %207 = arith.truncf %206 : vector<16x384xf32> to vector<16x384xbf16>
    %c0_45 = arith.constant 0 : index
    %c2304 = arith.constant 2304 : index
    %208 = vector.load %arg15[%c0_45, %c2304] : memref<16x6144xbf16, #tpu.memory_space<vmem>>, vector<16x384xbf16>
    tpu.vector_store %arg15[%c0_45, %c2304], %207 {strides = array<i32>} : memref<16x6144xbf16, #tpu.memory_space<vmem>>, vector<16x384xbf16>,
    %c28 = arith.constant 28 : index
    %209 = memref.load %arg3[%c28] : memref<64xf32, #tpu.memory_space<smem>>
    %210 = vector.broadcast %209 : f32 to vector<16x384xf32>
    %211 = arith.mulf %10, %210 : vector<16x384xf32>
    %c7_46 = arith.constant 7 : index
    %212 = memref.load %arg4[%c7_46] : memref<16xf32, #tpu.memory_space<smem>>
    %213 = vector.broadcast %212 : f32 to vector<16x384xf32>
    %214 = arith.addf %211, %213 : vector<16x384xf32>
    %c29 = arith.constant 29 : index
    %215 = memref.load %arg3[%c29] : memref<64xf32, #tpu.memory_space<smem>>
    %216 = vector.broadcast %215 : f32 to vector<16x384xf32>
    %217 = arith.mulf %20, %216 : vector<16x384xf32>
    %218 = arith.addf %214, %217 : vector<16x384xf32>
    %c30 = arith.constant 30 : index
    %219 = memref.load %arg3[%c30] : memref<64xf32, #tpu.memory_space<smem>>
    %220 = vector.broadcast %219 : f32 to vector<16x384xf32>
    %221 = arith.mulf %30, %220 : vector<16x384xf32>
    %222 = arith.addf %218, %221 : vector<16x384xf32>
    %c31 = arith.constant 31 : index
    %223 = memref.load %arg3[%c31] : memref<64xf32, #tpu.memory_space<smem>>
    %224 = vector.broadcast %223 : f32 to vector<16x384xf32>
    %225 = arith.mulf %40, %224 : vector<16x384xf32>
    %226 = arith.addf %222, %225 : vector<16x384xf32>
    %cst_47 = arith.constant 0.000000e+00 : f32
    %cst_48 = arith.constant 6.000000e+00 : f32
    %227 = vector.broadcast %cst_47 : f32 to vector<16x384xf32>
    %228 = arith.maximumf %227, %226 : vector<16x384xf32>
    %229 = vector.broadcast %cst_48 : f32 to vector<16x384xf32>
    %230 = arith.minimumf %229, %228 : vector<16x384xf32>
    %231 = arith.truncf %230 : vector<16x384xf32> to vector<16x384xbf16>
    %c0_49 = arith.constant 0 : index
    %c2688 = arith.constant 2688 : index
    %232 = vector.load %arg15[%c0_49, %c2688] : memref<16x6144xbf16, #tpu.memory_space<vmem>>, vector<16x384xbf16>
    tpu.vector_store %arg15[%c0_49, %c2688], %231 {strides = array<i32>} : memref<16x6144xbf16, #tpu.memory_space<vmem>>, vector<16x384xbf16>,
    %c32 = arith.constant 32 : index
    %233 = memref.load %arg3[%c32] : memref<64xf32, #tpu.memory_space<smem>>
    %234 = vector.broadcast %233 : f32 to vector<16x384xf32>
    %235 = arith.mulf %10, %234 : vector<16x384xf32>
    %c8_50 = arith.constant 8 : index
    %236 = memref.load %arg4[%c8_50] : memref<16xf32, #tpu.memory_space<smem>>
    %237 = vector.broadcast %236 : f32 to vector<16x384xf32>
    %238 = arith.addf %235, %237 : vector<16x384xf32>
    %c33 = arith.constant 33 : index
    %239 = memref.load %arg3[%c33] : memref<64xf32, #tpu.memory_space<smem>>
    %240 = vector.broadcast %239 : f32 to vector<16x384xf32>
    %241 = arith.mulf %20, %240 : vector<16x384xf32>
    %242 = arith.addf %238, %241 : vector<16x384xf32>
    %c34 = arith.constant 34 : index
    %243 = memref.load %arg3[%c34] : memref<64xf32, #tpu.memory_space<smem>>
    %244 = vector.broadcast %243 : f32 to vector<16x384xf32>
    %245 = arith.mulf %30, %244 : vector<16x384xf32>
    %246 = arith.addf %242, %245 : vector<16x384xf32>
    %c35 = arith.constant 35 : index
    %247 = memref.load %arg3[%c35] : memref<64xf32, #tpu.memory_space<smem>>
    %248 = vector.broadcast %247 : f32 to vector<16x384xf32>
    %249 = arith.mulf %40, %248 : vector<16x384xf32>
    %250 = arith.addf %246, %249 : vector<16x384xf32>
    %cst_51 = arith.constant 0.000000e+00 : f32
    %cst_52 = arith.constant 6.000000e+00 : f32
    %251 = vector.broadcast %cst_51 : f32 to vector<16x384xf32>
    %252 = arith.maximumf %251, %250 : vector<16x384xf32>
    %253 = vector.broadcast %cst_52 : f32 to vector<16x384xf32>
    %254 = arith.minimumf %253, %252 : vector<16x384xf32>
    %255 = arith.truncf %254 : vector<16x384xf32> to vector<16x384xbf16>
    %c0_53 = arith.constant 0 : index
    %c3072 = arith.constant 3072 : index
    %256 = vector.load %arg15[%c0_53, %c3072] : memref<16x6144xbf16, #tpu.memory_space<vmem>>, vector<16x384xbf16>
    tpu.vector_store %arg15[%c0_53, %c3072], %255 {strides = array<i32>} : memref<16x6144xbf16, #tpu.memory_space<vmem>>, vector<16x384xbf16>,
    %c36 = arith.constant 36 : index
    %257 = memref.load %arg3[%c36] : memref<64xf32, #tpu.memory_space<smem>>
    %258 = vector.broadcast %257 : f32 to vector<16x384xf32>
    %259 = arith.mulf %10, %258 : vector<16x384xf32>
    %c9_54 = arith.constant 9 : index
    %260 = memref.load %arg4[%c9_54] : memref<16xf32, #tpu.memory_space<smem>>
    %261 = vector.broadcast %260 : f32 to vector<16x384xf32>
    %262 = arith.addf %259, %261 : vector<16x384xf32>
    %c37 = arith.constant 37 : index
    %263 = memref.load %arg3[%c37] : memref<64xf32, #tpu.memory_space<smem>>
    %264 = vector.broadcast %263 : f32 to vector<16x384xf32>
    %265 = arith.mulf %20, %264 : vector<16x384xf32>
    %266 = arith.addf %262, %265 : vector<16x384xf32>
    %c38 = arith.constant 38 : index
    %267 = memref.load %arg3[%c38] : memref<64xf32, #tpu.memory_space<smem>>
    %268 = vector.broadcast %267 : f32 to vector<16x384xf32>
    %269 = arith.mulf %30, %268 : vector<16x384xf32>
    %270 = arith.addf %266, %269 : vector<16x384xf32>
    %c39 = arith.constant 39 : index
    %271 = memref.load %arg3[%c39] : memref<64xf32, #tpu.memory_space<smem>>
    %272 = vector.broadcast %271 : f32 to vector<16x384xf32>
    %273 = arith.mulf %40, %272 : vector<16x384xf32>
    %274 = arith.addf %270, %273 : vector<16x384xf32>
    %cst_55 = arith.constant 0.000000e+00 : f32
    %cst_56 = arith.constant 6.000000e+00 : f32
    %275 = vector.broadcast %cst_55 : f32 to vector<16x384xf32>
    %276 = arith.maximumf %275, %274 : vector<16x384xf32>
    %277 = vector.broadcast %cst_56 : f32 to vector<16x384xf32>
    %278 = arith.minimumf %277, %276 : vector<16x384xf32>
    %279 = arith.truncf %278 : vector<16x384xf32> to vector<16x384xbf16>
    %c0_57 = arith.constant 0 : index
    %c3456 = arith.constant 3456 : index
    %280 = vector.load %arg15[%c0_57, %c3456] : memref<16x6144xbf16, #tpu.memory_space<vmem>>, vector<16x384xbf16>
    tpu.vector_store %arg15[%c0_57, %c3456], %279 {strides = array<i32>} : memref<16x6144xbf16, #tpu.memory_space<vmem>>, vector<16x384xbf16>,
    %c40 = arith.constant 40 : index
    %281 = memref.load %arg3[%c40] : memref<64xf32, #tpu.memory_space<smem>>
    %282 = vector.broadcast %281 : f32 to vector<16x384xf32>
    %283 = arith.mulf %10, %282 : vector<16x384xf32>
    %c10_58 = arith.constant 10 : index
    %284 = memref.load %arg4[%c10_58] : memref<16xf32, #tpu.memory_space<smem>>
    %285 = vector.broadcast %284 : f32 to vector<16x384xf32>
    %286 = arith.addf %283, %285 : vector<16x384xf32>
    %c41 = arith.constant 41 : index
    %287 = memref.load %arg3[%c41] : memref<64xf32, #tpu.memory_space<smem>>
    %288 = vector.broadcast %287 : f32 to vector<16x384xf32>
    %289 = arith.mulf %20, %288 : vector<16x384xf32>
    %290 = arith.addf %286, %289 : vector<16x384xf32>
    %c42 = arith.constant 42 : index
    %291 = memref.load %arg3[%c42] : memref<64xf32, #tpu.memory_space<smem>>
    %292 = vector.broadcast %291 : f32 to vector<16x384xf32>
    %293 = arith.mulf %30, %292 : vector<16x384xf32>
    %294 = arith.addf %290, %293 : vector<16x384xf32>
    %c43 = arith.constant 43 : index
    %295 = memref.load %arg3[%c43] : memref<64xf32, #tpu.memory_space<smem>>
    %296 = vector.broadcast %295 : f32 to vector<16x384xf32>
    %297 = arith.mulf %40, %296 : vector<16x384xf32>
    %298 = arith.addf %294, %297 : vector<16x384xf32>
    %cst_59 = arith.constant 0.000000e+00 : f32
    %cst_60 = arith.constant 6.000000e+00 : f32
    %299 = vector.broadcast %cst_59 : f32 to vector<16x384xf32>
    %300 = arith.maximumf %299, %298 : vector<16x384xf32>
    %301 = vector.broadcast %cst_60 : f32 to vector<16x384xf32>
    %302 = arith.minimumf %301, %300 : vector<16x384xf32>
    %303 = arith.truncf %302 : vector<16x384xf32> to vector<16x384xbf16>
    %c0_61 = arith.constant 0 : index
    %c3840 = arith.constant 3840 : index
    %304 = vector.load %arg15[%c0_61, %c3840] : memref<16x6144xbf16, #tpu.memory_space<vmem>>, vector<16x384xbf16>
    tpu.vector_store %arg15[%c0_61, %c3840], %303 {strides = array<i32>} : memref<16x6144xbf16, #tpu.memory_space<vmem>>, vector<16x384xbf16>,
    %c44 = arith.constant 44 : index
    %305 = memref.load %arg3[%c44] : memref<64xf32, #tpu.memory_space<smem>>
    %306 = vector.broadcast %305 : f32 to vector<16x384xf32>
    %307 = arith.mulf %10, %306 : vector<16x384xf32>
    %c11_62 = arith.constant 11 : index
    %308 = memref.load %arg4[%c11_62] : memref<16xf32, #tpu.memory_space<smem>>
    %309 = vector.broadcast %308 : f32 to vector<16x384xf32>
    %310 = arith.addf %307, %309 : vector<16x384xf32>
    %c45 = arith.constant 45 : index
    %311 = memref.load %arg3[%c45] : memref<64xf32, #tpu.memory_space<smem>>
    %312 = vector.broadcast %311 : f32 to vector<16x384xf32>
    %313 = arith.mulf %20, %312 : vector<16x384xf32>
    %314 = arith.addf %310, %313 : vector<16x384xf32>
    %c46 = arith.constant 46 : index
    %315 = memref.load %arg3[%c46] : memref<64xf32, #tpu.memory_space<smem>>
    %316 = vector.broadcast %315 : f32 to vector<16x384xf32>
    %317 = arith.mulf %30, %316 : vector<16x384xf32>
    %318 = arith.addf %314, %317 : vector<16x384xf32>
    %c47 = arith.constant 47 : index
    %319 = memref.load %arg3[%c47] : memref<64xf32, #tpu.memory_space<smem>>
    %320 = vector.broadcast %319 : f32 to vector<16x384xf32>
    %321 = arith.mulf %40, %320 : vector<16x384xf32>
    %322 = arith.addf %318, %321 : vector<16x384xf32>
    %cst_63 = arith.constant 0.000000e+00 : f32
    %cst_64 = arith.constant 6.000000e+00 : f32
    %323 = vector.broadcast %cst_63 : f32 to vector<16x384xf32>
    %324 = arith.maximumf %323, %322 : vector<16x384xf32>
    %325 = vector.broadcast %cst_64 : f32 to vector<16x384xf32>
    %326 = arith.minimumf %325, %324 : vector<16x384xf32>
    %327 = arith.truncf %326 : vector<16x384xf32> to vector<16x384xbf16>
    %c0_65 = arith.constant 0 : index
    %c4224 = arith.constant 4224 : index
    %328 = vector.load %arg15[%c0_65, %c4224] : memref<16x6144xbf16, #tpu.memory_space<vmem>>, vector<16x384xbf16>
    tpu.vector_store %arg15[%c0_65, %c4224], %327 {strides = array<i32>} : memref<16x6144xbf16, #tpu.memory_space<vmem>>, vector<16x384xbf16>,
    %c48 = arith.constant 48 : index
    %329 = memref.load %arg3[%c48] : memref<64xf32, #tpu.memory_space<smem>>
    %330 = vector.broadcast %329 : f32 to vector<16x384xf32>
    %331 = arith.mulf %10, %330 : vector<16x384xf32>
    %c12_66 = arith.constant 12 : index
    %332 = memref.load %arg4[%c12_66] : memref<16xf32, #tpu.memory_space<smem>>
    %333 = vector.broadcast %332 : f32 to vector<16x384xf32>
    %334 = arith.addf %331, %333 : vector<16x384xf32>
    %c49 = arith.constant 49 : index
    %335 = memref.load %arg3[%c49] : memref<64xf32, #tpu.memory_space<smem>>
    %336 = vector.broadcast %335 : f32 to vector<16x384xf32>
    %337 = arith.mulf %20, %336 : vector<16x384xf32>
    %338 = arith.addf %334, %337 : vector<16x384xf32>
    %c50 = arith.constant 50 : index
    %339 = memref.load %arg3[%c50] : memref<64xf32, #tpu.memory_space<smem>>
    %340 = vector.broadcast %339 : f32 to vector<16x384xf32>
    %341 = arith.mulf %30, %340 : vector<16x384xf32>
    %342 = arith.addf %338, %341 : vector<16x384xf32>
    %c51 = arith.constant 51 : index
    %343 = memref.load %arg3[%c51] : memref<64xf32, #tpu.memory_space<smem>>
    %344 = vector.broadcast %343 : f32 to vector<16x384xf32>
    %345 = arith.mulf %40, %344 : vector<16x384xf32>
    %346 = arith.addf %342, %345 : vector<16x384xf32>
    %cst_67 = arith.constant 0.000000e+00 : f32
    %cst_68 = arith.constant 6.000000e+00 : f32
    %347 = vector.broadcast %cst_67 : f32 to vector<16x384xf32>
    %348 = arith.maximumf %347, %346 : vector<16x384xf32>
    %349 = vector.broadcast %cst_68 : f32 to vector<16x384xf32>
    %350 = arith.minimumf %349, %348 : vector<16x384xf32>
    %351 = arith.truncf %350 : vector<16x384xf32> to vector<16x384xbf16>
    %c0_69 = arith.constant 0 : index
    %c4608 = arith.constant 4608 : index
    %352 = vector.load %arg15[%c0_69, %c4608] : memref<16x6144xbf16, #tpu.memory_space<vmem>>, vector<16x384xbf16>
    tpu.vector_store %arg15[%c0_69, %c4608], %351 {strides = array<i32>} : memref<16x6144xbf16, #tpu.memory_space<vmem>>, vector<16x384xbf16>,
    %c52 = arith.constant 52 : index
    %353 = memref.load %arg3[%c52] : memref<64xf32, #tpu.memory_space<smem>>
    %354 = vector.broadcast %353 : f32 to vector<16x384xf32>
    %355 = arith.mulf %10, %354 : vector<16x384xf32>
    %c13_70 = arith.constant 13 : index
    %356 = memref.load %arg4[%c13_70] : memref<16xf32, #tpu.memory_space<smem>>
    %357 = vector.broadcast %356 : f32 to vector<16x384xf32>
    %358 = arith.addf %355, %357 : vector<16x384xf32>
    %c53 = arith.constant 53 : index
    %359 = memref.load %arg3[%c53] : memref<64xf32, #tpu.memory_space<smem>>
    %360 = vector.broadcast %359 : f32 to vector<16x384xf32>
    %361 = arith.mulf %20, %360 : vector<16x384xf32>
    %362 = arith.addf %358, %361 : vector<16x384xf32>
    %c54 = arith.constant 54 : index
    %363 = memref.load %arg3[%c54] : memref<64xf32, #tpu.memory_space<smem>>
    %364 = vector.broadcast %363 : f32 to vector<16x384xf32>
    %365 = arith.mulf %30, %364 : vector<16x384xf32>
    %366 = arith.addf %362, %365 : vector<16x384xf32>
    %c55 = arith.constant 55 : index
    %367 = memref.load %arg3[%c55] : memref<64xf32, #tpu.memory_space<smem>>
    %368 = vector.broadcast %367 : f32 to vector<16x384xf32>
    %369 = arith.mulf %40, %368 : vector<16x384xf32>
    %370 = arith.addf %366, %369 : vector<16x384xf32>
    %cst_71 = arith.constant 0.000000e+00 : f32
    %cst_72 = arith.constant 6.000000e+00 : f32
    %371 = vector.broadcast %cst_71 : f32 to vector<16x384xf32>
    %372 = arith.maximumf %371, %370 : vector<16x384xf32>
    %373 = vector.broadcast %cst_72 : f32 to vector<16x384xf32>
    %374 = arith.minimumf %373, %372 : vector<16x384xf32>
    %375 = arith.truncf %374 : vector<16x384xf32> to vector<16x384xbf16>
    %c0_73 = arith.constant 0 : index
    %c4992 = arith.constant 4992 : index
    %376 = vector.load %arg15[%c0_73, %c4992] : memref<16x6144xbf16, #tpu.memory_space<vmem>>, vector<16x384xbf16>
    tpu.vector_store %arg15[%c0_73, %c4992], %375 {strides = array<i32>} : memref<16x6144xbf16, #tpu.memory_space<vmem>>, vector<16x384xbf16>,
    %c56 = arith.constant 56 : index
    %377 = memref.load %arg3[%c56] : memref<64xf32, #tpu.memory_space<smem>>
    %378 = vector.broadcast %377 : f32 to vector<16x384xf32>
    %379 = arith.mulf %10, %378 : vector<16x384xf32>
    %c14_74 = arith.constant 14 : index
    %380 = memref.load %arg4[%c14_74] : memref<16xf32, #tpu.memory_space<smem>>
    %381 = vector.broadcast %380 : f32 to vector<16x384xf32>
    %382 = arith.addf %379, %381 : vector<16x384xf32>
    %c57 = arith.constant 57 : index
    %383 = memref.load %arg3[%c57] : memref<64xf32, #tpu.memory_space<smem>>
    %384 = vector.broadcast %383 : f32 to vector<16x384xf32>
    %385 = arith.mulf %20, %384 : vector<16x384xf32>
    %386 = arith.addf %382, %385 : vector<16x384xf32>
    %c58 = arith.constant 58 : index
    %387 = memref.load %arg3[%c58] : memref<64xf32, #tpu.memory_space<smem>>
    %388 = vector.broadcast %387 : f32 to vector<16x384xf32>
    %389 = arith.mulf %30, %388 : vector<16x384xf32>
    %390 = arith.addf %386, %389 : vector<16x384xf32>
    %c59 = arith.constant 59 : index
    %391 = memref.load %arg3[%c59] : memref<64xf32, #tpu.memory_space<smem>>
    %392 = vector.broadcast %391 : f32 to vector<16x384xf32>
    %393 = arith.mulf %40, %392 : vector<16x384xf32>
    %394 = arith.addf %390, %393 : vector<16x384xf32>
    %cst_75 = arith.constant 0.000000e+00 : f32
    %cst_76 = arith.constant 6.000000e+00 : f32
    %395 = vector.broadcast %cst_75 : f32 to vector<16x384xf32>
    %396 = arith.maximumf %395, %394 : vector<16x384xf32>
    %397 = vector.broadcast %cst_76 : f32 to vector<16x384xf32>
    %398 = arith.minimumf %397, %396 : vector<16x384xf32>
    %399 = arith.truncf %398 : vector<16x384xf32> to vector<16x384xbf16>
    %c0_77 = arith.constant 0 : index
    %c5376 = arith.constant 5376 : index
    %400 = vector.load %arg15[%c0_77, %c5376] : memref<16x6144xbf16, #tpu.memory_space<vmem>>, vector<16x384xbf16>
    tpu.vector_store %arg15[%c0_77, %c5376], %399 {strides = array<i32>} : memref<16x6144xbf16, #tpu.memory_space<vmem>>, vector<16x384xbf16>,
    %c60 = arith.constant 60 : index
    %401 = memref.load %arg3[%c60] : memref<64xf32, #tpu.memory_space<smem>>
    %402 = vector.broadcast %401 : f32 to vector<16x384xf32>
    %403 = arith.mulf %10, %402 : vector<16x384xf32>
    %c15_78 = arith.constant 15 : index
    %404 = memref.load %arg4[%c15_78] : memref<16xf32, #tpu.memory_space<smem>>
    %405 = vector.broadcast %404 : f32 to vector<16x384xf32>
    %406 = arith.addf %403, %405 : vector<16x384xf32>
    %c61 = arith.constant 61 : index
    %407 = memref.load %arg3[%c61] : memref<64xf32, #tpu.memory_space<smem>>
    %408 = vector.broadcast %407 : f32 to vector<16x384xf32>
    %409 = arith.mulf %20, %408 : vector<16x384xf32>
    %410 = arith.addf %406, %409 : vector<16x384xf32>
    %c62 = arith.constant 62 : index
    %411 = memref.load %arg3[%c62] : memref<64xf32, #tpu.memory_space<smem>>
    %412 = vector.broadcast %411 : f32 to vector<16x384xf32>
    %413 = arith.mulf %30, %412 : vector<16x384xf32>
    %414 = arith.addf %410, %413 : vector<16x384xf32>
    %c63 = arith.constant 63 : index
    %415 = memref.load %arg3[%c63] : memref<64xf32, #tpu.memory_space<smem>>
    %416 = vector.broadcast %415 : f32 to vector<16x384xf32>
    %417 = arith.mulf %40, %416 : vector<16x384xf32>
    %418 = arith.addf %414, %417 : vector<16x384xf32>
    %cst_79 = arith.constant 0.000000e+00 : f32
    %cst_80 = arith.constant 6.000000e+00 : f32
    %419 = vector.broadcast %cst_79 : f32 to vector<16x384xf32>
    %420 = arith.maximumf %419, %418 : vector<16x384xf32>
    %421 = vector.broadcast %cst_80 : f32 to vector<16x384xf32>
    %422 = arith.minimumf %421, %420 : vector<16x384xf32>
    %423 = arith.truncf %422 : vector<16x384xf32> to vector<16x384xbf16>
    %c0_81 = arith.constant 0 : index
    %c5760 = arith.constant 5760 : index
    %424 = vector.load %arg15[%c0_81, %c5760] : memref<16x6144xbf16, #tpu.memory_space<vmem>>, vector<16x384xbf16>
    tpu.vector_store %arg15[%c0_81, %c5760], %423 {strides = array<i32>} : memref<16x6144xbf16, #tpu.memory_space<vmem>>, vector<16x384xbf16>,
    %c0_82 = arith.constant 0 : index
    %c0_83 = arith.constant 0 : index
    %425 = vector.load %arg15[%c0_82, %c0_83] : memref<16x6144xbf16, #tpu.memory_space<vmem>>, vector<16x6144xbf16>
    %c0_84 = arith.constant 0 : index
    %c0_85 = arith.constant 0 : index
    %426 = vector.load %arg6[%c0_84, %c0_85] : memref<6144x256xbf16, #tpu.memory_space<vmem>>, vector<6144x256xbf16>
    %cst_86 = arith.constant dense<0.000000e+00> : vector<16x256xf32>
    %427 = tpu.matmul %425, %426, %cst_86 {dimension_numbers = #tpu.dot_dimension_numbers<[1], [0], [0], [1], [0, 0, 1, 1], [], []>} : vector<16x6144xbf16>, vector<6144x256xbf16>, vector<16x256xf32> -> vector<16x256xf32>
    %c0_87 = arith.constant 0 : index
    %c0_88 = arith.constant 0 : index
    %428 = vector.load %arg7[%c0_87, %c0_88] : memref<1x256xf32, #tpu.memory_space<vmem>>, vector<1x256xf32>
    %429 = vector.broadcast %428 : vector<1x256xf32> to vector<16x256xf32>
    %430 = arith.addf %427, %429 : vector<16x256xf32>
    %cst_89 = arith.constant 0.000000e+00 : f32
    %cst_90 = arith.constant 6.000000e+00 : f32
    %431 = vector.broadcast %cst_89 : f32 to vector<16x256xf32>
    %432 = arith.maximumf %431, %430 : vector<16x256xf32>
    %433 = vector.broadcast %cst_90 : f32 to vector<16x256xf32>
    %434 = arith.minimumf %433, %432 : vector<16x256xf32>
    %435 = arith.truncf %434 : vector<16x256xf32> to vector<16x256xbf16>
    %c0_91 = arith.constant 0 : index
    %c0_92 = arith.constant 0 : index
    %436 = vector.load %arg8[%c0_91, %c0_92] : memref<256x256xbf16, #tpu.memory_space<vmem>>, vector<256x256xbf16>
    %cst_93 = arith.constant dense<0.000000e+00> : vector<16x256xf32>
    %437 = tpu.matmul %435, %436, %cst_93 {dimension_numbers = #tpu.dot_dimension_numbers<[1], [0], [0], [1], [0, 0, 1, 1], [], []>} : vector<16x256xbf16>, vector<256x256xbf16>, vector<16x256xf32> -> vector<16x256xf32>
    %c0_94 = arith.constant 0 : index
    %c0_95 = arith.constant 0 : index
    %438 = vector.load %arg9[%c0_94, %c0_95] : memref<1x256xf32, #tpu.memory_space<vmem>>, vector<1x256xf32>
    %439 = vector.broadcast %438 : vector<1x256xf32> to vector<16x256xf32>
    %440 = arith.addf %437, %439 : vector<16x256xf32>
    %cst_96 = arith.constant 0.000000e+00 : f32
    %cst_97 = arith.constant 6.000000e+00 : f32
    %441 = vector.broadcast %cst_96 : f32 to vector<16x256xf32>
    %442 = arith.maximumf %441, %440 : vector<16x256xf32>
    %443 = vector.broadcast %cst_97 : f32 to vector<16x256xf32>
    %444 = arith.minimumf %443, %442 : vector<16x256xf32>
    %445 = arith.truncf %444 : vector<16x256xf32> to vector<16x256xbf16>
    %c0_98 = arith.constant 0 : index
    %c0_99 = arith.constant 0 : index
    %446 = vector.load %arg10[%c0_98, %c0_99] : memref<256x256xbf16, #tpu.memory_space<vmem>>, vector<256x256xbf16>
    %cst_100 = arith.constant dense<0.000000e+00> : vector<16x256xf32>
    %447 = tpu.matmul %445, %446, %cst_100 {dimension_numbers = #tpu.dot_dimension_numbers<[1], [0], [0], [1], [0, 0, 1, 1], [], []>} : vector<16x256xbf16>, vector<256x256xbf16>, vector<16x256xf32> -> vector<16x256xf32>
    %c0_101 = arith.constant 0 : index
    %c0_102 = arith.constant 0 : index
    %448 = vector.load %arg11[%c0_101, %c0_102] : memref<1x256xf32, #tpu.memory_space<vmem>>, vector<1x256xf32>
    %449 = vector.broadcast %448 : vector<1x256xf32> to vector<16x256xf32>
    %450 = arith.addf %447, %449 : vector<16x256xf32>
    %cst_103 = arith.constant 0.000000e+00 : f32
    %cst_104 = arith.constant 6.000000e+00 : f32
    %451 = vector.broadcast %cst_103 : f32 to vector<16x256xf32>
    %452 = arith.maximumf %451, %450 : vector<16x256xf32>
    %453 = vector.broadcast %cst_104 : f32 to vector<16x256xf32>
    %454 = arith.minimumf %453, %452 : vector<16x256xf32>
    %455 = arith.truncf %454 : vector<16x256xf32> to vector<16x256xbf16>
    %c0_105 = arith.constant 0 : index
    %c0_106 = arith.constant 0 : index
    %456 = vector.load %arg12[%c0_105, %c0_106] : memref<256x128xbf16, #tpu.memory_space<vmem>>, vector<256x128xbf16>
    %cst_107 = arith.constant dense<0.000000e+00> : vector<16x128xf32>
    %457 = tpu.matmul %455, %456, %cst_107 {dimension_numbers = #tpu.dot_dimension_numbers<[1], [0], [0], [1], [0, 0, 1, 1], [], []>} : vector<16x256xbf16>, vector<256x128xbf16>, vector<16x128xf32> -> vector<16x128xf32>
    %c0_108 = arith.constant 0 : index
    %c0_109 = arith.constant 0 : index
    %458 = vector.load %arg13[%c0_108, %c0_109] : memref<1x128xf32, #tpu.memory_space<vmem>>, vector<1x128xf32>
    %459 = vector.broadcast %458 : vector<1x128xf32> to vector<16x128xf32>
    %460 = arith.addf %457, %459 : vector<16x128xf32>
    %c0_110 = arith.constant 0 : index
    %c0_111 = arith.constant 0 : index
    %461 = vector.load %arg14[%c0_110, %c0_111] : memref<16x128xf32, #tpu.memory_space<vmem>>, vector<16x128xf32>
    tpu.vector_store %arg14[%c0_110, %c0_111], %460 {strides = array<i32>} : memref<16x128xf32, #tpu.memory_space<vmem>>, vector<16x128xf32>,
    return
  }
  func.func @transform_0(%arg0: i32, %arg1: memref<4xf32, #tpu.memory_space<smem>>, %arg2: memref<4xf32, #tpu.memory_space<smem>>, %arg3: memref<64xf32, #tpu.memory_space<smem>>, %arg4: memref<16xf32, #tpu.memory_space<smem>>) -> (i32, i32) {
    %c0_i32 = arith.constant 0 : i32
    %c0_i32_0 = arith.constant 0 : i32
    return %arg0, %c0_i32 : i32, i32
  }
  func.func @transform_1(%arg0: i32, %arg1: memref<4xf32, #tpu.memory_space<smem>>, %arg2: memref<4xf32, #tpu.memory_space<smem>>, %arg3: memref<64xf32, #tpu.memory_space<smem>>, %arg4: memref<16xf32, #tpu.memory_space<smem>>) -> (i32, i32) {
    %c0_i32 = arith.constant 0 : i32
    %c0_i32_0 = arith.constant 0 : i32
    %c0_i32_1 = arith.constant 0 : i32
    return %c0_i32, %c0_i32_0 : i32, i32
  }
  func.func @transform_2(%arg0: i32, %arg1: memref<4xf32, #tpu.memory_space<smem>>, %arg2: memref<4xf32, #tpu.memory_space<smem>>, %arg3: memref<64xf32, #tpu.memory_space<smem>>, %arg4: memref<16xf32, #tpu.memory_space<smem>>) -> (i32, i32) {
    %c0_i32 = arith.constant 0 : i32
    %c0_i32_0 = arith.constant 0 : i32
    %c0_i32_1 = arith.constant 0 : i32
    return %c0_i32, %c0_i32_0 : i32, i32
  }
  func.func @transform_3(%arg0: i32, %arg1: memref<4xf32, #tpu.memory_space<smem>>, %arg2: memref<4xf32, #tpu.memory_space<smem>>, %arg3: memref<64xf32, #tpu.memory_space<smem>>, %arg4: memref<16xf32, #tpu.memory_space<smem>>) -> (i32, i32) {
    %c0_i32 = arith.constant 0 : i32
    %c0_i32_0 = arith.constant 0 : i32
    %c0_i32_1 = arith.constant 0 : i32
    return %c0_i32, %c0_i32_0 : i32, i32
  }
  func.func @transform_4(%arg0: i32, %arg1: memref<4xf32, #tpu.memory_space<smem>>, %arg2: memref<4xf32, #tpu.memory_space<smem>>, %arg3: memref<64xf32, #tpu.memory_space<smem>>, %arg4: memref<16xf32, #tpu.memory_space<smem>>) -> (i32, i32) {
    %c0_i32 = arith.constant 0 : i32
    %c0_i32_0 = arith.constant 0 : i32
    %c0_i32_1 = arith.constant 0 : i32
    return %c0_i32, %c0_i32_0 : i32, i32
  }
  func.func @transform_5(%arg0: i32, %arg1: memref<4xf32, #tpu.memory_space<smem>>, %arg2: memref<4xf32, #tpu.memory_space<smem>>, %arg3: memref<64xf32, #tpu.memory_space<smem>>, %arg4: memref<16xf32, #tpu.memory_space<smem>>) -> (i32, i32) {
    %c0_i32 = arith.constant 0 : i32
    %c0_i32_0 = arith.constant 0 : i32
    %c0_i32_1 = arith.constant 0 : i32
    return %c0_i32, %c0_i32_0 : i32, i32
  }
  func.func @transform_6(%arg0: i32, %arg1: memref<4xf32, #tpu.memory_space<smem>>, %arg2: memref<4xf32, #tpu.memory_space<smem>>, %arg3: memref<64xf32, #tpu.memory_space<smem>>, %arg4: memref<16xf32, #tpu.memory_space<smem>>) -> (i32, i32) {
    %c0_i32 = arith.constant 0 : i32
    %c0_i32_0 = arith.constant 0 : i32
    %c0_i32_1 = arith.constant 0 : i32
    return %c0_i32, %c0_i32_0 : i32, i32
  }
  func.func @transform_7(%arg0: i32, %arg1: memref<4xf32, #tpu.memory_space<smem>>, %arg2: memref<4xf32, #tpu.memory_space<smem>>, %arg3: memref<64xf32, #tpu.memory_space<smem>>, %arg4: memref<16xf32, #tpu.memory_space<smem>>) -> (i32, i32) {
    %c0_i32 = arith.constant 0 : i32
    %c0_i32_0 = arith.constant 0 : i32
    %c0_i32_1 = arith.constant 0 : i32
    return %c0_i32, %c0_i32_0 : i32, i32
  }
  func.func @transform_8(%arg0: i32, %arg1: memref<4xf32, #tpu.memory_space<smem>>, %arg2: memref<4xf32, #tpu.memory_space<smem>>, %arg3: memref<64xf32, #tpu.memory_space<smem>>, %arg4: memref<16xf32, #tpu.memory_space<smem>>) -> (i32, i32) {
    %c0_i32 = arith.constant 0 : i32
    %c0_i32_0 = arith.constant 0 : i32
    %c0_i32_1 = arith.constant 0 : i32
    return %c0_i32, %c0_i32_0 : i32, i32
  }
  func.func @transform_9(%arg0: i32, %arg1: memref<4xf32, #tpu.memory_space<smem>>, %arg2: memref<4xf32, #tpu.memory_space<smem>>, %arg3: memref<64xf32, #tpu.memory_space<smem>>, %arg4: memref<16xf32, #tpu.memory_space<smem>>) -> (i32, i32) {
    %c0_i32 = arith.constant 0 : i32
    %c0_i32_0 = arith.constant 0 : i32
    return %arg0, %c0_i32 : i32, i32
  }
}

</mosaic_0001>

<bundles_post_ra>
// kernel: convnet_forward.1
= control target key start
LH: loop header
LB: loop body
LE: loop exit
PB: predicated region body
PF: predicated region fallthrough
CT: control target
= control target key end

     0   :  { %s12205_s0 = inlined_call_operand.hbm [shape: f32[4], index: 0, kind: input, shape index: {}]   ;;  %s12206_s4 = inlined_call_operand.vmem [shape: f32[16,384], index: 4, kind: input, shape index: {}]   ;;  %s12207_s5 = inlined_call_operand.hbm [shape: bf16[6144,256], index: 5, kind: input, shape index: {}]   ;;  %s12208_s6 = inlined_call_operand.hbm [shape: f32[1,256], index: 6, kind: input, shape index: {}]   ;;  %s12209_s7 = inlined_call_operand.hbm [shape: bf16[256,256], index: 7, kind: input, shape index: {}]   ;;  %s12210_s8 = inlined_call_operand.hbm [shape: f32[1,256], index: 8, kind: input, shape index: {}]   ;;  %s12211_s9 = inlined_call_operand.hbm [shape: bf16[256,256], index: 9, kind: input, shape index: {}]   ;;  %s12212_s10 = inlined_call_operand.hbm [shape: f32[1,256], index: 10, kind: input, shape index: {}]   ;;  %s12213_s11 = inlined_call_operand.hbm [shape: bf16[256,128], index: 11, kind: input, shape index: {}]   ;;  %s12214_s12 = inlined_call_operand.hbm [shape: f32[1,128], index: 12, kind: input, shape index: {}]   ;;  %s12215_s13 = inlined_call_operand.vmem [shape: f32[16,128], index: 13, kind: output, shape index: {}]   ;;  %s12216_s1 = inlined_call_operand.hbm [shape: f32[4], index: 1, kind: input, shape index: {}]   ;;  %s12217_s2 = inlined_call_operand.hbm [shape: f32[64], index: 2, kind: input, shape index: {}]   ;;  %s12218_s3 = inlined_call_operand.hbm [shape: f32[16], index: 3, kind: input, shape index: {}]  }
   0x1   :  { %s10224_s27 = scalar_lea.hbm %s12205_s0, 16 }
   0x2   :  { %p10225_p0 = scmp.ne.s32.totalorder %s12205_s0, %s10224_s27  ;;  %p10228_p1 = scmp.lt.u32.totalorder %s10224_s27, %s12205_s0 }
   0x4   :  { %p10230_p2 = pnand %p10228_p1, %p10225_p0 }
   0x6   :  { %10233 = shalt.err (!%p10230_p2)  }
   0x7   :  { %s10452_s15 = smov [#allocation4]   ;;  %s10234_s20 = scalar_lea.hbm %s12216_s1, 16 }
   0x8   :  { %19 = dma.hbm_to_smem %s12205_s0, 16, %s10452_s15, [#allocation3] }
   0x9   :  { %p10235_p3 = scmp.ne.s32.totalorder %s12216_s1, %s10234_s20  ;;  %p10238_p4 = scmp.lt.u32.totalorder %s10234_s20, %s12216_s1 }
   0xb   :  { %p10240_p5 = pnand %p10238_p4, %p10235_p3 }
   0xd   :  { %10243 = shalt.err (!%p10240_p5)  }
   0xe   :  { %s10453_s25 = smov [#allocation5]   ;;  %s10244_s29 = scalar_lea.hbm %s12217_s2, 16 }
   0xf   :  { %21 = dma.hbm_to_smem %s12216_s1, 16, %s10453_s25, [#allocation3] }
  0x10   :  { %p10245_p6 = scmp.ne.s32.totalorder %s12217_s2, %s10244_s29  ;;  %p10248_p7 = scmp.lt.u32.totalorder %s10244_s29, %s12217_s2 }
  0x12   :  { %p10250_p8 = pnand %p10248_p7, %p10245_p6 }
  0x14   :  { %10253 = shalt.err (!%p10250_p8)  }
  0x15   :  { %s10454_s17 = smov [#allocation6]   ;;  %s10254_s21 = scalar_lea.hbm %s12218_s3, 16 }
  0x16   :  { %23 = dma.hbm_to_smem %s12217_s2, 16, %s10454_s17, [#allocation3] }
  0x17   :  { %p10255_p9 = scmp.ne.s32.totalorder %s12218_s3, %s10254_s21  ;;  %p10258_p10 = scmp.lt.u32.totalorder %s10254_s21, %s12218_s3 }
  0x19   :  { %p10260_p11 = pnand %p10258_p10, %p10255_p9 }
  0x1b   :  { %10263 = shalt.err (!%p10260_p11)  }
  0x1c   :  { %s10455_s26 = smov [#allocation7]  }
  0x1d   :  { %25 = dma.hbm_to_smem %s12218_s3, 16, %s10455_s26, [#allocation3] }
  0x1e   :  { %10440 = dma.done.wait [#allocation3], 64 }
  0x1f   :  { %10441 = vsyncadd [#allocation3], 4294967232 }
  0x20   :  { %27 = sfence }
  0x21   :  { %28 = vsyncpa [#allocation9], 0 }
  0x22   :  { %29 = vsyncpa [#allocation11], 0 }
  0x23   :  { %30 = vsyncpa [#allocation14], 0 }
  0x24   :  { %31 = vsyncpa [#allocation17], 0 }
  0x25   :  { %32 = vsyncpa [#allocation20], 0  ;;  %s10456_s2 = smov [#allocation10]   ;;  %s10457_s29 = smov [#allocation13]  }
  0x26   :  { %s53_s28 = sshll.u32 %s10456_s2, 4  ;;  %s75_s30 = sshll.u32 %s10457_s29, 4  ;;  %s54_s28 = int_to_ptr.vmem [resolvable:$true] %s53_s28  ;;  %s76_s30 = int_to_ptr.vmem [resolvable:$true] %s75_s30 }
  0x27   :  { %s10264_s16 = scalar_lea.hbm %s12208_s6, 32 }
  0x28   :  { %p10265_p12 = scmp.ne.s32.totalorder %s12208_s6, %s10264_s16  ;;  %p10268_p13 = scmp.lt.u32.totalorder %s10264_s16, %s12208_s6 }
  0x2a   :  { %p10270_p0 = pnand %p10268_p13, %p10265_p12 }
  0x2c   :  { %10273 = shalt.err (!%p10270_p0)
}
  0x2d   :  { %s10274_s1 = scalar_lea.vmem %s54_s28, 32  ;;  %p10279_p2 = scmp.lt.s32.totalorder %s54_s28, %s54_s28 }
  0x2e   :  { %p10275_p1 = scmp.ne.s32.totalorder %s54_s28, %s10274_s1  ;;  %p10280_p3 = scmp.lt.s32.totalorder %s10274_s1, %s10274_s1 }
  0x30   :  { %p10281_p4 = por %p10280_p3, %p10279_p2 }
  0x32   :  { %p10282_p5 = pnand %p10281_p4, %p10275_p1 }
  0x34   :  { %10285 = shalt.err (!%p10282_p5)
}
  0x35   :  { %56 = dma.hbm_to_vmem [thread:$0]  %s12208_s6, 32, %s54_s28, [#allocation11]  }
  0x36   :  { %s10286_s24 = scalar_lea.hbm %s12210_s8, 32 }
  0x37   :  { %p10287_p6 = scmp.ne.s32.totalorder %s12210_s8, %s10286_s24  ;;  %p10290_p7 = scmp.lt.u32.totalorder %s10286_s24, %s12210_s8 }
  0x39   :  { %p10292_p8 = pnand %p10290_p7, %p10287_p6 }
  0x3b   :  { %10295 = shalt.err (!%p10292_p8)
}
  0x3c   :  { %s10296_s2 = scalar_lea.vmem %s76_s30, 32  ;;  %p10301_p10 = scmp.lt.s32.totalorder %s76_s30, %s76_s30 }
  0x3d   :  { %p10297_p9 = scmp.ne.s32.totalorder %s76_s30, %s10296_s2  ;;  %p10302_p11 = scmp.lt.s32.totalorder %s10296_s2, %s10296_s2 }
  0x3f   :  { %p10303_p12 = por %p10302_p11, %p10301_p10 }
  0x41   :  { %p10304_p13 = pnand %p10303_p12, %p10297_p9 }
  0x43   :  { %10307 = shalt.err (!%p10304_p13)
}
  0x44   :  { %78 = dma.hbm_to_vmem [thread:$0]  %s12210_s8, 32, %s76_s30, [#allocation14]  }
  0x45   :  { %s10458_s29 = smov [#allocation16]   ;;  %s10459_s15 = smov [#allocation8]  }
  0x46   :  { %s97_s14 = sshll.u32 %s10458_s29, 4  ;;  %s40_s16 = sshll.u32 %s10459_s15, 4  ;;  %s98_s14 = int_to_ptr.vmem [resolvable:$true] %s97_s14  ;;  %s10610_s16 = int_to_ptr.vmem [resolvable:$true] %s40_s16 }
  0x47   :  { %s10308_s18 = scalar_lea.hbm %s12212_s10, 32 }
  0x48   :  { %p10309_p0 = scmp.ne.s32.totalorder %s12212_s10, %s10308_s18  ;;  %p10312_p1 = scmp.lt.u32.totalorder %s10308_s18, %s12212_s10 }
  0x4a   :  { %p10314_p2 = pnand %p10312_p1, %p10309_p0 }
  0x4c   :  { %10317 = shalt.err (!%p10314_p2)
}
  0x4d   :  { %s10318_s8 = scalar_lea.vmem %s98_s14, 32  ;;  %p10323_p4 = scmp.lt.s32.totalorder %s98_s14, %s98_s14 }
  0x4e   :  { %p10319_p3 = scmp.ne.s32.totalorder %s98_s14, %s10318_s8  ;;  %p10324_p5 = scmp.lt.s32.totalorder %s10318_s8, %s10318_s8 }
  0x50   :  { %p10325_p6 = por %p10324_p5, %p10323_p4 }
  0x52   :  { %p10326_p7 = pnand %p10325_p6, %p10319_p3 }
  0x54   :  { %10329 = shalt.err (!%p10326_p7)
}
  0x55   :  { %100 = dma.hbm_to_vmem [thread:$0]  %s12212_s10, 32, %s98_s14, [#allocation17]  }
  0x56   :  { %s10330_s25 = scalar_lea.hbm %s12207_s5, 98304 }
  0x57   :  { %p10331_p8 = scmp.ne.s32.totalorder %s12207_s5, %s10330_s25  ;;  %p10334_p9 = scmp.lt.u32.totalorder %s10330_s25, %s12207_s5 }
  0x59   :  { %p10336_p10 = pnand %p10334_p9, %p10331_p8 }
  0x5b   :  { %10339 = shalt.err (!%p10336_p10)
}
  0x5c   :  { %s10340_s6 = scalar_lea.vmem %s10610_s16, 98304  ;;  %p10345_p12 = scmp.lt.s32.totalorder %s10610_s16, %s10610_s16 }
  0x5d   :  { %p10341_p11 = scmp.ne.s32.totalorder %s10610_s16, %s10340_s6  ;;  %p10346_p13 = scmp.lt.s32.totalorder %s10340_s6, %s10340_s6 }
  0x5f   :  { %p10347_p0 = por %p10346_p13, %p10345_p12 }
  0x61   :  { %p10348_p1 = pnand %p10347_p0, %p10341_p11 }
  0x63   :  { %10351 = shalt.err (!%p10348_p1)
}
  0x64   :  { %s10460_s10 = smov 128   ;;  %s10461_s28 = smov 8  }
  0x65   :  { %46 = dma.hbm_to_vmem [thread:$0]  %s12207_s5, 98304, %s10610_s16, [#allocation9], %s10460_s10, %s10460_s10, %s10461_s28  }
  0x66   :  { %s10462_s15 = smov [#allocation12]   ;;  %s10463_s3 = smov [#allocation15]  }
  0x67   :  { %s62_s17 = sshll.u32 %s10462_s15, 4  ;;  %s84_s18 = sshll.u32 %s10463_s3, 4  ;;  %s63_s17 = int_to_ptr.vmem [resolvable:$true] %s62_s17  ;;  %s10644_s18 = int_to_ptr.vmem [resolvable:$true] %s84_s18 }
  0x68   :  { %s10352_s20 = scalar_lea.hbm %s12209_s7, 4096 }
  0x69   :  { %p10353_p2 = scmp.ne.s32.totalorder %s12209_s7, %s10352_s20  ;;  %p10356_p3 = scmp.lt.u32.totalorder %s10352_s20, %s12209_s7 }
  0x6b   :  { %p10358_p4 = pnand %p10356_p3, %p10353_p2 }
  0x6d   :  { %10361 = shalt.err (!%p10358_p4)
}
  0x6e   :  { %s10362_s5 = scalar_lea.vmem %s63_s17, 4096  ;;  %p10367_p6 = scmp.lt.s32.totalorder %s63_s17, %s63_s17 }
  0x6f   :  { %p10363_p5 = scmp.ne.s32.totalorder %s63_s17, %s10362_s5  ;;  %p10368_p7 = scmp.lt.s32.totalorder %s10362_s5, %s10362_s5 }
  0x71   :  { %p10369_p8 = por %p10368_p7, %p10367_p6 }
  0x73   :  { %p10370_p9 = pnand %p10369_p8, %p10363_p5 }
  0x75   :  { %10373 = shalt.err (!%p10370_p9)
}
  0x76   :  { %68 = dma.hbm_to_vmem [thread:$0]  %s12209_s7, 4096, %s63_s17, [#allocation11], %s10460_s10, %s10460_s10, %s10461_s28  }
  0x77   :  { %s10374_s26 = scalar_lea.hbm %s12211_s9, 4096 }
  0x78   :  { %p10375_p10 = scmp.ne.s32.totalorder %s12211_s9, %s10374_s26  ;;  %p10378_p11 = scmp.lt.u32.totalorder %s10374_s26, %s12211_s9 }
  0x7a   :  { %p10380_p12 = pnand %p10378_p11, %p10375_p10 }
  0x7c   :  { %10383 = shalt.err (!%p10380_p12)
}
  0x7d   :  { %s10384_s29 = scalar_lea.vmem %s10644_s18, 4096  ;;  %p10389_p0 = scmp.lt.s32.totalorder %s10644_s18, %s10644_s18 }
  0x7e   :  { %p10385_p13 = scmp.ne.s32.totalorder %s10644_s18, %s10384_s29  ;;  %p10390_p1 = scmp.lt.s32.totalorder %s10384_s29, %s10384_s29 }
  0x80   :  { %p10391_p2 = por %p10390_p1, %p10389_p0 }
  0x82   :  { %p10392_p3 = pnand %p10391_p2, %p10385_p13 }
  0x84   :  { %10395 = shalt.err (!%p10392_p3)
}
  0x85   :  { %90 = dma.hbm_to_vmem [thread:$0]  %s12211_s9, 4096, %s10644_s18, [#allocation14], %s10460_s10, %s10460_s10, %s10461_s28  }
  0x86   :  { %s10464_s15 = smov [#allocation18]   ;;  %s10396_s1 = scalar_lea.hbm %s12213_s11, 2048 }
  0x87   :  { %s106_s17 = sshll.u32 %s10464_s15, 4  ;;  %p10397_p4 = scmp.ne.s32.totalorder %s12213_s11, %s10396_s1  ;;  %s107_s17 = int_to_ptr.vmem [resolvable:$true] %s106_s17 }
  0x88   :  { %p10400_p5 = scmp.lt.u32.totalorder %s10396_s1, %s12213_s11 }
  0x8a   :  { %p10402_p6 = pnand %p10400_p5, %p10397_p4 }
  0x8c   :  { %10405 = shalt.err (!%p10402_p6)
}
  0x8d   :  { %s10406_s22 = scalar_lea.vmem %s107_s17, 2048  ;;  %p10411_p8 = scmp.lt.s32.totalorder %s107_s17, %s107_s17 }
  0x8e   :  { %p10407_p7 = scmp.ne.s32.totalorder %s107_s17, %s10406_s22  ;;  %p10412_p9 = scmp.lt.s32.totalorder %s10406_s22, %s10406_s22 }
  0x90   :  { %p10413_p10 = por %p10412_p9, %p10411_p8 }
  0x92   :  { %p10414_p11 = pnand %p10413_p10, %p10407_p7 }
  0x94   :  { %10417 = shalt.err (!%p10414_p11)
}
  0x95   :  { %s10465_s9 = smov 64   ;;  %s10466_s10 = smov 4  }
  0x96   :  { %112 = dma.hbm_to_vmem [thread:$0]  %s12213_s11, 2048, %s107_s17, [#allocation17], %s10465_s9, %s10465_s9, %s10466_s10  }
  0x97   :  { %s10467_s5 = smov [#allocation19]   ;;  %s10418_s25 = scalar_lea.hbm %s12214_s12, 16 }
  0x98   :  { %s119_s16 = sshll.u32 %s10467_s5, 4  ;;  %p10419_p12 = scmp.ne.s32.totalorder %s12214_s12, %s10418_s25  ;;  %s120_s16 = int_to_ptr.vmem [resolvable:$true] %s119_s16 }
  0x99   :  { %p10422_p13 = scmp.lt.u32.totalorder %s10418_s25, %s12214_s12 }
  0x9b   :  { %p10424_p0 = pnand %p10422_p13, %p10419_p12 }
  0x9d   :  { %10427 = shalt.err (!%p10424_p0)
}
  0x9e   :  { %s10428_s6 = scalar_lea.vmem %s120_s16, 16  ;;  %s10432_s11 = scalar_lea.vmem %s120_s16, 32 }
  0x9f   :  { %p10429_p1 = scmp.ne.s32.totalorder %s120_s16, %s10428_s6  ;;  %p10433_p2 = scmp.lt.s32.totalorder %s120_s16, %s120_s16 }
  0xa0   :  { %p10434_p3 = scmp.lt.s32.totalorder %s10432_s11, %s10428_s6 }
  0xa2   :  { %p10435_p4 = por %p10434_p3, %p10433_p2 }
  0xa4   :  { %p10436_p5 = pnand %p10435_p4, %p10429_p1 }
  0xa6   :  { %10439 = shalt.err (!%p10436_p5)
}
  0xa7   :  { %122 = dma.hbm_to_vmem [thread:$0]  %s12214_s12, 16, %s120_s16, [#allocation20]  }
  0xa8   :  { %10442 = dma.done.wait [#allocation9], 98304  }
  0xa9   :  { %10443 = vsyncadd [#allocation9], 4294868992 }
  0xaa   :  { %10444 = dma.done.wait [#allocation11], 4128  }
  0xab   :  { %10445 = vsyncadd [#allocation11], 4294963168 }
  0xac   :  { %10446 = dma.done.wait [#allocation14], 4128  }
  0xad   :  { %10447 = vsyncadd [#allocation14], 4294963168 }
  0xae   :  { %10448 = dma.done.wait [#allocation17], 2080  }
  0xaf   :  { %10449 = vsyncadd [#allocation17], 4294965216 }
  0xb0   :  { %10450 = dma.done.wait [#allocation20], 16  }
  0xb1   :  { %10451 = vsyncadd [#allocation20], 4294967280  ;;  %v8960_v0 = vld [vmem:[#allocation8 + $0x4] ss:$8 sps:$4 sm:$0xff]   ;;  %v8964_v2 = vld [vmem:[#allocation8] ss:$8 sps:$4 sm:$0xff]  }
  0xb2   :  { %v8962_v1 = vld [vmem:[#allocation8 + $0xb04] ss:$8 sps:$4 sm:$0xff]   ;;  %6150 = vmatprep.subr.bf16.mxu1 %v8960_v0  ;;  %v8965_v3 = vld [vmem:[#allocation8 + $0xb00] ss:$8 sps:$4 sm:$0xff]   ;;  %v8966_v4 = vld [vmem:[#allocation8 + $0x14] ss:$8 sps:$4 sm:$0xff]  }
  0xb3   :  { %6623 = vmatprep.subr.bf16.mxu0 %v8962_v1  ;;  %6151 = vmatpush1.bf16.msra.mxu1 %v8964_v2  ;;  %v8968_v5 = vld [vmem:[#allocation8 + $0xb14] ss:$8 sps:$4 sm:$0xff]   ;;  %v8970_v6 = vld [vmem:[#allocation8 + $0x10] ss:$8 sps:$4 sm:$0xff]   ;;  %v8972_v8 = vld [vmem:[#allocation8 + $0x24] ss:$8 sps:$4 sm:$0xff]  }
  0xb4   :  { %6624 = vmatpush1.bf16.msra.mxu0 %v8965_v3  ;;  %6152 = vmatprep.subr.bf16.mxu1 %v8966_v4  ;;  %v8971_v7 = vld [vmem:[#allocation8 + $0xb10] ss:$8 sps:$4 sm:$0xff]   ;;  %v8974_v9 = vld [vmem:[#allocation8 + $0xb24] ss:$8 sps:$4 sm:$0xff]   ;;  %v8976_v10 = vld [vmem:[#allocation8 + $0x20] ss:$8 sps:$4 sm:$0xff]  }
  0xb5   :  { %6625 = vmatprep.subr.bf16.mxu0 %v8968_v5  ;;  %v8977_v11 = vld [vmem:[#allocation8 + $0xb20] ss:$8 sps:$4 sm:$0xff]   ;;  %v8978_v12 = vld [vmem:[#allocation8 + $0x34] ss:$8 sps:$4 sm:$0xff]   ;;  %v8982_v14 = vld [vmem:[#allocation8 + $0x30] ss:$8 sps:$4 sm:$0xff]  }
  0xb6   :  { %v8980_v13 = vld [vmem:[#allocation8 + $0xb34] ss:$8 sps:$4 sm:$0xff]   ;;  %v8983_v15 = vld [vmem:[#allocation8 + $0xb30] ss:$8 sps:$4 sm:$0xff]   ;;  %v8984_v16 = vld [vmem:[#allocation8 + $0x44] ss:$8 sps:$4 sm:$0xff]  }
  0xb7   :  { %6153 = vmatpush1.bf16.msra.mxu1 %v8970_v6  ;;  %v8986_v17 = vld [vmem:[#allocation8 + $0xb44] ss:$8 sps:$4 sm:$0xff]   ;;  %s10705_s12 = sld [smem:[#allocation4]]  ;;  %v8988_v18 = vld [vmem:[#allocation8 + $0x40] ss:$8 sps:$4 sm:$0xff]   ;;  %s10709_s15 = sld [smem:[#allocation4 + $0x1]] }
  0xb8   :  { %6626 = vmatpush1.bf16.msra.mxu0 %v8971_v7  ;;  %6154 = vmatprep.subr.bf16.mxu1 %v8972_v8  ;;  %v8989_v19 = vld [vmem:[#allocation8 + $0xb40] ss:$8 sps:$4 sm:$0xff]   ;;  %s10707_s14 = sld [smem:[#allocation5]]  ;;  %v8990_v20 = vld [vmem:[#allocation8 + $0x54] ss:$8 sps:$4 sm:$0xff]   ;;  %s10711_s17 = sld [smem:[#allocation5 + $0x1]] }
  0xb9   :  { %6627 = vmatprep.subr.bf16.mxu0 %v8974_v9  ;;  %v8992_v21 = vld [vmem:[#allocation8 + $0xb54] ss:$8 sps:$4 sm:$0xff]   ;;  %s10713_s3 = sld [smem:[#allocation4 + $0x2]]  ;;  %v8994_v22 = vld [vmem:[#allocation8 + $0x50] ss:$8 sps:$4 sm:$0xff]   ;;  %s10717_s1 = sld [smem:[#allocation4 + $0x3]] }
  0xba   :  { %s10715_s19 = sld [smem:[#allocation5 + $0x2]]  ;;  %v8995_v23 = vld [vmem:[#allocation8 + $0xb50] ss:$8 sps:$4 sm:$0xff]   ;;  %v8996_v24 = vld [vmem:[#allocation8 + $0x64] ss:$8 sps:$4 sm:$0xff]   ;;  %s10719_s20 = sld [smem:[#allocation5 + $0x3]] }
  0xbb   :  { %6155 = vmatpush1.bf16.msra.mxu1 %v8976_v10  ;;  %v8998_v25 = vld [vmem:[#allocation8 + $0xb64] ss:$8 sps:$4 sm:$0xff]   ;;  %s10721_s21 = sld [smem:[#allocation6]]  ;;  %v9000_v26 = vld [vmem:[#allocation8 + $0x60] ss:$8 sps:$4 sm:$0xff]   ;;  %s10725_s30 = sld [smem:[#allocation6 + $0x1]] }
  0xbc   :  { %6628 = vmatpush1.bf16.msra.mxu0 %v8977_v11  ;;  %6156 = vmatprep.subr.bf16.mxu1 %v8978_v12  ;;  %s10723_s8 = sld [smem:[#allocation7]]  ;;  %v9001_v27 = vld [vmem:[#allocation8 + $0xb60] ss:$8 sps:$4 sm:$0xff]   ;;  %v9002_v28 = vld [vmem:[#allocation8 + $0x74] ss:$8 sps:$4 sm:$0xff]   ;;  %s10727_s22 = sld [smem:[#allocation6 + $0x2]] }
  0xbd   :  { %6629 = vmatprep.subr.bf16.mxu0 %v8980_v13  ;;  %v9004_v29 = vld [vmem:[#allocation8 + $0xb74] ss:$8 sps:$4 sm:$0xff]   ;;  %s10729_s9 = sld [smem:[#allocation6 + $0x3]]  ;;  %s10731_s10 = sld [smem:[#allocation6 + $0x1c]]  ;;  %v9006_v30 = vld [vmem:[#allocation8 + $0x70] ss:$8 sps:$4 sm:$0xff]   ;;  %v10756_v41 = vstv %s10705_s12  ;;  %v10762_v44 = vstv %s10709_s15 }
  0xbe   :  { %s10733_s28 = sld [smem:[#allocation7 + $0x7]]  ;;  %s10735_s18 = sld [smem:[#allocation6 + $0x1d]]  ;;  %v9007_v31 = vld [vmem:[#allocation8 + $0xb70] ss:$8 sps:$4 sm:$0xff]   ;;  %v9008_v32 = vld [vmem:[#allocation8 + $0x84] ss:$8 sps:$4 sm:$0xff]   ;;  %v10759_v43 = vstv %s10707_s14  ;;  %v10765_v45 = vstv %s10711_s17 }
  0xbf   :  { %6157 = vmatpush1.bf16.msra.mxu1 %v8982_v14  ;;  %v9010_v33 = vld [vmem:[#allocation8 + $0xb84] ss:$8 sps:$4 sm:$0xff]   ;;  %s10737_s5 = sld [smem:[#allocation6 + $0x1e]]  ;;  %s10739_s16 = sld [smem:[#allocation6 + $0x1f]]  ;;  %v9012_v34 = vld [vmem:[#allocation8 + $0x80] ss:$8 sps:$4 sm:$0xff]   ;;  %v10768_v46 = vstv %s10713_s3  ;;  %v10776_v48 = vstv %s10717_s1 }
  0xc0   :  { %6630 = vmatpush1.bf16.msra.mxu0 %v8983_v15  ;;  %6158 = vmatprep.subr.bf16.mxu1 %v8984_v16  ;;  %s10741_s23 = sld [smem:[#allocation6 + $0x4]]  ;;  %v9013_v35 = vld [vmem:[#allocation8 + $0xb80] ss:$8 sps:$4 sm:$0xff]   ;;  %s10743_s24 = sld [smem:[#allocation7 + $0x1]]  ;;  %v9014_v36 = vld [vmem:[#allocation8 + $0x94] ss:$8 sps:$4 sm:$0xff]   ;;  %v10773_v47 = vstv %s10715_s19  ;;  %v10779_v49 = vstv %s10719_s20 }
  0xc1   :  { %6631 = vmatprep.subr.bf16.mxu0 %v8986_v17  ;;  %s10745_s25 = sld [smem:[#allocation6 + $0x5]]  ;;  %v9016_v37 = vld [vmem:[#allocation8 + $0xb94] ss:$8 sps:$4 sm:$0xff]   ;;  %s10747_s26 = sld [smem:[#allocation6 + $0x6]]  ;;  %v9018_v38 = vld [vmem:[#allocation8 + $0x90] ss:$8 sps:$4 sm:$0xff]   ;;  %v10782_v50 = vstv %s10721_s21  ;;  %v10788_v54 = vstv %s10725_s30 }
  0xc2   :  { %s10749_s27 = sld [smem:[#allocation6 + $0x7]]  ;;  %s10751_s0 = sld [smem:[#allocation6 + $0x20]]  ;;  %v9019_v39 = vld [vmem:[#allocation8 + $0xb90] ss:$8 sps:$4 sm:$0xff]   ;;  %v9020_v40 = vld [vmem:[#allocation8 + $0xa4] ss:$8 sps:$4 sm:$0xff]   ;;  %v10785_v53 = vstv %s10723_s8  ;;  %v10791_v55 = vstv %s10727_s22 }
  0xc3   :  { %6159 = vmatpush1.bf16.msra.mxu1 %v8988_v18  ;;  %s10753_s2 = sld [smem:[#allocation7 + $0x8]]  ;;  %v9022_v42 = vld [vmem:[#allocation8 + $0xba4] ss:$8 sps:$4 sm:$0xff]   ;;  %s10770_s6 = sld [smem:[#allocation6 + $0x21]]  ;;  %v9024_v51 = vld [vmem:[#allocation8 + $0xa0] ss:$8 sps:$4 sm:$0xff]   ;;  %v10794_v56 = vstv %s10729_s9  ;;  %v10797_v58 = vstv %s10731_s10 }
  0xc4   :  { %6632 = vmatpush1.bf16.msra.mxu0 %v8989_v19  ;;  %6160 = vmatprep.subr.bf16.mxu1 %v8990_v20  ;;  %v9025_v52 = vld [vmem:[#allocation8 + $0xba0] ss:$8 sps:$4 sm:$0xff]   ;;  %v9026_v57 = vld [vmem:[#allocation8 + $0xb4] ss:$8 sps:$4 sm:$0xff]   ;;  %12275 = vst [vmem:[#allocation27_spill] sm:$0xff] %v10797_v58  ;;  %v10800_v59 = vstv %s10733_s28  ;;  %v10803_v60 = vstv %s10735_s18  ;;  %s10851_s14 = sld [smem:[#allocation6 + $0x22]] }
  0xc5   :  { %6633 = vmatprep.subr.bf16.mxu0 %v8992_v21  ;;  %12276 = vst [vmem:[#allocation28_spill] sm:$0xff] %v10800_v59  ;;  %12277 = vst [vmem:[#allocation29_spill] sm:$0xff] %v10803_v60  ;;  %v10806_v61 = vstv %s10737_s5  ;;  %v9028_v62 = vld [vmem:[#allocation8 + $0xbb4] ss:$8 sps:$4 sm:$0xff]   ;;  %v10809_v63 = vstv %s10739_s16  ;;  %v149_v3 = vld [vmem:[%s12206_s4 + $0x8] sm:$0xff]  ;;  %s10857_s15 = sld [smem:[#allocation6 + $0x23]] }
  0xc6   :  { %12278 = vst [vmem:[#allocation30_spill] sm:$0xff] %v10806_v61  ;;  %12279 = vst [vmem:[#allocation31_spill] sm:$0xff] %v10809_v63  ;;  %v10812_v0 = vstv %s10741_s23  ;;  %v10815_v1 = vstv %s10743_s24  ;;  %v152_v7 = vld [vmem:[%s12206_s4 + $0x20] sm:$0xff]  ;;  %v157_v8 = vmul.f32 %v10756_v41, %v149_v3  ;;  %v185_v9 = vmul.f32 %v10762_v44, %v149_v3  ;;  %v9030_v12 = vld [vmem:[#allocation8 + $0xb0] ss:$8 sps:$4 sm:$0xff]   ;;  %s11126_s22 = sld [smem:[#allocation7 + $0x9]] }
  0xc7   :  { %6161 = vmatpush1.bf16.msra.mxu1 %v8994_v22  ;;  %v10818_v2 = vstv %s10745_s25  ;;  %v10824_v4 = vstv %s10747_s26  ;;  %v213_v10 = vmul.f32 %v10768_v46, %v149_v3  ;;  %v241_v11 = vmul.f32 %v10776_v48, %v149_v3  ;;  %v9031_v13 = vld [vmem:[#allocation8 + $0xbb0] ss:$8 sps:$4 sm:$0xff]   ;;  %v9032_v14 = vld [vmem:[#allocation8 + $0xc4] ss:$8 sps:$4 sm:$0xff]   ;;  %s11143_s9 = sld [smem:[#allocation6 + $0x25]]  ;;  %s11164_s10 = sld [smem:[#allocation6 + $0x26]] }
  0xc8   :  { %6634 = vmatpush1.bf16.msra.mxu0 %v8995_v23  ;;  %6162 = vmatprep.subr.bf16.mxu1 %v8996_v24  ;;  %v10827_v5 = vstv %s10749_s27  ;;  %v10830_v6 = vstv %s10751_s0  ;;  %v160_v15 = vmul.f32 %v10756_v41, %v152_v7  ;;  %v188_v16 = vmul.f32 %v10762_v44, %v152_v7  ;;  %v9034_v19 = vld [vmem:[#allocation8 + $0xbc4] ss:$8 sps:$4 sm:$0xff]   ;;  %v9036_v24 = vld [vmem:[#allocation8 + $0xc0] ss:$8 sps:$4 sm:$0xff]   ;;  %s11186_s28 = sld [smem:[#allocation6 + $0x27]]  ;;  %s7907_s18 = sld [smem:[#allocation6 + $0x8]] }
  0xc9   :  { %6635 = vmatprep.subr.bf16.mxu0 %v8998_v25  ;;  %v216_v17 = vmul.f32 %v10768_v46, %v152_v7  ;;  %v10843_v18 = vstv %s10753_s2  ;;  %v165_v20 = vadd.f32 %v10759_v43, %v157_v8  ;;  %v193_v21 = vadd.f32 %v10765_v45, %v185_v9  ;;  %v9037_v25 = vld [vmem:[#allocation8 + $0xbc0] ss:$8 sps:$4 sm:$0xff]   ;;  %s7908_s5 = sld [smem:[#allocation7 + $0x2]]  ;;  %s7909_s16 = sld [smem:[#allocation6 + $0x9]] }
  0xca   :  { %12280 = vst [vmem:[#allocation32_spill] sm:$0xff] %v10843_v18  ;;  %v221_v22 = vadd.f32 %v10773_v47, %v213_v10  ;;  %v10849_v23 = vstv %s10770_s6  ;;  %s7910_s23 = sld [smem:[#allocation6 + $0xa]]  ;;  %s7911_s24 = sld [smem:[#allocation6 + $0xb]] }
  0xcb   :  { %6163 = vmatpush1.bf16.msra.mxu1 %v9000_v26  ;;  %v168_v26 = vadd.f32 %v10759_v43, %v160_v15  ;;  %v9043_v15 = vld [vmem:[#allocation8 + $0xbd0] ss:$8 sps:$4 sm:$0xff]   ;;  %s7912_s25 = sld [smem:[#allocation6 + $0xc]]  ;;  %s7947_s26 = sld [smem:[#allocation6 + $0x28]] }
  0xcc   :  { %6636 = vmatpush1.bf16.msra.mxu0 %v9001_v27  ;;  %6164 = vmatprep.subr.bf16.mxu1 %v9002_v28  ;;  %v196_v27 = vadd.f32 %v10765_v45, %v188_v16  ;;  %v224_v28 = vadd.f32 %v10773_v47, %v216_v17  ;;  %s11363_s27 = sld [smem:[#allocation7 + $0x3]]  ;;  %s11365_s0 = sld [smem:[#allocation6 + $0xd]] }
  0xcd   :  { %6637 = vmatprep.subr.bf16.mxu0 %v9004_v29  ;;  %v244_v29 = vmul.f32 %v10776_v48, %v152_v7  ;;  %s11367_s2 = sld [smem:[#allocation7 + $0xa]]  ;;  %s11369_s6 = sld [smem:[#allocation6 + $0x29]] }
  0xce   :  { %s11377_s11 = sld [smem:[#allocation6 + $0xe]]  ;;  %s11381_s29 = sld [smem:[#allocation6 + $0x2a]] }
  0xcf   :  { %6165 = vmatpush1.bf16.msra.mxu1 %v9006_v30  ;;  %v9038_v30 = vld [vmem:[#allocation8 + $0xd4] ss:$8 sps:$4 sm:$0xff]   ;;  %s11399_s7 = sld [smem:[#allocation6 + $0xf]]  ;;  %s11413_s12 = sld [smem:[#allocation6 + $0x2b]] }
  0xd0   :  { %6638 = vmatpush1.bf16.msra.mxu0 %v9007_v31  ;;  %6166 = vmatprep.subr.bf16.mxu1 %v9008_v32  ;;  %v171_v31 = vmax.f32 %v165_v20, 0.0  ;;  %v199_v32 = vmax.f32 %v193_v21, 0.0  ;;  %v9044_v21 = vld [vmem:[#allocation8 + $0xe4] ss:$8 sps:$4 sm:$0xff]   ;;  %s7954_s17 = sld [smem:[#allocation6 + $0x2d]]  ;;  %s11466_s3 = sld [smem:[#allocation6 + $0x2e]] }
  0xd1   :  { %6639 = vmatprep.subr.bf16.mxu0 %v9010_v33  ;;  %v227_v33 = vmax.f32 %v221_v22, 0.0  ;;  %v9046_v22 = vld [vmem:[#allocation8 + $0xbe4] ss:$8 sps:$4 sm:$0xff]   ;;  %s11484_s19 = sld [smem:[#allocation6 + $0x2f]]  ;;  %s7917_s1 = sld [smem:[#allocation6 + $0x10]] }
  0xd2   :  { %s11539_s20 = sld [smem:[#allocation7 + $0x4]]  ;;  %s11541_s21 = sld [smem:[#allocation6 + $0x11]] }
  0xd3   :  { %6167 = vmatpush1.bf16.msra.mxu1 %v9012_v34  ;;  %v249_v34 = vadd.f32 %v10779_v49, %v241_v11  ;;  %s11550_s8 = sld [smem:[#allocation6 + $0x12]]  ;;  %s11571_s30 = sld [smem:[#allocation6 + $0x13]] }
  0xd4   :  { %6640 = vmatpush1.bf16.msra.mxu0 %v9013_v35  ;;  %6168 = vmatprep.subr.bf16.mxu1 %v9014_v36  ;;  %v9040_v35 = vld [vmem:[#allocation8 + $0xbd4] ss:$8 sps:$4 sm:$0xff]   ;;  %v174_v36 = vmax.f32 %v168_v26, 0.0 }
  0xd5   :  { %6641 = vmatprep.subr.bf16.mxu0 %v9016_v37  ;;  %v202_v37 = vmax.f32 %v196_v27, 0.0  ;;  %v10905_v27 = vstv %s10851_s14  ;;  %s7952_s14 = sld [smem:[#allocation6 + $0x2c]] }
  0xd6   :  { %12288 = vst [vmem:[#allocation40_spill] sm:$0xff] %v10905_v27 }
  0xd7   :  { %6169 = vmatpush1.bf16.msra.mxu1 %v9018_v38  ;;  %v230_v38 = vmax.f32 %v224_v28, 0.0  ;;  %v10874_v3 = vmin.f32 %v202_v37, 6.0  ;;  %v9049_v37 = vld [vmem:[#allocation8 + $0xbe0] ss:$8 sps:$4 sm:$0xff]  }
  0xd8   :  { %6642 = vmatpush1.bf16.msra.mxu0 %v9019_v39  ;;  %6170 = vmatprep.subr.bf16.mxu1 %v9020_v40  ;;  %v252_v39 = vadd.f32 %v10779_v49, %v244_v29  ;;  %v10861_v40 = vmin.f32 %v171_v31, 6.0 }
  0xd9   :  { %6643 = vmatprep.subr.bf16.mxu0 %v9022_v42  ;;  %v10863_v42 = vmin.f32 %v199_v32, 6.0  ;;  %12284 = vst [vmem:[#allocation36_spill] sm:$0xff] %v10874_v3  ;;  %v10876_v7 = vmin.f32 %v230_v38, 6.0 }
  0xda   :  { %12281 = vst [vmem:[#allocation33_spill] sm:$0xff] %v10861_v40  ;;  %v258_v8 = vmax.f32 %v252_v39, 0.0  ;;  %v269_v10 = vmul.f32 %v10782_v50, %v10861_v40 }
  0xdb   :  { %6171 = vmatpush1.bf16.msra.mxu1 %v9024_v51  ;;  %12282 = vst [vmem:[#allocation34_spill] sm:$0xff] %v10863_v42  ;;  %v10865_v51 = vmin.f32 %v227_v33, 6.0  ;;  %12285 = vst [vmem:[#allocation37_spill] sm:$0xff] %v10876_v7  ;;  %v285_v11 = vmul.f32 %v10788_v54, %v10863_v42  ;;  %v302_v20 = vmul.f32 %v10791_v55, %v10876_v7 }
  0xdc   :  { %6644 = vmatpush1.bf16.msra.mxu0 %v9025_v52  ;;  %6172 = vmatprep.subr.bf16.mxu1 %v9026_v57  ;;  %v255_v52 = vmax.f32 %v249_v34, 0.0  ;;  %v10870_v57 = vld [vmem:[%s12206_s4 + $0x10] sm:$0xff]  ;;  %v10891_v16 = vmin.f32 %v258_v8, 6.0  ;;  %v10922_v8 = vstv %s10857_s15  ;;  %s7953_s15 = sld [smem:[#allocation7 + $0xb]] }
  0xdd   :  { %6645 = vmatprep.subr.bf16.mxu0 %v9028_v62  ;;  %v10872_v62 = vmin.f32 %v174_v36, 6.0  ;;  %v158_v26 = vmul.f32 %v10756_v41, %v10870_v57  ;;  %v186_v31 = vmul.f32 %v10762_v44, %v10870_v57  ;;  %v9048_v36 = vld [vmem:[#allocation8 + $0xe0] ss:$8 sps:$4 sm:$0xff]   ;;  %12289 = vst [vmem:[#allocation41_spill] sm:$0xff] %v10922_v8 }
  0xde   :  { %v10878_v9 = vmin.f32 %v255_v52, 6.0  ;;  %12287 = vst [vmem:[#allocation39_spill] sm:$0xff] %v10891_v16  ;;  %v316_v29 = vmul.f32 %v10794_v56, %v10891_v16 }
  0xdf   :  { %6173 = vmatpush1.bf16.msra.mxu1 %v9030_v12  ;;  %12283 = vst [vmem:[#allocation35_spill] sm:$0xff] %v10872_v62  ;;  %v299_v12 = vmul.f32 %v10791_v55, %v10865_v51  ;;  %v272_v17 = vmul.f32 %v10782_v50, %v10872_v62  ;;  %v166_v33 = vadd.f32 %v10759_v43, %v158_v26 }
  0xe0   :  { %6646 = vmatpush1.bf16.msra.mxu0 %v9031_v13  ;;  %6174 = vmatprep.subr.bf16.mxu1 %v9032_v14  ;;  %12286 = vst [vmem:[#allocation38_spill] sm:$0xff] %v10878_v9  ;;  %v10889_v13 = vld [vmem:[%s12206_s4 + $0x28] sm:$0xff]  ;;  %v9042_v14 = vld [vmem:[#allocation8 + $0xd0] ss:$8 sps:$4 sm:$0xff]   ;;  %v194_v52 = vadd.f32 %v10765_v45, %v186_v31 }
  0xe1   :  { %6647 = vmatprep.subr.bf16.mxu0 %v9034_v19  ;;  %v288_v19 = vmul.f32 %v10788_v54, %v10874_v3  ;;  %v280_v28 = vadd.f32 %v10785_v53, %v272_v17  ;;  %v189_v34 = vmul.f32 %v10762_v44, %v10889_v13  ;;  %v9055_v31 = vld [vmem:[#allocation8 + $0xbf0] ss:$8 sps:$4 sm:$0xff]  }
  0xe3   :  { %6175 = vmatpush1.bf16.msra.mxu1 %v9036_v24  ;;  %v277_v24 = vadd.f32 %v10785_v53, %v269_v10  ;;  %v294_v38 = vadd.f32 %v288_v19, %v280_v28  ;;  %v9050_v10 = vld [vmem:[#allocation8 + $0xf4] ss:$8 sps:$4 sm:$0xff]   ;;  %v197_v26 = vadd.f32 %v10765_v45, %v189_v34  ;;  %v200_v28 = vmax.f32 %v194_v52, 0.0  ;;  %v9061_v52 = vld [vmem:[#allocation8 + $0xc04] ss:$8 sps:$4 sm:$0xff]  }
  0xe4   :  { %6648 = vmatpush1.bf16.msra.mxu0 %v9037_v25  ;;  %6176 = vmatprep.subr.bf16.mxu1 %v9038_v30  ;;  %v313_v25 = vmul.f32 %v10794_v56, %v10878_v9  ;;  %v161_v30 = vmul.f32 %v10756_v41, %v10889_v13 }
  0xe5   :  { %6649 = vmatprep.subr.bf16.mxu0 %v9040_v35  ;;  %v291_v32 = vadd.f32 %v285_v11, %v277_v24  ;;  %v214_v35 = vmul.f32 %v10768_v46, %v10870_v57  ;;  %v9052_v11 = vld [vmem:[#allocation8 + $0xbf4] ss:$8 sps:$4 sm:$0xff]   ;;  %v172_v24 = vmax.f32 %v166_v33, 0.0  ;;  %v308_v27 = vadd.f32 %v302_v20, %v294_v38 }
  0xe6   :  { %v169_v39 = vadd.f32 %v10759_v43, %v161_v30  ;;  %v10933_v34 = vmin.f32 %v200_v28, 6.0 }
  0xe7   :  { %6177 = vmatpush1.bf16.msra.mxu1 %v9042_v14  ;;  %v305_v17 = vadd.f32 %v299_v12, %v291_v32  ;;  %v217_v14 = vmul.f32 %v10768_v46, %v10889_v13  ;;  %v222_v30 = vadd.f32 %v10773_v47, %v214_v35  ;;  %v10928_v8 = vmin.f32 %v172_v24, 6.0  ;;  %v9058_v32 = vld [vmem:[#allocation8 + $0x104] ss:$8 sps:$4 sm:$0xff]  }
  0xe8   :  { %6650 = vmatpush1.bf16.msra.mxu0 %v9043_v15  ;;  %6178 = vmatprep.subr.bf16.mxu1 %v9044_v21  ;;  %v9054_v15 = vld [vmem:[#allocation8 + $0xf0] ss:$8 sps:$4 sm:$0xff]   ;;  %v175_v19 = vmax.f32 %v169_v39, 0.0  ;;  %v203_v21 = vmax.f32 %v197_v26, 0.0  ;;  %v322_v12 = vadd.f32 %v316_v29, %v308_v27  ;;  %v242_v39 = vmul.f32 %v10776_v48, %v10870_v57  ;;  %v148_v57 = vld [vmem:[%s12206_s4] sm:$0xff] }
  0xe9   :  { %6651 = vmatprep.subr.bf16.mxu0 %v9046_v22  ;;  %v319_v18 = vadd.f32 %v313_v25, %v305_v17  ;;  %v225_v22 = vadd.f32 %v10773_v47, %v217_v14  ;;  %v228_v20 = vmax.f32 %v222_v30, 0.0  ;;  %v245_v27 = vmul.f32 %v10776_v48, %v10889_v13 }
  0xea   :  { %v10931_v33 = vmin.f32 %v175_v19, 6.0  ;;  %v10935_v35 = vmin.f32 %v203_v21, 6.0  ;;  %v328_v17 = vmax.f32 %v322_v12, 0.0  ;;  %v802_v29 = vmul.f32 %v10797_v58, %v10928_v8  ;;  %v151_v19 = vld [vmem:[%s12206_s4 + $0x18] sm:$0xff]  ;;  %s11103_s4 = sld [smem:[#allocation6 + $0x24]] }
  0xeb   :  { %6179 = vmatpush1.bf16.msra.mxu1 %v9048_v36  ;;  %v325_v38 = vmax.f32 %v319_v18, 0.0  ;;  %v231_v25 = vmax.f32 %v225_v22, 0.0  ;;  %v10939_v36 = vmin.f32 %v228_v20, 6.0  ;;  %v250_v18 = vadd.f32 %v10779_v49, %v242_v39 }
  0xec   :  { %6652 = vmatpush1.bf16.msra.mxu0 %v9049_v37  ;;  %6180 = vmatprep.subr.bf16.mxu1 %v9050_v10  ;;  %v334_v24 = vmin.f32 %v328_v17, 6.0  ;;  %v253_v13 = vadd.f32 %v10779_v49, %v245_v27  ;;  %v810_v26 = vadd.f32 %v10800_v59, %v802_v29  ;;  %v818_v14 = vmul.f32 %v10803_v60, %v10933_v34 }
  0xed   :  { %6653 = vmatprep.subr.bf16.mxu0 %v9052_v11  ;;  %v331_v37 = vmin.f32 %v325_v38, 6.0  ;;  %v10945_v10 = vmin.f32 %v231_v25, 6.0  ;;  %v805_v11 = vmul.f32 %v10797_v58, %v10931_v33  ;;  %v256_v28 = vmax.f32 %v250_v18, 0.0 }
  0xee   :  { %v259_v22 = vmax.f32 %v253_v13, 0.0  ;;  %v824_v12 = vadd.f32 %v818_v14, %v810_v26  ;;  %v159_v39 = vmul.f32 %v10756_v41, %v151_v19  ;;  %v184_v29 = vmul.f32 %v10762_v44, %v148_v57 }
  0xef   :  { %6181 = vmatpush1.bf16.msra.mxu1 %v9054_v15  ;;  %v813_v30 = vadd.f32 %v10800_v59, %v805_v11  ;;  %v821_v15 = vmul.f32 %v10803_v60, %v10935_v35  ;;  %v337_v21 = vpack.c.bf16 %v334_v24, %v331_v37  ;;  %v835_v20 = vmul.f32 %v10806_v61, %v10945_v10 }
  0xf0   :  { %6654 = vmatpush1.bf16.msra.mxu0 %v9055_v31  ;;  %6193 = vmatprep.subr.bf16.mxu1 %v9058_v32  ;;  %v832_v31 = vmul.f32 %v10806_v61, %v10939_v36  ;;  %v10967_v38 = vmin.f32 %v256_v28, 6.0  ;;  %v156_v32 = vmul.f32 %v10756_v41, %v148_v57  ;;  %v10971_v17 = vmin.f32 %v259_v22, 6.0 }
  0xf1   :  { %6666 = vmatprep.subr.bf16.mxu0 %v9061_v52  ;;  %v827_v25 = vadd.f32 %v821_v15, %v813_v30  ;;  %6182 = vmatprep.mubr.bf16.mxu1 %v337_v21  ;;  %v187_v52 = vmul.f32 %v10762_v44, %v151_v19  ;;  %v167_v24 = vadd.f32 %v10759_v43, %v159_v39 }
  0xf2   :  { %12290 = vst [vmem:[#allocation42_spill] sm:$0xff] %v10971_v17  ;;  %v838_v27 = vadd.f32 %v832_v31, %v824_v12  ;;  %v846_v18 = vmul.f32 %v10809_v63, %v10967_v38  ;;  %v164_v11 = vadd.f32 %v10759_v43, %v156_v32  ;;  %v849_v13 = vmul.f32 %v10809_v63, %v10971_v17 }
  0xf3   :  { %v841_v37 = vadd.f32 %v835_v20, %v827_v25  ;;  %v192_v41 = vadd.f32 %v10765_v45, %v184_v29  ;;  %v195_v26 = vadd.f32 %v10765_v45, %v187_v52  ;;  %v212_v14 = vmul.f32 %v10768_v46, %v148_v57 }
  0xf4   :  { %v852_v28 = vadd.f32 %v846_v18, %v838_v27  ;;  %v170_v30 = vmax.f32 %v164_v11, 0.0  ;;  %v173_v44 = vmax.f32 %v167_v24, 0.0  ;;  %v215_v15 = vmul.f32 %v10768_v46, %v151_v19 }
  0xf5   :  { %v855_v31 = vadd.f32 %v849_v13, %v841_v37  ;;  %v198_v21 = vmax.f32 %v192_v41, 0.0  ;;  %v201_v22 = vmax.f32 %v195_v26, 0.0  ;;  %v220_v12 = vadd.f32 %v10773_v47, %v212_v14 }
  0xf6   :  { %v858_v43 = vmax.f32 %v852_v28, 0.0  ;;  %v10986_v20 = vmin.f32 %v170_v30, 6.0  ;;  %v10988_v25 = vmin.f32 %v173_v44, 6.0  ;;  %v223_v32 = vadd.f32 %v10773_v47, %v215_v15 }
  0xf7   :  { %v861_v45 = vmax.f32 %v855_v31, 0.0  ;;  %v10991_v39 = vmin.f32 %v198_v21, 6.0  ;;  %v10993_v27 = vmin.f32 %v201_v22, 6.0  ;;  %v226_v29 = vmax.f32 %v220_v12, 0.0 }
  0xf8   :  { %12291 = vst [vmem:[#allocation43_spill] sm:$0xff] %v10986_v20  ;;  %12292 = vst [vmem:[#allocation44_spill] sm:$0xff] %v10988_v25  ;;  %v864_v52 = vmin.f32 %v858_v43, 6.0  ;;  %v229_v46 = vmax.f32 %v223_v32, 0.0  ;;  %v240_v37 = vmul.f32 %v10776_v48, %v148_v57  ;;  %v243_v18 = vmul.f32 %v10776_v48, %v151_v19 }
  0xf9   :  { %12293 = vst [vmem:[#allocation45_spill] sm:$0xff] %v10993_v27  ;;  %v867_v11 = vmin.f32 %v861_v45, 6.0  ;;  %v10997_v24 = vmin.f32 %v226_v29, 6.0  ;;  %v268_v13 = vmul.f32 %v10782_v50, %v10986_v20  ;;  %v271_v47 = vmul.f32 %v10782_v50, %v10988_v25 }
  0xfa   :  { %v11003_v41 = vmin.f32 %v229_v46, 6.0  ;;  %v248_v26 = vadd.f32 %v10779_v49, %v240_v37  ;;  %v251_v14 = vadd.f32 %v10779_v49, %v243_v18  ;;  %v284_v57 = vmul.f32 %v10788_v54, %v10991_v39 }
  0xfb   :  { %12294 = vst [vmem:[#allocation46_spill] sm:$0xff] %v10997_v24  ;;  %v870_v28 = vpack.c.bf16 %v867_v11, %v864_v52  ;;  %v276_v48 = vadd.f32 %v10785_v53, %v268_v13  ;;  %v279_v19 = vadd.f32 %v10785_v53, %v271_v47  ;;  %v287_v30 = vmul.f32 %v10788_v54, %v10993_v27 }
  0xfc   :  { %12295 = vst [vmem:[#allocation47_spill] sm:$0xff] %v11003_v41  ;;  %v254_v44 = vmax.f32 %v248_v26, 0.0  ;;  %v257_v15 = vmax.f32 %v251_v14, 0.0  ;;  %v298_v31 = vmul.f32 %v10791_v55, %v10997_v24  ;;  %v301_v21 = vmul.f32 %v10791_v55, %v11003_v41 }
  0xfd   :  { %6655 = vmatprep.mubr.bf16.mxu0 %v870_v28  ;;  %v290_v49 = vadd.f32 %v284_v57, %v276_v48  ;;  %v293_v22 = vadd.f32 %v287_v30, %v279_v19  ;;  %v801_v12 = vmul.f32 %v10797_v58, %v10861_v40  ;;  %v804_v43 = vmul.f32 %v10797_v58, %v10872_v62  ;;  %v9076_v58 = vld [vmem:[#allocation8 + $0x134] ss:$8 sps:$4 sm:$0xff]  }
  0xfe   :  { %v11021_v32 = vmin.f32 %v254_v44, 6.0  ;;  %v11023_v45 = vmin.f32 %v257_v15, 6.0  ;;  %v817_v29 = vmul.f32 %v10803_v60, %v10863_v42  ;;  %v820_v52 = vmul.f32 %v10803_v60, %v10874_v3  ;;  %v9068_v60 = vld [vmem:[#allocation8 + $0x120] ss:$8 sps:$4 sm:$0xff]  }
  0xff   :  { %v304_v46 = vadd.f32 %v298_v31, %v290_v49  ;;  %v307_v37 = vadd.f32 %v301_v21, %v293_v22  ;;  %v809_v18 = vadd.f32 %v10800_v59, %v801_v12  ;;  %v812_v11 = vadd.f32 %v10800_v59, %v804_v43 }
 0x100   :  { %12296 = vst [vmem:[#allocation48_spill] sm:$0xff] %v11021_v32  ;;  %12297 = vst [vmem:[#allocation49_spill] sm:$0xff] %v11023_v45  ;;  %v312_v13 = vmul.f32 %v10794_v56, %v11021_v32  ;;  %v315_v47 = vmul.f32 %v10794_v56, %v11023_v45  ;;  %v831_v26 = vmul.f32 %v10806_v61, %v10865_v51 }
 0x101   :  { %v834_v14 = vmul.f32 %v10806_v61, %v10876_v7  ;;  %v823_v57 = vadd.f32 %v817_v29, %v809_v18  ;;  %v826_v28 = vadd.f32 %v820_v52, %v812_v11  ;;  %v845_v48 = vmul.f32 %v10809_v63, %v10878_v9 }
 0x102   :  { %v848_v19 = vmul.f32 %v10809_v63, %v10891_v16  ;;  %v318_v30 = vadd.f32 %v312_v13, %v304_v46  ;;  %v321_v44 = vadd.f32 %v315_v47, %v307_v37  ;;  %v344_v15 = vmul.f32 %v10812_v0, %v10986_v20 }
 0x103   :  { %v347_v31 = vmul.f32 %v10812_v0, %v10988_v25  ;;  %v837_v21 = vadd.f32 %v831_v26, %v823_v57  ;;  %v840_v49 = vadd.f32 %v834_v14, %v826_v28  ;;  %v360_v22 = vmul.f32 %v10818_v2, %v10991_v39  ;;  %v9056_v28 = vld [vmem:[#allocation8 + $0x100] ss:$8 sps:$4 sm:$0xff]  }
 0x104   :  { %v363_v12 = vmul.f32 %v10818_v2, %v10993_v27  ;;  %v324_v43 = vmax.f32 %v318_v30, 0.0  ;;  %v327_v29 = vmax.f32 %v321_v44, 0.0  ;;  %v352_v52 = vadd.f32 %v10815_v1, %v344_v15  ;;  %v9064_v15 = vld [vmem:[#allocation8 + $0x114] ss:$8 sps:$4 sm:$0xff]  }
 0x105   :  { %v355_v46 = vadd.f32 %v10815_v1, %v347_v31  ;;  %v851_v37 = vadd.f32 %v845_v48, %v837_v21  ;;  %v854_v18 = vadd.f32 %v848_v19, %v840_v49  ;;  %v374_v11 = vmul.f32 %v10824_v4, %v10997_v24 }
 0x106   :  { %v377_v13 = vmul.f32 %v10824_v4, %v11003_v41  ;;  %v330_v47 = vmin.f32 %v324_v43, 6.0  ;;  %v333_v26 = vmin.f32 %v327_v29, 6.0  ;;  %v366_v14 = vadd.f32 %v360_v22, %v352_v52  ;;  %v9059_v52 = vld [vmem:[#allocation8 + $0xc00] ss:$8 sps:$4 sm:$0xff]  }
 0x107   :  { %v369_v57 = vadd.f32 %v363_v12, %v355_v46  ;;  %v857_v63 = vmax.f32 %v851_v37, 0.0  ;;  %v860_v30 = vmax.f32 %v854_v18, 0.0  ;;  %v388_v44 = vmul.f32 %v10827_v5, %v11021_v32  ;;  %v12298_v18 = vld [vmem:[#allocation32_spill] sm:$0xff] }
 0x108   :  { %v391_v48 = vmul.f32 %v10827_v5, %v11023_v45  ;;  %v336_v19 = vpack.c.bf16 %v333_v26, %v330_v47  ;;  %v380_v31 = vadd.f32 %v374_v11, %v366_v14  ;;  %v877_v49 = vmul.f32 %v10830_v6, %v10861_v40  ;;  %v9062_v26 = vld [vmem:[#allocation8 + $0x110] ss:$8 sps:$4 sm:$0xff]  }
 0x109   :  { %v383_v21 = vadd.f32 %v377_v13, %v369_v57  ;;  %v863_v43 = vmin.f32 %v857_v63, 6.0  ;;  %v866_v29 = vmin.f32 %v860_v30, 6.0  ;;  %v880_v22 = vmul.f32 %v10830_v6, %v10872_v62  ;;  %v9067_v63 = vld [vmem:[#allocation8 + $0xc14] ss:$8 sps:$4 sm:$0xff]  }
 0x10a   :  { %v893_v12 = vmul.f32 %v10849_v23, %v10863_v42  ;;  %6183 = vmatmul.mubr.bf16.vlgmr.msra.gmra.mrb[0].mxu1 %v336_v19  ;;  %v394_v46 = vadd.f32 %v388_v44, %v380_v31  ;;  %v885_v47 = vadd.f32 %v12298_v18, %v877_v49  ;;  %v896_v11 = vmul.f32 %v10849_v23, %v10874_v3  ;;  %v12299_v57 = vld [vmem:[#allocation40_spill] sm:$0xff]  ;;  %v9070_v44 = vld [vmem:[#allocation8 + $0x124] ss:$8 sps:$4 sm:$0xff]  }
 0x10b   :  { %v397_v37 = vadd.f32 %v391_v48, %v383_v21  ;;  %6194 = vmatpush1.bf16.msra.mxu1 %v9056_v28  ;;  %v869_v13 = vpack.c.bf16 %v866_v29, %v863_v43  ;;  %v888_v14 = vadd.f32 %v12298_v18, %v880_v22  ;;  %v907_v30 = vmul.f32 %v12299_v57, %v10865_v51  ;;  %v12300_v21 = vld [vmem:[#allocation41_spill] sm:$0xff] }
 0x10c   :  { %v910_v61 = vmul.f32 %v12299_v57, %v10876_v7  ;;  %6195 = vmatprep.subr.bf16.mxu1 %v9064_v15  ;;  %v400_v48 = vmax.f32 %v394_v46, 0.0  ;;  %v899_v31 = vadd.f32 %v893_v12, %v885_v47  ;;  %v921_v49 = vmul.f32 %v12300_v21, %v10878_v9  ;;  %v9065_v15 = vld [vmem:[#allocation8 + $0xc10] ss:$8 sps:$4 sm:$0xff]  }
 0x10d   :  { %v403_v19 = vmax.f32 %v397_v37, 0.0  ;;  %6656 = vmatmul.mubr.bf16.vlgmr.msra.gmra.mrb[0].mxu0 %v869_v13  ;;  %v902_v28 = vadd.f32 %v896_v11, %v888_v14  ;;  %v924_v43 = vmul.f32 %v12300_v21, %v10891_v16  ;;  %v270_v29 = vmul.f32 %v10782_v50, %v10928_v8  ;;  %v9073_v11 = vld [vmem:[#allocation8 + $0xc24] ss:$8 sps:$4 sm:$0xff]  }
 0x10e   :  { %v273_v22 = vmul.f32 %v10782_v50, %v10931_v33  ;;  %6667 = vmatpush1.bf16.msra.mxu0 %v9059_v52  ;;  %v406_v46 = vmin.f32 %v400_v48, 6.0  ;;  %v913_v12 = vadd.f32 %v907_v30, %v899_v31  ;;  %v286_v47 = vmul.f32 %v10788_v54, %v10933_v34 }
 0x10f   :  { %v409_v37 = vmin.f32 %v403_v19, 6.0  ;;  %6668 = vmatprep.subr.bf16.mxu0 %v9067_v63  ;;  %6196 = vmatpush1.bf16.msra.mxu1 %v9062_v26  ;;  %v916_v13 = vadd.f32 %v910_v61, %v902_v28  ;;  %v278_v14 = vadd.f32 %v10785_v53, %v270_v29  ;;  %v289_v48 = vmul.f32 %v10788_v54, %v10935_v35  ;;  %v9074_v63 = vld [vmem:[#allocation8 + $0x130] ss:$8 sps:$4 sm:$0xff]   ;;  %v9079_v28 = vld [vmem:[#allocation8 + $0xc34] ss:$8 sps:$4 sm:$0xff]  }
 0x110   :  { %v281_v59 = vadd.f32 %v10785_v53, %v273_v22  ;;  %6197 = vmatprep.subr.bf16.mxu1 %v9070_v44  ;;  %v927_v52 = vadd.f32 %v921_v49, %v913_v12  ;;  %v300_v30 = vmul.f32 %v10791_v55, %v10939_v36  ;;  %v303_v26 = vmul.f32 %v10791_v55, %v10945_v10  ;;  %v9071_v53 = vld [vmem:[#allocation8 + $0xc20] ss:$8 sps:$4 sm:$0xff]   ;;  %v9082_v22 = vld [vmem:[#allocation8 + $0x144] ss:$8 sps:$4 sm:$0xff]  }
 0x111   :  { %v412_v50 = vpack.c.bf16 %v409_v37, %v406_v46  ;;  %v930_v19 = vadd.f32 %v924_v43, %v916_v13  ;;  %v292_v31 = vadd.f32 %v286_v47, %v278_v14  ;;  %v314_v61 = vmul.f32 %v10794_v56, %v10967_v38  ;;  %v9080_v47 = vld [vmem:[#allocation8 + $0x140] ss:$8 sps:$4 sm:$0xff]  }
 0x112   :  { %6669 = vmatpush1.bf16.msra.mxu0 %v9065_v15  ;;  %v933_v44 = vmax.f32 %v927_v52, 0.0  ;;  %v295_v49 = vadd.f32 %v289_v48, %v281_v59  ;;  %v317_v54 = vmul.f32 %v10794_v56, %v10971_v17  ;;  %v9077_v15 = vld [vmem:[#allocation8 + $0xc30] ss:$8 sps:$4 sm:$0xff]   ;;  %v9085_v59 = vld [vmem:[#allocation8 + $0xc44] ss:$8 sps:$4 sm:$0xff]  }
 0x113   :  { %6225 = vmatprep.mubr.bf16.mxu1 %v412_v50  ;;  %6670 = vmatprep.subr.bf16.mxu0 %v9073_v11  ;;  %v936_v43 = vmax.f32 %v930_v19, 0.0  ;;  %v306_v29 = vadd.f32 %v300_v30, %v292_v31  ;;  %v9086_v52 = vld [vmem:[#allocation8 + $0x150] ss:$8 sps:$4 sm:$0xff]   ;;  %v9091_v30 = vld [vmem:[#allocation8 + $0xc54] ss:$8 sps:$4 sm:$0xff]  }
 0x114   :  { %6198 = vmatpush1.bf16.msra.mxu1 %v9068_v60  ;;  %v939_v55 = vmin.f32 %v933_v44, 6.0  ;;  %v309_v46 = vadd.f32 %v303_v26, %v295_v49  ;;  %v9088_v60 = vld [vmem:[#allocation8 + $0x154] ss:$8 sps:$4 sm:$0xff]   ;;  %v9094_v19 = vld [vmem:[#allocation8 + $0x164] ss:$8 sps:$4 sm:$0xff]  }
 0x115   :  { %6199 = vmatprep.subr.bf16.mxu1 %v9076_v58  ;;  %v942_v37 = vmin.f32 %v936_v43, 6.0  ;;  %v320_v12 = vadd.f32 %v314_v61, %v306_v29  ;;  %v9083_v58 = vld [vmem:[#allocation8 + $0xc40] ss:$8 sps:$4 sm:$0xff]   ;;  %v9089_v26 = vld [vmem:[#allocation8 + $0xc50] ss:$8 sps:$4 sm:$0xff]   ;;  %v876_v43 = vmul.f32 %v10830_v6, %v10986_v20 }
 0x116   :  { %6671 = vmatpush1.bf16.msra.mxu0 %v9071_v53  ;;  %v323_v13 = vadd.f32 %v317_v54, %v309_v46  ;;  %v9092_v61 = vld [vmem:[#allocation8 + $0x160] ss:$8 sps:$4 sm:$0xff]   ;;  %v9097_v53 = vld [vmem:[#allocation8 + $0xc64] ss:$8 sps:$4 sm:$0xff]   ;;  %v9098_v49 = vld [vmem:[#allocation8 + $0x170] ss:$8 sps:$4 sm:$0xff]   ;;  %v345_v54 = vmul.f32 %v10812_v0, %v10861_v40 }
 0x117   :  { %6672 = vmatprep.subr.bf16.mxu0 %v9079_v28  ;;  %v945_v14 = vpack.c.bf16 %v942_v37, %v939_v55  ;;  %v326_v56 = vmax.f32 %v320_v12, 0.0  ;;  %v9095_v44 = vld [vmem:[#allocation8 + $0xc60] ss:$8 sps:$4 sm:$0xff]   ;;  %v9103_v28 = vld [vmem:[#allocation8 + $0xc74] ss:$8 sps:$4 sm:$0xff]   ;;  %v11114_v37 = vmul.f32 %v10830_v6, %v10988_v25  ;;  %v11118_v12 = vmul.f32 %v10849_v23, %v10991_v39 }
 0x118   :  { %6200 = vmatpush1.bf16.msra.mxu1 %v9074_v63  ;;  %v329_v11 = vmax.f32 %v323_v13, 0.0  ;;  %v9100_v63 = vld [vmem:[#allocation8 + $0x174] ss:$8 sps:$4 sm:$0xff]   ;;  %v9106_v29 = vld [vmem:[#allocation8 + $0x184] ss:$8 sps:$4 sm:$0xff]   ;;  %v353_v55 = vadd.f32 %v10815_v1, %v345_v54 }
 0x119   :  { %6201 = vmatprep.subr.bf16.mxu1 %v9082_v22  ;;  %6698 = vmatprep.mubr.bf16.mxu0 %v945_v14  ;;  %v11097_v50 = vmin.f32 %v326_v56, 6.0  ;;  %v348_v22 = vmul.f32 %v10812_v0, %v10872_v62  ;;  %v9101_v46 = vld [vmem:[#allocation8 + $0xc70] ss:$8 sps:$4 sm:$0xff]   ;;  %v9104_v13 = vld [vmem:[#allocation8 + $0x180] ss:$8 sps:$4 sm:$0xff]   ;;  %v375_v56 = vmul.f32 %v10824_v4, %v10865_v51 }
 0x11a   :  { %6673 = vmatpush1.bf16.msra.mxu0 %v9077_v15  ;;  %v11099_v48 = vmin.f32 %v329_v11, 6.0  ;;  %v361_v15 = vmul.f32 %v10818_v2, %v10863_v42  ;;  %v9109_v11 = vld [vmem:[#allocation8 + $0xc84] ss:$8 sps:$4 sm:$0xff]  }
 0x11b   :  { %6674 = vmatprep.subr.bf16.mxu0 %v9085_v59  ;;  %v346_v59 = vmul.f32 %v10812_v0, %v10928_v8  ;;  %v356_v14 = vadd.f32 %v10815_v1, %v348_v22 }
 0x11c   :  { %6202 = vmatpush1.bf16.msra.mxu1 %v9080_v47  ;;  %v364_v47 = vmul.f32 %v10818_v2, %v10874_v3 }
 0x11d   :  { %6203 = vmatprep.subr.bf16.mxu1 %v9088_v60  ;;  %v378_v60 = vmul.f32 %v10824_v4, %v10876_v7  ;;  %v354_v22 = vadd.f32 %v10815_v1, %v346_v59  ;;  %v9118_v59 = vld [vmem:[#allocation8 + $0x1a4] ss:$8 sps:$4 sm:$0xff]  }
 0x11e   :  { %6675 = vmatpush1.bf16.msra.mxu0 %v9083_v58  ;;  %v11134_v58 = vadd.f32 %v12298_v18, %v876_v43  ;;  %v881_v43 = vmul.f32 %v10830_v6, %v10931_v33 }
 0x11f   :  { %6676 = vmatprep.subr.bf16.mxu0 %v9091_v30  ;;  %v11141_v30 = vstv %s11103_s4  ;;  %s7922_s4 = sld [smem:[#allocation6 + $0x14]] }
 0x120   :  { %6204 = vmatpush1.bf16.msra.mxu1 %v9086_v52  ;;  %v11138_v52 = vmul.f32 %v10849_v23, %v10993_v27 }
 0x121   :  { %6205 = vmatprep.subr.bf16.mxu1 %v9094_v19  ;;  %v367_v19 = vadd.f32 %v361_v15, %v353_v55  ;;  %v894_v15 = vmul.f32 %v10849_v23, %v10933_v34 }
 0x122   :  { %6677 = vmatpush1.bf16.msra.mxu0 %v9089_v26  ;;  %v9112_v26 = vld [vmem:[#allocation8 + $0x194] ss:$8 sps:$4 sm:$0xff]  }
 0x123   :  { %6678 = vmatprep.subr.bf16.mxu0 %v9097_v53  ;;  %v370_v53 = vadd.f32 %v364_v47, %v356_v14  ;;  %v381_v54 = vadd.f32 %v375_v56, %v367_v19  ;;  %v897_v47 = vmul.f32 %v10849_v23, %v10935_v35  ;;  %v9115_v14 = vld [vmem:[#allocation8 + $0xc94] ss:$8 sps:$4 sm:$0xff]   ;;  %v908_v23 = vmul.f32 %v12299_v57, %v10939_v36 }
 0x124   :  { %6206 = vmatpush1.bf16.msra.mxu1 %v9092_v61  ;;  %v349_v61 = vmul.f32 %v10812_v0, %v10931_v33  ;;  %v9107_v0 = vld [vmem:[#allocation8 + $0xc80] ss:$8 sps:$4 sm:$0xff]  }
 0x125   :  { %6207 = vmatprep.subr.bf16.mxu1 %v9100_v63  ;;  %v389_v63 = vmul.f32 %v10827_v5, %v10878_v9  ;;  %v384_v55 = vadd.f32 %v378_v60, %v370_v53  ;;  %v952_v60 = vmul.f32 %v11141_v30, %v10986_v20  ;;  %v925_v20 = vmul.f32 %v12300_v21, %v10971_v17 }
 0x126   :  { %6679 = vmatpush1.bf16.msra.mxu0 %v9095_v44  ;;  %v392_v44 = vmul.f32 %v10827_v5, %v10891_v16 }
 0x127   :  { %6680 = vmatprep.subr.bf16.mxu0 %v9103_v28  ;;  %v878_v28 = vmul.f32 %v10830_v6, %v10928_v8  ;;  %v395_v56 = vadd.f32 %v389_v63, %v381_v54 }
 0x128   :  { %6208 = vmatpush1.bf16.msra.mxu1 %v9098_v49  ;;  %v11153_v49 = vmul.f32 %v10818_v2, %v10933_v34  ;;  %v398_v19 = vadd.f32 %v392_v44, %v384_v55  ;;  %v955_v44 = vmul.f32 %v11141_v30, %v10988_v25  ;;  %v11179_v55 = vstv %s11126_s22  ;;  %s7957_s22 = sld [smem:[#allocation6 + $0x30]] }
 0x129   :  { %6209 = vmatprep.subr.bf16.mxu1 %v9106_v29  ;;  %v9110_v29 = vld [vmem:[#allocation8 + $0x190] ss:$8 sps:$4 sm:$0xff]   ;;  %v886_v6 = vadd.f32 %v12298_v18, %v878_v28  ;;  %v401_v53 = vmax.f32 %v395_v56, 0.0  ;;  %v922_v28 = vmul.f32 %v12300_v21, %v10967_v38  ;;  %v11184_v56 = vstv %s11143_s9  ;;  %s11635_s9 = sld [smem:[#allocation7 + $0x5]] }
 0x12a   :  { %6681 = vmatpush1.bf16.msra.mxu0 %v9101_v46  ;;  %v889_v46 = vadd.f32 %v12298_v18, %v881_v43  ;;  %v9121_v43 = vld [vmem:[#allocation8 + $0xca4] ss:$8 sps:$4 sm:$0xff]   ;;  %v404_v31 = vmax.f32 %v398_v19, 0.0  ;;  %v357_v19 = vadd.f32 %v10815_v1, %v349_v61  ;;  %v365_v25 = vmul.f32 %v10818_v2, %v10935_v35 }
 0x12b   :  { %6682 = vmatprep.subr.bf16.mxu0 %v9109_v11  ;;  %v9113_v11 = vld [vmem:[#allocation8 + $0xc90] ss:$8 sps:$4 sm:$0xff]   ;;  %v900_v63 = vadd.f32 %v894_v15, %v886_v6  ;;  %v11188_v15 = vmin.f32 %v401_v53, 6.0  ;;  %v9124_v6 = vld [vmem:[#allocation8 + $0x1b4] ss:$8 sps:$4 sm:$0xff]   ;;  %v960_v53 = vadd.f32 %v11179_v55, %v952_v60  ;;  %v968_v1 = vmul.f32 %v11184_v56, %v10991_v39 }
 0x12c   :  { %6210 = vmatpush1.bf16.msra.mxu1 %v9104_v13  ;;  %v911_v13 = vmul.f32 %v12299_v57, %v10945_v10  ;;  %v903_v54 = vadd.f32 %v897_v47, %v889_v46  ;;  %v887_v46 = vadd.f32 %v12298_v18, %v11114_v37  ;;  %v963_v18 = vadd.f32 %v11179_v55, %v955_v44  ;;  %v9127_v37 = vld [vmem:[#allocation8 + $0xcb4] ss:$8 sps:$4 sm:$0xff]  }
 0x12d   :  { %6211 = vmatprep.subr.bf16.mxu1 %v9112_v26  ;;  %v9116_v26 = vld [vmem:[#allocation8 + $0x1a0] ss:$8 sps:$4 sm:$0xff]   ;;  %v971_v2 = vmul.f32 %v11184_v56, %v10993_v27  ;;  %v368_v61 = vadd.f32 %v11153_v49, %v354_v22  ;;  %v906_v44 = vmul.f32 %v12299_v57, %v10997_v24  ;;  %v909_v22 = vmul.f32 %v12299_v57, %v11003_v41 }
 0x12e   :  { %6683 = vmatpush1.bf16.msra.mxu0 %v9107_v0  ;;  %v914_v0 = vadd.f32 %v908_v23, %v900_v63  ;;  %v917_v47 = vadd.f32 %v911_v13, %v903_v54  ;;  %v9122_v63 = vld [vmem:[#allocation8 + $0x1b0] ss:$8 sps:$4 sm:$0xff]   ;;  %v9130_v54 = vld [vmem:[#allocation8 + $0x1c4] ss:$8 sps:$4 sm:$0xff]   ;;  %v901_v49 = vadd.f32 %v11138_v52, %v887_v46  ;;  %v390_v57 = vmul.f32 %v10827_v5, %v10967_v38 }
 0x12f   :  { %6684 = vmatprep.subr.bf16.mxu0 %v9115_v14  ;;  %v11195_v14 = vmin.f32 %v404_v31, 6.0  ;;  %v9133_v52 = vld [vmem:[#allocation8 + $0xcc4] ss:$8 sps:$4 sm:$0xff]   ;;  %v9160_v31 = vld [vmem:[#allocation8 + $0x214] ss:$8 sps:$4 sm:$0xff]  }
 0x130   :  { %6212 = vmatpush1.bf16.msra.mxu1 %v9110_v29  ;;  %v376_v29 = vmul.f32 %v10824_v4, %v10939_v36  ;;  %v928_v23 = vadd.f32 %v922_v28, %v914_v0  ;;  %v931_v13 = vadd.f32 %v925_v20, %v917_v47  ;;  %v11209_v20 = vstv %s11164_s10  ;;  %s11637_s10 = sld [smem:[#allocation6 + $0x15]] }
 0x131   :  { %6213 = vmatprep.subr.bf16.mxu1 %v9118_v59  ;;  %v9119_v59 = vld [vmem:[#allocation8 + $0xca0] ss:$8 sps:$4 sm:$0xff]   ;;  %v898_v28 = vadd.f32 %v11118_v12, %v11134_v58  ;;  %v371_v0 = vadd.f32 %v365_v25, %v357_v19  ;;  %v974_v58 = vadd.f32 %v968_v1, %v960_v53  ;;  %v982_v25 = vmul.f32 %v11209_v20, %v10997_v24  ;;  %v9136_v53 = vld [vmem:[#allocation8 + $0x1d4] ss:$8 sps:$4 sm:$0xff]  }
 0x132   :  { %6685 = vmatpush1.bf16.msra.mxu0 %v9113_v11  ;;  %v934_v60 = vmax.f32 %v928_v23, 0.0  ;;  %v937_v11 = vmax.f32 %v931_v13, 0.0  ;;  %v9128_v12 = vld [vmem:[#allocation8 + $0x1c0] ss:$8 sps:$4 sm:$0xff]   ;;  %v977_v23 = vadd.f32 %v971_v2, %v963_v18  ;;  %v382_v46 = vadd.f32 %v376_v29, %v368_v61  ;;  %v9134_v61 = vld [vmem:[#allocation8 + $0x1d0] ss:$8 sps:$4 sm:$0xff]  }
 0x133   :  { %6686 = vmatprep.subr.bf16.mxu0 %v9121_v43  ;;  %v379_v43 = vmul.f32 %v10824_v4, %v10945_v10  ;;  %v985_v4 = vmul.f32 %v11209_v20, %v11003_v41  ;;  %v11231_v19 = vstv %s11186_s28  ;;  %v393_v18 = vmul.f32 %v10827_v5, %v10971_v17  ;;  %v9131_v1 = vld [vmem:[#allocation8 + $0xcc0] ss:$8 sps:$4 sm:$0xff]   ;;  %v9139_v5 = vld [vmem:[#allocation8 + $0xcd4] ss:$8 sps:$4 sm:$0xff]   ;;  %s11642_s28 = sld [smem:[#allocation7 + $0xc]] }
 0x134   :  { %6214 = vmatpush1.bf16.msra.mxu1 %v9116_v26  ;;  %v9125_v26 = vld [vmem:[#allocation8 + $0xcb0] ss:$8 sps:$4 sm:$0xff]   ;;  %v11220_v47 = vmin.f32 %v934_v60, 6.0  ;;  %v912_v2 = vadd.f32 %v906_v44, %v898_v28  ;;  %v920_v29 = vmul.f32 %v12300_v21, %v11021_v32  ;;  %v988_v60 = vadd.f32 %v982_v25, %v974_v58  ;;  %v9142_v44 = vld [vmem:[#allocation8 + $0x1e4] ss:$8 sps:$4 sm:$0xff]  }
 0x135   :  { %6215 = vmatprep.subr.bf16.mxu1 %v9124_v6  ;;  %v11222_v6 = vmin.f32 %v937_v11, 6.0  ;;  %v991_v11 = vadd.f32 %v985_v4, %v977_v23  ;;  %v396_v28 = vadd.f32 %v390_v57, %v382_v46  ;;  %v957_v58 = vmul.f32 %v11141_v30, %v10931_v33  ;;  %v9140_v23 = vld [vmem:[#allocation8 + $0x1e0] ss:$8 sps:$4 sm:$0xff]   ;;  %v9145_v46 = vld [vmem:[#allocation8 + $0xce4] ss:$8 sps:$4 sm:$0xff]  }
 0x136   :  { %6687 = vmatpush1.bf16.msra.mxu0 %v9119_v59  ;;  %v385_v59 = vadd.f32 %v379_v43, %v371_v0  ;;  %v999_v0 = vmul.f32 %v11231_v19, %v11023_v45 }
 0x137   :  { %6688 = vmatprep.subr.bf16.mxu0 %v9127_v37  ;;  %v915_v37 = vadd.f32 %v909_v22, %v901_v49  ;;  %v9137_v49 = vld [vmem:[#allocation8 + $0xcd0] ss:$8 sps:$4 sm:$0xff]   ;;  %v926_v22 = vadd.f32 %v920_v29, %v912_v2  ;;  %v402_v57 = vmax.f32 %v396_v28, 0.0 }
 0x138   :  { %6216 = vmatpush1.bf16.msra.mxu1 %v9122_v63  ;;  %v923_v63 = vmul.f32 %v12300_v21, %v11023_v45  ;;  %v399_v43 = vadd.f32 %v393_v18, %v385_v59  ;;  %v1005_v4 = vadd.f32 %v999_v0, %v991_v11  ;;  %v965_v59 = vadd.f32 %v11179_v55, %v957_v58 }
 0x139   :  { %6217 = vmatprep.subr.bf16.mxu1 %v9130_v54  ;;  %v996_v54 = vmul.f32 %v11231_v19, %v11021_v32  ;;  %v970_v18 = vmul.f32 %v11184_v56, %v10933_v34 }
 0x13a   :  { %6689 = vmatpush1.bf16.msra.mxu0 %v9125_v26  ;;  %v929_v21 = vadd.f32 %v923_v63, %v915_v37  ;;  %v954_v26 = vmul.f32 %v11141_v30, %v10928_v8  ;;  %v405_v2 = vmax.f32 %v399_v43, 0.0  ;;  %v973_v37 = vmul.f32 %v11184_v56, %v10935_v35  ;;  %v9143_v63 = vld [vmem:[#allocation8 + $0xce0] ss:$8 sps:$4 sm:$0xff]   ;;  %v9151_v43 = vld [vmem:[#allocation8 + $0xcf4] ss:$8 sps:$4 sm:$0xff]  }
 0x13b   :  { %6690 = vmatprep.subr.bf16.mxu0 %v9133_v52  ;;  %v1002_v25 = vadd.f32 %v996_v54, %v988_v60  ;;  %v956_v52 = vmul.f32 %v11141_v30, %v10872_v62  ;;  %v9146_v54 = vld [vmem:[#allocation8 + $0x1f0] ss:$8 sps:$4 sm:$0xff]  }
 0x13c   :  { %6218 = vmatpush1.bf16.msra.mxu1 %v9128_v12  ;;  %v953_v12 = vmul.f32 %v11141_v30, %v10861_v40  ;;  %v935_v60 = vmax.f32 %v929_v21, 0.0  ;;  %v979_v28 = vadd.f32 %v973_v37, %v965_v59  ;;  %v408_v21 = vmin.f32 %v402_v57, 6.0  ;;  %v9157_v37 = vld [vmem:[#allocation8 + $0xd04] ss:$8 sps:$4 sm:$0xff]   ;;  %v9155_v57 = vld [vmem:[#allocation8 + $0xd00] ss:$8 sps:$4 sm:$0xff]  }
 0x13d   :  { %6219 = vmatprep.subr.bf16.mxu1 %v9136_v53  ;;  %v962_v53 = vadd.f32 %v11179_v55, %v954_v26  ;;  %v11263_v30 = vadd.f32 %v11179_v55, %v956_v52  ;;  %v1008_v0 = vmax.f32 %v1002_v25, 0.0  ;;  %v987_v26 = vmul.f32 %v11209_v20, %v10945_v10 }
 0x13e   :  { %6691 = vmatpush1.bf16.msra.mxu0 %v9131_v1  ;;  %v9148_v1 = vld [vmem:[#allocation8 + $0x1f4] ss:$8 sps:$4 sm:$0xff]   ;;  %v11260_v29 = vadd.f32 %v11179_v55, %v953_v12  ;;  %v998_v55 = vmul.f32 %v11231_v19, %v10967_v38  ;;  %v411_v58 = vmin.f32 %v405_v2, 6.0  ;;  %v941_v52 = vmin.f32 %v935_v60, 6.0 }
 0x13f   :  { %6692 = vmatprep.subr.bf16.mxu0 %v9139_v5  ;;  %v976_v11 = vadd.f32 %v970_v18, %v962_v53  ;;  %v1011_v5 = vmax.f32 %v1005_v4, 0.0  ;;  %v9149_v4 = vld [vmem:[#allocation8 + $0xcf0] ss:$8 sps:$4 sm:$0xff]   ;;  %v1014_v53 = vmin.f32 %v1008_v0, 6.0 }
 0x140   :  { %6220 = vmatpush1.bf16.msra.mxu1 %v9134_v61  ;;  %v932_v61 = vmax.f32 %v926_v22, 0.0  ;;  %v1001_v22 = vmul.f32 %v11231_v19, %v10971_v17 }
 0x141   :  { %6221 = vmatprep.subr.bf16.mxu1 %v9142_v44  ;;  %v984_v44 = vmul.f32 %v11209_v20, %v10939_v36  ;;  %v1017_v59 = vmin.f32 %v1011_v5, 6.0  ;;  %v9166_v5 = vld [vmem:[#allocation8 + $0x224] ss:$8 sps:$4 sm:$0xff]  }
 0x142   :  { %6693 = vmatpush1.bf16.msra.mxu0 %v9137_v49  ;;  %v9154_v49 = vld [vmem:[#allocation8 + $0x204] ss:$8 sps:$4 sm:$0xff]   ;;  %v938_v12 = vmin.f32 %v932_v61, 6.0  ;;  %v12301_v61 = vpack.c.bf16 %v11099_v48, %v11097_v50  ;;  %v972_v50 = vmul.f32 %v11184_v56, %v10874_v3  ;;  %v986_v48 = vmul.f32 %v11209_v20, %v10876_v7 }
 0x143   :  { %6694 = vmatprep.subr.bf16.mxu0 %v9145_v46  ;;  %v990_v25 = vadd.f32 %v984_v44, %v976_v11  ;;  %v993_v46 = vadd.f32 %v987_v26, %v979_v28  ;;  %v1020_v60 = vpack.c.bf16 %v1017_v59, %v1014_v53  ;;  %v9161_v44 = vld [vmem:[#allocation8 + $0xd10] ss:$8 sps:$4 sm:$0xff]   ;;  %v9169_v26 = vld [vmem:[#allocation8 + $0xd24] ss:$8 sps:$4 sm:$0xff]   ;;  %v9176_v53 = vld [vmem:[#allocation8 + $0x240] ss:$8 sps:$4 sm:$0xff]  }
 0x144   :  { %6222 = vmatpush1.bf16.msra.mxu1 %v9140_v23  ;;  %v9152_v23 = vld [vmem:[#allocation8 + $0x200] ss:$8 sps:$4 sm:$0xff]   ;;  %v944_v2 = vpack.c.bf16 %v941_v52, %v938_v12  ;;  %v9175_v12 = vld [vmem:[#allocation8 + $0xd34] ss:$8 sps:$4 sm:$0xff]  }
 0x145   :  { %6223 = vmatprep.subr.bf16.mxu1 %v9148_v1  ;;  %v1004_v18 = vadd.f32 %v998_v55, %v990_v25  ;;  %v1007_v13 = vadd.f32 %v1001_v22, %v993_v46  ;;  %v414_v1 = vpack.c.bf16 %v411_v58, %v408_v21  ;;  %v978_v22 = vadd.f32 %v972_v50, %v11263_v30  ;;  %v9167_v21 = vld [vmem:[#allocation8 + $0xd20] ss:$8 sps:$4 sm:$0xff]   ;;  %v9178_v30 = vld [vmem:[#allocation8 + $0x244] ss:$8 sps:$4 sm:$0xff]   ;;  %v9173_v46 = vld [vmem:[#allocation8 + $0xd30] ss:$8 sps:$4 sm:$0xff]  }
 0x146   :  { %6695 = vmatpush1.bf16.msra.mxu0 %v9143_v63  ;;  %v9158_v63 = vld [vmem:[#allocation8 + $0x210] ss:$8 sps:$4 sm:$0xff]  }
 0x147   :  { %6696 = vmatprep.subr.bf16.mxu0 %v9151_v43  ;;  %v1010_v45 = vmax.f32 %v1004_v18, 0.0  ;;  %v1013_v11 = vmax.f32 %v1007_v13, 0.0  ;;  %v969_v13 = vmul.f32 %v11184_v56, %v10863_v42  ;;  %v997_v56 = vmul.f32 %v11231_v19, %v10878_v9  ;;  %v9194_v50 = vld [vmem:[#allocation8 + $0x270] ss:$8 sps:$4 sm:$0xff]  }
 0x148   :  { %6224 = vmatpush1.bf16.msra.mxu1 %v9146_v54  ;;  %v9163_v54 = vld [vmem:[#allocation8 + $0xd14] ss:$8 sps:$4 sm:$0xff]   ;;  %v992_v25 = vadd.f32 %v986_v48, %v978_v22  ;;  %v9202_v48 = vld [vmem:[#allocation8 + $0x284] ss:$8 sps:$4 sm:$0xff]  }
 0x149   :  { %6236 = vmatprep.subr.bf16.mxu1 %v9154_v49  ;;  %v11276_v0 = vmin.f32 %v1010_v45, 6.0  ;;  %v11278_v28 = vmin.f32 %v1013_v11, 6.0  ;;  %v983_v45 = vmul.f32 %v11209_v20, %v10865_v51  ;;  %v975_v55 = vadd.f32 %v969_v13, %v11260_v29  ;;  %v9172_v49 = vld [vmem:[#allocation8 + $0x234] ss:$8 sps:$4 sm:$0xff]   ;;  %v9317_v11 = vld [vmem:[#allocation8 + $0xeb0] ss:$8 sps:$4 sm:$0xff]  }
 0x14a   :  { %6697 = vmatpush1.bf16.msra.mxu0 %v9149_v4  ;;  %v1000_v20 = vmul.f32 %v11231_v19, %v10891_v16  ;;  %v9170_v4 = vld [vmem:[#allocation8 + $0x230] ss:$8 sps:$4 sm:$0xff]   ;;  %v9181_v19 = vld [vmem:[#allocation8 + $0xd44] ss:$8 sps:$4 sm:$0xff]   ;;  %v9196_v13 = vld [vmem:[#allocation8 + $0x274] ss:$8 sps:$4 sm:$0xff]  }
 0x14b   :  { %6226 = vmatmul.mubr.bf16.vlgmr.msra.gmra.mrb[0].mxu1 %v12301_v61  ;;  %6709 = vmatprep.subr.bf16.mxu0 %v9157_v37  ;;  %v1022_v43 = vpack.c.bf16 %v11278_v28, %v11276_v0  ;;  %v989_v58 = vadd.f32 %v983_v45, %v975_v55  ;;  %v9184_v37 = vld [vmem:[#allocation8 + $0x254] ss:$8 sps:$4 sm:$0xff]   ;;  %v9205_v55 = vld [vmem:[#allocation8 + $0xd84] ss:$8 sps:$4 sm:$0xff]   ;;  %v9269_v28 = vld [vmem:[#allocation8 + $0xe30] ss:$8 sps:$4 sm:$0xff]  }
 0x14c   :  { %6237 = vmatpush1.bf16.msra.mxu1 %v9152_v23  ;;  %6268 = vmatprep.mubr.bf16.mxu1 %v414_v1  ;;  %v1006_v29 = vadd.f32 %v1000_v20, %v992_v25  ;;  %v9187_v61 = vld [vmem:[#allocation8 + $0xd54] ss:$8 sps:$4 sm:$0xff]   ;;  %v9206_v20 = vld [vmem:[#allocation8 + $0x290] ss:$8 sps:$4 sm:$0xff]   ;;  %v9214_v25 = vld [vmem:[#allocation8 + $0x2a4] ss:$8 sps:$4 sm:$0xff]  }
 0x14d   :  { %6238 = vmatprep.subr.bf16.mxu1 %v9160_v31  ;;  %6699 = vmatmul.mubr.bf16.vlgmr.msra.gmra.mrb[0].mxu0 %v944_v2  ;;  %v9164_v31 = vld [vmem:[#allocation8 + $0x220] ss:$8 sps:$4 sm:$0xff]   ;;  %v1003_v52 = vadd.f32 %v997_v56, %v989_v58  ;;  %v9182_v2 = vld [vmem:[#allocation8 + $0x250] ss:$8 sps:$4 sm:$0xff]   ;;  %v9199_v45 = vld [vmem:[#allocation8 + $0xd74] ss:$8 sps:$4 sm:$0xff]   ;;  %v11302_v56 = vstv %s7907_s18 }
 0x14e   :  { %6710 = vmatpush1.bf16.msra.mxu0 %v9155_v57  ;;  %6741 = vmatprep.mubr.bf16.mxu0 %v1020_v60  ;;  %v1012_v59 = vmax.f32 %v1006_v29, 0.0  ;;  %v9179_v57 = vld [vmem:[#allocation8 + $0xd40] ss:$8 sps:$4 sm:$0xff]   ;;  %v9185_v60 = vld [vmem:[#allocation8 + $0xd50] ss:$8 sps:$4 sm:$0xff]   ;;  %v421_v58 = vmul.f32 %v11302_v56, %v10861_v40  ;;  %s11644_s18 = sld [smem:[#allocation6 + $0x31]] }
 0x14f   :  { %6711 = vmatprep.subr.bf16.mxu0 %v9163_v54  ;;  %v1009_v23 = vmax.f32 %v1003_v52, 0.0  ;;  %v9188_v54 = vld [vmem:[#allocation8 + $0x260] ss:$8 sps:$4 sm:$0xff]   ;;  %v9208_v22 = vld [vmem:[#allocation8 + $0x294] ss:$8 sps:$4 sm:$0xff]   ;;  %v11310_v52 = vstv %s7909_s16  ;;  %s11657_s16 = sld [smem:[#allocation6 + $0x32]] }
 0x150   :  { %6239 = vmatpush1.bf16.msra.mxu1 %v9158_v63  ;;  %v11298_v1 = vmin.f32 %v1012_v59, 6.0  ;;  %v9190_v63 = vld [vmem:[#allocation8 + $0x264] ss:$8 sps:$4 sm:$0xff]   ;;  %v9209_v29 = vld [vmem:[#allocation8 + $0xd90] ss:$8 sps:$4 sm:$0xff]  }
 0x151   :  { %6240 = vmatprep.subr.bf16.mxu1 %v9166_v5  ;;  %v11296_v18 = vmin.f32 %v1009_v23, 6.0  ;;  %v9193_v5 = vld [vmem:[#allocation8 + $0xd64] ss:$8 sps:$4 sm:$0xff]   ;;  %v9220_v59 = vld [vmem:[#allocation8 + $0x2b4] ss:$8 sps:$4 sm:$0xff]  }
 0x152   :  { %6712 = vmatpush1.bf16.msra.mxu0 %v9161_v44  ;;  %v9191_v44 = vld [vmem:[#allocation8 + $0xd60] ss:$8 sps:$4 sm:$0xff]   ;;  %v9274_v0 = vld [vmem:[#allocation8 + $0x344] ss:$8 sps:$4 sm:$0xff]  }
 0x153   :  { %6713 = vmatprep.subr.bf16.mxu0 %v9169_v26  ;;  %v9200_v26 = vld [vmem:[#allocation8 + $0x280] ss:$8 sps:$4 sm:$0xff]  }
 0x154   :  { %6241 = vmatpush1.bf16.msra.mxu1 %v9164_v31  ;;  %v9197_v31 = vld [vmem:[#allocation8 + $0xd70] ss:$8 sps:$4 sm:$0xff]  }
 0x155   :  { %6242 = vmatprep.subr.bf16.mxu1 %v9172_v49  ;;  %v9203_v49 = vld [vmem:[#allocation8 + $0xd80] ss:$8 sps:$4 sm:$0xff]  }
 0x156   :  { %6714 = vmatpush1.bf16.msra.mxu0 %v9167_v21  ;;  %v9211_v21 = vld [vmem:[#allocation8 + $0xd94] ss:$8 sps:$4 sm:$0xff]  }
 0x157   :  { %6715 = vmatprep.subr.bf16.mxu0 %v9175_v12  ;;  %v11308_v12 = vstv %s7908_s5  ;;  %s11651_s5 = sld [smem:[#allocation6 + $0x16]] }
 0x158   :  { %6243 = vmatpush1.bf16.msra.mxu1 %v9170_v4  ;;  %v424_v4 = vmul.f32 %v11302_v56, %v10872_v62  ;;  %v429_v23 = vadd.f32 %v11308_v12, %v421_v58  ;;  %v9230_v58 = vld [vmem:[#allocation8 + $0x2d0] ss:$8 sps:$4 sm:$0xff]  }
 0x159   :  { %6244 = vmatprep.subr.bf16.mxu1 %v9178_v30  ;;  %v9212_v30 = vld [vmem:[#allocation8 + $0x2a0] ss:$8 sps:$4 sm:$0xff]  }
 0x15a   :  { %6716 = vmatpush1.bf16.msra.mxu0 %v9173_v46  ;;  %v9217_v46 = vld [vmem:[#allocation8 + $0xda4] ss:$8 sps:$4 sm:$0xff]  }
 0x15b   :  { %6717 = vmatprep.subr.bf16.mxu0 %v9181_v19  ;;  %v432_v19 = vadd.f32 %v11308_v12, %v424_v4 }
 0x15c   :  { %6245 = vmatpush1.bf16.msra.mxu1 %v9176_v53  ;;  %v437_v53 = vmul.f32 %v11310_v52, %v10863_v42 }
 0x15d   :  { %6246 = vmatprep.subr.bf16.mxu1 %v9184_v37  ;;  %v440_v37 = vmul.f32 %v11310_v52, %v10874_v3 }
 0x15e   :  { %6718 = vmatpush1.bf16.msra.mxu0 %v9179_v57  ;;  %v11318_v57 = vstv %s7910_s23  ;;  %s11673_s23 = sld [smem:[#allocation6 + $0x17]] }
 0x15f   :  { %6719 = vmatprep.subr.bf16.mxu0 %v9187_v61  ;;  %v9218_v61 = vld [vmem:[#allocation8 + $0x2b0] ss:$8 sps:$4 sm:$0xff]  }
 0x160   :  { %6247 = vmatpush1.bf16.msra.mxu1 %v9182_v2  ;;  %v9215_v2 = vld [vmem:[#allocation8 + $0xda0] ss:$8 sps:$4 sm:$0xff]  }
 0x161   :  { %6248 = vmatprep.subr.bf16.mxu1 %v9190_v63  ;;  %v9223_v63 = vld [vmem:[#allocation8 + $0xdb4] ss:$8 sps:$4 sm:$0xff]  }
 0x162   :  { %6720 = vmatpush1.bf16.msra.mxu0 %v9185_v60  ;;  %v443_v60 = vadd.f32 %v437_v53, %v429_v23  ;;  %v9236_v23 = vld [vmem:[#allocation8 + $0x2e0] ss:$8 sps:$4 sm:$0xff]   ;;  %v422_v53 = vmul.f32 %v11302_v56, %v10928_v8 }
 0x163   :  { %6721 = vmatprep.subr.bf16.mxu0 %v9193_v5  ;;  %v9226_v5 = vld [vmem:[#allocation8 + $0x2c4] ss:$8 sps:$4 sm:$0xff]  }
 0x164   :  { %6249 = vmatpush1.bf16.msra.mxu1 %v9188_v54  ;;  %v451_v54 = vmul.f32 %v11318_v57, %v10865_v51 }
 0x165   :  { %6250 = vmatprep.subr.bf16.mxu1 %v9196_v13  ;;  %v446_v13 = vadd.f32 %v440_v37, %v432_v19  ;;  %v9241_v19 = vld [vmem:[#allocation8 + $0xde4] ss:$8 sps:$4 sm:$0xff]  }
 0x166   :  { %6722 = vmatpush1.bf16.msra.mxu0 %v9191_v44  ;;  %v454_v44 = vmul.f32 %v11318_v57, %v10876_v7 }
 0x167   :  { %6723 = vmatprep.subr.bf16.mxu0 %v9199_v45  ;;  %v9221_v45 = vld [vmem:[#allocation8 + $0xdb0] ss:$8 sps:$4 sm:$0xff]  }
 0x168   :  { %6251 = vmatpush1.bf16.msra.mxu1 %v9194_v50  ;;  %v11324_v50 = vstv %s7911_s24  ;;  %s11691_s24 = sld [smem:[#allocation6 + $0x33]] }
 0x169   :  { %6252 = vmatprep.subr.bf16.mxu1 %v9202_v48  ;;  %v9224_v48 = vld [vmem:[#allocation8 + $0x2c0] ss:$8 sps:$4 sm:$0xff]  }
 0x16a   :  { %6724 = vmatpush1.bf16.msra.mxu0 %v9197_v31  ;;  %v9229_v31 = vld [vmem:[#allocation8 + $0xdc4] ss:$8 sps:$4 sm:$0xff]  }
 0x16b   :  { %6725 = vmatprep.subr.bf16.mxu0 %v9205_v55  ;;  %v465_v55 = vmul.f32 %v11324_v50, %v10878_v9 }
 0x16c   :  { %6253 = vmatpush1.bf16.msra.mxu1 %v9200_v26  ;;  %v457_v26 = vadd.f32 %v451_v54, %v443_v60  ;;  %v438_v54 = vmul.f32 %v11310_v52, %v10933_v34 }
 0x16d   :  { %6254 = vmatprep.subr.bf16.mxu1 %v9208_v22  ;;  %v9232_v22 = vld [vmem:[#allocation8 + $0x2d4] ss:$8 sps:$4 sm:$0xff]  }
 0x16e   :  { %6726 = vmatpush1.bf16.msra.mxu0 %v9203_v49  ;;  %v460_v49 = vadd.f32 %v454_v44, %v446_v13  ;;  %v471_v4 = vadd.f32 %v465_v55, %v457_v26  ;;  %v441_v13 = vmul.f32 %v11310_v52, %v10935_v35  ;;  %v9242_v44 = vld [vmem:[#allocation8 + $0x2f0] ss:$8 sps:$4 sm:$0xff]   ;;  %v455_v55 = vmul.f32 %v11318_v57, %v10945_v10 }
 0x16f   :  { %6727 = vmatprep.subr.bf16.mxu0 %v9211_v21  ;;  %v9227_v21 = vld [vmem:[#allocation8 + $0xdc0] ss:$8 sps:$4 sm:$0xff]  }
 0x170   :  { %6255 = vmatpush1.bf16.msra.mxu1 %v9206_v20  ;;  %v468_v20 = vmul.f32 %v11324_v50, %v10891_v16  ;;  %v477_v37 = vmax.f32 %v471_v4, 0.0  ;;  %v9248_v4 = vld [vmem:[#allocation8 + $0x300] ss:$8 sps:$4 sm:$0xff]  }
 0x171   :  { %6256 = vmatprep.subr.bf16.mxu1 %v9214_v25  ;;  %v9235_v25 = vld [vmem:[#allocation8 + $0xdd4] ss:$8 sps:$4 sm:$0xff]  }
 0x172   :  { %6728 = vmatpush1.bf16.msra.mxu0 %v9209_v29  ;;  %v9238_v29 = vld [vmem:[#allocation8 + $0x2e4] ss:$8 sps:$4 sm:$0xff]  }
 0x173   :  { %6729 = vmatprep.subr.bf16.mxu0 %v9217_v46  ;;  %v9233_v46 = vld [vmem:[#allocation8 + $0xdd0] ss:$8 sps:$4 sm:$0xff]  }
 0x174   :  { %6257 = vmatpush1.bf16.msra.mxu1 %v9212_v30  ;;  %v474_v30 = vadd.f32 %v468_v20, %v460_v49  ;;  %v483_v49 = vmin.f32 %v477_v37, 6.0  ;;  %v9251_v37 = vld [vmem:[#allocation8 + $0xe00] ss:$8 sps:$4 sm:$0xff]  }
 0x175   :  { %6258 = vmatprep.subr.bf16.mxu1 %v9220_v59  ;;  %v425_v59 = vmul.f32 %v11302_v56, %v10931_v33 }
 0x176   :  { %6730 = vmatpush1.bf16.msra.mxu0 %v9215_v2  ;;  %v9244_v2 = vld [vmem:[#allocation8 + $0x2f4] ss:$8 sps:$4 sm:$0xff]  }
 0x177   :  { %6731 = vmatprep.subr.bf16.mxu0 %v9223_v63  ;;  %v430_v63 = vadd.f32 %v11308_v12, %v422_v53  ;;  %v433_v60 = vadd.f32 %v11308_v12, %v425_v59 }
 0x178   :  { %6259 = vmatpush1.bf16.msra.mxu1 %v9218_v61  ;;  %v480_v61 = vmax.f32 %v474_v30, 0.0  ;;  %v469_v30 = vmul.f32 %v11324_v50, %v10971_v17 }
 0x179   :  { %6260 = vmatprep.subr.bf16.mxu1 %v9226_v5  ;;  %v9239_v5 = vld [vmem:[#allocation8 + $0xde0] ss:$8 sps:$4 sm:$0xff]   ;;  %v447_v26 = vadd.f32 %v441_v13, %v433_v60  ;;  %v9262_v60 = vld [vmem:[#allocation8 + $0x324] ss:$8 sps:$4 sm:$0xff]   ;;  %v12303_v13 = vpack.c.bf16 %v11222_v6, %v11220_v47  ;;  %v11444_v47 = vstv %s11399_s7  ;;  %s11856_s7 = sld [smem:[#allocation6 + $0x1a]] }
 0x17a   :  { %6732 = vmatpush1.bf16.msra.mxu0 %v9221_v45  ;;  %v444_v45 = vadd.f32 %v438_v54, %v430_v63  ;;  %v486_v20 = vmin.f32 %v480_v61, 6.0  ;;  %v9254_v61 = vld [vmem:[#allocation8 + $0x310] ss:$8 sps:$4 sm:$0xff]   ;;  %v9259_v63 = vld [vmem:[#allocation8 + $0xe14] ss:$8 sps:$4 sm:$0xff]  }
 0x17b   :  { %6733 = vmatprep.subr.bf16.mxu0 %v9229_v31  ;;  %v9247_v31 = vld [vmem:[#allocation8 + $0xdf4] ss:$8 sps:$4 sm:$0xff]   ;;  %v9263_v6 = vld [vmem:[#allocation8 + $0xe20] ss:$8 sps:$4 sm:$0xff]  }
 0x17c   :  { %6261 = vmatpush1.bf16.msra.mxu1 %v9224_v48  ;;  %v452_v48 = vmul.f32 %v11318_v57, %v10939_v36  ;;  %v489_v53 = vpack.c.bf16 %v486_v20, %v483_v49  ;;  %v9280_v49 = vld [vmem:[#allocation8 + $0x354] ss:$8 sps:$4 sm:$0xff]   ;;  %v9275_v20 = vld [vmem:[#allocation8 + $0xe40] ss:$8 sps:$4 sm:$0xff]  }
 0x17d   :  { %6262 = vmatprep.subr.bf16.mxu1 %v9232_v22  ;;  %v9250_v22 = vld [vmem:[#allocation8 + $0x304] ss:$8 sps:$4 sm:$0xff]  }
 0x17e   :  { %6734 = vmatpush1.bf16.msra.mxu0 %v9227_v21  ;;  %v458_v21 = vadd.f32 %v452_v48, %v444_v45  ;;  %v9260_v45 = vld [vmem:[#allocation8 + $0x320] ss:$8 sps:$4 sm:$0xff]   ;;  %v9268_v48 = vld [vmem:[#allocation8 + $0x334] ss:$8 sps:$4 sm:$0xff]  }
 0x17f   :  { %6735 = vmatprep.subr.bf16.mxu0 %v9235_v25  ;;  %v461_v25 = vadd.f32 %v455_v55, %v447_v26  ;;  %v9266_v26 = vld [vmem:[#allocation8 + $0x330] ss:$8 sps:$4 sm:$0xff]   ;;  %v9271_v55 = vld [vmem:[#allocation8 + $0xe34] ss:$8 sps:$4 sm:$0xff]  }
 0x180   :  { %6263 = vmatpush1.bf16.msra.mxu1 %v9230_v58  ;;  %v9245_v58 = vld [vmem:[#allocation8 + $0xdf0] ss:$8 sps:$4 sm:$0xff]  }
 0x181   :  { %6264 = vmatprep.subr.bf16.mxu1 %v9238_v29  ;;  %v466_v29 = vmul.f32 %v11324_v50, %v10967_v38 }
 0x182   :  { %6736 = vmatpush1.bf16.msra.mxu0 %v9233_v46  ;;  %v9253_v46 = vld [vmem:[#allocation8 + $0xe04] ss:$8 sps:$4 sm:$0xff]  }
 0x183   :  { %6737 = vmatprep.subr.bf16.mxu0 %v9241_v19  ;;  %v472_v59 = vadd.f32 %v466_v29, %v458_v21  ;;  %v475_v19 = vadd.f32 %v469_v30, %v461_v25  ;;  %v9278_v21 = vld [vmem:[#allocation8 + $0x350] ss:$8 sps:$4 sm:$0xff]   ;;  %v9286_v25 = vld [vmem:[#allocation8 + $0x364] ss:$8 sps:$4 sm:$0xff]   ;;  %v9284_v29 = vld [vmem:[#allocation8 + $0x360] ss:$8 sps:$4 sm:$0xff]  }
 0x184   :  { %6265 = vmatpush1.bf16.msra.mxu1 %v9236_v23  ;;  %v9256_v23 = vld [vmem:[#allocation8 + $0x314] ss:$8 sps:$4 sm:$0xff]   ;;  %v9289_v30 = vld [vmem:[#allocation8 + $0xe64] ss:$8 sps:$4 sm:$0xff]  }
 0x185   :  { %6266 = vmatprep.subr.bf16.mxu1 %v9244_v2  ;;  %v12302_v2 = vpack.c.bf16 %v11195_v14, %v11188_v15  ;;  %v478_v54 = vmax.f32 %v472_v59, 0.0  ;;  %v9265_v14 = vld [vmem:[#allocation8 + $0xe24] ss:$8 sps:$4 sm:$0xff]   ;;  %v9295_v59 = vld [vmem:[#allocation8 + $0xe74] ss:$8 sps:$4 sm:$0xff]  }
 0x186   :  { %6738 = vmatpush1.bf16.msra.mxu0 %v9239_v5  ;;  %v481_v5 = vmax.f32 %v475_v19, 0.0  ;;  %v9298_v19 = vld [vmem:[#allocation8 + $0x384] ss:$8 sps:$4 sm:$0xff]  }
 0x187   :  { %6739 = vmatprep.subr.bf16.mxu0 %v9247_v31  ;;  %v11357_v15 = vmin.f32 %v478_v54, 6.0 }
 0x188   :  { %6267 = vmatpush1.bf16.msra.mxu1 %v9242_v44  ;;  %v9257_v44 = vld [vmem:[#allocation8 + $0xe10] ss:$8 sps:$4 sm:$0xff]   ;;  %v11359_v31 = vmin.f32 %v481_v5, 6.0 }
 0x189   :  { %6279 = vmatprep.subr.bf16.mxu1 %v9250_v22  ;;  %v9277_v22 = vld [vmem:[#allocation8 + $0xe44] ss:$8 sps:$4 sm:$0xff]   ;;  %v12305_v5 = vld [vmem:[#allocation44_spill] sm:$0xff] }
 0x18a   :  { %6740 = vmatpush1.bf16.msra.mxu0 %v9245_v58  ;;  %v9283_v58 = vld [vmem:[#allocation8 + $0xe54] ss:$8 sps:$4 sm:$0xff]  }
 0x18b   :  { %6269 = vmatmul.mubr.bf16.vlgmr.msra.gmra.mrb[0].mxu1 %v12302_v2  ;;  %6752 = vmatprep.subr.bf16.mxu0 %v9253_v46  ;;  %v9292_v46 = vld [vmem:[#allocation8 + $0x374] ss:$8 sps:$4 sm:$0xff]   ;;  %v9296_v2 = vld [vmem:[#allocation8 + $0x380] ss:$8 sps:$4 sm:$0xff]  }
 0x18c   :  { %6280 = vmatpush1.bf16.msra.mxu1 %v9248_v4  ;;  %6311 = vmatprep.mubr.bf16.mxu1 %v489_v53  ;;  %v9281_v4 = vld [vmem:[#allocation8 + $0xe50] ss:$8 sps:$4 sm:$0xff]  }
 0x18d   :  { %6281 = vmatprep.subr.bf16.mxu1 %v9256_v23  ;;  %6742 = vmatmul.mubr.bf16.vlgmr.msra.gmra.mrb[0].mxu0 %v12303_v13  ;;  %v9287_v23 = vld [vmem:[#allocation8 + $0xe60] ss:$8 sps:$4 sm:$0xff]   ;;  %v9290_v53 = vld [vmem:[#allocation8 + $0x370] ss:$8 sps:$4 sm:$0xff]   ;;  %v423_v13 = vmul.f32 %v11302_v56, %v12305_v5 }
 0x18e   :  { %6753 = vmatpush1.bf16.msra.mxu0 %v9251_v37  ;;  %6784 = vmatprep.mubr.bf16.mxu0 %v1022_v43  ;;  %v9272_v43 = vld [vmem:[#allocation8 + $0x340] ss:$8 sps:$4 sm:$0xff]   ;;  %v9293_v37 = vld [vmem:[#allocation8 + $0xe70] ss:$8 sps:$4 sm:$0xff]  }
 0x18f   :  { %6754 = vmatprep.subr.bf16.mxu0 %v9259_v63  ;;  %v9304_v63 = vld [vmem:[#allocation8 + $0x394] ss:$8 sps:$4 sm:$0xff]  }
 0x190   :  { %6282 = vmatpush1.bf16.msra.mxu1 %v9254_v61  ;;  %v9301_v61 = vld [vmem:[#allocation8 + $0xe84] ss:$8 sps:$4 sm:$0xff]  }
 0x191   :  { %6283 = vmatprep.subr.bf16.mxu1 %v9262_v60  ;;  %v12304_v60 = vld [vmem:[#allocation43_spill] sm:$0xff] }
 0x192   :  { %6755 = vmatpush1.bf16.msra.mxu0 %v9257_v44  ;;  %v420_v54 = vmul.f32 %v11302_v56, %v12304_v60  ;;  %v11375_v44 = vstv %s7912_s25  ;;  %s7962_s25 = sld [smem:[#allocation6 + $0x34]] }
 0x193   :  { %6756 = vmatprep.subr.bf16.mxu0 %v9265_v14  ;;  %v9302_v14 = vld [vmem:[#allocation8 + $0x390] ss:$8 sps:$4 sm:$0xff]  }
 0x194   :  { %6284 = vmatpush1.bf16.msra.mxu1 %v9260_v45  ;;  %v9299_v45 = vld [vmem:[#allocation8 + $0xe80] ss:$8 sps:$4 sm:$0xff]   ;;  %v428_v56 = vadd.f32 %v11308_v12, %v420_v54 }
 0x195   :  { %6285 = vmatprep.subr.bf16.mxu1 %v9268_v48  ;;  %v9307_v48 = vld [vmem:[#allocation8 + $0xe94] ss:$8 sps:$4 sm:$0xff]   ;;  %v9311_v54 = vld [vmem:[#allocation8 + $0xea0] ss:$8 sps:$4 sm:$0xff]  }
 0x196   :  { %6757 = vmatpush1.bf16.msra.mxu0 %v9263_v6  ;;  %v9310_v6 = vld [vmem:[#allocation8 + $0x3a4] ss:$8 sps:$4 sm:$0xff]  }
 0x197   :  { %6758 = vmatprep.subr.bf16.mxu0 %v9271_v55  ;;  %v431_v55 = vadd.f32 %v11308_v12, %v423_v13  ;;  %v9305_v12 = vld [vmem:[#allocation8 + $0xe90] ss:$8 sps:$4 sm:$0xff]  }
 0x198   :  { %6286 = vmatpush1.bf16.msra.mxu1 %v9266_v26  ;;  %v11379_v26 = vstv %s7947_s26  ;;  %v9314_v13 = vld [vmem:[#allocation8 + $0x3b0] ss:$8 sps:$4 sm:$0xff]   ;;  %s11751_s26 = sld [smem:[#allocation7 + $0xd]] }
 0x199   :  { %6287 = vmatprep.subr.bf16.mxu1 %v9274_v0  ;;  %v496_v0 = vmul.f32 %v11375_v44, %v12304_v60 }
 0x19a   :  { %6759 = vmatpush1.bf16.msra.mxu0 %v9269_v28  ;;  %v499_v28 = vmul.f32 %v11375_v44, %v12305_v5 }
 0x19b   :  { %6760 = vmatprep.subr.bf16.mxu0 %v9277_v22  ;;  %v439_v22 = vmul.f32 %v11310_v52, %v10993_v27 }
 0x19c   :  { %6288 = vmatpush1.bf16.msra.mxu1 %v9272_v43  ;;  %v436_v43 = vmul.f32 %v11310_v52, %v10991_v39  ;;  %v9316_v52 = vld [vmem:[#allocation8 + $0x3b4] ss:$8 sps:$4 sm:$0xff]  }
 0x19d   :  { %6289 = vmatprep.subr.bf16.mxu1 %v9280_v49  ;;  %v11394_v49 = vstv %s11363_s27  ;;  %s11753_s27 = sld [smem:[#allocation6 + $0x35]] }
 0x19e   :  { %6761 = vmatpush1.bf16.msra.mxu0 %v9275_v20  ;;  %v11397_v20 = vstv %s11365_s0  ;;  %s11763_s0 = sld [smem:[#allocation6 + $0x36]] }
 0x19f   :  { %6762 = vmatprep.subr.bf16.mxu0 %v9283_v58  ;;  %v9313_v58 = vld [vmem:[#allocation8 + $0xea4] ss:$8 sps:$4 sm:$0xff]  }
 0x1a0   :  { %6290 = vmatpush1.bf16.msra.mxu1 %v9278_v21  ;;  %v9308_v21 = vld [vmem:[#allocation8 + $0x3a0] ss:$8 sps:$4 sm:$0xff]  }
 0x1a1   :  { %6291 = vmatprep.subr.bf16.mxu1 %v9286_v25  ;;  %v1029_v25 = vmul.f32 %v11379_v26, %v10861_v40 }
 0x1a2   :  { %6763 = vmatpush1.bf16.msra.mxu0 %v9281_v4  ;;  %v1032_v4 = vmul.f32 %v11379_v26, %v10872_v62 }
 0x1a3   :  { %6764 = vmatprep.subr.bf16.mxu0 %v9289_v30  ;;  %v11408_v30 = vstv %s11367_s2  ;;  %s11789_s2 = sld [smem:[#allocation6 + $0x37]] }
 0x1a4   :  { %6292 = vmatpush1.bf16.msra.mxu1 %v9284_v29  ;;  %v450_v29 = vmul.f32 %v11318_v57, %v10997_v24 }
 0x1a5   :  { %6293 = vmatprep.subr.bf16.mxu1 %v9292_v46  ;;  %v11411_v46 = vstv %s11369_s6  ;;  %s7927_s6 = sld [smem:[#allocation6 + $0x18]] }
 0x1a6   :  { %6765 = vmatpush1.bf16.msra.mxu0 %v9287_v23  ;;  %v504_v23 = vadd.f32 %v11394_v49, %v496_v0  ;;  %v11435_v0 = vstv %s11381_s29  ;;  %s11845_s29 = sld [smem:[#allocation6 + $0x19]] }
 0x1a7   :  { %6766 = vmatprep.subr.bf16.mxu0 %v9295_v59  ;;  %v512_v59 = vmul.f32 %v11397_v20, %v10991_v39 }
 0x1a8   :  { %6294 = vmatpush1.bf16.msra.mxu1 %v9290_v53  ;;  %v507_v53 = vadd.f32 %v11394_v49, %v499_v28 }
 0x1a9   :  { %6295 = vmatprep.subr.bf16.mxu1 %v9298_v19  ;;  %v515_v19 = vmul.f32 %v11397_v20, %v10993_v27  ;;  %v518_v28 = vadd.f32 %v512_v59, %v504_v23  ;;  %v1062_v59 = vmul.f32 %v11435_v0, %v10876_v7 }
 0x1aa   :  { %6767 = vmatpush1.bf16.msra.mxu0 %v9293_v37  ;;  %v442_v37 = vadd.f32 %v436_v43, %v428_v56  ;;  %v1048_v56 = vmul.f32 %v11411_v46, %v10874_v3  ;;  %v9320_v3 = vld [vmem:[#allocation8 + $0x3c0] ss:$8 sps:$4 sm:$0xff]  }
 0x1ab   :  { %6768 = vmatprep.subr.bf16.mxu0 %v9301_v61  ;;  %v453_v61 = vmul.f32 %v11318_v57, %v11003_v41  ;;  %v9322_v57 = vld [vmem:[#allocation8 + $0x3c4] ss:$8 sps:$4 sm:$0xff]   ;;  %v521_v43 = vadd.f32 %v515_v19, %v507_v53  ;;  %v1059_v53 = vmul.f32 %v11435_v0, %v10865_v51  ;;  %v11451_v19 = vstv %s11413_s12  ;;  %s11878_s12 = sld [smem:[#allocation6 + $0x1b]] }
 0x1ac   :  { %6296 = vmatpush1.bf16.msra.mxu1 %v9296_v2  ;;  %v445_v2 = vadd.f32 %v439_v22, %v431_v55  ;;  %v464_v55 = vmul.f32 %v11324_v50, %v11021_v32 }
 0x1ad   :  { %6297 = vmatprep.subr.bf16.mxu1 %v9304_v63  ;;  %v11424_v63 = vstv %s11377_s11  ;;  %s11843_s11 = sld [smem:[#allocation7 + $0x6]] }
 0x1ae   :  { %6769 = vmatpush1.bf16.msra.mxu0 %v9299_v45  ;;  %v9319_v45 = vld [vmem:[#allocation8 + $0xeb4] ss:$8 sps:$4 sm:$0xff]   ;;  %v526_v22 = vmul.f32 %v11424_v63, %v10997_v24 }
 0x1af   :  { %6770 = vmatprep.subr.bf16.mxu0 %v9307_v48  ;;  %v1040_v48 = vadd.f32 %v11408_v30, %v1032_v4  ;;  %v459_v4 = vadd.f32 %v453_v61, %v445_v2  ;;  %v540_v61 = vmul.f32 %v11444_v47, %v11021_v32 }
 0x1b0   :  { %6298 = vmatpush1.bf16.msra.mxu1 %v9302_v14  ;;  %v1037_v14 = vadd.f32 %v11408_v30, %v1029_v25  ;;  %v456_v25 = vadd.f32 %v450_v29, %v442_v37  ;;  %v9325_v29 = vld [vmem:[#allocation8 + $0xec4] ss:$8 sps:$4 sm:$0xff]   ;;  %v532_v37 = vadd.f32 %v526_v22, %v518_v28  ;;  %v1076_v28 = vmul.f32 %v11451_v19, %v10891_v16 }
 0x1b1   :  { %6299 = vmatprep.subr.bf16.mxu1 %v9310_v6  ;;  %v1045_v6 = vmul.f32 %v11411_v46, %v10863_v42  ;;  %v1054_v23 = vadd.f32 %v1048_v56, %v1040_v48  ;;  %v9326_v56 = vld [vmem:[#allocation8 + $0x3d0] ss:$8 sps:$4 sm:$0xff]  }
 0x1b2   :  { %6771 = vmatpush1.bf16.msra.mxu0 %v9305_v12  ;;  %v529_v12 = vmul.f32 %v11424_v63, %v11003_v41  ;;  %v546_v22 = vadd.f32 %v540_v61, %v532_v37  ;;  %v9343_v37 = vld [vmem:[#allocation8 + $0xef4] ss:$8 sps:$4 sm:$0xff]  }
 0x1b3   :  { %6772 = vmatprep.subr.bf16.mxu0 %v9313_v58  ;;  %v12306_v58 = vld [vmem:[#allocation49_spill] sm:$0xff]  ;;  %v1068_v7 = vadd.f32 %v1062_v59, %v1054_v23  ;;  %v9335_v59 = vld [vmem:[#allocation8 + $0xee0] ss:$8 sps:$4 sm:$0xff]  }
 0x1b4   :  { %6300 = vmatpush1.bf16.msra.mxu1 %v9308_v21  ;;  %v467_v21 = vmul.f32 %v11324_v50, %v12306_v58  ;;  %v9328_v50 = vld [vmem:[#allocation8 + $0x3d4] ss:$8 sps:$4 sm:$0xff]   ;;  %v535_v2 = vadd.f32 %v529_v12, %v521_v43  ;;  %v9334_v43 = vld [vmem:[#allocation8 + $0x3e4] ss:$8 sps:$4 sm:$0xff]   ;;  %v552_v16 = vmax.f32 %v546_v22, 0.0 }
 0x1b5   :  { %6301 = vmatprep.subr.bf16.mxu1 %v9316_v52  ;;  %v1051_v52 = vadd.f32 %v1045_v6, %v1037_v14  ;;  %v470_v14 = vadd.f32 %v464_v55, %v456_v25  ;;  %v9323_v6 = vld [vmem:[#allocation8 + $0xec0] ss:$8 sps:$4 sm:$0xff]   ;;  %v1082_v23 = vadd.f32 %v1076_v28, %v1068_v7  ;;  %v9352_v28 = vld [vmem:[#allocation8 + $0x414] ss:$8 sps:$4 sm:$0xff]  }
 0x1b6   :  { %6773 = vmatpush1.bf16.msra.mxu0 %v9311_v54  ;;  %v543_v54 = vmul.f32 %v11444_v47, %v12306_v58  ;;  %v473_v48 = vadd.f32 %v467_v21, %v459_v4  ;;  %v9332_v4 = vld [vmem:[#allocation8 + $0x3e0] ss:$8 sps:$4 sm:$0xff]   ;;  %v9337_v21 = vld [vmem:[#allocation8 + $0xee4] ss:$8 sps:$4 sm:$0xff]   ;;  %v558_v7 = vmin.f32 %v552_v16, 6.0 }
 0x1b7   :  { %6774 = vmatprep.subr.bf16.mxu0 %v9319_v45  ;;  %v9331_v45 = vld [vmem:[#allocation8 + $0xed4] ss:$8 sps:$4 sm:$0xff]   ;;  %v476_v55 = vmax.f32 %v470_v14, 0.0  ;;  %v1088_v61 = vmax.f32 %v1082_v23, 0.0  ;;  %v9341_v14 = vld [vmem:[#allocation8 + $0xef0] ss:$8 sps:$4 sm:$0xff]  }
 0x1b8   :  { %6302 = vmatpush1.bf16.msra.mxu1 %v9314_v13  ;;  %v1065_v13 = vadd.f32 %v1059_v53, %v1051_v52  ;;  %v549_v12 = vadd.f32 %v543_v54, %v535_v2  ;;  %v479_v25 = vmax.f32 %v473_v48, 0.0  ;;  %v9340_v53 = vld [vmem:[#allocation8 + $0x3f4] ss:$8 sps:$4 sm:$0xff]   ;;  %v9346_v54 = vld [vmem:[#allocation8 + $0x404] ss:$8 sps:$4 sm:$0xff]  }
 0x1b9   :  { %6303 = vmatprep.subr.bf16.mxu1 %v9322_v57  ;;  %v1073_v57 = vmul.f32 %v11451_v19, %v10878_v9  ;;  %v9347_v22 = vld [vmem:[#allocation8 + $0xf00] ss:$8 sps:$4 sm:$0xff]   ;;  %v9355_v16 = vld [vmem:[#allocation8 + $0xf14] ss:$8 sps:$4 sm:$0xff]  }
 0x1ba   :  { %6775 = vmatpush1.bf16.msra.mxu0 %v9317_v11  ;;  %v9329_v11 = vld [vmem:[#allocation8 + $0xed0] ss:$8 sps:$4 sm:$0xff]   ;;  %v485_v9 = vmin.f32 %v479_v25, 6.0  ;;  %v9358_v25 = vld [vmem:[#allocation8 + $0x424] ss:$8 sps:$4 sm:$0xff]  }
 0x1bb   :  { %6776 = vmatprep.subr.bf16.mxu0 %v9325_v29  ;;  %v1079_v52 = vadd.f32 %v1073_v57, %v1065_v13  ;;  %v555_v29 = vmax.f32 %v549_v12, 0.0  ;;  %v1094_v57 = vmin.f32 %v1088_v61, 6.0  ;;  %v9350_v12 = vld [vmem:[#allocation8 + $0x410] ss:$8 sps:$4 sm:$0xff]   ;;  %v9359_v23 = vld [vmem:[#allocation8 + $0xf20] ss:$8 sps:$4 sm:$0xff]  }
 0x1bc   :  { %6304 = vmatpush1.bf16.msra.mxu1 %v9320_v3  ;;  %v482_v3 = vmin.f32 %v476_v55, 6.0  ;;  %v9379_v61 = vld [vmem:[#allocation8 + $0xf54] ss:$8 sps:$4 sm:$0xff]  }
 0x1bd   :  { %6305 = vmatprep.subr.bf16.mxu1 %v9328_v50  ;;  %v9338_v50 = vld [vmem:[#allocation8 + $0x3f0] ss:$8 sps:$4 sm:$0xff]   ;;  %v1085_v2 = vmax.f32 %v1079_v52, 0.0  ;;  %v561_v48 = vmin.f32 %v555_v29, 6.0  ;;  %v9364_v52 = vld [vmem:[#allocation8 + $0x434] ss:$8 sps:$4 sm:$0xff]  }
 0x1be   :  { %6777 = vmatpush1.bf16.msra.mxu0 %v9323_v6  ;;  %v9344_v6 = vld [vmem:[#allocation8 + $0x400] ss:$8 sps:$4 sm:$0xff]   ;;  %v9370_v29 = vld [vmem:[#allocation8 + $0x444] ss:$8 sps:$4 sm:$0xff]  }
 0x1bf   :  { %6778 = vmatprep.subr.bf16.mxu0 %v9331_v45  ;;  %v488_v45 = vpack.c.bf16 %v485_v9, %v482_v3  ;;  %v1091_v13 = vmin.f32 %v1085_v2, 6.0  ;;  %v12307_v9 = vpack.c.bf16 %v11298_v1, %v11296_v18  ;;  %v9365_v18 = vld [vmem:[#allocation8 + $0xf30] ss:$8 sps:$4 sm:$0xff]   ;;  %v9368_v1 = vld [vmem:[#allocation8 + $0x440] ss:$8 sps:$4 sm:$0xff]  }
 0x1c0   :  { %6306 = vmatpush1.bf16.msra.mxu1 %v9326_v56  ;;  %v9349_v56 = vld [vmem:[#allocation8 + $0xf04] ss:$8 sps:$4 sm:$0xff]   ;;  %v9374_v2 = vld [vmem:[#allocation8 + $0x450] ss:$8 sps:$4 sm:$0xff]  }
 0x1c1   :  { %6307 = vmatprep.subr.bf16.mxu1 %v9334_v43  ;;  %v564_v43 = vpack.c.bf16 %v561_v48, %v558_v7  ;;  %v1097_v55 = vpack.c.bf16 %v1094_v57, %v1091_v13  ;;  %v9373_v3 = vld [vmem:[#allocation8 + $0xf44] ss:$8 sps:$4 sm:$0xff]   ;;  %v9380_v7 = vld [vmem:[#allocation8 + $0x460] ss:$8 sps:$4 sm:$0xff]   ;;  %v9391_v13 = vld [vmem:[#allocation8 + $0xf74] ss:$8 sps:$4 sm:$0xff]  }
 0x1c2   :  { %6779 = vmatpush1.bf16.msra.mxu0 %v9329_v11  ;;  %v9353_v11 = vld [vmem:[#allocation8 + $0xf10] ss:$8 sps:$4 sm:$0xff]   ;;  %v9385_v48 = vld [vmem:[#allocation8 + $0xf64] ss:$8 sps:$4 sm:$0xff]  }
 0x1c3   :  { %6780 = vmatprep.subr.bf16.mxu0 %v9337_v21  ;;  %v9361_v21 = vld [vmem:[#allocation8 + $0xf24] ss:$8 sps:$4 sm:$0xff]  }
 0x1c4   :  { %6308 = vmatpush1.bf16.msra.mxu1 %v9332_v4  ;;  %v9356_v4 = vld [vmem:[#allocation8 + $0x420] ss:$8 sps:$4 sm:$0xff]   ;;  %v9394_v57 = vld [vmem:[#allocation8 + $0x484] ss:$8 sps:$4 sm:$0xff]  }
 0x1c5   :  { %6309 = vmatprep.subr.bf16.mxu1 %v9340_v53  ;;  %v9362_v53 = vld [vmem:[#allocation8 + $0x430] ss:$8 sps:$4 sm:$0xff]  }
 0x1c6   :  { %6781 = vmatpush1.bf16.msra.mxu0 %v9335_v59  ;;  %v9367_v59 = vld [vmem:[#allocation8 + $0xf34] ss:$8 sps:$4 sm:$0xff]  }
 0x1c7   :  { %6782 = vmatprep.subr.bf16.mxu0 %v9343_v37  ;;  %v9371_v37 = vld [vmem:[#allocation8 + $0xf40] ss:$8 sps:$4 sm:$0xff]  }
 0x1c8   :  { %6310 = vmatpush1.bf16.msra.mxu1 %v9338_v50  ;;  %v9376_v50 = vld [vmem:[#allocation8 + $0x454] ss:$8 sps:$4 sm:$0xff]  }
 0x1c9   :  { %6322 = vmatprep.subr.bf16.mxu1 %v9346_v54  ;;  %v9382_v54 = vld [vmem:[#allocation8 + $0x464] ss:$8 sps:$4 sm:$0xff]  }
 0x1ca   :  { %6783 = vmatpush1.bf16.msra.mxu0 %v9341_v14  ;;  %v9377_v14 = vld [vmem:[#allocation8 + $0xf50] ss:$8 sps:$4 sm:$0xff]  }
 0x1cb   :  { %6312 = vmatmul.mubr.bf16.vlgmr.msra.gmra.mrb[0].mxu1 %v488_v45  ;;  %6795 = vmatprep.subr.bf16.mxu0 %v9349_v56  ;;  %v9383_v56 = vld [vmem:[#allocation8 + $0xf60] ss:$8 sps:$4 sm:$0xff]   ;;  %v9386_v45 = vld [vmem:[#allocation8 + $0x470] ss:$8 sps:$4 sm:$0xff]  }
 0x1cc   :  { %6323 = vmatpush1.bf16.msra.mxu1 %v9344_v6  ;;  %6354 = vmatprep.mubr.bf16.mxu1 %v564_v43  ;;  %v9388_v6 = vld [vmem:[#allocation8 + $0x474] ss:$8 sps:$4 sm:$0xff]   ;;  %v9392_v43 = vld [vmem:[#allocation8 + $0x480] ss:$8 sps:$4 sm:$0xff]  }
 0x1cd   :  { %6324 = vmatprep.subr.bf16.mxu1 %v9352_v28  ;;  %6785 = vmatmul.mubr.bf16.vlgmr.msra.gmra.mrb[0].mxu0 %v12307_v9  ;;  %v9389_v28 = vld [vmem:[#allocation8 + $0xf70] ss:$8 sps:$4 sm:$0xff]   ;;  %v9406_v9 = vld [vmem:[#allocation8 + $0x4a4] ss:$8 sps:$4 sm:$0xff]  }
 0x1ce   :  { %6796 = vmatpush1.bf16.msra.mxu0 %v9347_v22  ;;  %6827 = vmatprep.mubr.bf16.mxu0 %v1097_v55  ;;  %v9397_v22 = vld [vmem:[#allocation8 + $0xf84] ss:$8 sps:$4 sm:$0xff]   ;;  %v9395_v55 = vld [vmem:[#allocation8 + $0xf80] ss:$8 sps:$4 sm:$0xff]  }
 0x1cf   :  { %6797 = vmatprep.subr.bf16.mxu0 %v9355_v16  ;;  %v9398_v16 = vld [vmem:[#allocation8 + $0x490] ss:$8 sps:$4 sm:$0xff]  }
 0x1d0   :  { %6325 = vmatpush1.bf16.msra.mxu1 %v9350_v12  ;;  %v9400_v12 = vld [vmem:[#allocation8 + $0x494] ss:$8 sps:$4 sm:$0xff]  }
 0x1d1   :  { %6326 = vmatprep.subr.bf16.mxu1 %v9358_v25  ;;  %v9403_v25 = vld [vmem:[#allocation8 + $0xf94] ss:$8 sps:$4 sm:$0xff]  }
 0x1d2   :  { %6798 = vmatpush1.bf16.msra.mxu0 %v9353_v11  ;;  %v11464_v11 = vstv %s7952_s14  ;;  %s7967_s14 = sld [smem:[#allocation6 + $0x38]] }
 0x1d3   :  { %6799 = vmatprep.subr.bf16.mxu0 %v9361_v21  ;;  %v501_v21 = vmul.f32 %v11375_v44, %v10931_v33 }
 0x1d4   :  { %6327 = vmatpush1.bf16.msra.mxu1 %v9356_v4  ;;  %v498_v4 = vmul.f32 %v11375_v44, %v10928_v8 }
 0x1d5   :  { %6328 = vmatprep.subr.bf16.mxu1 %v9364_v52  ;;  %v1028_v52 = vmul.f32 %v11379_v26, %v12304_v60 }
 0x1d6   :  { %6800 = vmatpush1.bf16.msra.mxu0 %v9359_v23  ;;  %v1031_v23 = vmul.f32 %v11379_v26, %v12305_v5 }
 0x1d7   :  { %6801 = vmatprep.subr.bf16.mxu0 %v9367_v59  ;;  %v9404_v59 = vld [vmem:[#allocation8 + $0x4a0] ss:$8 sps:$4 sm:$0xff]  }
 0x1d8   :  { %6329 = vmatpush1.bf16.msra.mxu1 %v9362_v53  ;;  %v9401_v53 = vld [vmem:[#allocation8 + $0xf90] ss:$8 sps:$4 sm:$0xff]  }
 0x1d9   :  { %6330 = vmatprep.subr.bf16.mxu1 %v9370_v29  ;;  %v9409_v29 = vld [vmem:[#allocation8 + $0xfa4] ss:$8 sps:$4 sm:$0xff]  }
 0x1da   :  { %6802 = vmatpush1.bf16.msra.mxu0 %v9365_v18  ;;  %v1104_v18 = vmul.f32 %v11464_v11, %v12304_v60 }
 0x1db   :  { %6803 = vmatprep.subr.bf16.mxu0 %v9373_v3  ;;  %v9412_v3 = vld [vmem:[#allocation8 + $0x4b4] ss:$8 sps:$4 sm:$0xff]  }
 0x1dc   :  { %6331 = vmatpush1.bf16.msra.mxu1 %v9368_v1  ;;  %v1107_v1 = vmul.f32 %v11464_v11, %v12305_v5 }
 0x1dd   :  { %6332 = vmatprep.subr.bf16.mxu1 %v9376_v50  ;;  %v11480_v50 = vstv %s7953_s15  ;;  %s11966_s15 = sld [smem:[#allocation7 + $0xe]] }
 0x1de   :  { %6804 = vmatpush1.bf16.msra.mxu0 %v9371_v37  ;;  %v11482_v37 = vstv %s7954_s17  ;;  %s11968_s17 = sld [smem:[#allocation6 + $0x39]] }
 0x1df   :  { %6805 = vmatprep.subr.bf16.mxu0 %v9379_v61  ;;  %v509_v61 = vadd.f32 %v11394_v49, %v501_v21  ;;  %v531_v21 = vmul.f32 %v11424_v63, %v10945_v10 }
 0x1e0   :  { %6333 = vmatpush1.bf16.msra.mxu1 %v9374_v2  ;;  %v506_v2 = vadd.f32 %v11394_v49, %v498_v4  ;;  %v528_v4 = vmul.f32 %v11424_v63, %v10939_v36 }
 0x1e1   :  { %6334 = vmatprep.subr.bf16.mxu1 %v9382_v54  ;;  %v514_v54 = vmul.f32 %v11397_v20, %v10933_v34 }
 0x1e2   :  { %6806 = vmatpush1.bf16.msra.mxu0 %v9377_v14  ;;  %v517_v14 = vmul.f32 %v11397_v20, %v10935_v35 }
 0x1e3   :  { %6807 = vmatprep.subr.bf16.mxu0 %v9385_v48  ;;  %v1039_v48 = vadd.f32 %v11408_v30, %v1031_v23 }
 0x1e4   :  { %6335 = vmatpush1.bf16.msra.mxu1 %v9380_v7  ;;  %v1036_v7 = vadd.f32 %v11408_v30, %v1028_v52 }
 0x1e5   :  { %6336 = vmatprep.subr.bf16.mxu1 %v9388_v6  ;;  %v1044_v6 = vmul.f32 %v11411_v46, %v10991_v39 }
 0x1e6   :  { %6808 = vmatpush1.bf16.msra.mxu0 %v9383_v56  ;;  %v1047_v56 = vmul.f32 %v11411_v46, %v10993_v27 }
 0x1e7   :  { %6809 = vmatprep.subr.bf16.mxu0 %v9391_v13  ;;  %v9410_v13 = vld [vmem:[#allocation8 + $0x4b0] ss:$8 sps:$4 sm:$0xff]   ;;  %v1050_v52 = vadd.f32 %v1044_v6, %v1036_v7  ;;  %v9424_v7 = vld [vmem:[#allocation8 + $0x4d4] ss:$8 sps:$4 sm:$0xff]  }
 0x1e8   :  { %6337 = vmatpush1.bf16.msra.mxu1 %v9386_v45  ;;  %v9407_v45 = vld [vmem:[#allocation8 + $0xfa0] ss:$8 sps:$4 sm:$0xff]   ;;  %v1053_v23 = vadd.f32 %v1047_v56, %v1039_v48  ;;  %v542_v56 = vmul.f32 %v11444_v47, %v10967_v38 }
 0x1e9   :  { %6338 = vmatprep.subr.bf16.mxu1 %v9394_v57  ;;  %v9415_v57 = vld [vmem:[#allocation8 + $0xfb4] ss:$8 sps:$4 sm:$0xff]  }
 0x1ea   :  { %6810 = vmatpush1.bf16.msra.mxu0 %v9389_v28  ;;  %v1112_v28 = vadd.f32 %v11480_v50, %v1104_v18  ;;  %v9416_v18 = vld [vmem:[#allocation8 + $0x4c0] ss:$8 sps:$4 sm:$0xff]  }
 0x1eb   :  { %6811 = vmatprep.subr.bf16.mxu0 %v9397_v22  ;;  %v1120_v22 = vmul.f32 %v11482_v37, %v10991_v39 }
 0x1ec   :  { %6339 = vmatpush1.bf16.msra.mxu1 %v9392_v43  ;;  %v1115_v43 = vadd.f32 %v11480_v50, %v1107_v1 }
 0x1ed   :  { %6340 = vmatprep.subr.bf16.mxu1 %v9400_v12  ;;  %v1123_v12 = vmul.f32 %v11482_v37, %v10993_v27  ;;  %v1126_v1 = vadd.f32 %v1120_v22, %v1112_v28  ;;  %v1072_v22 = vmul.f32 %v11451_v19, %v11021_v32  ;;  %v9433_v27 = vld [vmem:[#allocation8 + $0xfe4] ss:$8 sps:$4 sm:$0xff]  }
 0x1ee   :  { %6812 = vmatpush1.bf16.msra.mxu0 %v9395_v55  ;;  %v9418_v55 = vld [vmem:[#allocation8 + $0x4c4] ss:$8 sps:$4 sm:$0xff]  }
 0x1ef   :  { %6813 = vmatprep.subr.bf16.mxu0 %v9403_v25  ;;  %v520_v25 = vadd.f32 %v514_v54, %v506_v2  ;;  %v9421_v54 = vld [vmem:[#allocation8 + $0xfc4] ss:$8 sps:$4 sm:$0xff]  }
 0x1f0   :  { %6341 = vmatpush1.bf16.msra.mxu1 %v9398_v16  ;;  %v11505_v16 = vstv %s11466_s3  ;;  %s11979_s3 = sld [smem:[#allocation6 + $0x3a]] }
 0x1f1   :  { %6342 = vmatprep.subr.bf16.mxu1 %v9406_v9  ;;  %v523_v9 = vadd.f32 %v517_v14, %v509_v61  ;;  %v1134_v2 = vmul.f32 %v11505_v16, %v10997_v24  ;;  %v1137_v61 = vmul.f32 %v11505_v16, %v11003_v41  ;;  %v11520_v14 = vstv %s11484_s19  ;;  %s12002_s19 = sld [smem:[#allocation6 + $0x3b]] }
 0x1f2   :  { %6814 = vmatpush1.bf16.msra.mxu0 %v9401_v53  ;;  %v1058_v53 = vmul.f32 %v11435_v0, %v10997_v24  ;;  %v534_v48 = vadd.f32 %v528_v4, %v520_v25  ;;  %v1148_v4 = vmul.f32 %v11520_v14, %v11021_v32  ;;  %v9428_v24 = vld [vmem:[#allocation8 + $0x4e0] ss:$8 sps:$4 sm:$0xff]  }
 0x1f3   :  { %6815 = vmatprep.subr.bf16.mxu0 %v9409_v29  ;;  %v9413_v29 = vld [vmem:[#allocation8 + $0xfb0] ss:$8 sps:$4 sm:$0xff]   ;;  %v537_v6 = vadd.f32 %v531_v21, %v523_v9  ;;  %v1140_v25 = vadd.f32 %v1134_v2, %v1126_v1  ;;  %v1151_v21 = vmul.f32 %v11520_v14, %v12306_v58  ;;  %v9436_v2 = vld [vmem:[#allocation8 + $0x4f4] ss:$8 sps:$4 sm:$0xff]  }
 0x1f4   :  { %6343 = vmatpush1.bf16.msra.mxu1 %v9404_v59  ;;  %v1061_v59 = vmul.f32 %v11435_v0, %v11003_v41  ;;  %v1064_v28 = vadd.f32 %v1058_v53, %v1050_v52  ;;  %v9430_v52 = vld [vmem:[#allocation8 + $0x4e4] ss:$8 sps:$4 sm:$0xff]  }
 0x1f5   :  { %6344 = vmatprep.subr.bf16.mxu1 %v9412_v3  ;;  %v1129_v3 = vadd.f32 %v1123_v12, %v1115_v43  ;;  %v9422_v12 = vld [vmem:[#allocation8 + $0x4d0] ss:$8 sps:$4 sm:$0xff]   ;;  %v1154_v1 = vadd.f32 %v1148_v4, %v1140_v25 }
 0x1f6   :  { %6816 = vmatpush1.bf16.msra.mxu0 %v9407_v45  ;;  %v545_v45 = vmul.f32 %v11444_v47, %v10971_v17  ;;  %v1067_v43 = vadd.f32 %v1061_v59, %v1053_v23  ;;  %v548_v23 = vadd.f32 %v542_v56, %v534_v48  ;;  %v1078_v59 = vadd.f32 %v1072_v22, %v1064_v28  ;;  %v9439_v48 = vld [vmem:[#allocation8 + $0xff4] ss:$8 sps:$4 sm:$0xff]   ;;  %v9437_v28 = vld [vmem:[#allocation8 + $0xff0] ss:$8 sps:$4 sm:$0xff]  }
 0x1f7   :  { %6817 = vmatprep.subr.bf16.mxu0 %v9415_v57  ;;  %v9419_v57 = vld [vmem:[#allocation8 + $0xfc0] ss:$8 sps:$4 sm:$0xff]   ;;  %v1143_v9 = vadd.f32 %v1137_v61, %v1129_v3 }
 0x1f8   :  { %6345 = vmatpush1.bf16.msra.mxu1 %v9410_v13  ;;  %v1075_v13 = vmul.f32 %v11451_v19, %v12306_v58  ;;  %v551_v53 = vadd.f32 %v545_v45, %v537_v6  ;;  %v9431_v61 = vld [vmem:[#allocation8 + $0xfe0] ss:$8 sps:$4 sm:$0xff]   ;;  %v554_v58 = vmax.f32 %v548_v23, 0.0  ;;  %v1160_v6 = vmax.f32 %v1154_v1, 0.0  ;;  %v9442_v45 = vld [vmem:[#allocation8 + $0x504] ss:$8 sps:$4 sm:$0xff]  }
 0x1f9   :  { %6346 = vmatprep.subr.bf16.mxu1 %v9418_v55  ;;  %v9427_v55 = vld [vmem:[#allocation8 + $0xfd4] ss:$8 sps:$4 sm:$0xff]   ;;  %v1157_v3 = vadd.f32 %v1151_v21, %v1143_v9  ;;  %v9454_v23 = vld [vmem:[#allocation8 + $0x524] ss:$8 sps:$4 sm:$0xff]  }
 0x1fa   :  { %6818 = vmatpush1.bf16.msra.mxu0 %v9413_v29  ;;  %v1081_v41 = vadd.f32 %v1075_v13, %v1067_v43  ;;  %v9425_v29 = vld [vmem:[#allocation8 + $0xfd0] ss:$8 sps:$4 sm:$0xff]   ;;  %v560_v43 = vmin.f32 %v554_v58, 6.0  ;;  %v1166_v25 = vmin.f32 %v1160_v6, 6.0  ;;  %v9460_v1 = vld [vmem:[#allocation8 + $0x534] ss:$8 sps:$4 sm:$0xff]  }
 0x1fb   :  { %6819 = vmatprep.subr.bf16.mxu0 %v9421_v54  ;;  %v557_v54 = vmax.f32 %v551_v53, 0.0  ;;  %v1163_v56 = vmax.f32 %v1157_v3, 0.0  ;;  %v9449_v53 = vld [vmem:[#allocation8 + $0x1010] ss:$8 sps:$4 sm:$0xff]   ;;  %v9463_v3 = vld [vmem:[#allocation8 + $0x1034] ss:$8 sps:$4 sm:$0xff]  }
 0x1fc   :  { %6347 = vmatpush1.bf16.msra.mxu1 %v9416_v18  ;;  %v1084_v18 = vmax.f32 %v1078_v59, 0.0  ;;  %v1087_v32 = vmax.f32 %v1081_v41, 0.0  ;;  %v9448_v41 = vld [vmem:[#allocation8 + $0x514] ss:$8 sps:$4 sm:$0xff]   ;;  %v9452_v59 = vld [vmem:[#allocation8 + $0x520] ss:$8 sps:$4 sm:$0xff]  }
 0x1fd   :  { %6348 = vmatprep.subr.bf16.mxu1 %v9424_v7  ;;  %v9434_v7 = vld [vmem:[#allocation8 + $0x4f0] ss:$8 sps:$4 sm:$0xff]   ;;  %v563_v22 = vmin.f32 %v557_v54, 6.0  ;;  %v1169_v9 = vmin.f32 %v1163_v56, 6.0  ;;  %v9464_v54 = vld [vmem:[#allocation8 + $0x540] ss:$8 sps:$4 sm:$0xff]  }
 0x1fe   :  { %6820 = vmatpush1.bf16.msra.mxu0 %v9419_v57  ;;  %v1090_v13 = vmin.f32 %v1084_v18, 6.0  ;;  %v1093_v57 = vmin.f32 %v1087_v32, 6.0  ;;  %v9446_v32 = vld [vmem:[#allocation8 + $0x510] ss:$8 sps:$4 sm:$0xff]   ;;  %v9469_v18 = vld [vmem:[#allocation8 + $0x1044] ss:$8 sps:$4 sm:$0xff]  }
 0x1ff   :  { %6821 = vmatprep.subr.bf16.mxu0 %v9427_v55  ;;  %v9445_v55 = vld [vmem:[#allocation8 + $0x1004] ss:$8 sps:$4 sm:$0xff]   ;;  %v566_v4 = vpack.c.bf16 %v563_v22, %v560_v43  ;;  %v1172_v58 = vpack.c.bf16 %v1169_v9, %v1166_v25  ;;  %v9470_v6 = vld [vmem:[#allocation8 + $0x550] ss:$8 sps:$4 sm:$0xff]   ;;  %v9475_v56 = vld [vmem:[#allocation8 + $0x1054] ss:$8 sps:$4 sm:$0xff]   ;;  %v497_v9 = vmul.f32 %v11375_v44, %v10861_v40 }
 0x200   :  { %6349 = vmatpush1.bf16.msra.mxu1 %v9422_v12  ;;  %v9440_v12 = vld [vmem:[#allocation8 + $0x500] ss:$8 sps:$4 sm:$0xff]   ;;  %v1096_v21 = vpack.c.bf16 %v1093_v57, %v1090_v13  ;;  %v9481_v22 = vld [vmem:[#allocation8 + $0x1064] ss:$8 sps:$4 sm:$0xff]   ;;  %v9484_v13 = vld [vmem:[#allocation8 + $0x574] ss:$8 sps:$4 sm:$0xff]  }
 0x201   :  { %6350 = vmatprep.subr.bf16.mxu1 %v9430_v52  ;;  %v9451_v52 = vld [vmem:[#allocation8 + $0x1014] ss:$8 sps:$4 sm:$0xff]   ;;  %v9476_v43 = vld [vmem:[#allocation8 + $0x560] ss:$8 sps:$4 sm:$0xff]   ;;  %v9490_v25 = vld [vmem:[#allocation8 + $0x584] ss:$8 sps:$4 sm:$0xff]  }
 0x202   :  { %6822 = vmatpush1.bf16.msra.mxu0 %v9425_v29  ;;  %v9457_v29 = vld [vmem:[#allocation8 + $0x1024] ss:$8 sps:$4 sm:$0xff]   ;;  %v9479_v57 = vld [vmem:[#allocation8 + $0x1060] ss:$8 sps:$4 sm:$0xff]  }
 0x203   :  { %6823 = vmatprep.subr.bf16.mxu0 %v9433_v27  ;;  %v9443_v27 = vld [vmem:[#allocation8 + $0x1000] ss:$8 sps:$4 sm:$0xff]  }
 0x204   :  { %6351 = vmatpush1.bf16.msra.mxu1 %v9428_v24  ;;  %v12308_v24 = vpack.c.bf16 %v11359_v31, %v11357_v15  ;;  %v9455_v15 = vld [vmem:[#allocation8 + $0x1020] ss:$8 sps:$4 sm:$0xff]   ;;  %v9458_v31 = vld [vmem:[#allocation8 + $0x530] ss:$8 sps:$4 sm:$0xff]  }
 0x205   :  { %6352 = vmatprep.subr.bf16.mxu1 %v9436_v2  ;;  %v9466_v2 = vld [vmem:[#allocation8 + $0x544] ss:$8 sps:$4 sm:$0xff]  }
 0x206   :  { %6824 = vmatpush1.bf16.msra.mxu0 %v9431_v61  ;;  %v9461_v61 = vld [vmem:[#allocation8 + $0x1030] ss:$8 sps:$4 sm:$0xff]  }
 0x207   :  { %6825 = vmatprep.subr.bf16.mxu0 %v9439_v48  ;;  %v9467_v48 = vld [vmem:[#allocation8 + $0x1040] ss:$8 sps:$4 sm:$0xff]  }
 0x208   :  { %6353 = vmatpush1.bf16.msra.mxu1 %v9434_v7  ;;  %v9472_v7 = vld [vmem:[#allocation8 + $0x554] ss:$8 sps:$4 sm:$0xff]  }
 0x209   :  { %6365 = vmatprep.subr.bf16.mxu1 %v9442_v45  ;;  %v9478_v45 = vld [vmem:[#allocation8 + $0x564] ss:$8 sps:$4 sm:$0xff]  }
 0x20a   :  { %6826 = vmatpush1.bf16.msra.mxu0 %v9437_v28  ;;  %v9473_v28 = vld [vmem:[#allocation8 + $0x1050] ss:$8 sps:$4 sm:$0xff]  }
 0x20b   :  { %6355 = vmatmul.mubr.bf16.vlgmr.msra.gmra.mrb[0].mxu1 %v12308_v24  ;;  %6838 = vmatprep.subr.bf16.mxu0 %v9445_v55  ;;  %v9487_v55 = vld [vmem:[#allocation8 + $0x1074] ss:$8 sps:$4 sm:$0xff]  }
 0x20c   :  { %6366 = vmatpush1.bf16.msra.mxu1 %v9440_v12  ;;  %6397 = vmatprep.mubr.bf16.mxu1 %v566_v4  ;;  %v9482_v12 = vld [vmem:[#allocation8 + $0x570] ss:$8 sps:$4 sm:$0xff]   ;;  %v9488_v4 = vld [vmem:[#allocation8 + $0x580] ss:$8 sps:$4 sm:$0xff]   ;;  %v9496_v24 = vld [vmem:[#allocation8 + $0x594] ss:$8 sps:$4 sm:$0xff]  }
 0x20d   :  { %6367 = vmatprep.subr.bf16.mxu1 %v9448_v41  ;;  %6828 = vmatmul.mubr.bf16.vlgmr.msra.gmra.mrb[0].mxu0 %v1096_v21  ;;  %v9485_v41 = vld [vmem:[#allocation8 + $0x1070] ss:$8 sps:$4 sm:$0xff]   ;;  %v9493_v21 = vld [vmem:[#allocation8 + $0x1084] ss:$8 sps:$4 sm:$0xff]  }
 0x20e   :  { %6839 = vmatpush1.bf16.msra.mxu0 %v9443_v27  ;;  %6870 = vmatprep.mubr.bf16.mxu0 %v1172_v58  ;;  %v500_v27 = vmul.f32 %v11375_v44, %v10872_v62  ;;  %v505_v58 = vadd.f32 %v11394_v49, %v497_v9 }
 0x20f   :  { %6840 = vmatprep.subr.bf16.mxu0 %v9451_v52  ;;  %v11548_v52 = vstv %s7917_s1  ;;  %s7972_s1 = sld [smem:[#allocation6 + $0x3c]] }
 0x210   :  { %6368 = vmatpush1.bf16.msra.mxu1 %v9446_v32  ;;  %v513_v32 = vmul.f32 %v11397_v20, %v10863_v42  ;;  %v508_v44 = vadd.f32 %v11394_v49, %v500_v27  ;;  %v527_v49 = vmul.f32 %v11424_v63, %v10865_v51  ;;  %v1049_v27 = vmul.f32 %v11411_v46, %v10935_v35 }
 0x211   :  { %6369 = vmatprep.subr.bf16.mxu1 %v9454_v23  ;;  %v9491_v23 = vld [vmem:[#allocation8 + $0x1080] ss:$8 sps:$4 sm:$0xff]  }
 0x212   :  { %6841 = vmatpush1.bf16.msra.mxu0 %v9449_v53  ;;  %v9494_v53 = vld [vmem:[#allocation8 + $0x590] ss:$8 sps:$4 sm:$0xff]  }
 0x213   :  { %6842 = vmatprep.subr.bf16.mxu0 %v9457_v29  ;;  %v12309_v29 = vld [vmem:[#allocation36_spill] sm:$0xff] }
 0x214   :  { %6370 = vmatpush1.bf16.msra.mxu1 %v9452_v59  ;;  %v9499_v59 = vld [vmem:[#allocation8 + $0x1094] ss:$8 sps:$4 sm:$0xff]  }
 0x215   :  { %6371 = vmatprep.subr.bf16.mxu1 %v9460_v1  ;;  %v516_v1 = vmul.f32 %v11397_v20, %v12309_v29  ;;  %v1033_v20 = vmul.f32 %v11379_v26, %v10931_v33 }
 0x216   :  { %6843 = vmatpush1.bf16.msra.mxu0 %v9455_v15  ;;  %v9502_v15 = vld [vmem:[#allocation8 + $0x5a4] ss:$8 sps:$4 sm:$0xff]  }
 0x217   :  { %6844 = vmatprep.subr.bf16.mxu0 %v9463_v3  ;;  %v519_v3 = vadd.f32 %v513_v32, %v505_v58  ;;  %v9503_v58 = vld [vmem:[#allocation8 + $0x10a0] ss:$8 sps:$4 sm:$0xff]   ;;  %v9506_v32 = vld [vmem:[#allocation8 + $0x5b0] ss:$8 sps:$4 sm:$0xff]  }
 0x218   :  { %6372 = vmatpush1.bf16.msra.mxu1 %v9458_v31  ;;  %v1030_v31 = vmul.f32 %v11379_v26, %v10928_v8  ;;  %v1109_v26 = vmul.f32 %v11464_v11, %v10931_v33 }
 0x219   :  { %6373 = vmatprep.subr.bf16.mxu1 %v9466_v2  ;;  %v573_v2 = vmul.f32 %v11548_v52, %v10861_v40 }
 0x21a   :  { %6845 = vmatpush1.bf16.msra.mxu0 %v9461_v61  ;;  %v576_v61 = vmul.f32 %v11548_v52, %v10872_v62 }
 0x21b   :  { %6846 = vmatprep.subr.bf16.mxu0 %v9469_v18  ;;  %v11569_v18 = vstv %s11541_s21  ;;  %s7974_s21 = sld [smem:[#allocation6 + $0x3d]] }
 0x21c   :  { %6374 = vmatpush1.bf16.msra.mxu1 %v9464_v54  ;;  %v11566_v54 = vstv %s11539_s20  ;;  %v589_v9 = vmul.f32 %v11569_v18, %v10863_v42  ;;  %s7973_s20 = sld [smem:[#allocation7 + $0xf]] }
 0x21d   :  { %6375 = vmatprep.subr.bf16.mxu1 %v9472_v7  ;;  %v9497_v7 = vld [vmem:[#allocation8 + $0x1090] ss:$8 sps:$4 sm:$0xff]  }
 0x21e   :  { %6847 = vmatpush1.bf16.msra.mxu0 %v9467_v48  ;;  %v9500_v48 = vld [vmem:[#allocation8 + $0x5a0] ss:$8 sps:$4 sm:$0xff]  }
 0x21f   :  { %6848 = vmatprep.subr.bf16.mxu0 %v9475_v56  ;;  %v522_v56 = vadd.f32 %v516_v1, %v508_v44  ;;  %v1122_v44 = vmul.f32 %v11482_v37, %v10933_v34 }
 0x220   :  { %6376 = vmatpush1.bf16.msra.mxu1 %v9470_v6  ;;  %v9505_v6 = vld [vmem:[#allocation8 + $0x10a4] ss:$8 sps:$4 sm:$0xff]  }
 0x221   :  { %6377 = vmatprep.subr.bf16.mxu1 %v9478_v45  ;;  %v12310_v45 = vld [vmem:[#allocation37_spill] sm:$0xff] }
 0x222   :  { %6849 = vmatpush1.bf16.msra.mxu0 %v9473_v28  ;;  %v530_v28 = vmul.f32 %v11424_v63, %v12310_v45  ;;  %v581_v63 = vadd.f32 %v11566_v54, %v573_v2 }
 0x223   :  { %6850 = vmatprep.subr.bf16.mxu0 %v9481_v22  ;;  %v9508_v22 = vld [vmem:[#allocation8 + $0x5b4] ss:$8 sps:$4 sm:$0xff]  }
 0x224   :  { %6378 = vmatpush1.bf16.msra.mxu1 %v9476_v43  ;;  %v1106_v43 = vmul.f32 %v11464_v11, %v10928_v8  ;;  %v536_v1 = vadd.f32 %v530_v28, %v522_v56  ;;  %v595_v2 = vadd.f32 %v589_v9, %v581_v63  ;;  %v11613_v56 = vstv %s11571_s30  ;;  %s12089_s30 = sld [smem:[#allocation6 + $0x3f]] }
 0x225   :  { %6379 = vmatprep.subr.bf16.mxu1 %v9484_v13  ;;  %v12311_v13 = vld [vmem:[#allocation38_spill] sm:$0xff] }
 0x226   :  { %6851 = vmatpush1.bf16.msra.mxu0 %v9479_v57  ;;  %v541_v57 = vmul.f32 %v11444_v47, %v12311_v13 }
 0x227   :  { %6852 = vmatprep.subr.bf16.mxu0 %v9487_v55  ;;  %v1046_v55 = vmul.f32 %v11411_v46, %v10933_v34  ;;  %v9514_v46 = vld [vmem:[#allocation8 + $0x5c4] ss:$8 sps:$4 sm:$0xff]  }
 0x228   :  { %6380 = vmatpush1.bf16.msra.mxu1 %v9482_v12  ;;  %v1038_v12 = vadd.f32 %v11408_v30, %v1030_v31 }
 0x229   :  { %6381 = vmatprep.subr.bf16.mxu1 %v9490_v25  ;;  %v584_v25 = vadd.f32 %v11566_v54, %v576_v61 }
 0x22a   :  { %6853 = vmatpush1.bf16.msra.mxu0 %v9485_v41  ;;  %v592_v41 = vmul.f32 %v11569_v18, %v12309_v29 }
 0x22b   :  { %6854 = vmatprep.subr.bf16.mxu0 %v9493_v21  ;;  %v1041_v21 = vadd.f32 %v11408_v30, %v1033_v20  ;;  %v1125_v30 = vmul.f32 %v11482_v37, %v10935_v35 }
 0x22c   :  { %6382 = vmatpush1.bf16.msra.mxu1 %v9488_v4  ;;  %v533_v4 = vadd.f32 %v527_v49, %v519_v3  ;;  %v1052_v3 = vadd.f32 %v1046_v55, %v1038_v12  ;;  %v598_v61 = vadd.f32 %v592_v41, %v584_v25  ;;  %v9512_v12 = vld [vmem:[#allocation8 + $0x5c0] ss:$8 sps:$4 sm:$0xff]   ;;  %v9517_v55 = vld [vmem:[#allocation8 + $0x10c4] ss:$8 sps:$4 sm:$0xff]  }
 0x22d   :  { %6383 = vmatprep.subr.bf16.mxu1 %v9496_v24  ;;  %v11594_v24 = vstv %s11550_s8  ;;  %s7975_s8 = sld [smem:[#allocation6 + $0x3e]] }
 0x22e   :  { %6855 = vmatpush1.bf16.msra.mxu0 %v9491_v23  ;;  %v9511_v23 = vld [vmem:[#allocation8 + $0x10b4] ss:$8 sps:$4 sm:$0xff]   ;;  %v603_v49 = vmul.f32 %v11594_v24, %v10865_v51  ;;  %v606_v20 = vmul.f32 %v11594_v24, %v12310_v45  ;;  %v547_v63 = vadd.f32 %v541_v57, %v533_v4  ;;  %v9515_v57 = vld [vmem:[#allocation8 + $0x10c0] ss:$8 sps:$4 sm:$0xff]  }
 0x22f   :  { %6856 = vmatprep.subr.bf16.mxu0 %v9499_v59  ;;  %v1117_v59 = vadd.f32 %v11480_v50, %v1109_v26  ;;  %v1136_v26 = vmul.f32 %v11505_v16, %v10939_v36 }
 0x230   :  { %6384 = vmatpush1.bf16.msra.mxu1 %v9494_v53  ;;  %v1114_v53 = vadd.f32 %v11480_v50, %v1106_v43  ;;  %v609_v9 = vadd.f32 %v603_v49, %v595_v2  ;;  %v612_v41 = vadd.f32 %v606_v20, %v598_v61  ;;  %v9524_v20 = vld [vmem:[#allocation8 + $0x5e0] ss:$8 sps:$4 sm:$0xff]  }
 0x231   :  { %6385 = vmatprep.subr.bf16.mxu1 %v9502_v15  ;;  %v12312_v15 = vld [vmem:[#allocation39_spill] sm:$0xff]  ;;  %v1131_v43 = vadd.f32 %v1125_v30, %v1117_v59  ;;  %v1153_v30 = vmul.f32 %v11520_v14, %v10971_v17 }
 0x232   :  { %6857 = vmatpush1.bf16.msra.mxu0 %v9497_v7  ;;  %v544_v31 = vmul.f32 %v11444_v47, %v12312_v15  ;;  %v1055_v7 = vadd.f32 %v1049_v27, %v1041_v21  ;;  %v9509_v47 = vld [vmem:[#allocation8 + $0x10b0] ss:$8 sps:$4 sm:$0xff]   ;;  %v1128_v28 = vadd.f32 %v1122_v44, %v1114_v53  ;;  %v617_v21 = vmul.f32 %v11613_v56, %v12311_v13 }
 0x233   :  { %6858 = vmatprep.subr.bf16.mxu0 %v9505_v6  ;;  %v1060_v6 = vmul.f32 %v11435_v0, %v10939_v36  ;;  %v620_v27 = vmul.f32 %v11613_v56, %v12312_v15  ;;  %v1150_v44 = vmul.f32 %v11520_v14, %v10967_v38 }
 0x234   :  { %6386 = vmatpush1.bf16.msra.mxu1 %v9500_v48  ;;  %v1063_v48 = vmul.f32 %v11435_v0, %v10945_v10  ;;  %v550_v25 = vadd.f32 %v544_v31, %v536_v1  ;;  %v9520_v0 = vld [vmem:[#allocation8 + $0x5d4] ss:$8 sps:$4 sm:$0xff]   ;;  %v1142_v4 = vadd.f32 %v1136_v26, %v1128_v28  ;;  %v9521_v31 = vld [vmem:[#allocation8 + $0x10d0] ss:$8 sps:$4 sm:$0xff]   ;;  %v623_v2 = vadd.f32 %v617_v21, %v609_v9  ;;  %v9527_v26 = vld [vmem:[#allocation8 + $0x10e0] ss:$8 sps:$4 sm:$0xff]  }
 0x235   :  { %6387 = vmatprep.subr.bf16.mxu1 %v9508_v22  ;;  %v1139_v22 = vmul.f32 %v11505_v16, %v10945_v10  ;;  %v9523_v1 = vld [vmem:[#allocation8 + $0x10d4] ss:$8 sps:$4 sm:$0xff]   ;;  %v626_v61 = vadd.f32 %v620_v27, %v612_v41 }
 0x236   :  { %6859 = vmatpush1.bf16.msra.mxu0 %v9503_v58  ;;  %v1066_v58 = vadd.f32 %v1060_v6, %v1052_v3  ;;  %v1069_v53 = vadd.f32 %v1063_v48, %v1055_v7  ;;  %v9526_v3 = vld [vmem:[#allocation8 + $0x5e4] ss:$8 sps:$4 sm:$0xff]   ;;  %v553_v6 = vmax.f32 %v547_v63, 0.0  ;;  %v556_v48 = vmax.f32 %v550_v25, 0.0  ;;  %v9535_v41 = vld [vmem:[#allocation8 + $0x10f4] ss:$8 sps:$4 sm:$0xff]  }
 0x237   :  { %6860 = vmatprep.subr.bf16.mxu0 %v9511_v23  ;;  %v1074_v23 = vmul.f32 %v11451_v19, %v10967_v38  ;;  %v1145_v59 = vadd.f32 %v1139_v22, %v1131_v43  ;;  %v9529_v7 = vld [vmem:[#allocation8 + $0x10e4] ss:$8 sps:$4 sm:$0xff]   ;;  %v9532_v43 = vld [vmem:[#allocation8 + $0x5f4] ss:$8 sps:$4 sm:$0xff]   ;;  %v629_v22 = vmax.f32 %v623_v2, 0.0 }
 0x238   :  { %6388 = vmatpush1.bf16.msra.mxu1 %v9506_v32  ;;  %v1077_v32 = vmul.f32 %v11451_v19, %v10971_v17  ;;  %v559_v21 = vmin.f32 %v553_v6, 6.0  ;;  %v562_v27 = vmin.f32 %v556_v48, 6.0  ;;  %v9538_v63 = vld [vmem:[#allocation8 + $0x604] ss:$8 sps:$4 sm:$0xff]   ;;  %v9533_v25 = vld [vmem:[#allocation8 + $0x10f0] ss:$8 sps:$4 sm:$0xff]  }
 0x239   :  { %6389 = vmatprep.subr.bf16.mxu1 %v9514_v46  ;;  %v9518_v46 = vld [vmem:[#allocation8 + $0x5d0] ss:$8 sps:$4 sm:$0xff]   ;;  %v1080_v19 = vadd.f32 %v1074_v23, %v1066_v58  ;;  %v1159_v28 = vadd.f32 %v1153_v30, %v1145_v59  ;;  %v635_v23 = vmin.f32 %v629_v22, 6.0  ;;  %v9536_v59 = vld [vmem:[#allocation8 + $0x600] ss:$8 sps:$4 sm:$0xff]  }
 0x23a   :  { %6861 = vmatpush1.bf16.msra.mxu0 %v9509_v47  ;;  %v1083_v49 = vadd.f32 %v1077_v32, %v1069_v53  ;;  %v1156_v47 = vadd.f32 %v1150_v44, %v1142_v4  ;;  %v9541_v44 = vld [vmem:[#allocation8 + $0x1104] ss:$8 sps:$4 sm:$0xff]   ;;  %v565_v30 = vpack.c.bf16 %v562_v27, %v559_v21  ;;  %v9545_v6 = vld [vmem:[#allocation8 + $0x1110] ss:$8 sps:$4 sm:$0xff]   ;;  %v9548_v48 = vld [vmem:[#allocation8 + $0x620] ss:$8 sps:$4 sm:$0xff]  }
 0x23b   :  { %6862 = vmatprep.subr.bf16.mxu0 %v9517_v55  ;;  %v9530_v55 = vld [vmem:[#allocation8 + $0x5f0] ss:$8 sps:$4 sm:$0xff]   ;;  %v1165_v53 = vmax.f32 %v1159_v28, 0.0  ;;  %v9556_v28 = vld [vmem:[#allocation8 + $0x634] ss:$8 sps:$4 sm:$0xff]  }
 0x23c   :  { %6390 = vmatpush1.bf16.msra.mxu1 %v9512_v12  ;;  %v632_v12 = vmax.f32 %v626_v61, 0.0  ;;  %v1089_v9 = vmax.f32 %v1083_v49, 0.0  ;;  %v1162_v58 = vmax.f32 %v1156_v47, 0.0  ;;  %v9539_v61 = vld [vmem:[#allocation8 + $0x1100] ss:$8 sps:$4 sm:$0xff]  }
 0x23d   :  { %6391 = vmatprep.subr.bf16.mxu1 %v9520_v0  ;;  %v1086_v0 = vmax.f32 %v1080_v19, 0.0  ;;  %v9542_v49 = vld [vmem:[#allocation8 + $0x610] ss:$8 sps:$4 sm:$0xff]   ;;  %v9553_v47 = vld [vmem:[#allocation8 + $0x1124] ss:$8 sps:$4 sm:$0xff]  }
 0x23e   :  { %6863 = vmatpush1.bf16.msra.mxu0 %v9515_v57  ;;  %v638_v32 = vmin.f32 %v632_v12, 6.0  ;;  %v1095_v4 = vmin.f32 %v1089_v9, 6.0  ;;  %v9559_v22 = vld [vmem:[#allocation8 + $0x1134] ss:$8 sps:$4 sm:$0xff]   ;;  %v9562_v12 = vld [vmem:[#allocation8 + $0x644] ss:$8 sps:$4 sm:$0xff]  }
 0x23f   :  { %6864 = vmatprep.subr.bf16.mxu0 %v9523_v1  ;;  %v1092_v57 = vmin.f32 %v1086_v0, 6.0  ;;  %v1171_v1 = vmin.f32 %v1165_v53, 6.0  ;;  %v9560_v0 = vld [vmem:[#allocation8 + $0x640] ss:$8 sps:$4 sm:$0xff]   ;;  %v9565_v9 = vld [vmem:[#allocation8 + $0x1144] ss:$8 sps:$4 sm:$0xff]  }
 0x240   :  { %6392 = vmatpush1.bf16.msra.mxu1 %v9518_v46  ;;  %v1168_v46 = vmin.f32 %v1162_v58, 6.0  ;;  %v9563_v21 = vld [vmem:[#allocation8 + $0x1140] ss:$8 sps:$4 sm:$0xff]   ;;  %v9566_v27 = vld [vmem:[#allocation8 + $0x650] ss:$8 sps:$4 sm:$0xff]  }
 0x241   :  { %6393 = vmatprep.subr.bf16.mxu1 %v9526_v3  ;;  %v641_v3 = vpack.c.bf16 %v638_v32, %v635_v23  ;;  %v1098_v2 = vpack.c.bf16 %v1095_v4, %v1092_v57  ;;  %v9571_v58 = vld [vmem:[#allocation8 + $0x1154] ss:$8 sps:$4 sm:$0xff]   ;;  %v9574_v53 = vld [vmem:[#allocation8 + $0x664] ss:$8 sps:$4 sm:$0xff]   ;;  %v9575_v57 = vld [vmem:[#allocation8 + $0x1160] ss:$8 sps:$4 sm:$0xff]  }
 0x242   :  { %6865 = vmatpush1.bf16.msra.mxu0 %v9521_v31  ;;  %v9544_v31 = vld [vmem:[#allocation8 + $0x614] ss:$8 sps:$4 sm:$0xff]   ;;  %v1174_v19 = vpack.c.bf16 %v1171_v1, %v1168_v46  ;;  %v9577_v23 = vld [vmem:[#allocation8 + $0x1164] ss:$8 sps:$4 sm:$0xff]   ;;  %v9578_v4 = vld [vmem:[#allocation8 + $0x670] ss:$8 sps:$4 sm:$0xff]   ;;  %v575_v1 = vmul.f32 %v11548_v52, %v12305_v5 }
 0x243   :  { %6866 = vmatprep.subr.bf16.mxu0 %v9529_v7  ;;  %v9550_v7 = vld [vmem:[#allocation8 + $0x624] ss:$8 sps:$4 sm:$0xff]   ;;  %v9580_v32 = vld [vmem:[#allocation8 + $0x674] ss:$8 sps:$4 sm:$0xff]   ;;  %v9581_v46 = vld [vmem:[#allocation8 + $0x1170] ss:$8 sps:$4 sm:$0xff]  }
 0x244   :  { %6394 = vmatpush1.bf16.msra.mxu1 %v9524_v20  ;;  %v9547_v20 = vld [vmem:[#allocation8 + $0x1114] ss:$8 sps:$4 sm:$0xff]  }
 0x245   :  { %6395 = vmatprep.subr.bf16.mxu1 %v9532_v43  ;;  %v9551_v43 = vld [vmem:[#allocation8 + $0x1120] ss:$8 sps:$4 sm:$0xff]  }
 0x246   :  { %6867 = vmatpush1.bf16.msra.mxu0 %v9527_v26  ;;  %v9554_v26 = vld [vmem:[#allocation8 + $0x630] ss:$8 sps:$4 sm:$0xff]  }
 0x247   :  { %6868 = vmatprep.subr.bf16.mxu0 %v9535_v41  ;;  %v9568_v41 = vld [vmem:[#allocation8 + $0x654] ss:$8 sps:$4 sm:$0xff]  }
 0x248   :  { %6396 = vmatpush1.bf16.msra.mxu1 %v9530_v55  ;;  %v9557_v55 = vld [vmem:[#allocation8 + $0x1130] ss:$8 sps:$4 sm:$0xff]  }
 0x249   :  { %6408 = vmatprep.subr.bf16.mxu1 %v9538_v63  ;;  %v9569_v63 = vld [vmem:[#allocation8 + $0x1150] ss:$8 sps:$4 sm:$0xff]  }
 0x24a   :  { %6869 = vmatpush1.bf16.msra.mxu0 %v9533_v25  ;;  %v9572_v25 = vld [vmem:[#allocation8 + $0x660] ss:$8 sps:$4 sm:$0xff]  }
 0x24b   :  { %6398 = vmatmul.mubr.bf16.vlgmr.msra.gmra.mrb[0].mxu1 %v565_v30  ;;  %6881 = vmatprep.subr.bf16.mxu0 %v9541_v44  ;;  %v572_v44 = vmul.f32 %v11548_v52, %v12304_v60  ;;  %v9586_v30 = vld [vmem:[#allocation8 + $0x684] ss:$8 sps:$4 sm:$0xff]  }
 0x24c   :  { %6409 = vmatpush1.bf16.msra.mxu1 %v9536_v59  ;;  %6440 = vmatprep.mubr.bf16.mxu1 %v641_v3  ;;  %v9583_v59 = vld [vmem:[#allocation8 + $0x1174] ss:$8 sps:$4 sm:$0xff]   ;;  %v9589_v3 = vld [vmem:[#allocation8 + $0x1184] ss:$8 sps:$4 sm:$0xff]  }
 0x24d   :  { %6410 = vmatprep.subr.bf16.mxu1 %v9544_v31  ;;  %6871 = vmatmul.mubr.bf16.vlgmr.msra.gmra.mrb[0].mxu0 %v1098_v2  ;;  %v9584_v31 = vld [vmem:[#allocation8 + $0x680] ss:$8 sps:$4 sm:$0xff]   ;;  %v9592_v2 = vld [vmem:[#allocation8 + $0x694] ss:$8 sps:$4 sm:$0xff]  }
 0x24e   :  { %6882 = vmatpush1.bf16.msra.mxu0 %v9539_v61  ;;  %6913 = vmatprep.mubr.bf16.mxu0 %v1174_v19  ;;  %v580_v61 = vadd.f32 %v11566_v54, %v572_v44  ;;  %v588_v19 = vmul.f32 %v11569_v18, %v10991_v39  ;;  %v9604_v44 = vld [vmem:[#allocation8 + $0x6b4] ss:$8 sps:$4 sm:$0xff]  }
 0x24f   :  { %6883 = vmatprep.subr.bf16.mxu0 %v9547_v20  ;;  %v12313_v20 = vld [vmem:[#allocation45_spill] sm:$0xff] }
 0x250   :  { %6411 = vmatpush1.bf16.msra.mxu1 %v9542_v49  ;;  %v583_v49 = vadd.f32 %v11566_v54, %v575_v1  ;;  %v1121_v1 = vmul.f32 %v11482_v37, %v10863_v42 }
 0x251   :  { %6412 = vmatprep.subr.bf16.mxu1 %v9550_v7  ;;  %v591_v7 = vmul.f32 %v11569_v18, %v12313_v20 }
 0x252   :  { %6884 = vmatpush1.bf16.msra.mxu0 %v9545_v6  ;;  %v11649_v6 = vstv %s7922_s4 }
 0x253   :  { %6885 = vmatprep.subr.bf16.mxu0 %v9553_v47  ;;  %v9590_v47 = vld [vmem:[#allocation8 + $0x690] ss:$8 sps:$4 sm:$0xff]  }
 0x254   :  { %6413 = vmatpush1.bf16.msra.mxu1 %v9548_v48  ;;  %v9587_v48 = vld [vmem:[#allocation8 + $0x1180] ss:$8 sps:$4 sm:$0xff]  }
 0x255   :  { %6414 = vmatprep.subr.bf16.mxu1 %v9556_v28  ;;  %v9595_v28 = vld [vmem:[#allocation8 + $0x1194] ss:$8 sps:$4 sm:$0xff]  }
 0x256   :  { %6886 = vmatpush1.bf16.msra.mxu0 %v9551_v43  ;;  %v594_v43 = vadd.f32 %v588_v19, %v580_v61 }
 0x257   :  { %6887 = vmatprep.subr.bf16.mxu0 %v9559_v22 }
 0x258   :  { %6415 = vmatpush1.bf16.msra.mxu1 %v9554_v26  ;;  %v12314_v26 = vld [vmem:[#allocation46_spill] sm:$0xff] }
 0x259   :  { %6416 = vmatprep.subr.bf16.mxu1 %v9562_v12  ;;  %v602_v22 = vmul.f32 %v11594_v24, %v12314_v26  ;;  %v9598_v12 = vld [vmem:[#allocation8 + $0x6a4] ss:$8 sps:$4 sm:$0xff]  }
 0x25a   :  { %6888 = vmatpush1.bf16.msra.mxu0 %v9557_v55  ;;  %v11655_v55 = vstv %s7957_s22 }
 0x25b   :  { %6889 = vmatprep.subr.bf16.mxu0 %v9565_v9  ;;  %v648_v9 = vmul.f32 %v11649_v6, %v12304_v60 }
 0x25c   :  { %6417 = vmatpush1.bf16.msra.mxu1 %v9560_v0  ;;  %v597_v0 = vadd.f32 %v591_v7, %v583_v49 }
 0x25d   :  { %6418 = vmatprep.subr.bf16.mxu1 %v9568_v41  ;;  %v651_v41 = vmul.f32 %v11649_v6, %v12305_v5 }
 0x25e   :  { %6890 = vmatpush1.bf16.msra.mxu0 %v9563_v21  ;;  %v1105_v21 = vmul.f32 %v11464_v11, %v10861_v40 }
 0x25f   :  { %6891 = vmatprep.subr.bf16.mxu0 %v9571_v58  ;;  %v11668_v58 = vstv %s11635_s9 }
 0x260   :  { %6419 = vmatpush1.bf16.msra.mxu1 %v9566_v27  ;;  %v1108_v27 = vmul.f32 %v11464_v11, %v10872_v62  ;;  %v1184_v11 = vmul.f32 %v11655_v55, %v10872_v62  ;;  %v659_v61 = vadd.f32 %v11668_v58, %v651_v41  ;;  %v1113_v7 = vadd.f32 %v11480_v50, %v1105_v21 }
 0x261   :  { %6420 = vmatprep.subr.bf16.mxu1 %v9574_v53  ;;  %v11671_v53 = vstv %s11637_s10 }
 0x262   :  { %6892 = vmatpush1.bf16.msra.mxu0 %v9569_v63  ;;  %v9593_v63 = vld [vmem:[#allocation8 + $0x1190] ss:$8 sps:$4 sm:$0xff]   ;;  %v664_v19 = vmul.f32 %v11671_v53, %v10991_v39  ;;  %v667_v49 = vmul.f32 %v11671_v53, %v12313_v20 }
 0x263   :  { %6893 = vmatprep.subr.bf16.mxu0 %v9577_v23  ;;  %v9601_v23 = vld [vmem:[#allocation8 + $0x11a4] ss:$8 sps:$4 sm:$0xff]   ;;  %v9605_v20 = vld [vmem:[#allocation8 + $0x11b0] ss:$8 sps:$4 sm:$0xff]  }
 0x264   :  { %6421 = vmatpush1.bf16.msra.mxu1 %v9572_v25  ;;  %v9596_v25 = vld [vmem:[#allocation8 + $0x6a0] ss:$8 sps:$4 sm:$0xff]   ;;  %v673_v17 = vadd.f32 %v667_v49, %v659_v61 }
 0x265   :  { %6422 = vmatprep.subr.bf16.mxu1 %v9580_v32  ;;  %v12315_v32 = vld [vmem:[#allocation47_spill] sm:$0xff] }
 0x266   :  { %6894 = vmatpush1.bf16.msra.mxu0 %v9575_v57  ;;  %v605_v57 = vmul.f32 %v11594_v24, %v12315_v32 }
 0x267   :  { %6895 = vmatprep.subr.bf16.mxu0 %v9583_v59  ;;  %v1181_v59 = vmul.f32 %v11655_v55, %v10861_v40  ;;  %v1135_v40 = vmul.f32 %v11505_v16, %v10865_v51 }
 0x268   :  { %6423 = vmatpush1.bf16.msra.mxu1 %v9578_v4  ;;  %v608_v4 = vadd.f32 %v602_v22, %v594_v43  ;;  %v9599_v43 = vld [vmem:[#allocation8 + $0x11a0] ss:$8 sps:$4 sm:$0xff]   ;;  %v9602_v22 = vld [vmem:[#allocation8 + $0x6b0] ss:$8 sps:$4 sm:$0xff]   ;;  %v611_v21 = vadd.f32 %v605_v57, %v597_v0  ;;  %v1138_v57 = vmul.f32 %v11505_v16, %v12310_v45  ;;  %v9616_v16 = vld [vmem:[#allocation8 + $0x6d4] ss:$8 sps:$4 sm:$0xff]  }
 0x269   :  { %6424 = vmatprep.subr.bf16.mxu1 %v9586_v30  ;;  %v12316_v30 = vld [vmem:[#allocation48_spill] sm:$0xff] }
 0x26a   :  { %6896 = vmatpush1.bf16.msra.mxu0 %v9581_v46  ;;  %v616_v46 = vmul.f32 %v11613_v56, %v12316_v30 }
 0x26b   :  { %6897 = vmatprep.subr.bf16.mxu0 %v9589_v3  ;;  %v11689_v3 = vstv %s11644_s18 }
 0x26c   :  { %6425 = vmatpush1.bf16.msra.mxu1 %v9584_v31  ;;  %v11686_v31 = vstv %s11642_s28  ;;  %12317 = vst [vmem:[#allocation32_spill] sm:$0xff] %v11689_v3  ;;  %v1197_v62 = vmul.f32 %v11689_v3, %v10863_v42  ;;  %v622_v49 = vadd.f32 %v616_v46, %v608_v4  ;;  %v1152_v4 = vmul.f32 %v11520_v14, %v12312_v15  ;;  %v9611_v46 = vld [vmem:[#allocation8 + $0x11c0] ss:$8 sps:$4 sm:$0xff]  }
 0x26d   :  { %6426 = vmatprep.subr.bf16.mxu1 %v9592_v2  ;;  %v656_v2 = vadd.f32 %v11668_v58, %v648_v9  ;;  %v1189_v9 = vadd.f32 %v11686_v31, %v1181_v59  ;;  %v1192_v41 = vadd.f32 %v11686_v31, %v1184_v11  ;;  %v11717_v59 = vstv %s11657_s16 }
 0x26e   :  { %6898 = vmatpush1.bf16.msra.mxu0 %v9587_v48  ;;  %v1116_v48 = vadd.f32 %v11480_v50, %v1108_v27  ;;  %v1200_v50 = vmul.f32 %v11689_v3, %v12309_v29  ;;  %v12318_v27 = vld [vmem:[#allocation49_spill] sm:$0xff]  ;;  %v9608_v3 = vld [vmem:[#allocation8 + $0x6c0] ss:$8 sps:$4 sm:$0xff]   ;;  %v1211_v61 = vmul.f32 %v11717_v59, %v10865_v51 }
 0x26f   :  { %6899 = vmatprep.subr.bf16.mxu0 %v9595_v28  ;;  %v11704_v28 = vstv %s11651_s5  ;;  %v670_v11 = vadd.f32 %v664_v19, %v656_v2  ;;  %v1214_v19 = vmul.f32 %v11717_v59, %v12310_v45 }
 0x270   :  { %6427 = vmatpush1.bf16.msra.mxu1 %v9590_v47  ;;  %v1124_v47 = vmul.f32 %v11482_v37, %v12309_v29  ;;  %v9610_v37 = vld [vmem:[#allocation8 + $0x6c4] ss:$8 sps:$4 sm:$0xff]   ;;  %v678_v42 = vmul.f32 %v11704_v28, %v12314_v26  ;;  %v11726_v29 = vstv %s11673_s23  ;;  %v1206_v2 = vadd.f32 %v1200_v50, %v1192_v41 }
 0x271   :  { %6428 = vmatprep.subr.bf16.mxu1 %v9598_v12  ;;  %v9607_v12 = vld [vmem:[#allocation8 + $0x11b4] ss:$8 sps:$4 sm:$0xff]  }
 0x272   :  { %6900 = vmatpush1.bf16.msra.mxu0 %v9593_v63  ;;  %v619_v63 = vmul.f32 %v11613_v56, %v12318_v27  ;;  %v1130_v0 = vadd.f32 %v1124_v47, %v1116_v48  ;;  %v11733_v48 = vstv %s11691_s24  ;;  %v684_v47 = vadd.f32 %v678_v42, %v670_v11  ;;  %v9617_v11 = vld [vmem:[#allocation8 + $0x11d0] ss:$8 sps:$4 sm:$0xff]  }
 0x273   :  { %6901 = vmatprep.subr.bf16.mxu0 %v9601_v23  ;;  %v681_v23 = vmul.f32 %v11704_v28, %v12315_v32 }
 0x274   :  { %6429 = vmatpush1.bf16.msra.mxu1 %v9596_v25  ;;  %v1127_v25 = vadd.f32 %v1121_v1, %v1113_v7  ;;  %v9613_v1 = vld [vmem:[#allocation8 + $0x11c4] ss:$8 sps:$4 sm:$0xff]   ;;  %v625_v7 = vadd.f32 %v619_v63, %v611_v21  ;;  %v1144_v50 = vadd.f32 %v1138_v57, %v1130_v0  ;;  %v1225_v21 = vmul.f32 %v11733_v48, %v12311_v13  ;;  %v9620_v0 = vld [vmem:[#allocation8 + $0x6e0] ss:$8 sps:$4 sm:$0xff]  }
 0x275   :  { %6430 = vmatprep.subr.bf16.mxu1 %v9604_v44  ;;  %v1203_v44 = vadd.f32 %v1197_v62, %v1189_v9  ;;  %v692_v62 = vmul.f32 %v11726_v29, %v12316_v30  ;;  %v695_v9 = vmul.f32 %v11726_v29, %v12318_v27  ;;  %v1228_v63 = vmul.f32 %v11733_v48, %v12312_v15  ;;  %v9625_v57 = vld [vmem:[#allocation8 + $0x11e4] ss:$8 sps:$4 sm:$0xff]  }
 0x276   :  { %6902 = vmatpush1.bf16.msra.mxu0 %v9599_v43  ;;  %v687_v43 = vadd.f32 %v681_v23, %v673_v17  ;;  %v1141_v41 = vadd.f32 %v1135_v40, %v1127_v25  ;;  %v1220_v17 = vadd.f32 %v1214_v19, %v1206_v2  ;;  %v9622_v40 = vld [vmem:[#allocation8 + $0x6e4] ss:$8 sps:$4 sm:$0xff]   ;;  %v631_v2 = vmax.f32 %v625_v7, 0.0  ;;  %v9629_v7 = vld [vmem:[#allocation8 + $0x11f0] ss:$8 sps:$4 sm:$0xff]  }
 0x277   :  { %6903 = vmatprep.subr.bf16.mxu0 %v9607_v12  ;;  %v9614_v12 = vld [vmem:[#allocation8 + $0x6d0] ss:$8 sps:$4 sm:$0xff]   ;;  %v1217_v42 = vadd.f32 %v1211_v61, %v1203_v44  ;;  %v698_v23 = vadd.f32 %v692_v62, %v684_v47  ;;  %v628_v44 = vmax.f32 %v622_v49, 0.0  ;;  %v9634_v49 = vld [vmem:[#allocation8 + $0x704] ss:$8 sps:$4 sm:$0xff]  }
 0x278   :  { %6431 = vmatpush1.bf16.msra.mxu1 %v9602_v22  ;;  %v1149_v22 = vmul.f32 %v11520_v14, %v12311_v13  ;;  %v701_v25 = vadd.f32 %v695_v9, %v687_v43  ;;  %v1234_v19 = vadd.f32 %v1228_v63, %v1220_v17  ;;  %v9628_v13 = vld [vmem:[#allocation8 + $0x6f4] ss:$8 sps:$4 sm:$0xff]   ;;  %v637_v9 = vmin.f32 %v631_v2, 6.0  ;;  %v9647_v2 = vld [vmem:[#allocation8 + $0x1220] ss:$8 sps:$4 sm:$0xff]  }
 0x279   :  { %6432 = vmatprep.subr.bf16.mxu1 %v9610_v37  ;;  %v9619_v37 = vld [vmem:[#allocation8 + $0x11d4] ss:$8 sps:$4 sm:$0xff]   ;;  %v1231_v61 = vadd.f32 %v1225_v21, %v1217_v42  ;;  %v634_v62 = vmin.f32 %v628_v44, 6.0  ;;  %v9637_v42 = vld [vmem:[#allocation8 + $0x1204] ss:$8 sps:$4 sm:$0xff]  }
 0x27a   :  { %6904 = vmatpush1.bf16.msra.mxu0 %v9605_v20  ;;  %v1155_v14 = vadd.f32 %v1149_v22, %v1141_v41  ;;  %v1158_v20 = vadd.f32 %v1152_v4, %v1144_v50  ;;  %v707_v15 = vmax.f32 %v701_v25, 0.0  ;;  %v9631_v43 = vld [vmem:[#allocation8 + $0x11f4] ss:$8 sps:$4 sm:$0xff]   ;;  %v1240_v50 = vmax.f32 %v1234_v19, 0.0  ;;  %v9635_v25 = vld [vmem:[#allocation8 + $0x1200] ss:$8 sps:$4 sm:$0xff]  }
 0x27b   :  { %6905 = vmatprep.subr.bf16.mxu0 %v9613_v1  ;;  %v9623_v1 = vld [vmem:[#allocation8 + $0x11e0] ss:$8 sps:$4 sm:$0xff]   ;;  %v1237_v41 = vmax.f32 %v1231_v61, 0.0  ;;  %v640_v17 = vpack.c.bf16 %v637_v9, %v634_v62  ;;  %v9652_v44 = vld [vmem:[#allocation8 + $0x734] ss:$8 sps:$4 sm:$0xff]  }
 0x27c   :  { %6433 = vmatpush1.bf16.msra.mxu1 %v9608_v3  ;;  %v704_v3 = vmax.f32 %v698_v23, 0.0  ;;  %v1161_v45 = vmax.f32 %v1155_v14, 0.0  ;;  %v1164_v47 = vmax.f32 %v1158_v20, 0.0  ;;  %v713_v4 = vmin.f32 %v707_v15, 6.0  ;;  %v9646_v15 = vld [vmem:[#allocation8 + $0x724] ss:$8 sps:$4 sm:$0xff]  }
 0x27d   :  { %6434 = vmatprep.subr.bf16.mxu1 %v9616_v16  ;;  %v9626_v16 = vld [vmem:[#allocation8 + $0x6f0] ss:$8 sps:$4 sm:$0xff]   ;;  %v1243_v21 = vmin.f32 %v1237_v41, 6.0  ;;  %v1246_v63 = vmin.f32 %v1240_v50, 6.0  ;;  %v9655_v19 = vld [vmem:[#allocation8 + $0x1234] ss:$8 sps:$4 sm:$0xff]  }
 0x27e   :  { %6906 = vmatpush1.bf16.msra.mxu0 %v9611_v46  ;;  %v710_v22 = vmin.f32 %v704_v3, 6.0  ;;  %v1167_v46 = vmin.f32 %v1161_v45, 6.0  ;;  %v9643_v45 = vld [vmem:[#allocation8 + $0x1214] ss:$8 sps:$4 sm:$0xff]   ;;  %v9641_v20 = vld [vmem:[#allocation8 + $0x1210] ss:$8 sps:$4 sm:$0xff]  }
 0x27f   :  { %6907 = vmatprep.subr.bf16.mxu0 %v9619_v37  ;;  %v9632_v37 = vld [vmem:[#allocation8 + $0x700] ss:$8 sps:$4 sm:$0xff]   ;;  %v1249_v14 = vpack.c.bf16 %v1246_v63, %v1243_v21  ;;  %v9650_v61 = vld [vmem:[#allocation8 + $0x730] ss:$8 sps:$4 sm:$0xff]   ;;  %v9667_v41 = vld [vmem:[#allocation8 + $0x1254] ss:$8 sps:$4 sm:$0xff]   ;;  %v574_v63 = vmul.f32 %v11548_v52, %v10928_v8 }
 0x280   :  { %6435 = vmatpush1.bf16.msra.mxu1 %v9614_v12  ;;  %v1170_v12 = vmin.f32 %v1164_v47, 6.0  ;;  %v9653_v3 = vld [vmem:[#allocation8 + $0x1230] ss:$8 sps:$4 sm:$0xff]   ;;  %v9661_v47 = vld [vmem:[#allocation8 + $0x1244] ss:$8 sps:$4 sm:$0xff]  }
 0x281   :  { %6436 = vmatprep.subr.bf16.mxu1 %v9622_v40  ;;  %v9640_v40 = vld [vmem:[#allocation8 + $0x714] ss:$8 sps:$4 sm:$0xff]   ;;  %v9659_v62 = vld [vmem:[#allocation8 + $0x1240] ss:$8 sps:$4 sm:$0xff]   ;;  %v9662_v9 = vld [vmem:[#allocation8 + $0x750] ss:$8 sps:$4 sm:$0xff]  }
 0x282   :  { %6908 = vmatpush1.bf16.msra.mxu0 %v9617_v11  ;;  %v716_v11 = vpack.c.bf16 %v713_v4, %v710_v22  ;;  %v1173_v23 = vpack.c.bf16 %v1170_v12, %v1167_v46  ;;  %v9670_v50 = vld [vmem:[#allocation8 + $0x764] ss:$8 sps:$4 sm:$0xff]   ;;  %v9676_v4 = vld [vmem:[#allocation8 + $0x774] ss:$8 sps:$4 sm:$0xff]   ;;  %v9671_v46 = vld [vmem:[#allocation8 + $0x1260] ss:$8 sps:$4 sm:$0xff]  }
 0x283   :  { %6909 = vmatprep.subr.bf16.mxu0 %v9625_v57  ;;  %v9649_v57 = vld [vmem:[#allocation8 + $0x1224] ss:$8 sps:$4 sm:$0xff]   ;;  %v9674_v12 = vld [vmem:[#allocation8 + $0x770] ss:$8 sps:$4 sm:$0xff]   ;;  %v9680_v21 = vld [vmem:[#allocation8 + $0x780] ss:$8 sps:$4 sm:$0xff]  }
 0x284   :  { %6437 = vmatpush1.bf16.msra.mxu1 %v9620_v0  ;;  %v9644_v0 = vld [vmem:[#allocation8 + $0x720] ss:$8 sps:$4 sm:$0xff]   ;;  %v9673_v22 = vld [vmem:[#allocation8 + $0x1264] ss:$8 sps:$4 sm:$0xff]  }
 0x285   :  { %6438 = vmatprep.subr.bf16.mxu1 %v9628_v13  ;;  %v9638_v13 = vld [vmem:[#allocation8 + $0x710] ss:$8 sps:$4 sm:$0xff]  }
 0x286   :  { %6910 = vmatpush1.bf16.msra.mxu0 %v9623_v1  ;;  %v9658_v1 = vld [vmem:[#allocation8 + $0x744] ss:$8 sps:$4 sm:$0xff]  }
 0x287   :  { %6911 = vmatprep.subr.bf16.mxu0 %v9631_v43  ;;  %v9664_v43 = vld [vmem:[#allocation8 + $0x754] ss:$8 sps:$4 sm:$0xff]  }
 0x288   :  { %6439 = vmatpush1.bf16.msra.mxu1 %v9626_v16  ;;  %v9656_v16 = vld [vmem:[#allocation8 + $0x740] ss:$8 sps:$4 sm:$0xff]  }
 0x289   :  { %6451 = vmatprep.subr.bf16.mxu1 %v9634_v49  ;;  %v9665_v49 = vld [vmem:[#allocation8 + $0x1250] ss:$8 sps:$4 sm:$0xff]  }
 0x28a   :  { %6912 = vmatpush1.bf16.msra.mxu0 %v9629_v7  ;;  %v9668_v7 = vld [vmem:[#allocation8 + $0x760] ss:$8 sps:$4 sm:$0xff]  }
 0x28b   :  { %6441 = vmatmul.mubr.bf16.vlgmr.msra.gmra.mrb[0].mxu1 %v640_v17  ;;  %6924 = vmatprep.subr.bf16.mxu0 %v9637_v42  ;;  %v9682_v42 = vld [vmem:[#allocation8 + $0x784] ss:$8 sps:$4 sm:$0xff]   ;;  %v9677_v17 = vld [vmem:[#allocation8 + $0x1270] ss:$8 sps:$4 sm:$0xff]  }
 0x28c   :  { %6452 = vmatpush1.bf16.msra.mxu1 %v9632_v37  ;;  %6483 = vmatprep.mubr.bf16.mxu1 %v716_v11  ;;  %v9679_v37 = vld [vmem:[#allocation8 + $0x1274] ss:$8 sps:$4 sm:$0xff]   ;;  %v577_v11 = vmul.f32 %v11548_v52, %v10931_v33  ;;  %v593_v52 = vmul.f32 %v11569_v18, %v10935_v35 }
 0x28d   :  { %6453 = vmatprep.subr.bf16.mxu1 %v9640_v40  ;;  %6914 = vmatmul.mubr.bf16.vlgmr.msra.gmra.mrb[0].mxu0 %v1173_v23  ;;  %v9685_v40 = vld [vmem:[#allocation8 + $0x1284] ss:$8 sps:$4 sm:$0xff]   ;;  %v9688_v23 = vld [vmem:[#allocation8 + $0x794] ss:$8 sps:$4 sm:$0xff]  }
 0x28e   :  { %6925 = vmatpush1.bf16.msra.mxu0 %v9635_v25  ;;  %6956 = vmatprep.mubr.bf16.mxu0 %v1249_v14  ;;  %v9683_v25 = vld [vmem:[#allocation8 + $0x1280] ss:$8 sps:$4 sm:$0xff]   ;;  %v590_v14 = vmul.f32 %v11569_v18, %v10933_v34  ;;  %v1183_v18 = vmul.f32 %v11655_v55, %v12305_v5 }
 0x28f   :  { %6926 = vmatprep.subr.bf16.mxu0 %v9643_v45  ;;  %v9686_v45 = vld [vmem:[#allocation8 + $0x790] ss:$8 sps:$4 sm:$0xff]  }
 0x290   :  { %6454 = vmatpush1.bf16.msra.mxu1 %v9638_v13  ;;  %v582_v13 = vadd.f32 %v11566_v54, %v574_v63 }
 0x291   :  { %6455 = vmatprep.subr.bf16.mxu1 %v9646_v15  ;;  %v9691_v15 = vld [vmem:[#allocation8 + $0x1294] ss:$8 sps:$4 sm:$0xff]  }
 0x292   :  { %6927 = vmatpush1.bf16.msra.mxu0 %v9641_v20  ;;  %v585_v20 = vadd.f32 %v11566_v54, %v577_v11  ;;  %v1180_v54 = vmul.f32 %v11655_v55, %v12304_v60 }
 0x293   :  { %6928 = vmatprep.subr.bf16.mxu0 %v9649_v57  ;;  %v9694_v57 = vld [vmem:[#allocation8 + $0x7a4] ss:$8 sps:$4 sm:$0xff]  }
 0x294   :  { %6456 = vmatpush1.bf16.msra.mxu1 %v9644_v0  ;;  %v11761_v0 = vstv %s7962_s25 }
 0x295   :  { %6457 = vmatprep.subr.bf16.mxu1 %v9652_v44  ;;  %v650_v44 = vmul.f32 %v11649_v6, %v10928_v8 }
 0x296   :  { %6929 = vmatpush1.bf16.msra.mxu0 %v9647_v2  ;;  %v653_v2 = vmul.f32 %v11649_v6, %v10931_v33 }
 0x297   :  { %6930 = vmatprep.subr.bf16.mxu0 %v9655_v19  ;;  %v9689_v19 = vld [vmem:[#allocation8 + $0x1290] ss:$8 sps:$4 sm:$0xff]  }
 0x298   :  { %6458 = vmatpush1.bf16.msra.mxu1 %v9650_v61  ;;  %v604_v61 = vmul.f32 %v11594_v24, %v10939_v36 }
 0x299   :  { %6459 = vmatprep.subr.bf16.mxu1 %v9658_v1  ;;  %v596_v1 = vadd.f32 %v590_v14, %v582_v13  ;;  %v9698_v14 = vld [vmem:[#allocation8 + $0x7b0] ss:$8 sps:$4 sm:$0xff]  }
 0x29a   :  { %6931 = vmatpush1.bf16.msra.mxu0 %v9653_v3  ;;  %v607_v3 = vmul.f32 %v11594_v24, %v10945_v10  ;;  %v9700_v24 = vld [vmem:[#allocation8 + $0x7b4] ss:$8 sps:$4 sm:$0xff]  }
 0x29b   :  { %6932 = vmatprep.subr.bf16.mxu0 %v9661_v47  ;;  %v1259_v47 = vmul.f32 %v11761_v0, %v12305_v5 }
 0x29c   :  { %6460 = vmatpush1.bf16.msra.mxu1 %v9656_v16  ;;  %v1256_v16 = vmul.f32 %v11761_v0, %v12304_v60 }
 0x29d   :  { %6461 = vmatprep.subr.bf16.mxu1 %v9664_v43  ;;  %v9692_v43 = vld [vmem:[#allocation8 + $0x7a0] ss:$8 sps:$4 sm:$0xff]  }
 0x29e   :  { %6933 = vmatpush1.bf16.msra.mxu0 %v9659_v62  ;;  %v9697_v62 = vld [vmem:[#allocation8 + $0x12a4] ss:$8 sps:$4 sm:$0xff]  }
 0x29f   :  { %6934 = vmatprep.subr.bf16.mxu0 %v9667_v41  ;;  %v618_v41 = vmul.f32 %v11613_v56, %v10967_v38 }
 0x2a0   :  { %6462 = vmatpush1.bf16.msra.mxu1 %v9662_v9  ;;  %v599_v9 = vadd.f32 %v593_v52, %v585_v20  ;;  %v12321_v52 = vld [vmem:[#allocation42_spill] sm:$0xff] }
 0x2a1   :  { %6463 = vmatprep.subr.bf16.mxu1 %v9670_v50  ;;  %v11784_v50 = vstv %s11751_s26 }
 0x2a2   :  { %6935 = vmatpush1.bf16.msra.mxu0 %v9665_v49  ;;  %v11787_v49 = vstv %s11753_s27  ;;  %v1264_v11 = vadd.f32 %v11784_v50, %v1256_v16  ;;  %v613_v20 = vadd.f32 %v607_v3, %v599_v9  ;;  %v683_v16 = vmul.f32 %v11704_v28, %v10945_v10 }
 0x2a3   :  { %6936 = vmatprep.subr.bf16.mxu0 %v9673_v22  ;;  %v661_v22 = vadd.f32 %v11668_v58, %v653_v2  ;;  %v9706_v2 = vld [vmem:[#allocation8 + $0x7c4] ss:$8 sps:$4 sm:$0xff]  }
 0x2a4   :  { %6464 = vmatpush1.bf16.msra.mxu1 %v9668_v7  ;;  %v658_v7 = vadd.f32 %v11668_v58, %v650_v44  ;;  %v11812_v44 = vstv %s11763_s0 }
 0x2a5   :  { %6465 = vmatprep.subr.bf16.mxu1 %v9676_v4  ;;  %v666_v4 = vmul.f32 %v11671_v53, %v10933_v34  ;;  %12322 = vst [vmem:[#allocation40_spill] sm:$0xff] %v11812_v44  ;;  %v1286_v9 = vmul.f32 %v11812_v44, %v12314_v26 }
 0x2a6   :  { %6937 = vmatpush1.bf16.msra.mxu0 %v9671_v46  ;;  %v669_v46 = vmul.f32 %v11671_v53, %v10935_v35 }
 0x2a7   :  { %6938 = vmatprep.subr.bf16.mxu0 %v9679_v37  ;;  %v1191_v37 = vadd.f32 %v11686_v31, %v1183_v18 }
 0x2a8   :  { %6466 = vmatpush1.bf16.msra.mxu1 %v9674_v12  ;;  %v1188_v12 = vadd.f32 %v11686_v31, %v1180_v54  ;;  %v672_v54 = vadd.f32 %v666_v4, %v658_v7  ;;  %v675_v18 = vadd.f32 %v669_v46, %v661_v22  ;;  %v9704_v7 = vld [vmem:[#allocation8 + $0x7c0] ss:$8 sps:$4 sm:$0xff]   ;;  %v9709_v22 = vld [vmem:[#allocation8 + $0x12c4] ss:$8 sps:$4 sm:$0xff]  }
 0x2a9   :  { %6467 = vmatprep.subr.bf16.mxu1 %v9682_v42  ;;  %v12319_v42 = vld [vmem:[#allocation32_spill] sm:$0xff] }
 0x2aa   :  { %6939 = vmatpush1.bf16.msra.mxu0 %v9677_v17  ;;  %v1196_v17 = vmul.f32 %v12319_v42, %v10991_v39 }
 0x2ab   :  { %6940 = vmatprep.subr.bf16.mxu0 %v9685_v40  ;;  %v9695_v40 = vld [vmem:[#allocation8 + $0x12a0] ss:$8 sps:$4 sm:$0xff]  }
 0x2ac   :  { %6468 = vmatpush1.bf16.msra.mxu1 %v9680_v21  ;;  %v12320_v21 = vld [vmem:[#allocation45_spill] sm:$0xff] }
 0x2ad   :  { %6469 = vmatprep.subr.bf16.mxu1 %v9688_v23  ;;  %v1199_v63 = vmul.f32 %v12319_v42, %v12320_v21  ;;  %v1267_v23 = vadd.f32 %v11784_v50, %v1259_v47  ;;  %v1275_v13 = vmul.f32 %v11787_v49, %v12320_v21  ;;  %v1202_v47 = vadd.f32 %v1196_v17, %v1188_v12 }
 0x2ae   :  { %6941 = vmatpush1.bf16.msra.mxu0 %v9683_v25  ;;  %v1272_v25 = vmul.f32 %v11787_v49, %v10991_v39  ;;  %v11827_v12 = vstv %s11789_s2 }
 0x2af   :  { %6942 = vmatprep.subr.bf16.mxu0 %v9691_v15  ;;  %v610_v15 = vadd.f32 %v604_v61, %v596_v1  ;;  %v1210_v61 = vmul.f32 %v11717_v59, %v12314_v26  ;;  %v9701_v1 = vld [vmem:[#allocation8 + $0x12b0] ss:$8 sps:$4 sm:$0xff]  }
 0x2b0   :  { %6470 = vmatpush1.bf16.msra.mxu1 %v9686_v45  ;;  %v9703_v45 = vld [vmem:[#allocation8 + $0x12b4] ss:$8 sps:$4 sm:$0xff]   ;;  %v1278_v3 = vadd.f32 %v1272_v25, %v1264_v11  ;;  %v697_v11 = vmul.f32 %v11726_v29, %v12321_v52 }
 0x2b1   :  { %6471 = vmatprep.subr.bf16.mxu1 %v9694_v57  ;;  %v621_v57 = vmul.f32 %v11613_v56, %v12321_v52  ;;  %v1213_v56 = vmul.f32 %v11717_v59, %v12315_v32  ;;  %v624_v4 = vadd.f32 %v618_v41, %v610_v15  ;;  %v1227_v41 = vmul.f32 %v11733_v48, %v12318_v27 }
 0x2b2   :  { %6943 = vmatpush1.bf16.msra.mxu0 %v9689_v19  ;;  %v680_v19 = vmul.f32 %v11704_v28, %v10939_v36 }
 0x2b3   :  { %6944 = vmatprep.subr.bf16.mxu0 %v9697_v62  ;;  %v1281_v62 = vadd.f32 %v1275_v13, %v1267_v23  ;;  %v627_v46 = vadd.f32 %v621_v57, %v613_v20  ;;  %v1216_v23 = vadd.f32 %v1210_v61, %v1202_v47  ;;  %v1224_v13 = vmul.f32 %v11733_v48, %v12316_v30  ;;  %v9713_v61 = vld [vmem:[#allocation8 + $0x12d0] ss:$8 sps:$4 sm:$0xff]  }
 0x2b4   :  { %6472 = vmatpush1.bf16.msra.mxu1 %v9692_v43  ;;  %v1205_v43 = vadd.f32 %v1199_v63, %v1191_v37  ;;  %v9712_v37 = vld [vmem:[#allocation8 + $0x7d4] ss:$8 sps:$4 sm:$0xff]   ;;  %v686_v17 = vadd.f32 %v680_v19, %v672_v54  ;;  %v689_v63 = vadd.f32 %v683_v16, %v675_v18  ;;  %v1300_v20 = vmul.f32 %v11827_v12, %v12316_v30  ;;  %v9718_v18 = vld [vmem:[#allocation8 + $0x7e4] ss:$8 sps:$4 sm:$0xff]  }
 0x2b5   :  { %6473 = vmatprep.subr.bf16.mxu1 %v9700_v24  ;;  %v1289_v24 = vmul.f32 %v11812_v44, %v12315_v32  ;;  %v1303_v57 = vmul.f32 %v11827_v12, %v12318_v27  ;;  %v9715_v54 = vld [vmem:[#allocation8 + $0x12d4] ss:$8 sps:$4 sm:$0xff]   ;;  %v1230_v47 = vadd.f32 %v1224_v13, %v1216_v23 }
 0x2b6   :  { %6945 = vmatpush1.bf16.msra.mxu0 %v9695_v40  ;;  %v694_v40 = vmul.f32 %v11726_v29, %v10967_v38  ;;  %v1219_v25 = vadd.f32 %v1213_v56, %v1205_v43  ;;  %v703_v16 = vadd.f32 %v697_v11, %v689_v63  ;;  %v630_v56 = vmax.f32 %v624_v4, 0.0  ;;  %v9722_v4 = vld [vmem:[#allocation8 + $0x7f0] ss:$8 sps:$4 sm:$0xff]  }
 0x2b7   :  { %6946 = vmatprep.subr.bf16.mxu0 %v9703_v45  ;;  %v1292_v45 = vadd.f32 %v1286_v9, %v1278_v3  ;;  %v1295_v15 = vadd.f32 %v1289_v24, %v1281_v62  ;;  %v9716_v9 = vld [vmem:[#allocation8 + $0x7e0] ss:$8 sps:$4 sm:$0xff]   ;;  %v9721_v24 = vld [vmem:[#allocation8 + $0x12e4] ss:$8 sps:$4 sm:$0xff]  }
 0x2b8   :  { %6474 = vmatpush1.bf16.msra.mxu1 %v9698_v14  ;;  %v9707_v14 = vld [vmem:[#allocation8 + $0x12c0] ss:$8 sps:$4 sm:$0xff]   ;;  %v700_v19 = vadd.f32 %v694_v40, %v686_v17  ;;  %v1233_v43 = vadd.f32 %v1227_v41, %v1219_v25  ;;  %v709_v27 = vmax.f32 %v703_v16, 0.0  ;;  %v636_v63 = vmin.f32 %v630_v56, 6.0  ;;  %v9730_v25 = vld [vmem:[#allocation8 + $0x804] ss:$8 sps:$4 sm:$0xff]  }
 0x2b9   :  { %6475 = vmatprep.subr.bf16.mxu1 %v9706_v2  ;;  %v9710_v2 = vld [vmem:[#allocation8 + $0x7d0] ss:$8 sps:$4 sm:$0xff]   ;;  %v1306_v3 = vadd.f32 %v1300_v20, %v1292_v45  ;;  %v1309_v62 = vadd.f32 %v1303_v57, %v1295_v15  ;;  %v9719_v17 = vld [vmem:[#allocation8 + $0x12e0] ss:$8 sps:$4 sm:$0xff]   ;;  %v9742_v56 = vld [vmem:[#allocation8 + $0x824] ss:$8 sps:$4 sm:$0xff]  }
 0x2ba   :  { %6947 = vmatpush1.bf16.msra.mxu0 %v9701_v1  ;;  %v633_v1 = vmax.f32 %v627_v46, 0.0  ;;  %v1239_v30 = vmax.f32 %v1233_v43, 0.0  ;;  %v9727_v46 = vld [vmem:[#allocation8 + $0x12f4] ss:$8 sps:$4 sm:$0xff]   ;;  %v715_v41 = vmin.f32 %v709_v27, 6.0 }
 0x2bb   :  { %6948 = vmatprep.subr.bf16.mxu0 %v9709_v22  ;;  %v706_v22 = vmax.f32 %v700_v19, 0.0  ;;  %v1312_v11 = vmax.f32 %v1306_v3, 0.0  ;;  %v1315_v23 = vmax.f32 %v1309_v62, 0.0  ;;  %v9725_v15 = vld [vmem:[#allocation8 + $0x12f0] ss:$8 sps:$4 sm:$0xff]  }
 0x2bc   :  { %6476 = vmatpush1.bf16.msra.mxu1 %v9704_v7  ;;  %v9724_v7 = vld [vmem:[#allocation8 + $0x7f4] ss:$8 sps:$4 sm:$0xff]   ;;  %v639_v40 = vmin.f32 %v633_v1, 6.0  ;;  %v1245_v45 = vmin.f32 %v1239_v30, 6.0  ;;  %v9731_v43 = vld [vmem:[#allocation8 + $0x1300] ss:$8 sps:$4 sm:$0xff]  }
 0x2bd   :  { %6477 = vmatprep.subr.bf16.mxu1 %v9712_v37  ;;  %v1236_v37 = vmax.f32 %v1230_v47, 0.0  ;;  %v712_v13 = vmin.f32 %v706_v22, 6.0  ;;  %v1318_v57 = vmin.f32 %v1312_v11, 6.0  ;;  %v9736_v19 = vld [vmem:[#allocation8 + $0x814] ss:$8 sps:$4 sm:$0xff]  }
 0x2be   :  { %6949 = vmatpush1.bf16.msra.mxu0 %v9707_v14  ;;  %v642_v20 = vpack.c.bf16 %v639_v40, %v636_v63  ;;  %v9734_v30 = vld [vmem:[#allocation8 + $0x810] ss:$8 sps:$4 sm:$0xff]   ;;  %v9739_v27 = vld [vmem:[#allocation8 + $0x1314] ss:$8 sps:$4 sm:$0xff]   ;;  %v9740_v3 = vld [vmem:[#allocation8 + $0x820] ss:$8 sps:$4 sm:$0xff]  }
 0x2bf   :  { %6950 = vmatprep.subr.bf16.mxu0 %v9715_v54  ;;  %v1242_v14 = vmin.f32 %v1236_v37, 6.0  ;;  %v9728_v54 = vld [vmem:[#allocation8 + $0x800] ss:$8 sps:$4 sm:$0xff]   ;;  %v718_v16 = vpack.c.bf16 %v715_v41, %v712_v13  ;;  %v9737_v1 = vld [vmem:[#allocation8 + $0x1310] ss:$8 sps:$4 sm:$0xff]  }
 0x2c0   :  { %6478 = vmatpush1.bf16.msra.mxu1 %v9710_v2  ;;  %v1321_v2 = vmin.f32 %v1315_v23, 6.0  ;;  %v9745_v62 = vld [vmem:[#allocation8 + $0x1324] ss:$8 sps:$4 sm:$0xff]   ;;  %v9751_v22 = vld [vmem:[#allocation8 + $0x1334] ss:$8 sps:$4 sm:$0xff]  }
 0x2c1   :  { %6479 = vmatprep.subr.bf16.mxu1 %v9718_v18  ;;  %v9733_v18 = vld [vmem:[#allocation8 + $0x1304] ss:$8 sps:$4 sm:$0xff]   ;;  %v1248_v47 = vpack.c.bf16 %v1245_v45, %v1242_v14  ;;  %v9752_v63 = vld [vmem:[#allocation8 + $0x840] ss:$8 sps:$4 sm:$0xff]   ;;  %v9760_v11 = vld [vmem:[#allocation8 + $0x854] ss:$8 sps:$4 sm:$0xff]  }
 0x2c2   :  { %6951 = vmatpush1.bf16.msra.mxu0 %v9713_v61  ;;  %v1324_v61 = vpack.c.bf16 %v1321_v2, %v1318_v57  ;;  %v9754_v37 = vld [vmem:[#allocation8 + $0x844] ss:$8 sps:$4 sm:$0xff]   ;;  %v9755_v23 = vld [vmem:[#allocation8 + $0x1340] ss:$8 sps:$4 sm:$0xff]   ;;  %v9761_v13 = vld [vmem:[#allocation8 + $0x1350] ss:$8 sps:$4 sm:$0xff]  }
 0x2c3   :  { %6952 = vmatprep.subr.bf16.mxu0 %v9721_v24  ;;  %v9743_v24 = vld [vmem:[#allocation8 + $0x1320] ss:$8 sps:$4 sm:$0xff]   ;;  %v9757_v40 = vld [vmem:[#allocation8 + $0x1344] ss:$8 sps:$4 sm:$0xff]   ;;  %v9772_v45 = vld [vmem:[#allocation8 + $0x874] ss:$8 sps:$4 sm:$0xff]  }
 0x2c4   :  { %6480 = vmatpush1.bf16.msra.mxu1 %v9716_v9  ;;  %v9748_v9 = vld [vmem:[#allocation8 + $0x834] ss:$8 sps:$4 sm:$0xff]   ;;  %v9764_v41 = vld [vmem:[#allocation8 + $0x860] ss:$8 sps:$4 sm:$0xff]   ;;  %v9769_v14 = vld [vmem:[#allocation8 + $0x1364] ss:$8 sps:$4 sm:$0xff]  }
 0x2c5   :  { %6481 = vmatprep.subr.bf16.mxu1 %v9724_v7  ;;  %v9746_v7 = vld [vmem:[#allocation8 + $0x830] ss:$8 sps:$4 sm:$0xff]   ;;  %v9775_v57 = vld [vmem:[#allocation8 + $0x1374] ss:$8 sps:$4 sm:$0xff]   ;;  %v9778_v2 = vld [vmem:[#allocation8 + $0x884] ss:$8 sps:$4 sm:$0xff]  }
 0x2c6   :  { %6953 = vmatpush1.bf16.msra.mxu0 %v9719_v17  ;;  %v9749_v17 = vld [vmem:[#allocation8 + $0x1330] ss:$8 sps:$4 sm:$0xff]  }
 0x2c7   :  { %6954 = vmatprep.subr.bf16.mxu0 %v9727_v46  ;;  %v9763_v46 = vld [vmem:[#allocation8 + $0x1354] ss:$8 sps:$4 sm:$0xff]  }
 0x2c8   :  { %6482 = vmatpush1.bf16.msra.mxu1 %v9722_v4  ;;  %v9758_v4 = vld [vmem:[#allocation8 + $0x850] ss:$8 sps:$4 sm:$0xff]  }
 0x2c9   :  { %6494 = vmatprep.subr.bf16.mxu1 %v9730_v25  ;;  %v9766_v25 = vld [vmem:[#allocation8 + $0x864] ss:$8 sps:$4 sm:$0xff]  }
 0x2ca   :  { %6955 = vmatpush1.bf16.msra.mxu0 %v9725_v15  ;;  %v9767_v15 = vld [vmem:[#allocation8 + $0x1360] ss:$8 sps:$4 sm:$0xff]  }
 0x2cb   :  { %6484 = vmatmul.mubr.bf16.vlgmr.msra.gmra.mrb[0].mxu1 %v642_v20  ;;  %6967 = vmatprep.subr.bf16.mxu0 %v9733_v18  ;;  %v9770_v20 = vld [vmem:[#allocation8 + $0x870] ss:$8 sps:$4 sm:$0xff]  }
 0x2cc   :  { %6495 = vmatpush1.bf16.msra.mxu1 %v9728_v54  ;;  %6526 = vmatprep.mubr.bf16.mxu1 %v718_v16  ;;  %v12323_v54 = vld [vmem:[#allocation33_spill] sm:$0xff]  ;;  %v9776_v16 = vld [vmem:[#allocation8 + $0x880] ss:$8 sps:$4 sm:$0xff]  }
 0x2cd   :  { %6496 = vmatprep.subr.bf16.mxu1 %v9736_v19  ;;  %6957 = vmatmul.mubr.bf16.vlgmr.msra.gmra.mrb[0].mxu0 %v1248_v47  ;;  %v649_v18 = vmul.f32 %v11649_v6, %v12323_v54  ;;  %v9773_v19 = vld [vmem:[#allocation8 + $0x1370] ss:$8 sps:$4 sm:$0xff]   ;;  %v9781_v47 = vld [vmem:[#allocation8 + $0x1384] ss:$8 sps:$4 sm:$0xff]  }
 0x2ce   :  { %6968 = vmatpush1.bf16.msra.mxu0 %v9731_v43  ;;  %6999 = vmatprep.mubr.bf16.mxu0 %v1324_v61  ;;  %v12324_v43 = vld [vmem:[#allocation35_spill] sm:$0xff] }
 0x2cf   :  { %6969 = vmatprep.subr.bf16.mxu0 %v9739_v27  ;;  %v652_v61 = vmul.f32 %v11649_v6, %v12324_v43  ;;  %v657_v27 = vadd.f32 %v11668_v58, %v649_v18  ;;  %v9782_v6 = vld [vmem:[#allocation8 + $0x890] ss:$8 sps:$4 sm:$0xff]   ;;  %v1201_v18 = vmul.f32 %v12319_v42, %v10935_v35 }
 0x2d0   :  { %6497 = vmatpush1.bf16.msra.mxu1 %v9734_v30  ;;  %v9784_v30 = vld [vmem:[#allocation8 + $0x894] ss:$8 sps:$4 sm:$0xff]  }
 0x2d1   :  { %6498 = vmatprep.subr.bf16.mxu1 %v9742_v56  ;;  %v12325_v56 = vld [vmem:[#allocation34_spill] sm:$0xff] }
 0x2d2   :  { %6970 = vmatpush1.bf16.msra.mxu0 %v9737_v1  ;;  %v665_v1 = vmul.f32 %v11671_v53, %v12325_v56 }
 0x2d3   :  { %6971 = vmatprep.subr.bf16.mxu0 %v9745_v62  ;;  %v11854_v62 = vstv %s7927_s6 }
 0x2d4   :  { %6499 = vmatpush1.bf16.msra.mxu1 %v9740_v3  ;;  %v1182_v3 = vmul.f32 %v11655_v55, %v10928_v8 }
 0x2d5   :  { %6500 = vmatprep.subr.bf16.mxu1 %v9748_v9  ;;  %v9779_v9 = vld [vmem:[#allocation8 + $0x1380] ss:$8 sps:$4 sm:$0xff]  }
 0x2d6   :  { %6972 = vmatpush1.bf16.msra.mxu0 %v9743_v24  ;;  %v9787_v24 = vld [vmem:[#allocation8 + $0x1394] ss:$8 sps:$4 sm:$0xff]  }
 0x2d7   :  { %6973 = vmatprep.subr.bf16.mxu0 %v9751_v22  ;;  %v12326_v22 = vld [vmem:[#allocation36_spill] sm:$0xff] }
 0x2d8   :  { %6501 = vmatpush1.bf16.msra.mxu1 %v9746_v7  ;;  %v660_v7 = vadd.f32 %v11668_v58, %v652_v61  ;;  %v1190_v58 = vadd.f32 %v11686_v31, %v1182_v3  ;;  %v11898_v3 = vstv %s11856_s7 }
 0x2d9   :  { %6502 = vmatprep.subr.bf16.mxu1 %v9754_v37  ;;  %v668_v37 = vmul.f32 %v11671_v53, %v12326_v22  ;;  %v1198_v53 = vmul.f32 %v12319_v42, %v10933_v34  ;;  %v9791_v42 = vld [vmem:[#allocation8 + $0x13a0] ss:$8 sps:$4 sm:$0xff]  }
 0x2da   :  { %6974 = vmatpush1.bf16.msra.mxu0 %v9749_v17  ;;  %v1185_v17 = vmul.f32 %v11655_v55, %v10931_v33  ;;  %v11876_v55 = vstv %s11845_s29 }
 0x2db   :  { %6975 = vmatprep.subr.bf16.mxu0 %v9757_v40  ;;  %v671_v40 = vadd.f32 %v665_v1, %v657_v27  ;;  %v744_v61 = vmul.f32 %v11876_v55, %v12326_v22  ;;  %v12328_v27 = vld [vmem:[#allocation38_spill] sm:$0xff] }
 0x2dc   :  { %6503 = vmatpush1.bf16.msra.mxu1 %v9752_v63  ;;  %v9790_v63 = vld [vmem:[#allocation8 + $0x8a4] ss:$8 sps:$4 sm:$0xff]   ;;  %v693_v1 = vmul.f32 %v11726_v29, %v12328_v27 }
 0x2dd   :  { %6504 = vmatprep.subr.bf16.mxu1 %v9760_v11  ;;  %v679_v11 = vmul.f32 %v11704_v28, %v10865_v51 }
 0x2de   :  { %6976 = vmatpush1.bf16.msra.mxu0 %v9755_v23  ;;  %v725_v23 = vmul.f32 %v11854_v62, %v12323_v54 }
 0x2df   :  { %6977 = vmatprep.subr.bf16.mxu0 %v9763_v46  ;;  %v11873_v46 = vstv %s11843_s11 }
 0x2e0   :  { %6505 = vmatpush1.bf16.msra.mxu1 %v9758_v4  ;;  %v728_v4 = vmul.f32 %v11854_v62, %v12324_v43 }
 0x2e1   :  { %6506 = vmatprep.subr.bf16.mxu1 %v9766_v25  ;;  %v9785_v25 = vld [vmem:[#allocation8 + $0x1390] ss:$8 sps:$4 sm:$0xff]  }
 0x2e2   :  { %6978 = vmatpush1.bf16.msra.mxu0 %v9761_v13  ;;  %v12327_v13 = vld [vmem:[#allocation37_spill] sm:$0xff] }
 0x2e3   :  { %6979 = vmatprep.subr.bf16.mxu0 %v9769_v14  ;;  %v1258_v14 = vmul.f32 %v11761_v0, %v10928_v8 }
 0x2e4   :  { %6507 = vmatpush1.bf16.msra.mxu1 %v9764_v41  ;;  %v682_v41 = vmul.f32 %v11704_v28, %v12327_v13  ;;  %v733_v28 = vadd.f32 %v11873_v46, %v725_v23  ;;  %v9802_v23 = vld [vmem:[#allocation8 + $0x8c4] ss:$8 sps:$4 sm:$0xff]  }
 0x2e5   :  { %6508 = vmatprep.subr.bf16.mxu1 %v9772_v45  ;;  %v1261_v45 = vmul.f32 %v11761_v0, %v10931_v33 }
 0x2e6   :  { %6980 = vmatpush1.bf16.msra.mxu0 %v9767_v15  ;;  %v9788_v15 = vld [vmem:[#allocation8 + $0x8a0] ss:$8 sps:$4 sm:$0xff]  }
 0x2e7   :  { %6981 = vmatprep.subr.bf16.mxu0 %v9775_v57  ;;  %v674_v57 = vadd.f32 %v668_v37, %v660_v7  ;;  %v1277_v7 = vmul.f32 %v11787_v49, %v10935_v35  ;;  %v9794_v37 = vld [vmem:[#allocation8 + $0x8b0] ss:$8 sps:$4 sm:$0xff]  }
 0x2e8   :  { %6509 = vmatpush1.bf16.msra.mxu1 %v9770_v20  ;;  %v9793_v20 = vld [vmem:[#allocation8 + $0x13a4] ss:$8 sps:$4 sm:$0xff]  }
 0x2e9   :  { %6510 = vmatprep.subr.bf16.mxu1 %v9778_v2  ;;  %v1193_v2 = vadd.f32 %v11686_v31, %v1185_v17  ;;  %v1204_v31 = vadd.f32 %v1198_v53, %v1190_v58  ;;  %v9799_v17 = vld [vmem:[#allocation8 + $0x13b4] ss:$8 sps:$4 sm:$0xff]   ;;  %v755_v53 = vmul.f32 %v11898_v3, %v10865_v51 }
 0x2ea   :  { %6982 = vmatpush1.bf16.msra.mxu0 %v9773_v19  ;;  %v9796_v19 = vld [vmem:[#allocation8 + $0x8b4] ss:$8 sps:$4 sm:$0xff]  }
 0x2eb   :  { %6983 = vmatprep.subr.bf16.mxu0 %v9781_v47  ;;  %v741_v47 = vmul.f32 %v11876_v55, %v12325_v56 }
 0x2ec   :  { %6511 = vmatpush1.bf16.msra.mxu1 %v9776_v16  ;;  %v736_v16 = vadd.f32 %v11873_v46, %v728_v4 }
 0x2ed   :  { %6512 = vmatprep.subr.bf16.mxu1 %v9784_v30  ;;  %v685_v30 = vadd.f32 %v679_v11, %v671_v40  ;;  %v1212_v40 = vmul.f32 %v11717_v59, %v10939_v36  ;;  %v1215_v11 = vmul.f32 %v11717_v59, %v10945_v10  ;;  %v747_v4 = vadd.f32 %v741_v47, %v733_v28  ;;  %v9797_v59 = vld [vmem:[#allocation8 + $0x13b0] ss:$8 sps:$4 sm:$0xff]  }
 0x2ee   :  { %6984 = vmatpush1.bf16.msra.mxu0 %v9779_v9  ;;  %v1266_v9 = vadd.f32 %v11784_v50, %v1258_v14  ;;  %v750_v58 = vadd.f32 %v744_v61, %v736_v16  ;;  %v688_v14 = vadd.f32 %v682_v41, %v674_v57  ;;  %v1288_v28 = vmul.f32 %v11812_v44, %v10939_v36  ;;  %v9800_v41 = vld [vmem:[#allocation8 + $0x8c0] ss:$8 sps:$4 sm:$0xff]   ;;  %v9805_v57 = vld [vmem:[#allocation8 + $0x13c4] ss:$8 sps:$4 sm:$0xff]  }
 0x2ef   :  { %6985 = vmatprep.subr.bf16.mxu0 %v9787_v24  ;;  %v1274_v24 = vmul.f32 %v11787_v49, %v10933_v34  ;;  %v1291_v16 = vmul.f32 %v11812_v44, %v10945_v10  ;;  %v1229_v61 = vmul.f32 %v11733_v48, %v12321_v52 }
 0x2f0   :  { %6513 = vmatpush1.bf16.msra.mxu1 %v9782_v6  ;;  %v1269_v6 = vadd.f32 %v11784_v50, %v1261_v45  ;;  %v12329_v45 = vld [vmem:[#allocation39_spill] sm:$0xff] }
 0x2f1   :  { %6514 = vmatprep.subr.bf16.mxu1 %v9790_v63  ;;  %v1207_v63 = vadd.f32 %v1201_v18, %v1193_v2  ;;  %v11919_v2 = vstv %s11878_s12  ;;  %v1280_v18 = vadd.f32 %v1274_v24, %v1266_v9 }
 0x2f2   :  { %6986 = vmatpush1.bf16.msra.mxu0 %v9785_v25  ;;  %v758_v25 = vmul.f32 %v11898_v3, %v12327_v13  ;;  %v761_v13 = vadd.f32 %v755_v53, %v747_v4  ;;  %v772_v24 = vmul.f32 %v11919_v2, %v12329_v45  ;;  %v726_v53 = vmul.f32 %v11854_v62, %v10928_v8 }
 0x2f3   :  { %6987 = vmatprep.subr.bf16.mxu0 %v9793_v20  ;;  %v1226_v20 = vmul.f32 %v11733_v48, %v10967_v38  ;;  %v1221_v47 = vadd.f32 %v1215_v11, %v1207_v63  ;;  %v1294_v44 = vadd.f32 %v1288_v28, %v1280_v18  ;;  %v1302_v63 = vmul.f32 %v11827_v12, %v10967_v38  ;;  %v9811_v11 = vld [vmem:[#allocation8 + $0x13d4] ss:$8 sps:$4 sm:$0xff]   ;;  %v9812_v28 = vld [vmem:[#allocation8 + $0x8e0] ss:$8 sps:$4 sm:$0xff]  }
 0x2f4   :  { %6515 = vmatpush1.bf16.msra.mxu1 %v9788_v15  ;;  %v696_v15 = vmul.f32 %v11726_v29, %v12329_v45  ;;  %v1218_v29 = vadd.f32 %v1212_v40, %v1204_v31  ;;  %v764_v9 = vadd.f32 %v758_v25, %v750_v58  ;;  %v1305_v48 = vmul.f32 %v11827_v12, %v12321_v52  ;;  %v9806_v40 = vld [vmem:[#allocation8 + $0x8d0] ss:$8 sps:$4 sm:$0xff]  }
 0x2f5   :  { %6516 = vmatprep.subr.bf16.mxu1 %v9796_v19  ;;  %v1283_v19 = vadd.f32 %v1277_v7, %v1269_v6  ;;  %v769_v6 = vmul.f32 %v11919_v2, %v12328_v27  ;;  %v699_v7 = vadd.f32 %v693_v1, %v685_v30  ;;  %v1235_v58 = vadd.f32 %v1229_v61, %v1221_v47 }
 0x2f6   :  { %6988 = vmatpush1.bf16.msra.mxu0 %v9791_v42  ;;  %v9808_v42 = vld [vmem:[#allocation8 + $0x8d4] ss:$8 sps:$4 sm:$0xff]   ;;  %v1232_v4 = vadd.f32 %v1226_v20, %v1218_v29  ;;  %v778_v1 = vadd.f32 %v772_v24, %v764_v9  ;;  %v729_v25 = vmul.f32 %v11854_v62, %v10931_v33  ;;  %v1308_v18 = vadd.f32 %v1302_v63, %v1294_v44 }
 0x2f7   :  { %6989 = vmatprep.subr.bf16.mxu0 %v9799_v17  ;;  %v702_v17 = vadd.f32 %v696_v15, %v688_v14  ;;  %v1297_v31 = vadd.f32 %v1291_v16, %v1283_v19  ;;  %v775_v30 = vadd.f32 %v769_v6, %v761_v13  ;;  %v9809_v14 = vld [vmem:[#allocation8 + $0x13d0] ss:$8 sps:$4 sm:$0xff]   ;;  %v705_v15 = vmax.f32 %v699_v7, 0.0  ;;  %v9817_v16 = vld [vmem:[#allocation8 + $0x13e4] ss:$8 sps:$4 sm:$0xff]  }
 0x2f8   :  { %6517 = vmatpush1.bf16.msra.mxu1 %v9794_v37  ;;  %v9803_v37 = vld [vmem:[#allocation8 + $0x13c0] ss:$8 sps:$4 sm:$0xff]   ;;  %v734_v20 = vadd.f32 %v11873_v46, %v726_v53  ;;  %v737_v13 = vadd.f32 %v11873_v46, %v729_v25  ;;  %v1238_v29 = vmax.f32 %v1232_v4, 0.0  ;;  %v1241_v47 = vmax.f32 %v1235_v58, 0.0  ;;  %v9826_v58 = vld [vmem:[#allocation8 + $0x904] ss:$8 sps:$4 sm:$0xff]  }
 0x2f9   :  { %6518 = vmatprep.subr.bf16.mxu1 %v9802_v23  ;;  %v9814_v23 = vld [vmem:[#allocation8 + $0x8e4] ss:$8 sps:$4 sm:$0xff]   ;;  %v1311_v19 = vadd.f32 %v1305_v48, %v1297_v31  ;;  %v781_v61 = vmax.f32 %v775_v30, 0.0  ;;  %v745_v44 = vmul.f32 %v11876_v55, %v10935_v35  ;;  %v756_v6 = vmul.f32 %v11898_v3, %v10939_v36  ;;  %v9815_v7 = vld [vmem:[#allocation8 + $0x13e0] ss:$8 sps:$4 sm:$0xff]  }
 0x2fa   :  { %6990 = vmatpush1.bf16.msra.mxu0 %v9797_v59  ;;  %v708_v59 = vmax.f32 %v702_v17, 0.0  ;;  %v759_v24 = vmul.f32 %v11898_v3, %v10945_v10  ;;  %v711_v17 = vmin.f32 %v705_v15, 6.0  ;;  %v1314_v31 = vmax.f32 %v1308_v18, 0.0  ;;  %v9818_v48 = vld [vmem:[#allocation8 + $0x8f0] ss:$8 sps:$4 sm:$0xff]  }
 0x2fb   :  { %6991 = vmatprep.subr.bf16.mxu0 %v9805_v57  ;;  %v9820_v57 = vld [vmem:[#allocation8 + $0x8f4] ss:$8 sps:$4 sm:$0xff]   ;;  %v1317_v63 = vmax.f32 %v1311_v19, 0.0  ;;  %v770_v4 = vmul.f32 %v11919_v2, %v10967_v38  ;;  %v787_v30 = vmin.f32 %v781_v61, 6.0  ;;  %v773_v53 = vmul.f32 %v11919_v2, %v12321_v52  ;;  %v9821_v18 = vld [vmem:[#allocation8 + $0x13f0] ss:$8 sps:$4 sm:$0xff]  }
 0x2fc   :  { %6519 = vmatpush1.bf16.msra.mxu1 %v9800_v41  ;;  %v742_v41 = vmul.f32 %v11876_v55, %v10933_v34  ;;  %v1244_v25 = vmin.f32 %v1238_v29, 6.0  ;;  %v9832_v61 = vld [vmem:[#allocation8 + $0x914] ss:$8 sps:$4 sm:$0xff]  }
 0x2fd   :  { %6520 = vmatprep.subr.bf16.mxu1 %v9808_v42  ;;  %v784_v42 = vmax.f32 %v778_v1, 0.0 }
 0x2fe   :  { %6992 = vmatpush1.bf16.msra.mxu0 %v9803_v37  ;;  %v748_v9 = vadd.f32 %v742_v41, %v734_v20  ;;  %v714_v37 = vmin.f32 %v708_v59, 6.0  ;;  %v9824_v20 = vld [vmem:[#allocation8 + $0x900] ss:$8 sps:$4 sm:$0xff]  }
 0x2ff   :  { %6993 = vmatprep.subr.bf16.mxu0 %v9811_v11  ;;  %v751_v11 = vadd.f32 %v745_v44, %v737_v13  ;;  %v790_v1 = vmin.f32 %v784_v42, 6.0  ;;  %v9829_v13 = vld [vmem:[#allocation8 + $0x1404] ss:$8 sps:$4 sm:$0xff]  }
 0x300   :  { %6521 = vmatpush1.bf16.msra.mxu1 %v9806_v40  ;;  %v9823_v40 = vld [vmem:[#allocation8 + $0x13f4] ss:$8 sps:$4 sm:$0xff]   ;;  %v717_v19 = vpack.c.bf16 %v714_v37, %v711_v17  ;;  %v9838_v37 = vld [vmem:[#allocation8 + $0x924] ss:$8 sps:$4 sm:$0xff]  }
 0x301   :  { %6522 = vmatprep.subr.bf16.mxu1 %v9814_v23  ;;  %v762_v23 = vadd.f32 %v756_v6, %v748_v9  ;;  %v765_v15 = vadd.f32 %v759_v24, %v751_v11  ;;  %v793_v42 = vpack.c.bf16 %v790_v1, %v787_v30  ;;  %v9830_v24 = vld [vmem:[#allocation8 + $0x910] ss:$8 sps:$4 sm:$0xff]   ;;  %v9844_v11 = vld [vmem:[#allocation8 + $0x934] ss:$8 sps:$4 sm:$0xff]   ;;  %v9850_v30 = vld [vmem:[#allocation8 + $0x944] ss:$8 sps:$4 sm:$0xff]  }
 0x302   :  { %6994 = vmatpush1.bf16.msra.mxu0 %v9809_v14  ;;  %v1247_v14 = vmin.f32 %v1241_v47, 6.0  ;;  %v9827_v47 = vld [vmem:[#allocation8 + $0x1400] ss:$8 sps:$4 sm:$0xff]   ;;  %v9845_v1 = vld [vmem:[#allocation8 + $0x1430] ss:$8 sps:$4 sm:$0xff]  }
 0x303   :  { %6995 = vmatprep.subr.bf16.mxu0 %v9817_v16  ;;  %v776_v59 = vadd.f32 %v770_v4, %v762_v23  ;;  %v1323_v16 = vmin.f32 %v1317_v63, 6.0  ;;  %v779_v41 = vadd.f32 %v773_v53, %v765_v15  ;;  %v9833_v63 = vld [vmem:[#allocation8 + $0x1410] ss:$8 sps:$4 sm:$0xff]   ;;  %v9839_v23 = vld [vmem:[#allocation8 + $0x1420] ss:$8 sps:$4 sm:$0xff]  }
 0x304   :  { %6523 = vmatpush1.bf16.msra.mxu1 %v9812_v28  ;;  %v1320_v28 = vmin.f32 %v1314_v31, 6.0  ;;  %v1250_v44 = vpack.c.bf16 %v1247_v14, %v1244_v25  ;;  %v9842_v4 = vld [vmem:[#allocation8 + $0x930] ss:$8 sps:$4 sm:$0xff]   ;;  %v9848_v53 = vld [vmem:[#allocation8 + $0x940] ss:$8 sps:$4 sm:$0xff]  }
 0x305   :  { %6524 = vmatprep.subr.bf16.mxu1 %v9820_v57  ;;  %v782_v57 = vmax.f32 %v776_v59, 0.0  ;;  %v785_v9 = vmax.f32 %v779_v41, 0.0  ;;  %v9853_v25 = vld [vmem:[#allocation8 + $0x1444] ss:$8 sps:$4 sm:$0xff]   ;;  %v9856_v14 = vld [vmem:[#allocation8 + $0x954] ss:$8 sps:$4 sm:$0xff]  }
 0x306   :  { %6996 = vmatpush1.bf16.msra.mxu0 %v9815_v7  ;;  %v1326_v6 = vpack.c.bf16 %v1323_v16, %v1320_v28  ;;  %v9835_v7 = vld [vmem:[#allocation8 + $0x1414] ss:$8 sps:$4 sm:$0xff]   ;;  %v9851_v15 = vld [vmem:[#allocation8 + $0x1440] ss:$8 sps:$4 sm:$0xff]   ;;  %v9854_v59 = vld [vmem:[#allocation8 + $0x950] ss:$8 sps:$4 sm:$0xff]  }
 0x307   :  { %6997 = vmatprep.subr.bf16.mxu0 %v9823_v40  ;;  %v11953_v29 = vmin.f32 %v782_v57, 6.0  ;;  %v11955_v17 = vmin.f32 %v785_v9, 6.0  ;;  %v9841_v40 = vld [vmem:[#allocation8 + $0x1424] ss:$8 sps:$4 sm:$0xff]   ;;  %v9857_v28 = vld [vmem:[#allocation8 + $0x1450] ss:$8 sps:$4 sm:$0xff]   ;;  %v724_v57 = vmul.f32 %v11854_v62, %v12304_v60  ;;  %v727_v9 = vmul.f32 %v11854_v62, %v12305_v5 }
 0x308   :  { %6525 = vmatpush1.bf16.msra.mxu1 %v9818_v48  ;;  %v9836_v48 = vld [vmem:[#allocation8 + $0x920] ss:$8 sps:$4 sm:$0xff]   ;;  %v743_v62 = vmul.f32 %v11876_v55, %v12320_v21 }
 0x309   :  { %6537 = vmatprep.subr.bf16.mxu1 %v9826_v58  ;;  %v9847_v58 = vld [vmem:[#allocation8 + $0x1434] ss:$8 sps:$4 sm:$0xff]   ;;  %v9860_v16 = vld [vmem:[#allocation8 + $0x960] ss:$8 sps:$4 sm:$0xff]  }
 0x30a   :  { %6998 = vmatpush1.bf16.msra.mxu0 %v9821_v18  ;;  %v9859_v18 = vld [vmem:[#allocation8 + $0x1454] ss:$8 sps:$4 sm:$0xff]   ;;  %v9863_v41 = vld [vmem:[#allocation8 + $0x1460] ss:$8 sps:$4 sm:$0xff]  }
 0x30b   :  { %6527 = vmatmul.mubr.bf16.vlgmr.msra.gmra.mrb[0].mxu1 %v717_v19  ;;  %7010 = vmatprep.subr.bf16.mxu0 %v9829_v13  ;;  %v9862_v19 = vld [vmem:[#allocation8 + $0x964] ss:$8 sps:$4 sm:$0xff]   ;;  %v9868_v13 = vld [vmem:[#allocation8 + $0x974] ss:$8 sps:$4 sm:$0xff]  }
 0x30c   :  { %6538 = vmatpush1.bf16.msra.mxu1 %v9824_v20  ;;  %6569 = vmatprep.mubr.bf16.mxu1 %v793_v42  ;;  %v9865_v20 = vld [vmem:[#allocation8 + $0x1464] ss:$8 sps:$4 sm:$0xff]   ;;  %v9871_v42 = vld [vmem:[#allocation8 + $0x1474] ss:$8 sps:$4 sm:$0xff]  }
 0x30d   :  { %6539 = vmatprep.subr.bf16.mxu1 %v9832_v61  ;;  %7000 = vmatmul.mubr.bf16.vlgmr.msra.gmra.mrb[0].mxu0 %v1250_v44  ;;  %v9866_v61 = vld [vmem:[#allocation8 + $0x970] ss:$8 sps:$4 sm:$0xff]   ;;  %v9874_v44 = vld [vmem:[#allocation8 + $0x984] ss:$8 sps:$4 sm:$0xff]  }
 0x30e   :  { %7011 = vmatpush1.bf16.msra.mxu0 %v9827_v47  ;;  %7042 = vmatprep.mubr.bf16.mxu0 %v1326_v6  ;;  %v9869_v47 = vld [vmem:[#allocation8 + $0x1470] ss:$8 sps:$4 sm:$0xff]   ;;  %v9872_v6 = vld [vmem:[#allocation8 + $0x980] ss:$8 sps:$4 sm:$0xff]  }
 0x30f   :  { %7012 = vmatprep.subr.bf16.mxu0 %v9835_v7  ;;  %v740_v7 = vmul.f32 %v11876_v55, %v10991_v39 }
 0x310   :  { %6540 = vmatpush1.bf16.msra.mxu1 %v9830_v24  ;;  %v732_v24 = vadd.f32 %v11873_v46, %v724_v57  ;;  %v12332_v57 = vld [vmem:[#allocation29_spill] sm:$0xff] }
 0x311   :  { %6541 = vmatprep.subr.bf16.mxu1 %v9838_v37  ;;  %v9877_v37 = vld [vmem:[#allocation8 + $0x1484] ss:$8 sps:$4 sm:$0xff]  }
 0x312   :  { %7013 = vmatpush1.bf16.msra.mxu0 %v9833_v63  ;;  %v9880_v63 = vld [vmem:[#allocation8 + $0x994] ss:$8 sps:$4 sm:$0xff]  }
 0x313   :  { %7014 = vmatprep.subr.bf16.mxu0 %v9841_v40  ;;  %v9875_v40 = vld [vmem:[#allocation8 + $0x1480] ss:$8 sps:$4 sm:$0xff]  }
 0x314   :  { %6542 = vmatpush1.bf16.msra.mxu1 %v9836_v48  ;;  %v735_v48 = vadd.f32 %v11873_v46, %v727_v9  ;;  %v9886_v46 = vld [vmem:[#allocation8 + $0x9a4] ss:$8 sps:$4 sm:$0xff]  }
 0x315   :  { %6543 = vmatprep.subr.bf16.mxu1 %v9844_v11  ;;  %v746_v11 = vadd.f32 %v740_v7, %v732_v24  ;;  %v819_v7 = vmul.f32 %v12332_v57, %v12320_v21 }
 0x316   :  { %7015 = vmatpush1.bf16.msra.mxu0 %v9839_v23  ;;  %v754_v23 = vmul.f32 %v11898_v3, %v12314_v26  ;;  %v749_v55 = vadd.f32 %v743_v62, %v735_v48  ;;  %v1273_v48 = vmul.f32 %v11787_v49, %v12325_v56  ;;  %v1276_v62 = vmul.f32 %v11787_v49, %v12326_v22 }
 0x317   :  { %7016 = vmatprep.subr.bf16.mxu0 %v9847_v58  ;;  %v9883_v58 = vld [vmem:[#allocation8 + $0x1494] ss:$8 sps:$4 sm:$0xff]  }
 0x318   :  { %6544 = vmatpush1.bf16.msra.mxu1 %v9842_v4  ;;  %v9878_v4 = vld [vmem:[#allocation8 + $0x990] ss:$8 sps:$4 sm:$0xff]  }
 0x319   :  { %6545 = vmatprep.subr.bf16.mxu1 %v9850_v30  ;;  %v12330_v30 = vld [vmem:[#allocation27_spill] sm:$0xff] }
 0x31a   :  { %7017 = vmatpush1.bf16.msra.mxu0 %v9845_v1  ;;  %v800_v1 = vmul.f32 %v12330_v30, %v12304_v60 }
 0x31b   :  { %7018 = vmatprep.subr.bf16.mxu0 %v9853_v25  ;;  %v757_v25 = vmul.f32 %v11898_v3, %v12315_v32  ;;  %v9884_v3 = vld [vmem:[#allocation8 + $0x9a0] ss:$8 sps:$4 sm:$0xff]  }
 0x31c   :  { %6546 = vmatpush1.bf16.msra.mxu1 %v9848_v53  ;;  %v11977_v53 = vstv %s7967_s14 }
 0x31d   :  { %6547 = vmatprep.subr.bf16.mxu1 %v9856_v14  ;;  %v803_v14 = vmul.f32 %v12330_v30, %v12305_v5  ;;  %v763_v9 = vadd.f32 %v757_v25, %v749_v55  ;;  %v9895_v30 = vld [vmem:[#allocation8 + $0x14b4] ss:$8 sps:$4 sm:$0xff]   ;;  %v12335_v55 = vld [vmem:[#allocation30_spill] sm:$0xff] }
 0x31e   :  { %7019 = vmatpush1.bf16.msra.mxu0 %v9851_v15  ;;  %v1257_v15 = vmul.f32 %v11761_v0, %v12323_v54  ;;  %v830_v25 = vmul.f32 %v12335_v55, %v12314_v26 }
 0x31f   :  { %7020 = vmatprep.subr.bf16.mxu0 %v9859_v18  ;;  %v9881_v18 = vld [vmem:[#allocation8 + $0x1490] ss:$8 sps:$4 sm:$0xff]  }
 0x320   :  { %6548 = vmatpush1.bf16.msra.mxu1 %v9854_v59  ;;  %v1260_v59 = vmul.f32 %v11761_v0, %v12324_v43  ;;  %v12000_v0 = vstv %s11968_s17 }
 0x321   :  { %6549 = vmatprep.subr.bf16.mxu1 %v9862_v19  ;;  %v760_v19 = vadd.f32 %v754_v23, %v746_v11 }
 0x322   :  { %7021 = vmatpush1.bf16.msra.mxu0 %v9857_v28  ;;  %v1333_v28 = vmul.f32 %v11977_v53, %v12323_v54 }
 0x323   :  { %7022 = vmatprep.subr.bf16.mxu0 %v9865_v20  ;;  %v9889_v20 = vld [vmem:[#allocation8 + $0x14a4] ss:$8 sps:$4 sm:$0xff]  }
 0x324   :  { %6550 = vmatpush1.bf16.msra.mxu1 %v9860_v16  ;;  %v1336_v16 = vmul.f32 %v11977_v53, %v12324_v43 }
 0x325   :  { %6551 = vmatprep.subr.bf16.mxu1 %v9868_v13  ;;  %v12331_v13 = vld [vmem:[#allocation28_spill] sm:$0xff] }
 0x326   :  { %7023 = vmatpush1.bf16.msra.mxu0 %v9863_v41  ;;  %v808_v41 = vadd.f32 %v12331_v13, %v800_v1  ;;  %v811_v24 = vadd.f32 %v12331_v13, %v803_v14  ;;  %v12334_v1 = vld [vmem:[#allocation49_spill] sm:$0xff]  ;;  %v12026_v14 = vstv %s11979_s3 }
 0x327   :  { %7024 = vmatprep.subr.bf16.mxu0 %v9871_v42  ;;  %v11997_v42 = vstv %s11966_s15 }
 0x328   :  { %6552 = vmatpush1.bf16.msra.mxu1 %v9866_v61  ;;  %v816_v61 = vmul.f32 %v12332_v57, %v10991_v39  ;;  %v1341_v11 = vadd.f32 %v11997_v42, %v1333_v28  ;;  %v1344_v23 = vadd.f32 %v11997_v42, %v1336_v16  ;;  %v833_v28 = vmul.f32 %v12335_v55, %v12315_v32  ;;  %v9893_v57 = vld [vmem:[#allocation8 + $0x14b0] ss:$8 sps:$4 sm:$0xff]  }
 0x329   :  { %6553 = vmatprep.subr.bf16.mxu1 %v9874_v44  ;;  %v9892_v44 = vld [vmem:[#allocation8 + $0x9b4] ss:$8 sps:$4 sm:$0xff]  }
 0x32a   :  { %7025 = vmatpush1.bf16.msra.mxu0 %v9869_v47  ;;  %v12333_v47 = vld [vmem:[#allocation48_spill] sm:$0xff]  ;;  %v822_v49 = vadd.f32 %v816_v61, %v808_v41 }
 0x32b   :  { %7026 = vmatprep.subr.bf16.mxu0 %v9877_v37  ;;  %v1265_v37 = vadd.f32 %v11784_v50, %v1257_v15  ;;  %v9898_v15 = vld [vmem:[#allocation8 + $0x9c4] ss:$8 sps:$4 sm:$0xff]  }
 0x32c   :  { %6554 = vmatpush1.bf16.msra.mxu1 %v9872_v6  ;;  %v768_v6 = vmul.f32 %v11919_v2, %v12333_v47 }
 0x32d   :  { %6555 = vmatprep.subr.bf16.mxu1 %v9880_v63  ;;  %v1268_v63 = vadd.f32 %v11784_v50, %v1260_v59  ;;  %v9890_v50 = vld [vmem:[#allocation8 + $0x9b0] ss:$8 sps:$4 sm:$0xff]   ;;  %v1279_v16 = vadd.f32 %v1273_v48, %v1265_v37  ;;  %v836_v37 = vadd.f32 %v830_v25, %v822_v49 }
 0x32e   :  { %7027 = vmatpush1.bf16.msra.mxu0 %v9875_v40  ;;  %v9887_v40 = vld [vmem:[#allocation8 + $0x14a0] ss:$8 sps:$4 sm:$0xff]   ;;  %v774_v59 = vadd.f32 %v768_v6, %v760_v19  ;;  %v1363_v19 = vmul.f32 %v12026_v14, %v10865_v51 }
 0x32f   :  { %7028 = vmatprep.subr.bf16.mxu0 %v9883_v58  ;;  %v1352_v58 = vmul.f32 %v12000_v0, %v12326_v22  ;;  %v9896_v6 = vld [vmem:[#allocation8 + $0x9c0] ss:$8 sps:$4 sm:$0xff]  }
 0x330   :  { %6556 = vmatpush1.bf16.msra.mxu1 %v9878_v4  ;;  %v1349_v4 = vmul.f32 %v12000_v0, %v12325_v56 }
 0x331   :  { %6557 = vmatprep.subr.bf16.mxu1 %v9886_v46  ;;  %v771_v46 = vmul.f32 %v11919_v2, %v12334_v1  ;;  %v12337_v2 = vld [vmem:[#allocation37_spill] sm:$0xff]  ;;  %v1358_v31 = vadd.f32 %v1352_v58, %v1344_v23 }
 0x332   :  { %7029 = vmatpush1.bf16.msra.mxu0 %v9881_v18  ;;  %v825_v18 = vadd.f32 %v819_v7, %v811_v24  ;;  %v1355_v61 = vadd.f32 %v1349_v4, %v1341_v11  ;;  %v9901_v24 = vld [vmem:[#allocation8 + $0x14c4] ss:$8 sps:$4 sm:$0xff]  }
 0x333   :  { %7030 = vmatprep.subr.bf16.mxu0 %v9889_v20  ;;  %v12336_v20 = vld [vmem:[#allocation40_spill] sm:$0xff]  ;;  %v777_v7 = vadd.f32 %v771_v46, %v763_v9  ;;  %v1304_v9 = vmul.f32 %v11827_v12, %v12329_v45 }
 0x334   :  { %6558 = vmatpush1.bf16.msra.mxu1 %v9884_v3  ;;  %v1282_v3 = vadd.f32 %v1276_v62, %v1268_v63  ;;  %v1287_v13 = vmul.f32 %v12336_v20, %v10865_v51  ;;  %v1290_v41 = vmul.f32 %v12336_v20, %v12337_v2  ;;  %v12338_v63 = vld [vmem:[#allocation31_spill] sm:$0xff]  ;;  %v12041_v62 = vstv %s12002_s19 }
 0x335   :  { %6559 = vmatprep.subr.bf16.mxu1 %v9892_v44  ;;  %v1366_v44 = vmul.f32 %v12026_v14, %v12337_v2  ;;  %v844_v48 = vmul.f32 %v12338_v63, %v12333_v47  ;;  %v839_v11 = vadd.f32 %v833_v28, %v825_v18  ;;  %v847_v23 = vmul.f32 %v12338_v63, %v12334_v1  ;;  %v9907_v18 = vld [vmem:[#allocation8 + $0x14d4] ss:$8 sps:$4 sm:$0xff]   ;;  %v9910_v20 = vld [vmem:[#allocation8 + $0x9e4] ss:$8 sps:$4 sm:$0xff]  }
 0x336   :  { %7031 = vmatpush1.bf16.msra.mxu0 %v9887_v40  ;;  %v9904_v40 = vld [vmem:[#allocation8 + $0x9d4] ss:$8 sps:$4 sm:$0xff]   ;;  %v1293_v4 = vadd.f32 %v1287_v13, %v1279_v16  ;;  %v1296_v58 = vadd.f32 %v1290_v41, %v1282_v3  ;;  %v1369_v46 = vadd.f32 %v1363_v19, %v1355_v61  ;;  %v1377_v55 = vmul.f32 %v12041_v62, %v12328_v27 }
 0x337   :  { %7032 = vmatprep.subr.bf16.mxu0 %v9895_v30  ;;  %v9899_v30 = vld [vmem:[#allocation8 + $0x14c0] ss:$8 sps:$4 sm:$0xff]   ;;  %v1372_v49 = vadd.f32 %v1366_v44, %v1358_v31  ;;  %v1380_v25 = vmul.f32 %v12041_v62, %v12329_v45  ;;  %v780_v28 = vmax.f32 %v774_v59, 0.0  ;;  %v783_v16 = vmax.f32 %v777_v7, 0.0  ;;  %v9905_v31 = vld [vmem:[#allocation8 + $0x14d0] ss:$8 sps:$4 sm:$0xff]  }
 0x338   :  { %6560 = vmatpush1.bf16.msra.mxu1 %v9890_v50  ;;  %v1301_v50 = vmul.f32 %v11827_v12, %v12328_v27  ;;  %v850_v3 = vadd.f32 %v844_v48, %v836_v37  ;;  %v853_v12 = vadd.f32 %v847_v23, %v839_v11  ;;  %v1310_v41 = vadd.f32 %v1304_v9, %v1296_v58  ;;  %v9913_v59 = vld [vmem:[#allocation8 + $0x14e4] ss:$8 sps:$4 sm:$0xff]   ;;  %v9916_v63 = vld [vmem:[#allocation8 + $0x9f4] ss:$8 sps:$4 sm:$0xff]  }
 0x339   :  { %6561 = vmatprep.subr.bf16.mxu1 %v9898_v15  ;;  %v9902_v15 = vld [vmem:[#allocation8 + $0x9d0] ss:$8 sps:$4 sm:$0xff]   ;;  %v1383_v61 = vadd.f32 %v1377_v55, %v1369_v46  ;;  %v1386_v19 = vadd.f32 %v1380_v25, %v1372_v49  ;;  %v1334_v44 = vmul.f32 %v11977_v53, %v10928_v8  ;;  %v789_v7 = vmin.f32 %v783_v16, 6.0  ;;  %v9919_v25 = vld [vmem:[#allocation8 + $0x14f4] ss:$8 sps:$4 sm:$0xff]  }
 0x33a   :  { %7033 = vmatpush1.bf16.msra.mxu0 %v9893_v57  ;;  %v1307_v13 = vadd.f32 %v1301_v50, %v1293_v4  ;;  %v9908_v57 = vld [vmem:[#allocation8 + $0x9e0] ss:$8 sps:$4 sm:$0xff]   ;;  %v856_v37 = vmax.f32 %v850_v3, 0.0  ;;  %v859_v48 = vmax.f32 %v853_v12, 0.0  ;;  %v1316_v4 = vmax.f32 %v1310_v41, 0.0 }
 0x33b   :  { %7034 = vmatprep.subr.bf16.mxu0 %v9901_v24  ;;  %v786_v24 = vmin.f32 %v780_v28, 6.0  ;;  %v1350_v58 = vmul.f32 %v12000_v0, %v10933_v34  ;;  %v9911_v50 = vld [vmem:[#allocation8 + $0x14e0] ss:$8 sps:$4 sm:$0xff]   ;;  %v1389_v9 = vmax.f32 %v1383_v61, 0.0  ;;  %v1353_v46 = vmul.f32 %v12000_v0, %v10935_v35  ;;  %v9914_v55 = vld [vmem:[#allocation8 + $0x9f0] ss:$8 sps:$4 sm:$0xff]  }
 0x33c   :  { %6562 = vmatpush1.bf16.msra.mxu1 %v9896_v6  ;;  %v1337_v6 = vmul.f32 %v11977_v53, %v10931_v33  ;;  %v1313_v23 = vmax.f32 %v1307_v13, 0.0  ;;  %v1364_v49 = vmul.f32 %v12026_v14, %v10939_v36  ;;  %v9922_v28 = vld [vmem:[#allocation8 + $0xa04] ss:$8 sps:$4 sm:$0xff]   ;;  %v865_v16 = vmin.f32 %v859_v48, 6.0  ;;  %v9917_v61 = vld [vmem:[#allocation8 + $0x14f0] ss:$8 sps:$4 sm:$0xff]  }
 0x33d   :  { %6563 = vmatprep.subr.bf16.mxu1 %v9904_v40  ;;  %v1342_v40 = vadd.f32 %v11997_v42, %v1334_v44  ;;  %v1367_v12 = vmul.f32 %v12026_v14, %v10945_v10  ;;  %v1322_v41 = vmin.f32 %v1316_v4, 6.0 }
 0x33e   :  { %7035 = vmatpush1.bf16.msra.mxu0 %v9899_v30  ;;  %v1345_v11 = vadd.f32 %v11997_v42, %v1337_v6  ;;  %v1392_v30 = vmax.f32 %v1386_v19, 0.0  ;;  %v1319_v13 = vmin.f32 %v1313_v23, 6.0  ;;  %v1395_v19 = vmin.f32 %v1389_v9, 6.0  ;;  %v9923_v23 = vld [vmem:[#allocation8 + $0x1500] ss:$8 sps:$4 sm:$0xff]  }
 0x33f   :  { %7036 = vmatprep.subr.bf16.mxu0 %v9907_v18  ;;  %v862_v18 = vmin.f32 %v856_v37, 6.0  ;;  %v1356_v3 = vadd.f32 %v1350_v58, %v1342_v40  ;;  %v9928_v37 = vld [vmem:[#allocation8 + $0xa14] ss:$8 sps:$4 sm:$0xff]  }
 0x340   :  { %6564 = vmatpush1.bf16.msra.mxu1 %v9902_v15  ;;  %v792_v15 = vpack.c.bf16 %v789_v7, %v786_v24  ;;  %v1398_v44 = vmin.f32 %v1392_v30, 6.0  ;;  %v9920_v24 = vld [vmem:[#allocation8 + $0xa00] ss:$8 sps:$4 sm:$0xff]   ;;  %v9925_v7 = vld [vmem:[#allocation8 + $0x1504] ss:$8 sps:$4 sm:$0xff]  }
 0x341   :  { %6565 = vmatprep.subr.bf16.mxu1 %v9910_v20  ;;  %v1359_v20 = vadd.f32 %v1353_v46, %v1345_v11  ;;  %v1370_v6 = vadd.f32 %v1364_v49, %v1356_v3  ;;  %v1325_v11 = vpack.c.bf16 %v1322_v41, %v1319_v13  ;;  %v9931_v9 = vld [vmem:[#allocation8 + $0x1514] ss:$8 sps:$4 sm:$0xff]   ;;  %v9934_v46 = vld [vmem:[#allocation8 + $0xa24] ss:$8 sps:$4 sm:$0xff]   ;;  %v9935_v3 = vld [vmem:[#allocation8 + $0x1520] ss:$8 sps:$4 sm:$0xff]  }
 0x342   :  { %7037 = vmatpush1.bf16.msra.mxu0 %v9905_v31  ;;  %v1378_v31 = vmul.f32 %v12041_v62, %v10967_v38  ;;  %v1401_v4 = vpack.c.bf16 %v1398_v44, %v1395_v19  ;;  %v9946_v13 = vld [vmem:[#allocation8 + $0xa44] ss:$8 sps:$4 sm:$0xff]   ;;  %v9941_v41 = vld [vmem:[#allocation8 + $0x1530] ss:$8 sps:$4 sm:$0xff]   ;;  %v9947_v19 = vld [vmem:[#allocation8 + $0x1540] ss:$8 sps:$4 sm:$0xff]  }
 0x343   :  { %7038 = vmatprep.subr.bf16.mxu0 %v9913_v59  ;;  %v1373_v59 = vadd.f32 %v1367_v12, %v1359_v20  ;;  %v9938_v20 = vld [vmem:[#allocation8 + $0xa30] ss:$8 sps:$4 sm:$0xff]   ;;  %v9943_v12 = vld [vmem:[#allocation8 + $0x1534] ss:$8 sps:$4 sm:$0xff]  }
 0x344   :  { %6566 = vmatpush1.bf16.msra.mxu1 %v9908_v57  ;;  %v1381_v57 = vmul.f32 %v12041_v62, %v12321_v52  ;;  %v1384_v48 = vadd.f32 %v1378_v31, %v1370_v6  ;;  %v9944_v31 = vld [vmem:[#allocation8 + $0xa40] ss:$8 sps:$4 sm:$0xff]   ;;  %v9950_v44 = vld [vmem:[#allocation8 + $0xa50] ss:$8 sps:$4 sm:$0xff]   ;;  %v9955_v6 = vld [vmem:[#allocation8 + $0x1554] ss:$8 sps:$4 sm:$0xff]  }
 0x345   :  { %6567 = vmatprep.subr.bf16.mxu1 %v9916_v63  ;;  %v868_v63 = vpack.c.bf16 %v865_v16, %v862_v18  ;;  %v9937_v18 = vld [vmem:[#allocation8 + $0x1524] ss:$8 sps:$4 sm:$0xff]   ;;  %v9940_v16 = vld [vmem:[#allocation8 + $0xa34] ss:$8 sps:$4 sm:$0xff]  }
 0x346   :  { %7039 = vmatpush1.bf16.msra.mxu0 %v9911_v50  ;;  %v1387_v40 = vadd.f32 %v1381_v57, %v1373_v59  ;;  %v1390_v58 = vmax.f32 %v1384_v48, 0.0  ;;  %v9926_v50 = vld [vmem:[#allocation8 + $0xa10] ss:$8 sps:$4 sm:$0xff]   ;;  %v9949_v57 = vld [vmem:[#allocation8 + $0x1544] ss:$8 sps:$4 sm:$0xff]  }
 0x347   :  { %7040 = vmatprep.subr.bf16.mxu0 %v9919_v25  ;;  %v9929_v25 = vld [vmem:[#allocation8 + $0x1510] ss:$8 sps:$4 sm:$0xff]   ;;  %v9958_v59 = vld [vmem:[#allocation8 + $0xa64] ss:$8 sps:$4 sm:$0xff]   ;;  %v9959_v48 = vld [vmem:[#allocation8 + $0x1560] ss:$8 sps:$4 sm:$0xff]  }
 0x348   :  { %6568 = vmatpush1.bf16.msra.mxu1 %v9914_v55  ;;  %v1393_v30 = vmax.f32 %v1387_v40, 0.0  ;;  %v12071_v49 = vmin.f32 %v1390_v58, 6.0  ;;  %v9962_v40 = vld [vmem:[#allocation8 + $0xa70] ss:$8 sps:$4 sm:$0xff]   ;;  %v12077_v58 = vstv %s7972_s1 }
 0x349   :  { %6580 = vmatprep.subr.bf16.mxu1 %v9922_v28 }
 0x34a   :  { %7041 = vmatpush1.bf16.msra.mxu0 %v9917_v61  ;;  %v12073_v55 = vmin.f32 %v1393_v30, 6.0  ;;  %v9952_v61 = vld [vmem:[#allocation8 + $0xa54] ss:$8 sps:$4 sm:$0xff]  }
 0x34b   :  { %6570 = vmatmul.mubr.bf16.vlgmr.msra.gmra.mrb[0].mxu1 %v792_v15  ;;  %7053 = vmatprep.subr.bf16.mxu0 %v9925_v7  ;;  %v9932_v15 = vld [vmem:[#allocation8 + $0xa20] ss:$8 sps:$4 sm:$0xff]   ;;  %v9976_v30 = vld [vmem:[#allocation8 + $0xa94] ss:$8 sps:$4 sm:$0xff]  }
 0x34c   :  { %6581 = vmatpush1.bf16.msra.mxu1 %v9920_v24  ;;  %6612 = vmatprep.mubr.bf16.mxu1 %v868_v63  ;;  %v1402_v28 = vpack.c.bf16 %v12073_v55, %v12071_v49  ;;  %v9953_v24 = vld [vmem:[#allocation8 + $0x1550] ss:$8 sps:$4 sm:$0xff]   ;;  %v9956_v7 = vld [vmem:[#allocation8 + $0xa60] ss:$8 sps:$4 sm:$0xff]   ;;  %v9964_v63 = vld [vmem:[#allocation8 + $0xa74] ss:$8 sps:$4 sm:$0xff]  }
 0x34d   :  { %6582 = vmatprep.subr.bf16.mxu1 %v9928_v37  ;;  %7043 = vmatmul.mubr.bf16.vlgmr.msra.gmra.mrb[0].mxu0 %v1325_v11  ;;  %v9961_v37 = vld [vmem:[#allocation8 + $0x1564] ss:$8 sps:$4 sm:$0xff]   ;;  %v9967_v11 = vld [vmem:[#allocation8 + $0x1574] ss:$8 sps:$4 sm:$0xff]   ;;  %v10079_v55 = vld [vmem:[#allocation8 + $0x1750] ss:$8 sps:$4 sm:$0xff]  }
 0x34e   :  { %7054 = vmatpush1.bf16.msra.mxu0 %v9923_v23  ;;  %7085 = vmatprep.mubr.bf16.mxu0 %v1401_v4  ;;  %v9970_v23 = vld [vmem:[#allocation8 + $0xa84] ss:$8 sps:$4 sm:$0xff]   ;;  %v9965_v4 = vld [vmem:[#allocation8 + $0x1570] ss:$8 sps:$4 sm:$0xff]   ;;  %v10081_v49 = vld [vmem:[#allocation8 + $0x1754] ss:$8 sps:$4 sm:$0xff]  }
 0x34f   :  { %7055 = vmatprep.subr.bf16.mxu0 %v9931_v9  ;;  %v9973_v9 = vld [vmem:[#allocation8 + $0x1584] ss:$8 sps:$4 sm:$0xff]  }
 0x350   :  { %6583 = vmatpush1.bf16.msra.mxu1 %v9926_v50  ;;  %v9968_v50 = vld [vmem:[#allocation8 + $0xa80] ss:$8 sps:$4 sm:$0xff]  }
 0x351   :  { %6584 = vmatprep.subr.bf16.mxu1 %v9934_v46  ;;  %v1332_v46 = vmul.f32 %v11977_v53, %v12304_v60 }
 0x352   :  { %7056 = vmatpush1.bf16.msra.mxu0 %v9929_v25  ;;  %v1335_v25 = vmul.f32 %v11977_v53, %v12305_v5  ;;  %v9982_v53 = vld [vmem:[#allocation8 + $0xaa4] ss:$8 sps:$4 sm:$0xff]  }
 0x353   :  { %7057 = vmatprep.subr.bf16.mxu0 %v9937_v18  ;;  %v9971_v18 = vld [vmem:[#allocation8 + $0x1580] ss:$8 sps:$4 sm:$0xff]  }
 0x354   :  { %6585 = vmatpush1.bf16.msra.mxu1 %v9932_v15  ;;  %v1408_v15 = vmul.f32 %v12077_v58, %v12304_v60  ;;  %v1348_v60 = vmul.f32 %v12000_v0, %v10991_v39 }
 0x355   :  { %6586 = vmatprep.subr.bf16.mxu1 %v9940_v16  ;;  %v12085_v16 = vstv %s7973_s20 }
 0x356   :  { %7058 = vmatpush1.bf16.msra.mxu0 %v9935_v3  ;;  %v12087_v3 = vstv %s7974_s21 }
 0x357   :  { %7059 = vmatprep.subr.bf16.mxu0 %v9943_v12  ;;  %v9979_v12 = vld [vmem:[#allocation8 + $0x1594] ss:$8 sps:$4 sm:$0xff]  }
 0x358   :  { %6587 = vmatpush1.bf16.msra.mxu1 %v9938_v20  ;;  %v9974_v20 = vld [vmem:[#allocation8 + $0xa90] ss:$8 sps:$4 sm:$0xff]  }
 0x359   :  { %6588 = vmatprep.subr.bf16.mxu1 %v9946_v13  ;;  %v1411_v13 = vmul.f32 %v12077_v58, %v12305_v5  ;;  %v12102_v5 = vstv %s7975_s8 }
 0x35a   :  { %7060 = vmatpush1.bf16.msra.mxu0 %v9941_v41  ;;  %v1340_v41 = vadd.f32 %v11997_v42, %v1332_v46 }
 0x35b   :  { %7061 = vmatprep.subr.bf16.mxu0 %v9949_v57  ;;  %v1351_v57 = vmul.f32 %v12000_v0, %v12320_v21  ;;  %v9988_v0 = vld [vmem:[#allocation8 + $0xab4] ss:$8 sps:$4 sm:$0xff]  }
 0x35c   :  { %6589 = vmatpush1.bf16.msra.mxu1 %v9944_v31  ;;  %v1343_v31 = vadd.f32 %v11997_v42, %v1335_v25  ;;  %v1427_v42 = vmul.f32 %v12087_v3, %v12320_v21  ;;  %v9986_v21 = vld [vmem:[#allocation8 + $0xab0] ss:$8 sps:$4 sm:$0xff]  }
 0x35d   :  { %6590 = vmatprep.subr.bf16.mxu1 %v9952_v61  ;;  %v1416_v61 = vadd.f32 %v12085_v16, %v1408_v15 }
 0x35e   :  { %7062 = vmatpush1.bf16.msra.mxu0 %v9947_v19  ;;  %v1424_v19 = vmul.f32 %v12087_v3, %v10991_v39  ;;  %v1362_v39 = vmul.f32 %v12026_v14, %v12314_v26 }
 0x35f   :  { %7063 = vmatprep.subr.bf16.mxu0 %v9955_v6  ;;  %v9980_v6 = vld [vmem:[#allocation8 + $0xaa0] ss:$8 sps:$4 sm:$0xff]  }
 0x360   :  { %6591 = vmatpush1.bf16.msra.mxu1 %v9950_v44  ;;  %v9977_v44 = vld [vmem:[#allocation8 + $0x1590] ss:$8 sps:$4 sm:$0xff]  }
 0x361   :  { %6592 = vmatprep.subr.bf16.mxu1 %v9958_v59  ;;  %v9985_v59 = vld [vmem:[#allocation8 + $0x15a4] ss:$8 sps:$4 sm:$0xff]  }
 0x362   :  { %7064 = vmatpush1.bf16.msra.mxu0 %v9953_v24  ;;  %v1419_v24 = vadd.f32 %v12085_v16, %v1411_v13 }
 0x363   :  { %7065 = vmatprep.subr.bf16.mxu0 %v9961_v37  ;;  %v1357_v37 = vadd.f32 %v1351_v57, %v1343_v31 }
 0x364   :  { %6593 = vmatpush1.bf16.msra.mxu1 %v9956_v7  ;;  %v1354_v7 = vadd.f32 %v1348_v60, %v1340_v41  ;;  %v10000_v41 = vld [vmem:[#allocation8 + $0xad4] ss:$8 sps:$4 sm:$0xff]  }
 0x365   :  { %6594 = vmatprep.subr.bf16.mxu1 %v9964_v63  ;;  %v1365_v63 = vmul.f32 %v12026_v14, %v12315_v32  ;;  %v1376_v14 = vmul.f32 %v12041_v62, %v12333_v47 }
 0x366   :  { %7066 = vmatpush1.bf16.msra.mxu0 %v9959_v48  ;;  %v1430_v48 = vadd.f32 %v1424_v19, %v1416_v61  ;;  %v1368_v46 = vadd.f32 %v1362_v39, %v1354_v7  ;;  %v10003_v61 = vld [vmem:[#allocation8 + $0x15d4] ss:$8 sps:$4 sm:$0xff]   ;;  %v1412_v7 = vmul.f32 %v12077_v58, %v12324_v43  ;;  %v10001_v39 = vld [vmem:[#allocation8 + $0x15d0] ss:$8 sps:$4 sm:$0xff]  }
 0x367   :  { %7067 = vmatprep.subr.bf16.mxu0 %v9967_v11  ;;  %v9983_v11 = vld [vmem:[#allocation8 + $0x15a0] ss:$8 sps:$4 sm:$0xff]   ;;  %v1371_v25 = vadd.f32 %v1365_v63, %v1357_v37 }
 0x368   :  { %6595 = vmatpush1.bf16.msra.mxu1 %v9962_v40  ;;  %v1438_v40 = vmul.f32 %v12102_v5, %v12314_v26  ;;  %v1379_v26 = vmul.f32 %v12041_v62, %v12334_v1  ;;  %v1382_v60 = vadd.f32 %v1376_v14, %v1368_v46  ;;  %v9995_v62 = vld [vmem:[#allocation8 + $0x15c0] ss:$8 sps:$4 sm:$0xff]   ;;  %v1420_v43 = vadd.f32 %v12085_v16, %v1412_v7  ;;  %v10024_v7 = vld [vmem:[#allocation8 + $0x1624] ss:$8 sps:$4 sm:$0xff]  }
 0x369   :  { %6596 = vmatprep.subr.bf16.mxu1 %v9970_v23  ;;  %v12114_v23 = vstv %s12089_s30  ;;  %v10007_v46 = vld [vmem:[#allocation8 + $0x15e0] ss:$8 sps:$4 sm:$0xff]  }
 0x36a   :  { %7068 = vmatpush1.bf16.msra.mxu0 %v9965_v4  ;;  %v9991_v4 = vld [vmem:[#allocation8 + $0x15b4] ss:$8 sps:$4 sm:$0xff]   ;;  %v1444_v15 = vadd.f32 %v1438_v40, %v1430_v48  ;;  %v1385_v31 = vadd.f32 %v1379_v26, %v1371_v25  ;;  %v10004_v48 = vld [vmem:[#allocation8 + $0xae0] ss:$8 sps:$4 sm:$0xff]   ;;  %v10009_v40 = vld [vmem:[#allocation8 + $0x15e4] ss:$8 sps:$4 sm:$0xff]  }
 0x36b   :  { %7069 = vmatprep.subr.bf16.mxu0 %v9973_v9  ;;  %v1441_v9 = vmul.f32 %v12102_v5, %v12315_v32  ;;  %v9997_v32 = vld [vmem:[#allocation8 + $0x15c4] ss:$8 sps:$4 sm:$0xff]  }
 0x36c   :  { %6597 = vmatpush1.bf16.msra.mxu1 %v9968_v50  ;;  %v1433_v50 = vadd.f32 %v1427_v42, %v1419_v24  ;;  %v1391_v24 = vmax.f32 %v1385_v31, 0.0  ;;  %v10018_v31 = vld [vmem:[#allocation8 + $0x1604] ss:$8 sps:$4 sm:$0xff]  }
 0x36d   :  { %6598 = vmatprep.subr.bf16.mxu1 %v9976_v30  ;;  %v9994_v30 = vld [vmem:[#allocation8 + $0xac4] ss:$8 sps:$4 sm:$0xff]  }
 0x36e   :  { %7070 = vmatpush1.bf16.msra.mxu0 %v9971_v18  ;;  %v1452_v18 = vmul.f32 %v12114_v23, %v12333_v47  ;;  %v1447_v13 = vadd.f32 %v1441_v9, %v1433_v50  ;;  %v9998_v47 = vld [vmem:[#allocation8 + $0xad0] ss:$8 sps:$4 sm:$0xff]   ;;  %v1428_v9 = vmul.f32 %v12087_v3, %v12326_v22 }
 0x36f   :  { %7071 = vmatprep.subr.bf16.mxu0 %v9979_v12  ;;  %v9992_v12 = vld [vmem:[#allocation8 + $0xac0] ss:$8 sps:$4 sm:$0xff]   ;;  %v10010_v22 = vld [vmem:[#allocation8 + $0xaf0] ss:$8 sps:$4 sm:$0xff]  }
 0x370   :  { %6599 = vmatpush1.bf16.msra.mxu1 %v9974_v20  ;;  %v9989_v20 = vld [vmem:[#allocation8 + $0x15b0] ss:$8 sps:$4 sm:$0xff]   ;;  %v12126_v57 = vadd.f32 %v1452_v18, %v1444_v15  ;;  %v1434_v26 = vadd.f32 %v1428_v9, %v1420_v43  ;;  %v1456_v18 = vmul.f32 %v12114_v23, %v12329_v45  ;;  %v10042_v43 = vld [vmem:[#allocation8 + $0x1684] ss:$8 sps:$4 sm:$0xff]  }
 0x371   :  { %6600 = vmatprep.subr.bf16.mxu1 %v9982_v53  ;;  %v1455_v53 = vmul.f32 %v12114_v23, %v12334_v1  ;;  %v1413_v1 = vmul.f32 %v12077_v58, %v10931_v33  ;;  %v1429_v33 = vmul.f32 %v12087_v3, %v10935_v35  ;;  %v1443_v35 = vmul.f32 %v12102_v5, %v10945_v10  ;;  %v10049_v9 = vld [vmem:[#allocation8 + $0x16b0] ss:$8 sps:$4 sm:$0xff]  }
 0x372   :  { %7072 = vmatpush1.bf16.msra.mxu0 %v9977_v44  ;;  %v10006_v44 = vld [vmem:[#allocation8 + $0xae4] ss:$8 sps:$4 sm:$0xff]   ;;  %v1464_v42 = vmax.f32 %v12126_v57, 0.0  ;;  %v1457_v10 = vmul.f32 %v12114_v23, %v12321_v52  ;;  %v10013_v52 = vld [vmem:[#allocation8 + $0x15f0] ss:$8 sps:$4 sm:$0xff]  }
 0x373   :  { %7073 = vmatprep.subr.bf16.mxu0 %v9985_v59  ;;  %v1461_v19 = vadd.f32 %v1455_v53, %v1447_v13  ;;  %v1410_v59 = vmul.f32 %v12077_v58, %v10928_v8  ;;  %v1421_v63 = vadd.f32 %v12085_v16, %v1413_v1  ;;  %v1426_v8 = vmul.f32 %v12087_v3, %v10933_v34  ;;  %v10021_v1 = vld [vmem:[#allocation8 + $0x1614] ss:$8 sps:$4 sm:$0xff]  }
 0x374   :  { %6601 = vmatpush1.bf16.msra.mxu1 %v9980_v6  ;;  %v1388_v6 = vmax.f32 %v1382_v60, 0.0  ;;  %v1440_v34 = vmul.f32 %v12102_v5, %v10939_v36  ;;  %v1454_v36 = vmul.f32 %v12114_v23, %v10967_v38  ;;  %v1397_v38 = vmin.f32 %v1391_v24, 6.0 }
 0x375   :  { %6602 = vmatprep.subr.bf16.mxu1 %v9988_v0  ;;  %v1409_v0 = vmul.f32 %v12077_v58, %v12323_v54  ;;  %v1418_v37 = vadd.f32 %v12085_v16, %v1410_v59  ;;  %v1467_v54 = vmax.f32 %v1461_v19, 0.0  ;;  %v1425_v58 = vmul.f32 %v12087_v3, %v12325_v56  ;;  %v10015_v3 = vld [vmem:[#allocation8 + $0x15f4] ss:$8 sps:$4 sm:$0xff]  }
 0x376   :  { %7074 = vmatpush1.bf16.msra.mxu0 %v9983_v11  ;;  %v1435_v50 = vadd.f32 %v1429_v33, %v1421_v63  ;;  %v1442_v56 = vmul.f32 %v12102_v5, %v12337_v2  ;;  %v1470_v13 = vmin.f32 %v1464_v42, 6.0  ;;  %v12339_v19 = vpack.c.bf16 %v11955_v17, %v11953_v29  ;;  %v10022_v29 = vld [vmem:[#allocation8 + $0x1620] ss:$8 sps:$4 sm:$0xff]   ;;  %v10027_v17 = vld [vmem:[#allocation8 + $0x1634] ss:$8 sps:$4 sm:$0xff]  }
 0x377   :  { %7075 = vmatprep.subr.bf16.mxu0 %v9991_v4  ;;  %v1417_v11 = vadd.f32 %v12085_v16, %v1409_v0  ;;  %v1432_v4 = vadd.f32 %v1426_v8, %v1418_v37  ;;  %v1439_v16 = vmul.f32 %v12102_v5, %v10865_v51  ;;  %v1453_v51 = vmul.f32 %v12114_v23, %v12328_v27  ;;  %v10019_v0 = vld [vmem:[#allocation8 + $0x1610] ss:$8 sps:$4 sm:$0xff]   ;;  %v10030_v37 = vld [vmem:[#allocation8 + $0x1644] ss:$8 sps:$4 sm:$0xff]   ;;  %v10028_v63 = vld [vmem:[#allocation8 + $0x1640] ss:$8 sps:$4 sm:$0xff]  }
 0x378   :  { %6603 = vmatpush1.bf16.msra.mxu1 %v9986_v21  ;;  %v10012_v21 = vld [vmem:[#allocation8 + $0xaf4] ss:$8 sps:$4 sm:$0xff]   ;;  %v1449_v25 = vadd.f32 %v1443_v35, %v1435_v50  ;;  %v1473_v53 = vmin.f32 %v1467_v54, 6.0  ;;  %v10031_v33 = vld [vmem:[#allocation8 + $0x1650] ss:$8 sps:$4 sm:$0xff]  }
 0x379   :  { %6604 = vmatprep.subr.bf16.mxu1 %v9994_v30  ;;  %v1431_v30 = vadd.f32 %v1425_v58, %v1417_v11  ;;  %v1446_v14 = vadd.f32 %v1440_v34, %v1432_v4  ;;  %v10033_v8 = vld [vmem:[#allocation8 + $0x1654] ss:$8 sps:$4 sm:$0xff]   ;;  %v10037_v11 = vld [vmem:[#allocation8 + $0x1670] ss:$8 sps:$4 sm:$0xff]   ;;  %v10040_v58 = vld [vmem:[#allocation8 + $0x1680] ss:$8 sps:$4 sm:$0xff]  }
 0x37a   :  { %7076 = vmatpush1.bf16.msra.mxu0 %v9989_v20  ;;  %v1463_v5 = vadd.f32 %v1457_v10, %v1449_v25  ;;  %v1394_v20 = vmin.f32 %v1388_v6, 6.0  ;;  %v1476_v6 = vpack.c.bf16 %v1473_v53, %v1470_v13  ;;  %v10039_v54 = vld [vmem:[#allocation8 + $0x1674] ss:$8 sps:$4 sm:$0xff]   ;;  %v10043_v4 = vld [vmem:[#allocation8 + $0x1690] ss:$8 sps:$4 sm:$0xff]  }
 0x37b   :  { %7077 = vmatprep.subr.bf16.mxu0 %v9997_v32  ;;  %v1445_v15 = vadd.f32 %v1439_v16, %v1431_v30  ;;  %v1460_v2 = vadd.f32 %v1454_v36, %v1446_v14  ;;  %v10048_v50 = vld [vmem:[#allocation8 + $0x16a4] ss:$8 sps:$4 sm:$0xff]   ;;  %v10046_v34 = vld [vmem:[#allocation8 + $0x16a0] ss:$8 sps:$4 sm:$0xff]   ;;  %v10051_v35 = vld [vmem:[#allocation8 + $0x16b4] ss:$8 sps:$4 sm:$0xff]  }
 0x37c   :  { %6605 = vmatpush1.bf16.msra.mxu1 %v9992_v12  ;;  %v1448_v12 = vadd.f32 %v1442_v56, %v1434_v26  ;;  %v1469_v60 = vmax.f32 %v1463_v5, 0.0  ;;  %v1400_v45 = vpack.c.bf16 %v1397_v38, %v1394_v20  ;;  %v10054_v30 = vld [vmem:[#allocation8 + $0x16c4] ss:$8 sps:$4 sm:$0xff]   ;;  %v10052_v16 = vld [vmem:[#allocation8 + $0x16c0] ss:$8 sps:$4 sm:$0xff]  }
 0x37d   :  { %6606 = vmatprep.subr.bf16.mxu1 %v10000_v41  ;;  %v1459_v32 = vadd.f32 %v1453_v51, %v1445_v15  ;;  %v1466_v41 = vmax.f32 %v1460_v2, 0.0  ;;  %v10057_v56 = vld [vmem:[#allocation8 + $0x16d4] ss:$8 sps:$4 sm:$0xff]   ;;  %v10060_v14 = vld [vmem:[#allocation8 + $0x16e4] ss:$8 sps:$4 sm:$0xff]  }
 0x37e   :  { %7078 = vmatpush1.bf16.msra.mxu0 %v9995_v62  ;;  %v1462_v27 = vadd.f32 %v1456_v18, %v1448_v12  ;;  %v10058_v25 = vld [vmem:[#allocation8 + $0x16e0] ss:$8 sps:$4 sm:$0xff]   ;;  %v10063_v36 = vld [vmem:[#allocation8 + $0x16f4] ss:$8 sps:$4 sm:$0xff]   ;;  %v10061_v10 = vld [vmem:[#allocation8 + $0x16f0] ss:$8 sps:$4 sm:$0xff]  }
 0x37f   :  { %7079 = vmatprep.subr.bf16.mxu0 %v10003_v61  ;;  %v1465_v57 = vmax.f32 %v1459_v32, 0.0  ;;  %v12165_v62 = vmin.f32 %v1466_v41, 6.0  ;;  %v10069_v26 = vld [vmem:[#allocation8 + $0x1714] ss:$8 sps:$4 sm:$0xff]   ;;  %v10067_v15 = vld [vmem:[#allocation8 + $0x1710] ss:$8 sps:$4 sm:$0xff]  }
 0x380   :  { %6607 = vmatpush1.bf16.msra.mxu1 %v9998_v47  ;;  %v12167_v47 = vmin.f32 %v1469_v60, 6.0  ;;  %v1468_v23 = vmax.f32 %v1462_v27, 0.0  ;;  %v10072_v51 = vld [vmem:[#allocation8 + $0x1724] ss:$8 sps:$4 sm:$0xff]   ;;  %v10070_v2 = vld [vmem:[#allocation8 + $0x1720] ss:$8 sps:$4 sm:$0xff]  }
 0x381   :  { %6608 = vmatprep.subr.bf16.mxu1 %v10006_v44  ;;  %v12169_v61 = vmin.f32 %v1465_v57, 6.0  ;;  %v10016_v44 = vld [vmem:[#allocation8 + $0x1600] ss:$8 sps:$4 sm:$0xff]   ;;  %v10075_v5 = vld [vmem:[#allocation8 + $0x1734] ss:$8 sps:$4 sm:$0xff]  }
 0x382   :  { %7080 = vmatpush1.bf16.msra.mxu0 %v10001_v39  ;;  %v1478_v59 = vpack.c.bf16 %v12167_v47, %v12165_v62  ;;  %v12176_v24 = vmin.f32 %v1468_v23, 6.0  ;;  %v10025_v39 = vld [vmem:[#allocation8 + $0x1630] ss:$8 sps:$4 sm:$0xff]   ;;  %v10078_v20 = vld [vmem:[#allocation8 + $0x1744] ss:$8 sps:$4 sm:$0xff]  }
 0x383   :  { %7081 = vmatprep.subr.bf16.mxu0 %v10009_v40  ;;  %v10034_v40 = vld [vmem:[#allocation8 + $0x1660] ss:$8 sps:$4 sm:$0xff]   ;;  %v10073_v18 = vld [vmem:[#allocation8 + $0x1730] ss:$8 sps:$4 sm:$0xff]   ;;  %v10087_v53 = vld [vmem:[#allocation8 + $0x1774] ss:$8 sps:$4 sm:$0xff]  }
 0x384   :  { %6609 = vmatpush1.bf16.msra.mxu1 %v10004_v48  ;;  %v1477_v42 = vpack.c.bf16 %v12176_v24, %v12169_v61  ;;  %v10036_v48 = vld [vmem:[#allocation8 + $0x1664] ss:$8 sps:$4 sm:$0xff]   ;;  %v10076_v38 = vld [vmem:[#allocation8 + $0x1740] ss:$8 sps:$4 sm:$0xff]   ;;  %v10115_v41 = vld [vmem:[#allocation12 + $0x10] ss:$8 sps:$4 sm:$0xff]  }
 0x385   :  { %6610 = vmatprep.subr.bf16.mxu1 %v10012_v21  ;;  %v10045_v21 = vld [vmem:[#allocation8 + $0x1694] ss:$8 sps:$4 sm:$0xff]   ;;  %v10112_v12 = vld [vmem:[#allocation12] ss:$8 sps:$4 sm:$0xff]   ;;  %v10114_v32 = vld [vmem:[#allocation12 + $0x4] ss:$8 sps:$4 sm:$0xff]  }
 0x386   :  { %7082 = vmatpush1.bf16.msra.mxu0 %v10007_v46  ;;  %v10055_v46 = vld [vmem:[#allocation8 + $0x16d0] ss:$8 sps:$4 sm:$0xff]   ;;  %v10090_v27 = vld [vmem:[#allocation8 + $0x1784] ss:$8 sps:$4 sm:$0xff]   ;;  %v10088_v47 = vld [vmem:[#allocation8 + $0x1780] ss:$8 sps:$4 sm:$0xff]  }
 0x387   :  { %7083 = vmatprep.subr.bf16.mxu0 %v10015_v3  ;;  %v10064_v3 = vld [vmem:[#allocation8 + $0x1700] ss:$8 sps:$4 sm:$0xff]   ;;  %v10121_v23 = vld [vmem:[#allocation12 + $0x30] ss:$8 sps:$4 sm:$0xff]  }
 0x388   :  { %6611 = vmatpush1.bf16.msra.mxu1 %v10010_v22  ;;  %v10066_v22 = vld [vmem:[#allocation8 + $0x1704] ss:$8 sps:$4 sm:$0xff]   ;;  %v10117_v13 = vld [vmem:[#allocation12 + $0x14] ss:$8 sps:$4 sm:$0xff]   ;;  %v10157_v24 = vld [vmem:[#allocation12 + $0xf0] ss:$8 sps:$4 sm:$0xff]  }
 0x389   :  { %7396 = vmatprep.subr.bf16.mxu1 %v10114_v32  ;;  %v10120_v60 = vld [vmem:[#allocation12 + $0x24] ss:$8 sps:$4 sm:$0xff]   ;;  %v10118_v57 = vld [vmem:[#allocation12 + $0x20] ss:$8 sps:$4 sm:$0xff]   ;;  %v10123_v62 = vld [vmem:[#allocation12 + $0x34] ss:$8 sps:$4 sm:$0xff]  }
 0x38a   :  { %7084 = vmatpush1.bf16.msra.mxu0 %v10013_v52  ;;  %v10082_v52 = vld [vmem:[#allocation8 + $0x1760] ss:$8 sps:$4 sm:$0xff]  }
 0x38b   :  { %6613 = vmatmul.mubr.bf16.vlgmr.msra.gmra.mrb[0].mxu1 %v12339_v19  ;;  %7096 = vmatprep.subr.bf16.mxu0 %v10018_v31  ;;  %v10085_v31 = vld [vmem:[#allocation8 + $0x1770] ss:$8 sps:$4 sm:$0xff]  }
 0x38c   :  { %7397 = vmatpush1.bf16.msra.mxu1 %v10112_v12  ;;  %v10126_v19 = vld [vmem:[#allocation12 + $0x44] ss:$8 sps:$4 sm:$0xff]   ;;  %v10159_v61 = vld [vmem:[#allocation12 + $0xf4] ss:$8 sps:$4 sm:$0xff]  }
 0x38d   :  { %7086 = vmatmul.mubr.bf16.vlgmr.msra.gmra.mrb[0].mxu0 %v1400_v45  ;;  %7398 = vmatprep.subr.bf16.mxu1 %v10117_v13  ;;  %v10093_v45 = vld [vmem:[#allocation8 + $0x1794] ss:$8 sps:$4 sm:$0xff]  }
 0x38e   :  { %7097 = vmatpush1.bf16.msra.mxu0 %v10016_v44  ;;  %7128 = vmatprep.mubr.bf16.mxu0 %v1476_v6  ;;  %v10091_v44 = vld [vmem:[#allocation8 + $0x1790] ss:$8 sps:$4 sm:$0xff]   ;;  %v10096_v6 = vld [vmem:[#allocation8 + $0x17a4] ss:$8 sps:$4 sm:$0xff]  }
 0x38f   :  { %7098 = vmatprep.subr.bf16.mxu0 %v10021_v1  ;;  %v10129_v1 = vld [vmem:[#allocation12 + $0x54] ss:$8 sps:$4 sm:$0xff]  }
 0x390   :  { %7399 = vmatpush1.bf16.msra.mxu1 %v10115_v41 }
 0x391   :  { %7400 = vmatprep.subr.bf16.mxu1 %v10120_v60 }
 0x392   :  { %7099 = vmatpush1.bf16.msra.mxu0 %v10019_v0  ;;  %v10094_v0 = vld [vmem:[#allocation8 + $0x17a0] ss:$8 sps:$4 sm:$0xff]  }
 0x393   :  { %7100 = vmatprep.subr.bf16.mxu0 %v10024_v7  ;;  %v10099_v7 = vld [vmem:[#allocation8 + $0x17b4] ss:$8 sps:$4 sm:$0xff]  }
 0x394   :  { %7401 = vmatpush1.bf16.msra.mxu1 %v10118_v57 }
 0x395   :  { %7402 = vmatprep.subr.bf16.mxu1 %v10123_v62 }
 0x396   :  { %7101 = vmatpush1.bf16.msra.mxu0 %v10022_v29  ;;  %v10127_v29 = vld [vmem:[#allocation12 + $0x50] ss:$8 sps:$4 sm:$0xff]  }
 0x397   :  { %7102 = vmatprep.subr.bf16.mxu0 %v10027_v17  ;;  %v10132_v17 = vld [vmem:[#allocation12 + $0x64] ss:$8 sps:$4 sm:$0xff]  }
 0x398   :  { %7403 = vmatpush1.bf16.msra.mxu1 %v10121_v23 }
 0x399   :  { %7404 = vmatprep.subr.bf16.mxu1 %v10126_v19 }
 0x39a   :  { %7103 = vmatpush1.bf16.msra.mxu0 %v10025_v39  ;;  %v10097_v39 = vld [vmem:[#allocation8 + $0x17b0] ss:$8 sps:$4 sm:$0xff]  }
 0x39b   :  { %7104 = vmatprep.subr.bf16.mxu0 %v10030_v37  ;;  %v10102_v37 = vld [vmem:[#allocation8 + $0x17c4] ss:$8 sps:$4 sm:$0xff]  }
 0x39e   :  { %7105 = vmatpush1.bf16.msra.mxu0 %v10028_v63  ;;  %v10130_v63 = vld [vmem:[#allocation12 + $0x60] ss:$8 sps:$4 sm:$0xff]  }
 0x39f   :  { %7106 = vmatprep.subr.bf16.mxu0 %v10033_v8  ;;  %v10135_v8 = vld [vmem:[#allocation12 + $0x74] ss:$8 sps:$4 sm:$0xff]  }
 0x3a2   :  { %7107 = vmatpush1.bf16.msra.mxu0 %v10031_v33  ;;  %v10100_v33 = vld [vmem:[#allocation8 + $0x17c0] ss:$8 sps:$4 sm:$0xff]  }
 0x3a3   :  { %7108 = vmatprep.subr.bf16.mxu0 %v10036_v48  ;;  %v10105_v48 = vld [vmem:[#allocation8 + $0x17d4] ss:$8 sps:$4 sm:$0xff]  }
 0x3a6   :  { %7109 = vmatpush1.bf16.msra.mxu0 %v10034_v40  ;;  %v10133_v40 = vld [vmem:[#allocation12 + $0x70] ss:$8 sps:$4 sm:$0xff]  }
 0x3a7   :  { %7110 = vmatprep.subr.bf16.mxu0 %v10039_v54  ;;  %v10138_v54 = vld [vmem:[#allocation12 + $0x84] ss:$8 sps:$4 sm:$0xff]  }
 0x3aa   :  { %7111 = vmatpush1.bf16.msra.mxu0 %v10037_v11  ;;  %v10103_v11 = vld [vmem:[#allocation8 + $0x17d0] ss:$8 sps:$4 sm:$0xff]  }
 0x3ab   :  { %7112 = vmatprep.subr.bf16.mxu0 %v10042_v43  ;;  %v10108_v43 = vld [vmem:[#allocation8 + $0x17e4] ss:$8 sps:$4 sm:$0xff]  }
 0x3ae   :  { %7113 = vmatpush1.bf16.msra.mxu0 %v10040_v58  ;;  %v10136_v58 = vld [vmem:[#allocation12 + $0x80] ss:$8 sps:$4 sm:$0xff]  }
 0x3af   :  { %7114 = vmatprep.subr.bf16.mxu0 %v10045_v21  ;;  %v10141_v21 = vld [vmem:[#allocation12 + $0x94] ss:$8 sps:$4 sm:$0xff]  }
 0x3b2   :  { %7115 = vmatpush1.bf16.msra.mxu0 %v10043_v4  ;;  %v10106_v4 = vld [vmem:[#allocation8 + $0x17e0] ss:$8 sps:$4 sm:$0xff]  }
 0x3b3   :  { %7116 = vmatprep.subr.bf16.mxu0 %v10048_v50  ;;  %v10111_v50 = vld [vmem:[#allocation8 + $0x17f4] ss:$8 sps:$4 sm:$0xff]  }
 0x3b6   :  { %7117 = vmatpush1.bf16.msra.mxu0 %v10046_v34  ;;  %v10139_v34 = vld [vmem:[#allocation12 + $0x90] ss:$8 sps:$4 sm:$0xff]  }
 0x3b7   :  { %7118 = vmatprep.subr.bf16.mxu0 %v10051_v35  ;;  %v10144_v35 = vld [vmem:[#allocation12 + $0xa4] ss:$8 sps:$4 sm:$0xff]  }
 0x3ba   :  { %7119 = vmatpush1.bf16.msra.mxu0 %v10049_v9  ;;  %v10109_v9 = vld [vmem:[#allocation8 + $0x17f0] ss:$8 sps:$4 sm:$0xff]  }
 0x3bb   :  { %7120 = vmatprep.subr.bf16.mxu0 %v10054_v30  ;;  %v10142_v30 = vld [vmem:[#allocation12 + $0xa0] ss:$8 sps:$4 sm:$0xff]  }
 0x3be   :  { %7121 = vmatpush1.bf16.msra.mxu0 %v10052_v16  ;;  %v10147_v16 = vld [vmem:[#allocation12 + $0xb4] ss:$8 sps:$4 sm:$0xff]  }
 0x3bf   :  { %7122 = vmatprep.subr.bf16.mxu0 %v10057_v56  ;;  %v10145_v56 = vld [vmem:[#allocation12 + $0xb0] ss:$8 sps:$4 sm:$0xff]  }
 0x3c2   :  { %7123 = vmatpush1.bf16.msra.mxu0 %v10055_v46  ;;  %v10150_v46 = vld [vmem:[#allocation12 + $0xc4] ss:$8 sps:$4 sm:$0xff]  }
 0x3c3   :  { %7124 = vmatprep.subr.bf16.mxu0 %v10060_v14  ;;  %v10148_v14 = vld [vmem:[#allocation12 + $0xc0] ss:$8 sps:$4 sm:$0xff]  }
 0x3c6   :  { %7125 = vmatpush1.bf16.msra.mxu0 %v10058_v25 }
 0x3c7   :  { %7126 = vmatprep.subr.bf16.mxu0 %v10063_v36 }
 0x3ca   :  { %7127 = vmatpush1.bf16.msra.mxu0 %v10061_v10 }
 0x3cb   :  { %7139 = vmatprep.subr.bf16.mxu0 %v10066_v22  ;;  %v10153_v22 = vld [vmem:[#allocation12 + $0xd4] ss:$8 sps:$4 sm:$0xff]  }
 0x3cd   :  { %7129 = vmatmul.mubr.bf16.vlgmr.msra.gmra.mrb[0].mxu0 %v1402_v28  ;;  %v10084_v28 = vld [vmem:[#allocation8 + $0x1764] ss:$8 sps:$4 sm:$0xff]  }
 0x3ce   :  { %7140 = vmatpush1.bf16.msra.mxu0 %v10064_v3  ;;  %7171 = vmatprep.mubr.bf16.mxu0 %v1478_v59  ;;  %v10124_v59 = vld [vmem:[#allocation12 + $0x40] ss:$8 sps:$4 sm:$0xff]  }
 0x3cf   :  { %7141 = vmatprep.subr.bf16.mxu0 %v10069_v26  ;;  %7405 = vmatpush1.bf16.msra.mxu1 %v10124_v59  ;;  %v10151_v26 = vld [vmem:[#allocation12 + $0xd0] ss:$8 sps:$4 sm:$0xff]  }
 0x3d0   :  { %7406 = vmatprep.subr.bf16.mxu1 %v10129_v1 }
 0x3d2   :  { %7142 = vmatpush1.bf16.msra.mxu0 %v10067_v15  ;;  %v10156_v15 = vld [vmem:[#allocation12 + $0xe4] ss:$8 sps:$4 sm:$0xff]  }
 0x3d3   :  { %7143 = vmatprep.subr.bf16.mxu0 %v10072_v51  ;;  %7407 = vmatpush1.bf16.msra.mxu1 %v10127_v29  ;;  %v10154_v51 = vld [vmem:[#allocation12 + $0xe0] ss:$8 sps:$4 sm:$0xff]  }
 0x3d4   :  { %7408 = vmatprep.subr.bf16.mxu1 %v10132_v17  ;;  %v10160_v29 = vld [vmem:[#allocation15] ss:$8 sps:$4 sm:$0xff]   ;;  %v10165_v17 = vld [vmem:[#allocation15 + $0x14] ss:$8 sps:$4 sm:$0xff]  }
 0x3d6   :  { %7144 = vmatpush1.bf16.msra.mxu0 %v10070_v2  ;;  %v2300_v2 = vlaneseq }
 0x3d7   :  { %7145 = vmatprep.subr.bf16.mxu0 %v10075_v5  ;;  %7409 = vmatpush1.bf16.msra.mxu1 %v10130_v63  ;;  %v10166_v63 = vld [vmem:[#allocation15 + $0x20] ss:$8 sps:$4 sm:$0xff]  }
 0x3d8   :  { %7410 = vmatprep.subr.bf16.mxu1 %v10135_v8  ;;  %v2301_v5 = vshrl.u32 %v2300_v2, 7  ;;  %v10171_v8 = vld [vmem:[#allocation15 + $0x34] ss:$8 sps:$4 sm:$0xff]  }
 0x3da   :  { %7146 = vmatpush1.bf16.msra.mxu0 %v10073_v18  ;;  %v12189_v18 = vsub.s32 0, %v2301_v5 }
 0x3db   :  { %7147 = vmatprep.subr.bf16.mxu0 %v10078_v20  ;;  %7411 = vmatpush1.bf16.msra.mxu1 %v10133_v40  ;;  %v2298_v20 = vld [vmem:[#allocation10] sm:$0x3]  ;;  %v10172_v40 = vld [vmem:[#allocation15 + $0x40] ss:$8 sps:$4 sm:$0xff]  }
 0x3dc   :  { %7412 = vmatprep.subr.bf16.mxu1 %v10138_v54  ;;  %v10177_v54 = vld [vmem:[#allocation15 + $0x54] ss:$8 sps:$4 sm:$0xff]  }
 0x3de   :  { %7148 = vmatpush1.bf16.msra.mxu0 %v10076_v38  ;;  %v12191_v38 = vsub.s32 1, %v2301_v5 }
 0x3df   :  { %7149 = vmatprep.subr.bf16.mxu0 %v10081_v49  ;;  %7413 = vmatpush1.bf16.msra.mxu1 %v10136_v58  ;;  %v2303_v49 = vrot.slane %v2298_v20, %v12189_v18  ;;  %v10178_v58 = vld [vmem:[#allocation15 + $0x60] ss:$8 sps:$4 sm:$0xff]  }
 0x3e0   :  { %7414 = vmatprep.subr.bf16.mxu1 %v10141_v21  ;;  %v10183_v21 = vld [vmem:[#allocation15 + $0x74] ss:$8 sps:$4 sm:$0xff]  }
 0x3e2   :  { %7150 = vmatpush1.bf16.msra.mxu0 %v10079_v55  ;;  %v2307_v55 = vrot.slane %v2298_v20, %v12191_v38 }
 0x3e3   :  { %7151 = vmatprep.subr.bf16.mxu0 %v10084_v28  ;;  %7415 = vmatpush1.bf16.msra.mxu1 %v10139_v34  ;;  %v10184_v34 = vld [vmem:[#allocation15 + $0x80] ss:$8 sps:$4 sm:$0xff]  }
 0x3e4   :  { %7416 = vmatprep.subr.bf16.mxu1 %v10144_v35  ;;  %v10189_v35 = vld [vmem:[#allocation15 + $0x94] ss:$8 sps:$4 sm:$0xff]  }
 0x3e6   :  { %7152 = vmatpush1.bf16.msra.mxu0 %v10082_v52 }
 0x3e7   :  { %7153 = vmatprep.subr.bf16.mxu0 %v10087_v53  ;;  %7417 = vmatpush1.bf16.msra.mxu1 %v10142_v30  ;;  %v10192_v30 = vld [vmem:[#allocation15 + $0xa4] ss:$8 sps:$4 sm:$0xff]  }
 0x3e8   :  { %7418 = vmatprep.subr.bf16.mxu1 %v10147_v16  ;;  %v10190_v16 = vld [vmem:[#allocation15 + $0xa0] ss:$8 sps:$4 sm:$0xff]  }
 0x3ea   :  { %7154 = vmatpush1.bf16.msra.mxu0 %v10085_v31 }
 0x3eb   :  { %7155 = vmatprep.subr.bf16.mxu0 %v10090_v27  ;;  %7419 = vmatpush1.bf16.msra.mxu1 %v10145_v56  ;;  %v10195_v56 = vld [vmem:[#allocation15 + $0xb4] ss:$8 sps:$4 sm:$0xff]  }
 0x3ec   :  { %7420 = vmatprep.subr.bf16.mxu1 %v10150_v46  ;;  %v10193_v46 = vld [vmem:[#allocation15 + $0xb0] ss:$8 sps:$4 sm:$0xff]  }
 0x3ee   :  { %7156 = vmatpush1.bf16.msra.mxu0 %v10088_v47 }
 0x3ef   :  { %7157 = vmatprep.subr.bf16.mxu0 %v10093_v45  ;;  %7421 = vmatpush1.bf16.msra.mxu1 %v10148_v14  ;;  %v10198_v14 = vld [vmem:[#allocation15 + $0xc4] ss:$8 sps:$4 sm:$0xff]  }
 0x3f0   :  { %7422 = vmatprep.subr.bf16.mxu1 %v10153_v22  ;;  %v10204_v22 = vld [vmem:[#allocation15 + $0xe4] ss:$8 sps:$4 sm:$0xff]  }
 0x3f2   :  { %7158 = vmatpush1.bf16.msra.mxu0 %v10091_v44 }
 0x3f3   :  { %7159 = vmatprep.subr.bf16.mxu0 %v10096_v6  ;;  %7423 = vmatpush1.bf16.msra.mxu1 %v10151_v26  ;;  %v10207_v26 = vld [vmem:[#allocation15 + $0xf4] ss:$8 sps:$4 sm:$0xff]  }
 0x3f4   :  { %7424 = vmatprep.subr.bf16.mxu1 %v10156_v15  ;;  %v10205_v15 = vld [vmem:[#allocation15 + $0xf0] ss:$8 sps:$4 sm:$0xff]  }
 0x3f6   :  { %7160 = vmatpush1.bf16.msra.mxu0 %v10094_v0 }
 0x3f7   :  { %7161 = vmatprep.subr.bf16.mxu0 %v10099_v7  ;;  %7425 = vmatpush1.bf16.msra.mxu1 %v10154_v51  ;;  %v10208_v51 = vld [vmem:[#allocation18 + $0x40] sm:$0xff]  }
 0x3f8   :  { %7426 = vmatprep.subr.bf16.mxu1 %v10159_v61  ;;  %v7224_v61 = vld [vmem:[#allocation13] sm:$0x3] }
 0x3fa   :  { %7162 = vmatpush1.bf16.msra.mxu0 %v10097_v39  ;;  %v10163_v39 = vld [vmem:[#allocation15 + $0x10] ss:$8 sps:$4 sm:$0xff]  }
 0x3fb   :  { %7163 = vmatprep.subr.bf16.mxu0 %v10102_v37  ;;  %7427 = vmatpush1.bf16.msra.mxu1 %v10157_v24  ;;  %v10168_v37 = vld [vmem:[#allocation15 + $0x24] ss:$8 sps:$4 sm:$0xff]   ;;  %v7229_v24 = vrot.slane %v7224_v61, %v12189_v18 }
 0x3fe   :  { %7164 = vmatpush1.bf16.msra.mxu0 %v10100_v33  ;;  %v10169_v33 = vld [vmem:[#allocation15 + $0x30] ss:$8 sps:$4 sm:$0xff]  }
 0x3ff   :  { %7165 = vmatprep.subr.bf16.mxu0 %v10105_v48  ;;  %v10174_v48 = vld [vmem:[#allocation15 + $0x44] ss:$8 sps:$4 sm:$0xff]  }
 0x402   :  { %7166 = vmatpush1.bf16.msra.mxu0 %v10103_v11  ;;  %v10175_v11 = vld [vmem:[#allocation15 + $0x50] ss:$8 sps:$4 sm:$0xff]  }
 0x403   :  { %7167 = vmatprep.subr.bf16.mxu0 %v10108_v43  ;;  %v10180_v43 = vld [vmem:[#allocation15 + $0x64] ss:$8 sps:$4 sm:$0xff]  }
 0x406   :  { %7168 = vmatpush1.bf16.msra.mxu0 %v10106_v4  ;;  %v10181_v4 = vld [vmem:[#allocation15 + $0x70] ss:$8 sps:$4 sm:$0xff]  }
 0x407   :  { %7169 = vmatprep.subr.bf16.mxu0 %v10111_v50  ;;  %v10186_v50 = vld [vmem:[#allocation15 + $0x84] ss:$8 sps:$4 sm:$0xff]  }
 0x40a   :  { %7170 = vmatpush1.bf16.msra.mxu0 %v10109_v9  ;;  %v10187_v9 = vld [vmem:[#allocation15 + $0x90] ss:$8 sps:$4 sm:$0xff]  }
 0x40d   :  { %7172 = vmatmul.mubr.bf16.vlgmr.msra.gmra.mrb[0].mxu0 %v1477_v42  ;;  %v10162_v42 = vld [vmem:[#allocation15 + $0x4] ss:$8 sps:$4 sm:$0xff]  }
 0x40e   :  { %7653 = vmatprep.subr.bf16.mxu1 %v10162_v42  ;;  %v7233_v42 = vrot.slane %v7224_v61, %v12191_v38 }
 0x45e   :  { %v6614_v25 = vpop.f32.mrb[0].mxu1 }
 0x45f   :  { %v6616_v36 = vpop.f32.mrb[1].mxu1  ;;  %v8848_v28 = vadd.f32 %v6614_v25, %v2303_v49  ;;  %v10196_v25 = vld [vmem:[#allocation15 + $0xc0] ss:$8 sps:$4 sm:$0xff]  }
 0x460   :  { %v6618_v10 = vpop.f32.mrb[2].mxu1  ;;  %v8850_v12 = vadd.f32 %v6616_v36, %v2307_v55  ;;  %v10201_v36 = vld [vmem:[#allocation15 + $0xd4] ss:$8 sps:$4 sm:$0xff]  }
 0x461   :  { %v6620_v3 = vpop.f32.mrb[3].mxu1  ;;  %v8852_v52 = vadd.f32 %v6618_v10, %v2303_v49  ;;  %v10199_v10 = vld [vmem:[#allocation15 + $0xd0] ss:$8 sps:$4 sm:$0xff]  }
 0x462   :  { %v8854_v41 = vadd.f32 %v6620_v3, %v2307_v55  ;;  %v10202_v3 = vld [vmem:[#allocation15 + $0xe0] ss:$8 sps:$4 sm:$0xff]  }
 0x4e0   :  { %v7173_v32 = vpop.f32.mrb[0].mxu0 }
 0x4e1   :  { %v8849_v13 = vadd.f32 %v8848_v28, %v7173_v32  ;;  %v7175_v53 = vpop.f32.mrb[1].mxu0 }
 0x4e2   :  { %v8851_v60 = vadd.f32 %v8850_v12, %v7175_v53  ;;  %v7177_v31 = vpop.f32.mrb[2].mxu0 }
 0x4e3   :  { %v7182_v27 = vmax.f32 %v8849_v13, 0.0  ;;  %v8853_v57 = vadd.f32 %v8852_v52, %v7177_v31  ;;  %v7179_v62 = vpop.f32.mrb[3].mxu0 }
 0x4e4   :  { %v7183_v47 = vmax.f32 %v8851_v60, 0.0  ;;  %v8855_v45 = vadd.f32 %v8854_v41, %v7179_v62 }
 0x4e5   :  { %v7184_v23 = vmax.f32 %v8853_v57, 0.0  ;;  %v7186_v44 = vmin.f32 %v7182_v27, 6.0 }
 0x4e6   :  { %v7185_v19 = vmax.f32 %v8855_v45, 0.0  ;;  %v7187_v59 = vmin.f32 %v7183_v47, 6.0  ;;  %v10209_v45 = vld [vmem:[#allocation18] sm:$0xff]  }
 0x4e7   :  { %v7188_v6 = vmin.f32 %v7184_v23, 6.0  ;;  %v10210_v23 = vld [vmem:[#allocation18 + $0x48] sm:$0xff]  }
 0x4e8   :  { %v7189_v1 = vmin.f32 %v7185_v19, 6.0  ;;  %v10211_v19 = vld [vmem:[#allocation18 + $0x8] sm:$0xff]  }
 0x4e9   :  { %v7190_v0 = vpack.c.bf16 %v7188_v6, %v7186_v44  ;;  %v10212_v44 = vld [vmem:[#allocation18 + $0x50] sm:$0xff]  }
 0x4ea   :  { %v7191_v7 = vpack.c.bf16 %v7189_v1, %v7187_v59  ;;  %v10213_v6 = vld [vmem:[#allocation18 + $0x10] sm:$0xff]   ;;  %v10214_v59 = vld [vmem:[#allocation18 + $0x58] sm:$0xff]  }
 0x4eb   :  { %v10215_v1 = vld [vmem:[#allocation18 + $0x18] sm:$0xff]  }
 0x4ec   :  { %7428 = vmatprep.mubr.bf16.mxu1 %v7191_v7  ;;  %v10217_v7 = vld [vmem:[#allocation18 + $0x20] sm:$0xff]  }
 0x4ed   :  { %7429 = vmatmul.mubr.bf16.vlgmr.msra.gmra.mrb[4].mxu1 %v7190_v0  ;;  %v10216_v0 = vld [vmem:[#allocation18 + $0x60] sm:$0xff]  }
 0x4ee   :  { %7654 = vmatpush1.bf16.msra.mxu1 %v10160_v29  ;;  %v10218_v29 = vld [vmem:[#allocation18 + $0x68] sm:$0xff]  }
 0x4ef   :  { %7655 = vmatprep.subr.bf16.mxu1 %v10165_v17  ;;  %v10219_v17 = vld [vmem:[#allocation18 + $0x28] sm:$0xff]  }
 0x4f2   :  { %7656 = vmatpush1.bf16.msra.mxu1 %v10163_v39  ;;  %v10220_v39 = vld [vmem:[#allocation18 + $0x70] sm:$0xff]  }
 0x4f3   :  { %7657 = vmatprep.subr.bf16.mxu1 %v10168_v37  ;;  %v10221_v37 = vld [vmem:[#allocation18 + $0x30] sm:$0xff]  }
 0x4f6   :  { %7658 = vmatpush1.bf16.msra.mxu1 %v10166_v63  ;;  %v10222_v63 = vld [vmem:[#allocation18 + $0x78] sm:$0xff]  }
 0x4f7   :  { %7659 = vmatprep.subr.bf16.mxu1 %v10171_v8  ;;  %v10223_v8 = vld [vmem:[#allocation18 + $0x38] sm:$0xff]  }
 0x4fa   :  { %7660 = vmatpush1.bf16.msra.mxu1 %v10169_v33  ;;  %v7481_v33 = vld [vmem:[#allocation16] sm:$0x3] }
 0x4fb   :  { %7661 = vmatprep.subr.bf16.mxu1 %v10174_v48  ;;  %v7486_v48 = vrot.slane %v7481_v33, %v12189_v18 }
 0x4fe   :  { %7662 = vmatpush1.bf16.msra.mxu1 %v10172_v40  ;;  %v7490_v40 = vrot.slane %v7481_v33, %v12191_v38 }
 0x4ff   :  { %7663 = vmatprep.subr.bf16.mxu1 %v10177_v54 }
 0x502   :  { %7664 = vmatpush1.bf16.msra.mxu1 %v10175_v11 }
 0x503   :  { %7665 = vmatprep.subr.bf16.mxu1 %v10180_v43 }
 0x506   :  { %7666 = vmatpush1.bf16.msra.mxu1 %v10178_v58 }
 0x507   :  { %7667 = vmatprep.subr.bf16.mxu1 %v10183_v21 }
 0x50a   :  { %7668 = vmatpush1.bf16.msra.mxu1 %v10181_v4 }
 0x50b   :  { %7669 = vmatprep.subr.bf16.mxu1 %v10186_v50 }
 0x50e   :  { %7670 = vmatpush1.bf16.msra.mxu1 %v10184_v34 }
 0x50f   :  { %7671 = vmatprep.subr.bf16.mxu1 %v10189_v35 }
 0x512   :  { %7672 = vmatpush1.bf16.msra.mxu1 %v10187_v9 }
 0x513   :  { %7673 = vmatprep.subr.bf16.mxu1 %v10192_v30 }
 0x516   :  { %7674 = vmatpush1.bf16.msra.mxu1 %v10190_v16 }
 0x517   :  { %7675 = vmatprep.subr.bf16.mxu1 %v10195_v56 }
 0x51a   :  { %7676 = vmatpush1.bf16.msra.mxu1 %v10193_v46 }
 0x51b   :  { %7677 = vmatprep.subr.bf16.mxu1 %v10198_v14 }
 0x51e   :  { %7678 = vmatpush1.bf16.msra.mxu1 %v10196_v25 }
 0x51f   :  { %7679 = vmatprep.subr.bf16.mxu1 %v10201_v36 }
 0x522   :  { %7680 = vmatpush1.bf16.msra.mxu1 %v10199_v10  ;;  %v8809_v10 = vld [vmem:[#allocation19] ss:$0 sm:$0xff] }
 0x523   :  { %7681 = vmatprep.subr.bf16.mxu1 %v10204_v22 }
 0x526   :  { %7682 = vmatpush1.bf16.msra.mxu1 %v10202_v3 }
 0x527   :  { %7683 = vmatprep.subr.bf16.mxu1 %v10207_v26 }
 0x52a   :  { %7684 = vmatpush1.bf16.msra.mxu1 %v10205_v15 }
 0x52b   :  { %8826 = vmatprep.subr.bf16.mxu1 %v10208_v51 }
 0x5c0   :  { %v7430_v2 = vpop.f32.mrb[4].mxu1 }
 0x5c1   :  { %v7431_v5 = vadd.f32 %v7430_v2, %v7229_v24  ;;  %v7432_v20 = vpop.f32.mrb[5].mxu1 }
 0x5c2   :  { %v7433_v49 = vadd.f32 %v7432_v20, %v7233_v42  ;;  %v7434_v55 = vpop.f32.mrb[6].mxu1 }
 0x5c3   :  { %v7439_v28 = vmax.f32 %v7431_v5, 0.0  ;;  %v7435_v12 = vadd.f32 %v7434_v55, %v7229_v24  ;;  %v7436_v32 = vpop.f32.mrb[7].mxu1 }
 0x5c4   :  { %v7440_v52 = vmax.f32 %v7433_v49, 0.0  ;;  %v7437_v13 = vadd.f32 %v7436_v32, %v7233_v42 }
 0x5c5   :  { %v7441_v53 = vmax.f32 %v7435_v12, 0.0  ;;  %v7443_v60 = vmin.f32 %v7439_v28, 6.0 }
 0x5c6   :  { %v7442_v41 = vmax.f32 %v7437_v13, 0.0  ;;  %v7444_v27 = vmin.f32 %v7440_v52, 6.0 }
 0x5c7   :  { %v7445_v31 = vmin.f32 %v7441_v53, 6.0 }
 0x5c8   :  { %v7446_v57 = vmin.f32 %v7442_v41, 6.0 }
 0x5c9   :  { %v7447_v62 = vpack.c.bf16 %v7445_v31, %v7443_v60 }
 0x5ca   :  { %v7448_v47 = vpack.c.bf16 %v7446_v57, %v7444_v27 }
 0x5cc   :  { %7685 = vmatprep.mubr.bf16.mxu1 %v7448_v47 }
 0x5cd   :  { %7686 = vmatmul.mubr.bf16.vlgmr.msra.gmra.mrb[8].mxu1 %v7447_v62 }
 0x5ce   :  { %8827 = vmatpush3.bf16.msra.mxu1 %v10209_v45 }
 0x5cf   :  { %8828 = vmatprep.subr.bf16.mxu1 %v10210_v23 }
 0x5d2   :  { %8829 = vmatpush3.bf16.msra.mxu1 %v10211_v19 }
 0x5d3   :  { %8830 = vmatprep.subr.bf16.mxu1 %v10212_v44 }
 0x5d6   :  { %8831 = vmatpush3.bf16.msra.mxu1 %v10213_v6 }
 0x5d7   :  { %8832 = vmatprep.subr.bf16.mxu1 %v10214_v59 }
 0x5da   :  { %8833 = vmatpush3.bf16.msra.mxu1 %v10215_v1 }
 0x5db   :  { %8834 = vmatprep.subr.bf16.mxu1 %v10216_v0 }
 0x5de   :  { %8835 = vmatpush3.bf16.msra.mxu1 %v10217_v7 }
 0x5df   :  { %8836 = vmatprep.subr.bf16.mxu1 %v10218_v29 }
 0x5e2   :  { %8837 = vmatpush3.bf16.msra.mxu1 %v10219_v17 }
 0x5e3   :  { %8838 = vmatprep.subr.bf16.mxu1 %v10220_v39 }
 0x5e6   :  { %8839 = vmatpush3.bf16.msra.mxu1 %v10221_v37 }
 0x5e7   :  { %8840 = vmatprep.subr.bf16.mxu1 %v10222_v63 }
 0x5ea   :  { %8841 = vmatpush3.bf16.msra.mxu1 %v10223_v8 }
 0x6a0   :  { %v7687_v54 = vpop.f32.mrb[8].mxu1 }
 0x6a1   :  { %v7688_v11 = vadd.f32 %v7687_v54, %v7486_v48  ;;  %v7689_v43 = vpop.f32.mrb[9].mxu1 }
 0x6a2   :  { %v7690_v58 = vadd.f32 %v7689_v43, %v7490_v40  ;;  %v7691_v21 = vpop.f32.mrb[10].mxu1 }
 0x6a3   :  { %v7696_v4 = vmax.f32 %v7688_v11, 0.0  ;;  %v7692_v50 = vadd.f32 %v7691_v21, %v7486_v48  ;;  %v7693_v34 = vpop.f32.mrb[11].mxu1 }
 0x6a4   :  { %v7697_v35 = vmax.f32 %v7690_v58, 0.0  ;;  %v7694_v9 = vadd.f32 %v7693_v34, %v7490_v40 }
 0x6a5   :  { %v7698_v30 = vmax.f32 %v7692_v50, 0.0  ;;  %v7700_v56 = vmin.f32 %v7696_v4, 6.0 }
 0x6a6   :  { %v7699_v16 = vmax.f32 %v7694_v9, 0.0  ;;  %v7701_v14 = vmin.f32 %v7697_v35, 6.0 }
 0x6a7   :  { %v7702_v46 = vmin.f32 %v7698_v30, 6.0 }
 0x6a8   :  { %v7703_v25 = vmin.f32 %v7699_v16, 6.0 }
 0x6a9   :  { %v7704_v36 = vpack.c.bf16 %v7702_v46, %v7700_v56 }
 0x6aa   :  { %v7705_v18 = vpack.c.bf16 %v7703_v25, %v7701_v14 }
 0x6ac   :  { %7873 = vmatprep.mubr.bf16.mxu1 %v7705_v18 }
 0x6ad   :  { %7874 = vmatmul.mubr.bf16.vlgmr.msra.gmra.mrb[12].mxu1 %v7704_v36 }
 0x780   :  { %v8842_v38 = vpop.f32.mrb[12].mxu1 }
 0x781   :  { %v8843_v22 = vpop.f32.mrb[13].mxu1 }
 0x782   :  { %v8844_v3 = vadd.f32 %v8843_v22, %v8842_v38  ;;  %v8845_v26 = vpop.f32.mrb[14].mxu1 }
 0x783   :  { %v8846_v15 = vpop.f32.mrb[15].mxu1 }
 0x784   :  { %v7876_v51 = vadd.f32 %v8844_v3, %v8809_v10  ;;  %v8847_v61 = vadd.f32 %v8846_v15, %v8845_v26 }
 0x786   :  { %7882 = vst [vmem:[%s12215_s13] sm:$0xff] %v7876_v51  ;;  %v7879_v24 = vadd.f32 %v8847_v61, %v8809_v10 }
 0x788   :  { %7883 = vst [vmem:[%s12215_s13 + $0x8] sm:$0xff] %v7879_v24 }
 0x789   :  { %7888 = vsyncpa [#allocation9], 1 }
 0x78a   :  { %7889 = vsyncpa [#allocation11], 1 }
 0x78b   :  { %7890 = vsyncpa [#allocation14], 1 }
 0x78c   :  { %7891 = vsyncpa [#allocation17], 1 }
 0x78d   :  { %7892 = vsyncpa [#allocation20], 1 }

</bundles_post_ra>
